<compile_context>
chip_gen: v6e
topology: v6e:2x2x1
jax: 0.10.0
libtpu: 0.0.40
codegen_flags: <defaults>
</compile_context>

<pallas_src>
import jax
import jax.numpy as jnp
from jax.experimental import pallas as pl
from jax.experimental.pallas import tpu as pltpu

N_INPUT = 224 * 224 * 3            # 150528 = 49 * 3072
H1, H2, H3, H_OUT = 1024, 512, 256, 1
TK = 3072                          # K tile for the layer-1 reduction grid
MAX_TB = 128                       # max batch tile (weight reuse / MXU fill)
NEG_SLOPE = 0.2


def _round_up(x, m):
    return ((x + m - 1) // m) * m


def _lrelu(v):
    return jnp.where(v > 0, v, NEG_SLOPE * v)


# ---------------------------------------------------------------------------
# Fused kernel: Linear(150528->1024) with K-reduction grid; on the last K step
# the resident (tiny) head weights finish LReLU -> 512 -> LReLU -> 256 -> LReLU
# -> 1 -> Sigmoid entirely in VMEM.
# ---------------------------------------------------------------------------
def _disc_kernel(x_ref, w1_ref, b1_ref, w2_ref, b2_ref, w3_ref, b3_ref,
                 w4t_ref, b4_ref, o_ref, acc_ref):
    k = pl.program_id(1)

    @pl.when(k == 0)
    def _():
        acc_ref[...] = jnp.zeros_like(acc_ref)

    # Layer-1 partial product: (TB, TK) bf16 @ (TK, H1) bf16 -> f32 accumulate.
    acc_ref[...] += jnp.dot(x_ref[...], w1_ref[...],
                            preferred_element_type=jnp.float32)

    # Epilogue on the last K step: bias + LeakyReLU, then the fused head.
    @pl.when(k == pl.num_programs(1) - 1)
    def _():
        h1 = _lrelu(acc_ref[...] + b1_ref[...])
        h2 = _lrelu(jnp.dot(h1.astype(jnp.bfloat16), w2_ref[...],
                            preferred_element_type=jnp.float32) + b2_ref[...])
        h3 = _lrelu(jnp.dot(h2.astype(jnp.bfloat16), w3_ref[...],
                            preferred_element_type=jnp.float32) + b3_ref[...])
        # 256 -> 1 as VPU multiply + cross-lane reduce (no N=1 MXU matmul).
        z = jnp.sum(h3 * w4t_ref[...], axis=-1, keepdims=True) + b4_ref[...]
        o_ref[...] = jax.nn.sigmoid(z)


def _disc_pallas(x, w1, b1, w2, b2, w3, b3, w4t, b4, *, tb):
    b_pad, k_dim = x.shape
    return pl.pallas_call(
        _disc_kernel,
        out_shape=jax.ShapeDtypeStruct((b_pad, H_OUT), jnp.float32),
        grid_spec=pltpu.PrefetchScalarGridSpec(
            num_scalar_prefetch=0,
            grid=(b_pad // tb, k_dim // TK),
            in_specs=[
                pl.BlockSpec((tb, TK), lambda i, k: (i, k)),      # x   (bf16)
                pl.BlockSpec((TK, H1), lambda i, k: (k, 0)),      # w1  (bf16)
                pl.BlockSpec((1, H1), lambda i, k: (0, 0)),       # b1  (f32)
                pl.BlockSpec((H1, H2), lambda i, k: (0, 0)),      # w2  (bf16)
                pl.BlockSpec((1, H2), lambda i, k: (0, 0)),       # b2
                pl.BlockSpec((H2, H3), lambda i, k: (0, 0)),      # w3  (bf16)
                pl.BlockSpec((1, H3), lambda i, k: (0, 0)),       # b3
                pl.BlockSpec((1, H3), lambda i, k: (0, 0)),       # w4^T row (f32)
                pl.BlockSpec((1, H_OUT), lambda i, k: (0, 0)),    # b4
            ],
            out_specs=pl.BlockSpec((tb, H_OUT), lambda i, k: (i, 0)),
            scratch_shapes=[pltpu.VMEM((tb, H1), jnp.float32)],
        ),
        compiler_params=pltpu.CompilerParams(
            dimension_semantics=("parallel", "arbitrary"),
            vmem_limit_bytes=32 * 1024 * 1024,
        ),
    )(x, w1, b1, w2, b2, w3, b3, w4t, b4)


# ---------------------------------------------------------------------------
# Wrapper: flatten NCHW input (== torch .view(-1, n_input)), cast to bf16,
# pad batch to an adaptive tile, run the fused kernel.
# ---------------------------------------------------------------------------
@jax.jit
def discriminator_forward(x_nchw, kparams):
    b = x_nchw.shape[0]
    x = x_nchw.reshape(b, -1).astype(jnp.bfloat16)
    # Adaptive batch tile: up to MAX_TB rows of w1 reuse per weight stream.
    tb = _round_up(b, 16) if b <= MAX_TB else MAX_TB
    b_pad = _round_up(b, tb)
    x = jnp.pad(x, ((0, b_pad - b), (0, 0)))
    out = _disc_pallas(
        x, kparams["w1"], kparams["b1"], kparams["w2"], kparams["b2"],
        kparams["w3"], kparams["b3"], kparams["w4t"], kparams["b4"], tb=tb)
    return out[:b]


def init_params(key):
    """f32 master params matching torch.nn.Linear default: U(-1/sqrt(in), 1/sqrt(in))."""
    dims = [(N_INPUT, H1), (H1, H2), (H2, H3), (H3, H_OUT)]
    params = {}
    for idx, (fan_in, fan_out) in enumerate(dims, start=1):
        key, kw, kb = jax.random.split(key, 3)
        bound = 1.0 / (fan_in ** 0.5)
        params[f"w{idx}"] = jax.random.uniform(
            kw, (fan_in, fan_out), jnp.float32, -bound, bound)
        params[f"b{idx}"] = jax.random.uniform(
            kb, (1, fan_out), jnp.float32, -bound, bound)
    return params


def prepare_params(params):
    """One-time weight preprocessing for the kernel (outside the hot forward)."""
    return {
        "w1": params["w1"].astype(jnp.bfloat16),
        "b1": params["b1"],
        "w2": params["w2"].astype(jnp.bfloat16),
        "b2": params["b2"],
        "w3": params["w3"].astype(jnp.bfloat16),
        "b3": params["b3"],
        "w4t": params["w4"].T,        # (1, 256) row for the VPU reduce
        "b4": params["b4"],           # (1, 1)
    }


def reference_forward(x_nchw, params):
    """Pure-f32 reference of the torch module's eval-mode forward."""
    x = x_nchw.reshape(x_nchw.shape[0], -1).astype(jnp.float32)
    h = _lrelu(x @ params["w1"] + params["b1"])
    h = _lrelu(h @ params["w2"] + params["b2"])
    h = _lrelu(h @ params["w3"] + params["b3"])
    return jax.nn.sigmoid(h @ params["w4"] + params["b4"])


if __name__ == "__main__":
    key = jax.random.PRNGKey(0)
    key, kx = jax.random.split(key)
    # Small batch; spatial dims fixed by the module (n_input = 224*224*3).
    x = jax.random.normal(kx, (2, 3, 224, 224), dtype=jnp.float32)
    params = init_params(key)
    kparams = prepare_params(params)

    out = jax.block_until_ready(discriminator_forward(x, kparams))
    assert out.shape == (2, 1), out.shape

    ref = jax.block_until_ready(reference_forward(x, params))
    max_err = float(jnp.max(jnp.abs(out - ref)))
    # bf16 weights in the matmuls -> loose comparison against the f32 reference.
    assert max_err < 2e-2, max_err

    print("KERNEL_OK")
</pallas_src>

<mosaic_0001>
module attributes {stable_mosaic.version = 11 : i64} {
  func.func @_disc_kernel(%arg0: i32, %arg1: i32, %arg2: memref<16x3072xbf16, #tpu.memory_space<vmem>>, %arg3: memref<3072x1024xbf16, #tpu.memory_space<vmem>>, %arg4: memref<1x1024xf32, #tpu.memory_space<vmem>>, %arg5: memref<1024x512xbf16, #tpu.memory_space<vmem>>, %arg6: memref<1x512xf32, #tpu.memory_space<vmem>>, %arg7: memref<512x256xbf16, #tpu.memory_space<vmem>>, %arg8: memref<1x256xf32, #tpu.memory_space<vmem>>, %arg9: memref<1x256xf32, #tpu.memory_space<vmem>>, %arg10: memref<1x1xf32, #tpu.memory_space<vmem>>, %arg11: memref<16x1xf32, #tpu.memory_space<vmem>>, %arg12: memref<16x1024xf32, #tpu.memory_space<vmem>>) attributes {dimension_semantics = [#tpu.dimension_semantics<parallel>, #tpu.dimension_semantics<arbitrary>], iteration_bounds = array<i64: 1, 49>, scalar_prefetch = 0 : i64, scratch_operands = 1 : i64, tpu.core_type = #tpu.core_type<tc>, window_params = [{transform_indices = @transform_0, window_bounds = array<i64: 16, 3072>}, {transform_indices = @transform_1, window_bounds = array<i64: 3072, 1024>}, {pipeline_mode = #tpu.pipeline_mode<synchronous>, transform_indices = @transform_2, window_bounds = array<i64: 1, 1024>}, {pipeline_mode = #tpu.pipeline_mode<synchronous>, transform_indices = @transform_3, window_bounds = array<i64: 1024, 512>}, {pipeline_mode = #tpu.pipeline_mode<synchronous>, transform_indices = @transform_4, window_bounds = array<i64: 1, 512>}, {pipeline_mode = #tpu.pipeline_mode<synchronous>, transform_indices = @transform_5, window_bounds = array<i64: 512, 256>}, {pipeline_mode = #tpu.pipeline_mode<synchronous>, transform_indices = @transform_6, window_bounds = array<i64: 1, 256>}, {pipeline_mode = #tpu.pipeline_mode<synchronous>, transform_indices = @transform_7, window_bounds = array<i64: 1, 256>}, {pipeline_mode = #tpu.pipeline_mode<synchronous>, transform_indices = @transform_8, window_bounds = array<i64: 1, 1>}, {transform_indices = @transform_9, window_bounds = array<i64: 16, 1>}]} {
    %c0_i32 = arith.constant 0 : i32
    %0 = arith.cmpi eq, %arg1, %c0_i32 : i32
    %1 = arith.extui %0 : i1 to i32
    %c0_i32_0 = arith.constant 0 : i32
    %2 = arith.cmpi ne, %1, %c0_i32_0 : i32
    scf.if %2 {
      %cst_9 = arith.constant 0.000000e+00 : f32
      %12 = vector.broadcast %cst_9 : f32 to vector<16x1024xf32>
      %c0_10 = arith.constant 0 : index
      %c0_11 = arith.constant 0 : index
      %13 = vector.load %arg12[%c0_10, %c0_11] : memref<16x1024xf32, #tpu.memory_space<vmem>>, vector<16x1024xf32>
      tpu.vector_store %arg12[%c0_10, %c0_11], %12 {strides = array<i32>} : memref<16x1024xf32, #tpu.memory_space<vmem>>, vector<16x1024xf32>,
    } else {
    }
    %c0 = arith.constant 0 : index
    %c0_1 = arith.constant 0 : index
    %3 = vector.load %arg12[%c0, %c0_1] : memref<16x1024xf32, #tpu.memory_space<vmem>>, vector<16x1024xf32>
    %c0_2 = arith.constant 0 : index
    %c0_3 = arith.constant 0 : index
    %4 = vector.load %arg2[%c0_2, %c0_3] : memref<16x3072xbf16, #tpu.memory_space<vmem>>, vector<16x3072xbf16>
    %c0_4 = arith.constant 0 : index
    %c0_5 = arith.constant 0 : index
    %5 = vector.load %arg3[%c0_4, %c0_5] : memref<3072x1024xbf16, #tpu.memory_space<vmem>>, vector<3072x1024xbf16>
    %cst = arith.constant dense<0.000000e+00> : vector<16x1024xf32>
    %6 = tpu.matmul %4, %5, %cst {dimension_numbers = #tpu.dot_dimension_numbers<[1], [0], [0], [1], [0, 0, 1, 1], [], []>} : vector<16x3072xbf16>, vector<3072x1024xbf16>, vector<16x1024xf32> -> vector<16x1024xf32>
    %7 = arith.addf %3, %6 : vector<16x1024xf32>
    %c0_6 = arith.constant 0 : index
    %c0_7 = arith.constant 0 : index
    %8 = vector.load %arg12[%c0_6, %c0_7] : memref<16x1024xf32, #tpu.memory_space<vmem>>, vector<16x1024xf32>
    tpu.vector_store %arg12[%c0_6, %c0_7], %7 {strides = array<i32>} : memref<16x1024xf32, #tpu.memory_space<vmem>>, vector<16x1024xf32>,
    %c48_i32 = arith.constant 48 : i32
    %9 = arith.cmpi eq, %arg1, %c48_i32 : i32
    %10 = arith.extui %9 : i1 to i32
    %c0_i32_8 = arith.constant 0 : i32
    %11 = arith.cmpi ne, %10, %c0_i32_8 : i32
    scf.if %11 {
      %c0_9 = arith.constant 0 : index
      %c0_10 = arith.constant 0 : index
      %12 = vector.load %arg12[%c0_9, %c0_10] : memref<16x1024xf32, #tpu.memory_space<vmem>>, vector<16x1024xf32>
      %c0_11 = arith.constant 0 : index
      %c0_12 = arith.constant 0 : index
      %13 = vector.load %arg4[%c0_11, %c0_12] : memref<1x1024xf32, #tpu.memory_space<vmem>>, vector<1x1024xf32>
      %14 = vector.broadcast %13 : vector<1x1024xf32> to vector<16x1024xf32>
      %15 = arith.addf %12, %14 : vector<16x1024xf32>
      %cst_13 = arith.constant 0.000000e+00 : f32
      %16 = vector.broadcast %cst_13 : f32 to vector<16x1024xf32>
      %17 = arith.cmpf ogt, %15, %16 : vector<16x1024xf32>
      %cst_14 = arith.constant 2.000000e-01 : f32
      %18 = vector.broadcast %cst_14 : f32 to vector<16x1024xf32>
      %19 = arith.mulf %18, %15 : vector<16x1024xf32>
      %20 = arith.select %17, %15, %19 : vector<16x1024xi1>, vector<16x1024xf32>
      %21 = arith.truncf %20 : vector<16x1024xf32> to vector<16x1024xbf16>
      %c0_15 = arith.constant 0 : index
      %c0_16 = arith.constant 0 : index
      %22 = vector.load %arg5[%c0_15, %c0_16] : memref<1024x512xbf16, #tpu.memory_space<vmem>>, vector<1024x512xbf16>
      %cst_17 = arith.constant dense<0.000000e+00> : vector<16x512xf32>
      %23 = tpu.matmul %21, %22, %cst_17 {dimension_numbers = #tpu.dot_dimension_numbers<[1], [0], [0], [1], [0, 0, 1, 1], [], []>} : vector<16x1024xbf16>, vector<1024x512xbf16>, vector<16x512xf32> -> vector<16x512xf32>
      %c0_18 = arith.constant 0 : index
      %c0_19 = arith.constant 0 : index
      %24 = vector.load %arg6[%c0_18, %c0_19] : memref<1x512xf32, #tpu.memory_space<vmem>>, vector<1x512xf32>
      %25 = vector.broadcast %24 : vector<1x512xf32> to vector<16x512xf32>
      %26 = arith.addf %23, %25 : vector<16x512xf32>
      %cst_20 = arith.constant 0.000000e+00 : f32
      %27 = vector.broadcast %cst_20 : f32 to vector<16x512xf32>
      %28 = arith.cmpf ogt, %26, %27 : vector<16x512xf32>
      %cst_21 = arith.constant 2.000000e-01 : f32
      %29 = vector.broadcast %cst_21 : f32 to vector<16x512xf32>
      %30 = arith.mulf %29, %26 : vector<16x512xf32>
      %31 = arith.select %28, %26, %30 : vector<16x512xi1>, vector<16x512xf32>
      %32 = arith.truncf %31 : vector<16x512xf32> to vector<16x512xbf16>
      %c0_22 = arith.constant 0 : index
      %c0_23 = arith.constant 0 : index
      %33 = vector.load %arg7[%c0_22, %c0_23] : memref<512x256xbf16, #tpu.memory_space<vmem>>, vector<512x256xbf16>
      %cst_24 = arith.constant dense<0.000000e+00> : vector<16x256xf32>
      %34 = tpu.matmul %32, %33, %cst_24 {dimension_numbers = #tpu.dot_dimension_numbers<[1], [0], [0], [1], [0, 0, 1, 1], [], []>} : vector<16x512xbf16>, vector<512x256xbf16>, vector<16x256xf32> -> vector<16x256xf32>
      %c0_25 = arith.constant 0 : index
      %c0_26 = arith.constant 0 : index
      %35 = vector.load %arg8[%c0_25, %c0_26] : memref<1x256xf32, #tpu.memory_space<vmem>>, vector<1x256xf32>
      %36 = vector.broadcast %35 : vector<1x256xf32> to vector<16x256xf32>
      %37 = arith.addf %34, %36 : vector<16x256xf32>
      %cst_27 = arith.constant 0.000000e+00 : f32
      %38 = vector.broadcast %cst_27 : f32 to vector<16x256xf32>
      %39 = arith.cmpf ogt, %37, %38 : vector<16x256xf32>
      %cst_28 = arith.constant 2.000000e-01 : f32
      %40 = vector.broadcast %cst_28 : f32 to vector<16x256xf32>
      %41 = arith.mulf %40, %37 : vector<16x256xf32>
      %42 = arith.select %39, %37, %41 : vector<16x256xi1>, vector<16x256xf32>
      %c0_29 = arith.constant 0 : index
      %c0_30 = arith.constant 0 : index
      %43 = vector.load %arg9[%c0_29, %c0_30] : memref<1x256xf32, #tpu.memory_space<vmem>>, vector<1x256xf32>
      %44 = vector.broadcast %43 : vector<1x256xf32> to vector<16x256xf32>
      %45 = arith.mulf %42, %44 : vector<16x256xf32>
      %cst_31 = arith.constant dense<0.000000e+00> : vector<16xf32>
      %46 = vector.multi_reduction <add>, %45, %cst_31 [1] : vector<16x256xf32> to vector<16xf32>
      %47 = vector.shape_cast %46 : vector<16xf32> to vector<16x1xf32>
      %c0_32 = arith.constant 0 : index
      %c0_33 = arith.constant 0 : index
      %48 = vector.load %arg10[%c0_32, %c0_33] : memref<1x1xf32, #tpu.memory_space<vmem>>, vector<1x1xf32>
      %49 = vector.broadcast %48 : vector<1x1xf32> to vector<16x1xf32>
      %50 = arith.addf %47, %49 : vector<16x1xf32>
      %51 = arith.negf %50 : vector<16x1xf32>
      %52 = math.exp %51 : vector<16x1xf32>
      %cst_34 = arith.constant 1.000000e+00 : f32
      %53 = vector.broadcast %cst_34 : f32 to vector<16x1xf32>
      %54 = arith.addf %53, %52 : vector<16x1xf32>
      %55 = arith.divf %53, %54 : vector<16x1xf32>
      %c0_35 = arith.constant 0 : index
      %c0_36 = arith.constant 0 : index
      %56 = vector.load %arg11[%c0_35, %c0_36] : memref<16x1xf32, #tpu.memory_space<vmem>>, vector<16x1xf32>
      tpu.vector_store %arg11[%c0_35, %c0_36], %55 {strides = array<i32>} : memref<16x1xf32, #tpu.memory_space<vmem>>, vector<16x1xf32>,
    } else {
    }
    return
  }
  func.func @transform_0(%arg0: i32, %arg1: i32) -> (i32, i32) {
    %c0_i32 = arith.constant 0 : i32
    return %arg0, %arg1 : i32, i32
  }
  func.func @transform_1(%arg0: i32, %arg1: i32) -> (i32, i32) {
    %c0_i32 = arith.constant 0 : i32
    %c0_i32_0 = arith.constant 0 : i32
    return %arg1, %c0_i32 : i32, i32
  }
  func.func @transform_2(%arg0: i32, %arg1: i32) -> (i32, i32) {
    %c0_i32 = arith.constant 0 : i32
    %c0_i32_0 = arith.constant 0 : i32
    %c0_i32_1 = arith.constant 0 : i32
    return %c0_i32, %c0_i32_0 : i32, i32
  }
  func.func @transform_3(%arg0: i32, %arg1: i32) -> (i32, i32) {
    %c0_i32 = arith.constant 0 : i32
    %c0_i32_0 = arith.constant 0 : i32
    %c0_i32_1 = arith.constant 0 : i32
    return %c0_i32, %c0_i32_0 : i32, i32
  }
  func.func @transform_4(%arg0: i32, %arg1: i32) -> (i32, i32) {
    %c0_i32 = arith.constant 0 : i32
    %c0_i32_0 = arith.constant 0 : i32
    %c0_i32_1 = arith.constant 0 : i32
    return %c0_i32, %c0_i32_0 : i32, i32
  }
  func.func @transform_5(%arg0: i32, %arg1: i32) -> (i32, i32) {
    %c0_i32 = arith.constant 0 : i32
    %c0_i32_0 = arith.constant 0 : i32
    %c0_i32_1 = arith.constant 0 : i32
    return %c0_i32, %c0_i32_0 : i32, i32
  }
  func.func @transform_6(%arg0: i32, %arg1: i32) -> (i32, i32) {
    %c0_i32 = arith.constant 0 : i32
    %c0_i32_0 = arith.constant 0 : i32
    %c0_i32_1 = arith.constant 0 : i32
    return %c0_i32, %c0_i32_0 : i32, i32
  }
  func.func @transform_7(%arg0: i32, %arg1: i32) -> (i32, i32) {
    %c0_i32 = arith.constant 0 : i32
    %c0_i32_0 = arith.constant 0 : i32
    %c0_i32_1 = arith.constant 0 : i32
    return %c0_i32, %c0_i32_0 : i32, i32
  }
  func.func @transform_8(%arg0: i32, %arg1: i32) -> (i32, i32) {
    %c0_i32 = arith.constant 0 : i32
    %c0_i32_0 = arith.constant 0 : i32
    %c0_i32_1 = arith.constant 0 : i32
    return %c0_i32, %c0_i32_0 : i32, i32
  }
  func.func @transform_9(%arg0: i32, %arg1: i32) -> (i32, i32) {
    %c0_i32 = arith.constant 0 : i32
    %c0_i32_0 = arith.constant 0 : i32
    return %arg0, %c0_i32 : i32, i32
  }
}

</mosaic_0001>

<bundles_post_ra>
// kernel: discriminator_forward.1
= control target key start
LH: loop header
LB: loop body
LE: loop exit
PB: predicated region body
PF: predicated region fallthrough
CT: control target
= control target key end

     0   :  { %s20538_s0 = inlined_call_operand.vmem [shape: bf16[16,150528], index: 0, kind: input, shape index: {}]   ;;  %s20539_s1 = inlined_call_operand.hbm [shape: bf16[150528,1024], index: 1, kind: input, shape index: {}]   ;;  %s20540_s2 = inlined_call_operand.vmem [shape: f32[1,1024], index: 2, kind: input, shape index: {}]   ;;  %s20541_s3 = inlined_call_operand.vmem [shape: bf16[1024,512], index: 3, kind: input, shape index: {}]   ;;  %s20542_s4 = inlined_call_operand.vmem [shape: f32[1,512], index: 4, kind: input, shape index: {}]   ;;  %s20543_s5 = inlined_call_operand.vmem [shape: bf16[512,256], index: 5, kind: input, shape index: {}]   ;;  %s20544_s6 = inlined_call_operand.vmem [shape: f32[1,256], index: 6, kind: input, shape index: {}]   ;;  %s20545_s7 = inlined_call_operand.vmem [shape: f32[1,256], index: 7, kind: input, shape index: {}]   ;;  %s20546_s8 = inlined_call_operand.<no memory space> [shape: f32[1,1], index: 8, kind: input, shape index: {}]   ;;  %s20547_s9 = inlined_call_operand.vmem [shape: f32[16,1], index: 9, kind: output, shape index: {}]  }
   0x1   :  { %v14_v0 = vstv %s20546_s8 }
   0x2   :  { %15 = vst [vmem:[#allocation3] sm:$0x1] %v14_v0 }
   0x3   :  { %16 = vsyncpa [#allocation6], 0 }
   0x4   :  { %18 = vsyncpa [#allocation6 + $0x1], 0  ;;  %s17233_s11 = smov 0   ;;  %s17235_s12 = smov 0  }
   0x5   :  { %s17237_s13 = smov 0   ;;  %s17239_s14 = smov 0  }
   0x6   :  { %s17241_s15 = smov 0   ;;  %s17243_s16 = smov 0  }
   0x7 LB: > { %s14653_s8 = sadd.s32 4294967295, %s17174_s16   ;;  %s33_s17 = sadd.s32 1, %s17170_s15  ;;  %s17174_s16 = sphi %s17243_s16, %s24_s16   ;;  %s17170_s15 = sphi %s17241_s15, %s20594_s15   ;;  %s17166_s14 = sphi %s17239_s14, %s20593_s14   ;;  %s17162_s13 = sphi %s17237_s13, %s20592_s13   ;;  %s17158_s12 = sphi %s17235_s12, %s20591_s12   ;;  %s17154_s11 = sphi %s17233_s11, %s20590_s11  }
   0x8   : > { %p34_p0 = scmp.ge.s32.totalorder %s33_s17, 49  ;;  %s45_s18 = sadd.s32 1, %s17162_s13 }
   0x9   : > { %p52_p1 = scmp.ne.s32.totalorder %s17162_s13, %s17158_s12  ;;  %p53_p2 = scmp.eq.s32.totalorder %s17174_s16, 0 }
   0xa   : > { %s20596_s17 = smov (%p34_p0, %s33_s17), 0  ;;  %p84_p4 = scmp.ne.s32.totalorder %s17158_s12, %s17154_s11 }
   0xb   : > { %p17269_p3 = por %p53_p2, %p52_p1  ;;  %s41_s20 = ssub.s32 %s17170_s15, %s20596_s17 }
   0xc   : > { %p85_p5 = scmp.eq.s32.totalorder %s14653_s8, 0  ;;  %p43_p6 = scmp.eq.s32.totalorder %s41_s20, 0 }
   0xd   : > { %p14655_p8 = scmp.ge.s32.totalorder %s17174_s16, 49 }
   0xe   : > { %p17276_p7 = por %p85_p5, %p84_p4 }
   0xf   : > { %s17281_s22 = scalar_select %p43_p6, %s17162_s13, %s45_s18  }
  0x10   : > { %298 = sbr.rel (%p14655_p8) target bundleno = 55 (0x37), region = 44 }
  0x15   : > { %301 = sbr.rel (!%p17269_p3) target bundleno = 38 (0x26), region = 48  ;;  %s303_s23 = sand.u32 (%p17269_p3), 1, %s17162_s13  }
  0x16   : > { %s16549_s24 = smul.u32 (%p17269_p3), 96, %s17170_s15 }
  0x17   : > { %s16553_s25 = smul.u32 (%p17269_p3), 192, %s303_s23 }
  0x18   : > { %s17291_s28 = scalar_lea.vmem (%p17269_p3), %s20538_s0, %s16549_s24 }
  0x19   : > { %v324_v1 = vld [vmem:[%s17291_s28] sm:$0xff] (%p17269_p3)  ;;  %v326_v2 = vld [vmem:[%s17291_s28 + $0x8] sm:$0xff] (%p17269_p3)  ;;  %v328_v3 = vld [vmem:[%s17291_s28 + $0x10] sm:$0xff] (%p17269_p3)  ;;  %s17296_s29 = scalar_lea.vmem (%p17269_p3), [#allocation4], %s16553_s25 }
  0x1a   : > { %325 = vst [vmem:[%s17296_s29] sm:$0xff] %v324_v1  ;;  %327 = vst [vmem:[%s17296_s29 + $0x8] sm:$0xff] %v326_v2  ;;  %v330_v4 = vld [vmem:[%s17291_s28 + $0x18] sm:$0xff]  ;;  %v332_v5 = vld [vmem:[%s17291_s28 + $0x20] sm:$0xff] }
  0x1b   : > { %329 = vst [vmem:[%s17296_s29 + $0x10] sm:$0xff] %v328_v3  ;;  %v334_v6 = vld [vmem:[%s17291_s28 + $0x28] sm:$0xff]  ;;  %331 = vst [vmem:[%s17296_s29 + $0x18] sm:$0xff] %v330_v4  ;;  %v336_v7 = vld [vmem:[%s17291_s28 + $0x30] sm:$0xff] }
  0x1c   : > { %333 = vst [vmem:[%s17296_s29 + $0x20] sm:$0xff] %v332_v5  ;;  %335 = vst [vmem:[%s17296_s29 + $0x28] sm:$0xff] %v334_v6  ;;  %v338_v8 = vld [vmem:[%s17291_s28 + $0x38] sm:$0xff]  ;;  %v340_v9 = vld [vmem:[%s17291_s28 + $0x40] sm:$0xff] }
  0x1d   : > { %337 = vst [vmem:[%s17296_s29 + $0x30] sm:$0xff] %v336_v7  ;;  %339 = vst [vmem:[%s17296_s29 + $0x38] sm:$0xff] %v338_v8  ;;  %v342_v10 = vld [vmem:[%s17291_s28 + $0x48] sm:$0xff]  ;;  %v344_v11 = vld [vmem:[%s17291_s28 + $0x50] sm:$0xff] }
  0x1e   : > { %341 = vst [vmem:[%s17296_s29 + $0x40] sm:$0xff] %v340_v9  ;;  %v346_v12 = vld [vmem:[%s17291_s28 + $0x58] sm:$0xff]  ;;  %343 = vst [vmem:[%s17296_s29 + $0x48] sm:$0xff] %v342_v10  ;;  %v348_v13 = vld [vmem:[%s17291_s28 + $0x1260] sm:$0xff] }
  0x1f   : > { %345 = vst [vmem:[%s17296_s29 + $0x50] sm:$0xff] %v344_v11  ;;  %347 = vst [vmem:[%s17296_s29 + $0x58] sm:$0xff] %v346_v12  ;;  %v350_v14 = vld [vmem:[%s17291_s28 + $0x1268] sm:$0xff]  ;;  %v352_v15 = vld [vmem:[%s17291_s28 + $0x1270] sm:$0xff] }
  0x20   : > { %349 = vst [vmem:[%s17296_s29 + $0x60] sm:$0xff] %v348_v13  ;;  %351 = vst [vmem:[%s17296_s29 + $0x68] sm:$0xff] %v350_v14  ;;  %v354_v16 = vld [vmem:[%s17291_s28 + $0x1278] sm:$0xff]  ;;  %v356_v17 = vld [vmem:[%s17291_s28 + $0x1280] sm:$0xff] }
  0x21   : > { %353 = vst [vmem:[%s17296_s29 + $0x70] sm:$0xff] %v352_v15  ;;  %v358_v18 = vld [vmem:[%s17291_s28 + $0x1288] sm:$0xff]  ;;  %355 = vst [vmem:[%s17296_s29 + $0x78] sm:$0xff] %v354_v16  ;;  %v360_v19 = vld [vmem:[%s17291_s28 + $0x1290] sm:$0xff] }
  0x22   : > { %357 = vst [vmem:[%s17296_s29 + $0x80] sm:$0xff] %v356_v17  ;;  %359 = vst [vmem:[%s17296_s29 + $0x88] sm:$0xff] %v358_v18  ;;  %v362_v20 = vld [vmem:[%s17291_s28 + $0x1298] sm:$0xff]  ;;  %v364_v21 = vld [vmem:[%s17291_s28 + $0x12a0] sm:$0xff] }
  0x23   : > { %361 = vst [vmem:[%s17296_s29 + $0x90] sm:$0xff] %v360_v19  ;;  %363 = vst [vmem:[%s17296_s29 + $0x98] sm:$0xff] %v362_v20  ;;  %v366_v22 = vld [vmem:[%s17291_s28 + $0x12a8] sm:$0xff]  ;;  %v368_v23 = vld [vmem:[%s17291_s28 + $0x12b0] sm:$0xff] }
  0x24   : > { %365 = vst [vmem:[%s17296_s29 + $0xa0] sm:$0xff] %v364_v21  ;;  %v370_v24 = vld [vmem:[%s17291_s28 + $0x12b8] sm:$0xff]  ;;  %367 = vst [vmem:[%s17296_s29 + $0xa8] sm:$0xff] %v366_v22 }
  0x25   : > { %369 = vst [vmem:[%s17296_s29 + $0xb0] sm:$0xff] %v368_v23  ;;  %371 = vst [vmem:[%s17296_s29 + $0xb8] sm:$0xff] %v370_v24 }
  0x26 PF: > { %s378_s30 = sand.u32 1, %s17162_s13   ;;  %s16552_s10 = smul.u32 196608, %s17170_s15 }
  0x27   : > { %s16554_s11 = smul.u32 12288, %s378_s30  ;;  %s379_s25 = scalar_lea.sflag [#allocation6], %s378_s30 }
  0x28   : > { %s389_s20 = scalar_lea.hbm %s20539_s1, %s16552_s10  ;;  %s17176_s27 = smov [#allocation5]  }
  0x29   : > { %s382_s23 = scalar_lea.vmem [#allocation5], %s16554_s11  ;;  %s17114_s28 = sshll.u32 %s17176_s27, 4  ;;  %s17115_s28 = int_to_ptr.vmem [resolvable:$false] %s17114_s28 }
  0x2a   : > { %s390_s24 = sshll.u32 %s382_s23, 4  ;;  %s17116_s29 = scalar_lea.vmem %s17115_s28, 393216  ;;  %s391_s24 = int_to_ptr.vmem [resolvable:$true] %s390_s24 }
  0x2b   : > { %s17110_s26 = scalar_lea.vmem %s391_s24, 196608  ;;  %p17117_p12 = scmp.lt.s32.totalorder %s391_s24, %s17115_s28 }
  0x2c   : > { %p17111_p9 = scmp.ne.s32.totalorder %s391_s24, %s17110_s26  ;;  %p17118_p13 = scmp.lt.s32.totalorder %s17116_s29, %s17110_s26 }
  0x2e   : > { %p17112_p10 = pnand %p17111_p9, %p17269_p3  ;;  %p17119_p0 = por %p17118_p13, %p17117_p12 }
  0x30   : > { %p17113_p11 = pneg %p17112_p10 }
  0x32   : > { %p17120_p1 = pnand %p17119_p0, %p17113_p11 }
  0x34   : > { %17123 = shalt.err (!%p17120_p1)
}
  0x35   : > { %s17177_s8 = smov 512   ;;  %s17178_s10 = smov 32  }
  0x36   : > { %16557 = dma.hbm_to_vmem [thread:$0]  (%p17269_p3), %s389_s20, 196608, %s391_s24, %s379_s25, %s17177_s8, %s17177_s8, %s17178_s10  }
  0x37 PF: > { %p14659_p2 = scmp.ge.s32.totalorder %s17174_s16, 1  ;;  %p398_p4 = scmp.lt.s32.totalorder %s17174_s16, 50 }
  0x39   : > { %p399_p5 = pnand %p14659_p2, %p398_p4 }
  0x3b   : > { %402 = sbr.rel (%p399_p5) target bundleno = 2685 (0xa7d), region = 75 }
  0x40   : > { %s405_s30 = sand.u32 1, %s17158_s12  }
  0x41   : > { %s16555_s11 = smul.u32 192, %s405_s30  ;;  %s412_s26 = scalar_lea.sflag [#allocation6], %s405_s30 }
  0x42   : > { %s16556_s18 = smul.u32 12288, %s405_s30 }
  0x43   : > { %s17355_s23 = scalar_lea.vmem [#allocation4], %s16555_s11 }
  0x44   : > { %s17357_s27 = scalar_lea.vmem [#allocation5], %s16556_s18 }
  0x45   : > { %17149 = dma.done.wait (%p17276_p7), %s412_s26, 196608  }
  0x46   : > { %17151 = vsyncadd (%p17276_p7), %s412_s26, 4294770688  ;;  %p14660_p3 = scmp.ne.s32.totalorder %s17166_s14, 0 }
  0x48   : > { %466 = sbr.rel (%p14660_p3) target bundleno = 86 (0x56), region = 87 }
  0x4d   : > { %v17179_v25 = vmov 0.0  }
  0x4e   : > { %467 = vst [vmem:[#allocation2 + $0x30] sm:$0xff] %v17179_v25  ;;  %468 = vst [vmem:[#allocation2] sm:$0xff] %v17179_v25 }
  0x4f   : > { %469 = vst [vmem:[#allocation2 + $0x58] sm:$0xff] %v17179_v25  ;;  %470 = vst [vmem:[#allocation2 + $0x18] sm:$0xff] %v17179_v25 }
  0x50   : > { %471 = vst [vmem:[#allocation2 + $0x50] sm:$0xff] %v17179_v25  ;;  %472 = vst [vmem:[#allocation2 + $0x68] sm:$0xff] %v17179_v25 }
  0x51   : > { %473 = vst [vmem:[#allocation2 + $0x8] sm:$0xff] %v17179_v25  ;;  %474 = vst [vmem:[#allocation2 + $0x48] sm:$0xff] %v17179_v25 }
  0x52   : > { %475 = vst [vmem:[#allocation2 + $0x40] sm:$0xff] %v17179_v25  ;;  %476 = vst [vmem:[#allocation2 + $0x20] sm:$0xff] %v17179_v25 }
  0x53   : > { %477 = vst [vmem:[#allocation2 + $0x10] sm:$0xff] %v17179_v25  ;;  %478 = vst [vmem:[#allocation2 + $0x38] sm:$0xff] %v17179_v25 }
  0x54   : > { %479 = vst [vmem:[#allocation2 + $0x60] sm:$0xff] %v17179_v25  ;;  %480 = vst [vmem:[#allocation2 + $0x70] sm:$0xff] %v17179_v25 }
  0x55   : > { %481 = vst [vmem:[#allocation2 + $0x78] sm:$0xff] %v17179_v25  ;;  %482 = vst [vmem:[#allocation2 + $0x28] sm:$0xff] %v17179_v25 }
  0x56 PF: > { %v579_v26 = vld [vmem:[%s17357_s27 + $0x1c0] sm:$0xff]  ;;  %v17405_v21 = vld [vmem:[%s17355_s23 + $0x8] sm:$0xff]  ;;  %p16221_p6 = scmp.ne.s32.totalorder %s17166_s14, 48 }
  0x57   : > { %v583_v27 = vld [vmem:[%s17357_s27 + $0x1e0] sm:$0xff]  ;;  %v17408_v22 = vld [vmem:[%s17355_s23 + $0x68] sm:$0xff] }
  0x58   : > { %v707_v28 = vld [vmem:[%s17357_s27 + $0x5c0] sm:$0xff]  ;;  %v14742_v29 = vcombine.high %v579_v26, %v583_v27  ;;  %v14741_v31 = vcombine.low %v579_v26, %v583_v27  ;;  %v17414_v25 = vcombine.high %v17405_v21, %v17408_v22 }
  0x59   : > { %v711_v30 = vld [vmem:[%s17357_s27 + $0x5e0] sm:$0xff] }
  0x5a   : > { %v571_v32 = vld [vmem:[%s17357_s27 + $0x180] sm:$0xff]  ;;  %v14870_v34 = vcombine.high %v707_v28, %v711_v30  ;;  %v14869_v35 = vcombine.low %v707_v28, %v711_v30  ;;  %9859 = vmatprep.subr.bf16.mxu0 %v14742_v29  ;;  %9934 = vmatprep.mubr.bf16.mxu1 %v17414_v25 }
  0x5b   : > { %v575_v33 = vld [vmem:[%s17357_s27 + $0x1a0] sm:$0xff]  ;;  %9860 = vmatpush1.bf16.msra.mxu0 %v14741_v31 }
  0x5c   : > { %v14734_v36 = vcombine.high %v571_v32, %v575_v33  ;;  %v699_v37 = vld [vmem:[%s17357_s27 + $0x580] sm:$0xff]  ;;  %9902 = vmatprep.subr.bf16.mxu1 %v14870_v34  ;;  %v14733_v44 = vcombine.low %v571_v32, %v575_v33 }
  0x5d   : > { %v703_v38 = vld [vmem:[%s17357_s27 + $0x5a0] sm:$0xff]  ;;  %9903 = vmatpush1.bf16.msra.mxu1 %v14869_v35 }
  0x5e   : > { %v563_v39 = vld [vmem:[%s17357_s27 + $0x140] sm:$0xff]  ;;  %v14862_v40 = vcombine.high %v699_v37, %v703_v38  ;;  %9861 = vmatprep.subr.bf16.mxu0 %v14734_v36  ;;  %v14861_v45 = vcombine.low %v699_v37, %v703_v38 }
  0x5f   : > { %v567_v41 = vld [vmem:[%s17357_s27 + $0x160] sm:$0xff]  ;;  %9862 = vmatpush1.bf16.msra.mxu0 %v14733_v44 }
  0x60   : > { %v691_v42 = vld [vmem:[%s17357_s27 + $0x540] sm:$0xff]  ;;  %v14726_v46 = vcombine.high %v563_v39, %v567_v41  ;;  %9904 = vmatprep.subr.bf16.mxu1 %v14862_v40  ;;  %v14725_v52 = vcombine.low %v563_v39, %v567_v41 }
  0x61   : > { %v695_v43 = vld [vmem:[%s17357_s27 + $0x560] sm:$0xff]  ;;  %9905 = vmatpush1.bf16.msra.mxu1 %v14861_v45 }
  0x62   : > { %v14854_v47 = vcombine.high %v691_v42, %v695_v43  ;;  %v555_v48 = vld [vmem:[%s17357_s27 + $0x100] sm:$0xff]  ;;  %9863 = vmatprep.subr.bf16.mxu0 %v14726_v46  ;;  %v14853_v53 = vcombine.low %v691_v42, %v695_v43 }
  0x63   : > { %v559_v49 = vld [vmem:[%s17357_s27 + $0x120] sm:$0xff]  ;;  %9864 = vmatpush1.bf16.msra.mxu0 %v14725_v52 }
  0x64   : > { %v683_v50 = vld [vmem:[%s17357_s27 + $0x500] sm:$0xff]  ;;  %v14718_v54 = vcombine.high %v555_v48, %v559_v49  ;;  %9906 = vmatprep.subr.bf16.mxu1 %v14854_v47  ;;  %v14717_v60 = vcombine.low %v555_v48, %v559_v49 }
  0x65   : > { %v687_v51 = vld [vmem:[%s17357_s27 + $0x520] sm:$0xff]  ;;  %9907 = vmatpush1.bf16.msra.mxu1 %v14853_v53 }
  0x66   : > { %v14846_v55 = vcombine.high %v683_v50, %v687_v51  ;;  %v547_v56 = vld [vmem:[%s17357_s27 + $0xc0] sm:$0xff]  ;;  %9865 = vmatprep.subr.bf16.mxu0 %v14718_v54  ;;  %v14845_v61 = vcombine.low %v683_v50, %v687_v51 }
  0x67   : > { %v551_v57 = vld [vmem:[%s17357_s27 + $0xe0] sm:$0xff]  ;;  %9866 = vmatpush1.bf16.msra.mxu0 %v14717_v60 }
  0x68   : > { %v675_v58 = vld [vmem:[%s17357_s27 + $0x4c0] sm:$0xff]  ;;  %v14710_v62 = vcombine.high %v547_v56, %v551_v57  ;;  %9908 = vmatprep.subr.bf16.mxu1 %v14846_v55  ;;  %v14709_v4 = vcombine.low %v547_v56, %v551_v57 }
  0x69   : > { %v679_v59 = vld [vmem:[%s17357_s27 + $0x4e0] sm:$0xff]  ;;  %9909 = vmatpush1.bf16.msra.mxu1 %v14845_v61 }
  0x6a   : > { %v14838_v63 = vcombine.high %v675_v58, %v679_v59  ;;  %v539_v0 = vld [vmem:[%s17357_s27 + $0x80] sm:$0xff]  ;;  %9867 = vmatprep.subr.bf16.mxu0 %v14710_v62  ;;  %v14837_v5 = vcombine.low %v675_v58, %v679_v59 }
  0x6b   : > { %v543_v1 = vld [vmem:[%s17357_s27 + $0xa0] sm:$0xff]  ;;  %9868 = vmatpush1.bf16.msra.mxu0 %v14709_v4 }
  0x6c   : > { %v667_v2 = vld [vmem:[%s17357_s27 + $0x480] sm:$0xff]  ;;  %v14702_v6 = vcombine.high %v539_v0, %v543_v1  ;;  %9910 = vmatprep.subr.bf16.mxu1 %v14838_v63  ;;  %v14701_v12 = vcombine.low %v539_v0, %v543_v1 }
  0x6d   : > { %v671_v3 = vld [vmem:[%s17357_s27 + $0x4a0] sm:$0xff]  ;;  %9911 = vmatpush1.bf16.msra.mxu1 %v14837_v5 }
  0x6e   : > { %v14830_v7 = vcombine.high %v667_v2, %v671_v3  ;;  %v531_v8 = vld [vmem:[%s17357_s27 + $0x40] sm:$0xff]  ;;  %9869 = vmatprep.subr.bf16.mxu0 %v14702_v6  ;;  %v14829_v13 = vcombine.low %v667_v2, %v671_v3 }
  0x6f   : > { %v535_v9 = vld [vmem:[%s17357_s27 + $0x60] sm:$0xff]  ;;  %9870 = vmatpush1.bf16.msra.mxu0 %v14701_v12 }
  0x70   : > { %v659_v10 = vld [vmem:[%s17357_s27 + $0x440] sm:$0xff]  ;;  %v14694_v14 = vcombine.high %v531_v8, %v535_v9  ;;  %9912 = vmatprep.subr.bf16.mxu1 %v14830_v7  ;;  %v14693_v26 = vcombine.low %v531_v8, %v535_v9 }
  0x71   : > { %v663_v11 = vld [vmem:[%s17357_s27 + $0x460] sm:$0xff]  ;;  %9913 = vmatpush1.bf16.msra.mxu1 %v14829_v13 }
  0x72   : > { %v523_v15 = vld [vmem:[%s17357_s27] sm:$0xff]  ;;  %v14822_v18 = vcombine.high %v659_v10, %v663_v11  ;;  %9871 = vmatprep.subr.bf16.mxu0 %v14694_v14  ;;  %v14821_v27 = vcombine.low %v659_v10, %v663_v11 }
  0x73   : > { %v17394_v16 = vld [vmem:[%s17355_s23] sm:$0xff]  ;;  %9872 = vmatpush1.bf16.msra.mxu0 %v14693_v26 }
  0x74   : > { %v17397_v17 = vld [vmem:[%s17355_s23 + $0x60] sm:$0xff]  ;;  %9914 = vmatprep.subr.bf16.mxu1 %v14822_v18 }
  0x75   : > { %v527_v19 = vld [vmem:[%s17357_s27 + $0x20] sm:$0xff]  ;;  %v17402_v20 = vcombine.high %v17394_v16, %v17397_v17  ;;  %9915 = vmatpush1.bf16.msra.mxu1 %v14821_v27 }
  0x76   : > { %v651_v23 = vld [vmem:[%s17357_s27 + $0x400] sm:$0xff]  ;;  %v14686_v28 = vcombine.high %v523_v15, %v527_v19  ;;  %v14685_v34 = vcombine.low %v523_v15, %v527_v19 }
  0x77   : > { %v655_v24 = vld [vmem:[%s17357_s27 + $0x420] sm:$0xff]  ;;  %9891 = vmatprep.mubr.bf16.mxu0 %v17402_v20 }
  0x78   : > { %v14814_v29 = vcombine.high %v651_v23, %v655_v24  ;;  %v643_v30 = vld [vmem:[%s17357_s27 + $0x3c0] sm:$0xff]  ;;  %9873 = vmatprep.subr.bf16.mxu0 %v14686_v28  ;;  %v14813_v35 = vcombine.low %v651_v23, %v655_v24 }
  0x79   : > { %v647_v31 = vld [vmem:[%s17357_s27 + $0x3e0] sm:$0xff]  ;;  %9874 = vmatpush1.bf16.msra.mxu0 %v14685_v34 }
  0x7a   : > { %v771_v32 = vld [vmem:[%s17357_s27 + $0x7c0] sm:$0xff]  ;;  %v14806_v36 = vcombine.high %v643_v30, %v647_v31  ;;  %9916 = vmatprep.subr.bf16.mxu1 %v14814_v29  ;;  %v14805_v42 = vcombine.low %v643_v30, %v647_v31 }
  0x7b   : > { %v775_v33 = vld [vmem:[%s17357_s27 + $0x7e0] sm:$0xff]  ;;  %9917 = vmatpush1.bf16.msra.mxu1 %v14813_v35 }
  0x7c   : > { %v14934_v37 = vcombine.high %v771_v32, %v775_v33  ;;  %v635_v38 = vld [vmem:[%s17357_s27 + $0x380] sm:$0xff]  ;;  %9875 = vmatprep.subr.bf16.mxu0 %v14806_v36  ;;  %v14933_v43 = vcombine.low %v771_v32, %v775_v33 }
  0x7d   : > { %v639_v39 = vld [vmem:[%s17357_s27 + $0x3a0] sm:$0xff]  ;;  %9876 = vmatpush2.bf16.msra.mxu0 %v14805_v42 }
  0x7e   : > { %v763_v40 = vld [vmem:[%s17357_s27 + $0x780] sm:$0xff]  ;;  %v14798_v44 = vcombine.high %v635_v38, %v639_v39  ;;  %9918 = vmatprep.subr.bf16.mxu1 %v14934_v37  ;;  %v14797_v50 = vcombine.low %v635_v38, %v639_v39 }
  0x7f   : > { %v767_v41 = vld [vmem:[%s17357_s27 + $0x7a0] sm:$0xff]  ;;  %9919 = vmatpush2.bf16.msra.mxu1 %v14933_v43 }
  0x80   : > { %v14926_v45 = vcombine.high %v763_v40, %v767_v41  ;;  %v627_v46 = vld [vmem:[%s17357_s27 + $0x340] sm:$0xff]  ;;  %9877 = vmatprep.subr.bf16.mxu0 %v14798_v44  ;;  %v14925_v51 = vcombine.low %v763_v40, %v767_v41 }
  0x81   : > { %v631_v47 = vld [vmem:[%s17357_s27 + $0x360] sm:$0xff]  ;;  %9878 = vmatpush2.bf16.msra.mxu0 %v14797_v50  ;;  %v17466_v50 = vld [vmem:[%s17355_s23 + $0x70] sm:$0xff] }
  0x82   : > { %v755_v48 = vld [vmem:[%s17357_s27 + $0x740] sm:$0xff]  ;;  %v14790_v52 = vcombine.high %v627_v46, %v631_v47  ;;  %9920 = vmatprep.subr.bf16.mxu1 %v14926_v45  ;;  %v14789_v58 = vcombine.low %v627_v46, %v631_v47  ;;  %v17459_v47 = vcombine.low %v17394_v16, %v17397_v17 }
  0x83   : > { %v759_v49 = vld [vmem:[%s17357_s27 + $0x760] sm:$0xff]  ;;  %9921 = vmatpush2.bf16.msra.mxu1 %v14925_v51  ;;  %v17470_v51 = vcombine.low %v17405_v21, %v17408_v22 }
  0x84   : > { %v14918_v53 = vcombine.high %v755_v48, %v759_v49  ;;  %v619_v54 = vld [vmem:[%s17357_s27 + $0x300] sm:$0xff]  ;;  %9879 = vmatprep.subr.bf16.mxu0 %v14790_v52  ;;  %v14917_v59 = vcombine.low %v755_v48, %v759_v49  ;;  %20566 = vst [vmem:[#allocation8_spill] sm:$0xff] %v17459_v47  ;;  %v17463_v49 = vld [vmem:[%s17355_s23 + $0x10] sm:$0xff] }
  0x85   : > { %v623_v55 = vld [vmem:[%s17357_s27 + $0x320] sm:$0xff]  ;;  %9880 = vmatpush2.bf16.msra.mxu0 %v14789_v58  ;;  %20567 = vst [vmem:[#allocation9_spill] sm:$0xff] %v17470_v51  ;;  %v17482_v58 = vcombine.high %v17463_v49, %v17466_v50 }
  0x86   : > { %v747_v56 = vld [vmem:[%s17357_s27 + $0x700] sm:$0xff]  ;;  %v14782_v60 = vcombine.high %v619_v54, %v623_v55  ;;  %9922 = vmatprep.subr.bf16.mxu1 %v14918_v53  ;;  %v14781_v2 = vcombine.low %v619_v54, %v623_v55  ;;  %v17473_v53 = vld [vmem:[%s17355_s23 + $0x18] sm:$0xff] }
  0x87   : > { %v751_v57 = vld [vmem:[%s17357_s27 + $0x720] sm:$0xff]  ;;  %9923 = vmatpush2.bf16.msra.mxu1 %v14917_v59  ;;  %v17476_v54 = vld [vmem:[%s17355_s23 + $0x78] sm:$0xff]  ;;  %20568 = vst [vmem:[#allocation10_spill] sm:$0xff] %v17482_v58 }
  0x88   : > { %v14910_v61 = vcombine.high %v747_v56, %v751_v57  ;;  %v611_v62 = vld [vmem:[%s17357_s27 + $0x2c0] sm:$0xff]  ;;  %9881 = vmatprep.subr.bf16.mxu0 %v14782_v60  ;;  %v14909_v3 = vcombine.low %v747_v56, %v751_v57  ;;  %v17489_v59 = vcombine.high %v17473_v53, %v17476_v54 }
  0x89   : > { %v615_v63 = vld [vmem:[%s17357_s27 + $0x2e0] sm:$0xff]  ;;  %9882 = vmatpush2.bf16.msra.mxu0 %v14781_v2 }
  0x8a   : > { %v739_v0 = vld [vmem:[%s17357_s27 + $0x6c0] sm:$0xff]  ;;  %v14774_v4 = vcombine.high %v611_v62, %v615_v63  ;;  %9924 = vmatprep.subr.bf16.mxu1 %v14910_v61  ;;  %v14773_v10 = vcombine.low %v611_v62, %v615_v63  ;;  %20569 = vst [vmem:[#allocation11_spill] sm:$0xff] %v17489_v59 }
  0x8b   : > { %v743_v1 = vld [vmem:[%s17357_s27 + $0x6e0] sm:$0xff]  ;;  %9925 = vmatpush2.bf16.msra.mxu1 %v14909_v3 }
  0x8c   : > { %v14902_v5 = vcombine.high %v739_v0, %v743_v1  ;;  %v603_v6 = vld [vmem:[%s17357_s27 + $0x280] sm:$0xff]  ;;  %9883 = vmatprep.subr.bf16.mxu0 %v14774_v4  ;;  %v14901_v11 = vcombine.low %v739_v0, %v743_v1 }
  0x8d   : > { %v607_v7 = vld [vmem:[%s17357_s27 + $0x2a0] sm:$0xff]  ;;  %9884 = vmatpush2.bf16.msra.mxu0 %v14773_v10 }
  0x8e   : > { %v731_v8 = vld [vmem:[%s17357_s27 + $0x680] sm:$0xff]  ;;  %v14766_v12 = vcombine.high %v603_v6, %v607_v7  ;;  %9926 = vmatprep.subr.bf16.mxu1 %v14902_v5  ;;  %v14765_v23 = vcombine.low %v603_v6, %v607_v7 }
  0x8f   : > { %v735_v9 = vld [vmem:[%s17357_s27 + $0x6a0] sm:$0xff]  ;;  %9927 = vmatpush2.bf16.msra.mxu1 %v14901_v11 }
  0x90   : > { %v14894_v13 = vcombine.high %v731_v8, %v735_v9  ;;  %v595_v14 = vld [vmem:[%s17357_s27 + $0x240] sm:$0xff]  ;;  %9885 = vmatprep.subr.bf16.mxu0 %v14766_v12  ;;  %v14893_v24 = vcombine.low %v731_v8, %v735_v9 }
  0x91   : > { %v599_v15 = vld [vmem:[%s17357_s27 + $0x260] sm:$0xff]  ;;  %9886 = vmatpush2.bf16.msra.mxu0 %v14765_v23 }
  0x92   : > { %v723_v18 = vld [vmem:[%s17357_s27 + $0x640] sm:$0xff]  ;;  %v14758_v26 = vcombine.high %v595_v14, %v599_v15  ;;  %9928 = vmatprep.subr.bf16.mxu1 %v14894_v13  ;;  %v14757_v32 = vcombine.low %v595_v14, %v599_v15 }
  0x93   : > { %v727_v19 = vld [vmem:[%s17357_s27 + $0x660] sm:$0xff]  ;;  %9929 = vmatpush2.bf16.msra.mxu1 %v14893_v24 }
  0x94   : > { %v14886_v27 = vcombine.high %v723_v18, %v727_v19  ;;  %v587_v28 = vld [vmem:[%s17357_s27 + $0x200] sm:$0xff]  ;;  %9887 = vmatprep.subr.bf16.mxu0 %v14758_v26  ;;  %v14885_v33 = vcombine.low %v723_v18, %v727_v19 }
  0x95   : > { %v591_v29 = vld [vmem:[%s17357_s27 + $0x220] sm:$0xff]  ;;  %9888 = vmatpush2.bf16.msra.mxu0 %v14757_v32 }
  0x96   : > { %v715_v30 = vld [vmem:[%s17357_s27 + $0x600] sm:$0xff]  ;;  %v14750_v34 = vcombine.high %v587_v28, %v591_v29  ;;  %9930 = vmatprep.subr.bf16.mxu1 %v14886_v27  ;;  %v14749_v40 = vcombine.low %v587_v28, %v591_v29 }
  0x97   : > { %v719_v31 = vld [vmem:[%s17357_s27 + $0x620] sm:$0xff]  ;;  %9931 = vmatpush2.bf16.msra.mxu1 %v14885_v33 }
  0x98   : > { %v14878_v35 = vcombine.high %v715_v30, %v719_v31  ;;  %v835_v36 = vld [vmem:[%s17357_s27 + $0x9c0] sm:$0xff]  ;;  %9889 = vmatprep.subr.bf16.mxu0 %v14750_v34  ;;  %v14877_v41 = vcombine.low %v715_v30, %v719_v31 }
  0x99   : > { %v839_v37 = vld [vmem:[%s17357_s27 + $0x9e0] sm:$0xff]  ;;  %9890 = vmatpush2.bf16.msra.mxu0 %v14749_v40 }
  0x9a   : > { %v963_v38 = vld [vmem:[%s17357_s27 + $0xdc0] sm:$0xff]  ;;  %v14998_v42 = vcombine.high %v835_v36, %v839_v37  ;;  %9932 = vmatprep.subr.bf16.mxu1 %v14878_v35  ;;  %v14997_v52 = vcombine.low %v835_v36, %v839_v37 }
  0x9b   : > { %v967_v39 = vld [vmem:[%s17357_s27 + $0xde0] sm:$0xff]  ;;  %9933 = vmatpush2.bf16.msra.mxu1 %v14877_v41 }
  0x9c   : > { %v15126_v43 = vcombine.high %v963_v38, %v967_v39  ;;  %v827_v44 = vld [vmem:[%s17357_s27 + $0x980] sm:$0xff]  ;;  %9945 = vmatprep.subr.bf16.mxu0 %v14998_v42  ;;  %v15125_v16 = vcombine.low %v963_v38, %v967_v39  ;;  %9892 = vmatmul.mubr.bf16.vlgmr.msra.gmra.mxu0 %v17459_v47 }
  0x9d   : > { %v831_v45 = vld [vmem:[%s17357_s27 + $0x9a0] sm:$0xff]  ;;  %9946 = vmatpush1.bf16.msra.mxu0 %v14997_v52  ;;  %9977 = vmatprep.mubr.bf16.mxu0 %v17482_v58 }
  0x9e   : > { %v955_v46 = vld [vmem:[%s17357_s27 + $0xd80] sm:$0xff]  ;;  %v14990_v17 = vcombine.high %v827_v44, %v831_v45  ;;  %9988 = vmatprep.subr.bf16.mxu1 %v15126_v43  ;;  %9935 = vmatmul.mubr.bf16.vlgmr.msra.gmra.mxu1 %v17470_v51  ;;  %v14989_v60 = vcombine.low %v827_v44, %v831_v45 }
  0x9f   : > { %v959_v48 = vld [vmem:[%s17357_s27 + $0xda0] sm:$0xff]  ;;  %9989 = vmatpush1.bf16.msra.mxu1 %v15125_v16  ;;  %10020 = vmatprep.mubr.bf16.mxu1 %v17489_v59 }
  0xa0   : > { %v15118_v55 = vcombine.high %v955_v46, %v959_v48  ;;  %v819_v56 = vld [vmem:[%s17357_s27 + $0x940] sm:$0xff]  ;;  %9947 = vmatprep.subr.bf16.mxu0 %v14990_v17  ;;  %v15117_v61 = vcombine.low %v955_v46, %v959_v48 }
  0xa1   : > { %v823_v57 = vld [vmem:[%s17357_s27 + $0x960] sm:$0xff]  ;;  %9948 = vmatpush1.bf16.msra.mxu0 %v14989_v60 }
  0xa2   : > { %v947_v21 = vld [vmem:[%s17357_s27 + $0xd40] sm:$0xff]  ;;  %v14982_v62 = vcombine.high %v819_v56, %v823_v57  ;;  %9990 = vmatprep.subr.bf16.mxu1 %v15118_v55  ;;  %v14981_v4 = vcombine.low %v819_v56, %v823_v57 }
  0xa3   : > { %v951_v22 = vld [vmem:[%s17357_s27 + $0xd60] sm:$0xff]  ;;  %9991 = vmatpush1.bf16.msra.mxu1 %v15117_v61 }
  0xa4   : > { %v15110_v63 = vcombine.high %v947_v21, %v951_v22  ;;  %v811_v0 = vld [vmem:[%s17357_s27 + $0x900] sm:$0xff]  ;;  %9949 = vmatprep.subr.bf16.mxu0 %v14982_v62  ;;  %v15109_v5 = vcombine.low %v947_v21, %v951_v22 }
  0xa5   : > { %v815_v1 = vld [vmem:[%s17357_s27 + $0x920] sm:$0xff]  ;;  %9950 = vmatpush1.bf16.msra.mxu0 %v14981_v4 }
  0xa6   : > { %v939_v2 = vld [vmem:[%s17357_s27 + $0xd00] sm:$0xff]  ;;  %v14974_v6 = vcombine.high %v811_v0, %v815_v1  ;;  %9992 = vmatprep.subr.bf16.mxu1 %v15110_v63  ;;  %v14973_v12 = vcombine.low %v811_v0, %v815_v1 }
  0xa7   : > { %v943_v3 = vld [vmem:[%s17357_s27 + $0xd20] sm:$0xff]  ;;  %9993 = vmatpush1.bf16.msra.mxu1 %v15109_v5 }
  0xa8   : > { %v15102_v7 = vcombine.high %v939_v2, %v943_v3  ;;  %v803_v8 = vld [vmem:[%s17357_s27 + $0x8c0] sm:$0xff]  ;;  %9951 = vmatprep.subr.bf16.mxu0 %v14974_v6  ;;  %v15101_v13 = vcombine.low %v939_v2, %v943_v3 }
  0xa9   : > { %v807_v9 = vld [vmem:[%s17357_s27 + $0x8e0] sm:$0xff]  ;;  %9952 = vmatpush1.bf16.msra.mxu0 %v14973_v12 }
  0xaa   : > { %v931_v10 = vld [vmem:[%s17357_s27 + $0xcc0] sm:$0xff]  ;;  %v14966_v14 = vcombine.high %v803_v8, %v807_v9  ;;  %9994 = vmatprep.subr.bf16.mxu1 %v15102_v7  ;;  %v14965_v26 = vcombine.low %v803_v8, %v807_v9 }
  0xab   : > { %v935_v11 = vld [vmem:[%s17357_s27 + $0xce0] sm:$0xff]  ;;  %9995 = vmatpush1.bf16.msra.mxu1 %v15101_v13 }
  0xac   : > { %v15094_v15 = vcombine.high %v931_v10, %v935_v11  ;;  %v795_v18 = vld [vmem:[%s17357_s27 + $0x880] sm:$0xff]  ;;  %9953 = vmatprep.subr.bf16.mxu0 %v14966_v14  ;;  %v15093_v27 = vcombine.low %v931_v10, %v935_v11 }
  0xad   : > { %v799_v19 = vld [vmem:[%s17357_s27 + $0x8a0] sm:$0xff]  ;;  %9954 = vmatpush1.bf16.msra.mxu0 %v14965_v26 }
  0xae   : > { %v923_v23 = vld [vmem:[%s17357_s27 + $0xc80] sm:$0xff]  ;;  %v14958_v28 = vcombine.high %v795_v18, %v799_v19  ;;  %9996 = vmatprep.subr.bf16.mxu1 %v15094_v15  ;;  %v14957_v34 = vcombine.low %v795_v18, %v799_v19 }
  0xaf   : > { %v927_v24 = vld [vmem:[%s17357_s27 + $0xca0] sm:$0xff]  ;;  %9997 = vmatpush1.bf16.msra.mxu1 %v15093_v27 }
  0xb0   : > { %v15086_v29 = vcombine.high %v923_v23, %v927_v24  ;;  %v787_v30 = vld [vmem:[%s17357_s27 + $0x840] sm:$0xff]  ;;  %9955 = vmatprep.subr.bf16.mxu0 %v14958_v28  ;;  %v15085_v35 = vcombine.low %v923_v23, %v927_v24 }
  0xb1   : > { %v791_v31 = vld [vmem:[%s17357_s27 + $0x860] sm:$0xff]  ;;  %9956 = vmatpush1.bf16.msra.mxu0 %v14957_v34 }
  0xb2   : > { %v915_v32 = vld [vmem:[%s17357_s27 + $0xc40] sm:$0xff]  ;;  %v14950_v36 = vcombine.high %v787_v30, %v791_v31  ;;  %9998 = vmatprep.subr.bf16.mxu1 %v15086_v29  ;;  %v14949_v42 = vcombine.low %v787_v30, %v791_v31 }
  0xb3   : > { %v919_v33 = vld [vmem:[%s17357_s27 + $0xc60] sm:$0xff]  ;;  %9999 = vmatpush1.bf16.msra.mxu1 %v15085_v35 }
  0xb4   : > { %v15078_v37 = vcombine.high %v915_v32, %v919_v33  ;;  %v779_v38 = vld [vmem:[%s17357_s27 + $0x800] sm:$0xff]  ;;  %9957 = vmatprep.subr.bf16.mxu0 %v14950_v36  ;;  %v15077_v43 = vcombine.low %v915_v32, %v919_v33 }
  0xb5   : > { %v783_v39 = vld [vmem:[%s17357_s27 + $0x820] sm:$0xff]  ;;  %9958 = vmatpush1.bf16.msra.mxu0 %v14949_v42 }
  0xb6   : > { %v907_v40 = vld [vmem:[%s17357_s27 + $0xc00] sm:$0xff]  ;;  %v14942_v44 = vcombine.high %v779_v38, %v783_v39  ;;  %10000 = vmatprep.subr.bf16.mxu1 %v15078_v37  ;;  %v14941_v17 = vcombine.low %v779_v38, %v783_v39 }
  0xb7   : > { %v911_v41 = vld [vmem:[%s17357_s27 + $0xc20] sm:$0xff]  ;;  %10001 = vmatpush1.bf16.msra.mxu1 %v15077_v43 }
  0xb8   : > { %v15070_v45 = vcombine.high %v907_v40, %v911_v41  ;;  %v899_v46 = vld [vmem:[%s17357_s27 + $0xbc0] sm:$0xff]  ;;  %9959 = vmatprep.subr.bf16.mxu0 %v14942_v44  ;;  %v15069_v55 = vcombine.low %v907_v40, %v911_v41 }
  0xb9   : > { %v903_v48 = vld [vmem:[%s17357_s27 + $0xbe0] sm:$0xff]  ;;  %9960 = vmatpush1.bf16.msra.mxu0 %v14941_v17 }
  0xba   : > { %v1027_v52 = vld [vmem:[%s17357_s27 + $0xfc0] sm:$0xff]  ;;  %v15062_v56 = vcombine.high %v899_v46, %v903_v48  ;;  %10002 = vmatprep.subr.bf16.mxu1 %v15070_v45  ;;  %v15061_v62 = vcombine.low %v899_v46, %v903_v48 }
  0xbb   : > { %v1031_v16 = vld [vmem:[%s17357_s27 + $0xfe0] sm:$0xff]  ;;  %10003 = vmatpush1.bf16.msra.mxu1 %v15069_v55 }
  0xbc   : > { %v15190_v57 = vcombine.high %v1027_v52, %v1031_v16  ;;  %v891_v21 = vld [vmem:[%s17357_s27 + $0xb80] sm:$0xff]  ;;  %9961 = vmatprep.subr.bf16.mxu0 %v15062_v56  ;;  %v15189_v63 = vcombine.low %v1027_v52, %v1031_v16 }
  0xbd   : > { %v895_v22 = vld [vmem:[%s17357_s27 + $0xba0] sm:$0xff]  ;;  %9962 = vmatpush2.bf16.msra.mxu0 %v15061_v62 }
  0xbe   : > { %v1019_v60 = vld [vmem:[%s17357_s27 + $0xf80] sm:$0xff]  ;;  %v15054_v0 = vcombine.high %v891_v21, %v895_v22  ;;  %10004 = vmatprep.subr.bf16.mxu1 %v15190_v57  ;;  %v15053_v6 = vcombine.low %v891_v21, %v895_v22 }
  0xbf   : > { %v1023_v61 = vld [vmem:[%s17357_s27 + $0xfa0] sm:$0xff]  ;;  %10005 = vmatpush2.bf16.msra.mxu1 %v15189_v63 }
  0xc0   : > { %v15182_v1 = vcombine.high %v1019_v60, %v1023_v61  ;;  %v883_v2 = vld [vmem:[%s17357_s27 + $0xb40] sm:$0xff]  ;;  %9963 = vmatprep.subr.bf16.mxu0 %v15054_v0  ;;  %v15181_v7 = vcombine.low %v1019_v60, %v1023_v61 }
  0xc1   : > { %v887_v3 = vld [vmem:[%s17357_s27 + $0xb60] sm:$0xff]  ;;  %9964 = vmatpush2.bf16.msra.mxu0 %v15053_v6 }
  0xc2   : > { %v1011_v4 = vld [vmem:[%s17357_s27 + $0xf40] sm:$0xff]  ;;  %v15046_v8 = vcombine.high %v883_v2, %v887_v3  ;;  %10006 = vmatprep.subr.bf16.mxu1 %v15182_v1  ;;  %v15045_v14 = vcombine.low %v883_v2, %v887_v3 }
  0xc3   : > { %v1015_v5 = vld [vmem:[%s17357_s27 + $0xf60] sm:$0xff]  ;;  %10007 = vmatpush2.bf16.msra.mxu1 %v15181_v7  ;;  %v17555_v7 = vcombine.low %v17463_v49, %v17466_v50 }
  0xc4   : > { %v15174_v9 = vcombine.high %v1011_v4, %v1015_v5  ;;  %v875_v10 = vld [vmem:[%s17357_s27 + $0xb00] sm:$0xff]  ;;  %9965 = vmatprep.subr.bf16.mxu0 %v15046_v8  ;;  %v15173_v15 = vcombine.low %v1011_v4, %v1015_v5 }
  0xc5   : > { %v879_v11 = vld [vmem:[%s17357_s27 + $0xb20] sm:$0xff]  ;;  %9966 = vmatpush2.bf16.msra.mxu0 %v15045_v14  ;;  %20570 = vst [vmem:[#allocation12_spill] sm:$0xff] %v17555_v7  ;;  %v17572_v14 = vld [vmem:[%s17355_s23 + $0x88] sm:$0xff] }
  0xc6   : > { %v1003_v12 = vld [vmem:[%s17357_s27 + $0xf00] sm:$0xff]  ;;  %v15038_v18 = vcombine.high %v875_v10, %v879_v11  ;;  %10008 = vmatprep.subr.bf16.mxu1 %v15174_v9  ;;  %v15037_v28 = vcombine.low %v875_v10, %v879_v11  ;;  %v17566_v11 = vcombine.low %v17473_v53, %v17476_v54 }
  0xc7   : > { %v1007_v13 = vld [vmem:[%s17357_s27 + $0xf20] sm:$0xff]  ;;  %10009 = vmatpush2.bf16.msra.mxu1 %v15173_v15 }
  0xc8   : > { %v15166_v19 = vcombine.high %v1003_v12, %v1007_v13  ;;  %v867_v23 = vld [vmem:[%s17357_s27 + $0xac0] sm:$0xff]  ;;  %9967 = vmatprep.subr.bf16.mxu0 %v15038_v18  ;;  %v15165_v29 = vcombine.low %v1003_v12, %v1007_v13  ;;  %20571 = vst [vmem:[#allocation13_spill] sm:$0xff] %v17566_v11  ;;  %v17569_v13 = vld [vmem:[%s17355_s23 + $0x28] sm:$0xff] }
  0xc9   : > { %v871_v24 = vld [vmem:[%s17357_s27 + $0xae0] sm:$0xff]  ;;  %9968 = vmatpush2.bf16.msra.mxu0 %v15037_v28 }
  0xca   : > { %v995_v26 = vld [vmem:[%s17357_s27 + $0xec0] sm:$0xff]  ;;  %v15030_v30 = vcombine.high %v867_v23, %v871_v24  ;;  %10010 = vmatprep.subr.bf16.mxu1 %v15166_v19  ;;  %v15029_v36 = vcombine.low %v867_v23, %v871_v24  ;;  %v17585_v24 = vcombine.high %v17569_v13, %v17572_v14 }
  0xcb   : > { %v999_v27 = vld [vmem:[%s17357_s27 + $0xee0] sm:$0xff]  ;;  %10011 = vmatpush2.bf16.msra.mxu1 %v15165_v29 }
  0xcc   : > { %v15158_v31 = vcombine.high %v995_v26, %v999_v27  ;;  %v859_v32 = vld [vmem:[%s17357_s27 + $0xa80] sm:$0xff]  ;;  %9969 = vmatprep.subr.bf16.mxu0 %v15030_v30  ;;  %v15157_v37 = vcombine.low %v995_v26, %v999_v27  ;;  %20573 = vst [vmem:[#allocation15_spill] sm:$0xff] %v17585_v24 }
  0xcd   : > { %v863_v33 = vld [vmem:[%s17357_s27 + $0xaa0] sm:$0xff]  ;;  %9970 = vmatpush2.bf16.msra.mxu0 %v15029_v36 }
  0xce   : > { %v987_v34 = vld [vmem:[%s17357_s27 + $0xe80] sm:$0xff]  ;;  %v15022_v38 = vcombine.high %v859_v32, %v863_v33  ;;  %10012 = vmatprep.subr.bf16.mxu1 %v15158_v31  ;;  %v15021_v44 = vcombine.low %v859_v32, %v863_v33 }
  0xcf   : > { %v991_v35 = vld [vmem:[%s17357_s27 + $0xea0] sm:$0xff]  ;;  %10013 = vmatpush2.bf16.msra.mxu1 %v15157_v37 }
  0xd0   : > { %v15150_v39 = vcombine.high %v987_v34, %v991_v35  ;;  %v851_v40 = vld [vmem:[%s17357_s27 + $0xa40] sm:$0xff]  ;;  %9971 = vmatprep.subr.bf16.mxu0 %v15022_v38  ;;  %v15149_v45 = vcombine.low %v987_v34, %v991_v35 }
  0xd1   : > { %v855_v41 = vld [vmem:[%s17357_s27 + $0xa60] sm:$0xff]  ;;  %9972 = vmatpush2.bf16.msra.mxu0 %v15021_v44 }
  0xd2   : > { %v979_v42 = vld [vmem:[%s17357_s27 + $0xe40] sm:$0xff]  ;;  %v15014_v46 = vcombine.high %v851_v40, %v855_v41  ;;  %10014 = vmatprep.subr.bf16.mxu1 %v15150_v39  ;;  %v15013_v56 = vcombine.low %v851_v40, %v855_v41 }
  0xd3   : > { %v983_v43 = vld [vmem:[%s17357_s27 + $0xe60] sm:$0xff]  ;;  %10015 = vmatpush2.bf16.msra.mxu1 %v15149_v45 }
  0xd4   : > { %v15142_v48 = vcombine.high %v979_v42, %v983_v43  ;;  %v843_v52 = vld [vmem:[%s17357_s27 + $0xa00] sm:$0xff]  ;;  %9973 = vmatprep.subr.bf16.mxu0 %v15014_v46  ;;  %v15141_v57 = vcombine.low %v979_v42, %v983_v43 }
  0xd5   : > { %v847_v16 = vld [vmem:[%s17357_s27 + $0xa20] sm:$0xff]  ;;  %9974 = vmatpush2.bf16.msra.mxu0 %v15013_v56 }
  0xd6   : > { %v971_v17 = vld [vmem:[%s17357_s27 + $0xe00] sm:$0xff]  ;;  %v15006_v21 = vcombine.high %v843_v52, %v847_v16  ;;  %10016 = vmatprep.subr.bf16.mxu1 %v15142_v48  ;;  %v15005_v0 = vcombine.low %v843_v52, %v847_v16 }
  0xd7   : > { %v975_v55 = vld [vmem:[%s17357_s27 + $0xe20] sm:$0xff]  ;;  %10017 = vmatpush2.bf16.msra.mxu1 %v15141_v57 }
  0xd8   : > { %v15134_v22 = vcombine.high %v971_v17, %v975_v55  ;;  %v1091_v60 = vld [vmem:[%s17357_s27 + $0x11c0] sm:$0xff]  ;;  %9975 = vmatprep.subr.bf16.mxu0 %v15006_v21  ;;  %v15133_v1 = vcombine.low %v971_v17, %v975_v55 }
  0xd9   : > { %v1095_v61 = vld [vmem:[%s17357_s27 + $0x11e0] sm:$0xff]  ;;  %9976 = vmatpush2.bf16.msra.mxu0 %v15005_v0 }
  0xda   : > { %v1219_v62 = vld [vmem:[%s17357_s27 + $0x15c0] sm:$0xff]  ;;  %v15254_v2 = vcombine.high %v1091_v60, %v1095_v61  ;;  %10018 = vmatprep.subr.bf16.mxu1 %v15134_v22  ;;  %v15253_v12 = vcombine.low %v1091_v60, %v1095_v61 }
  0xdb   : > { %v1223_v63 = vld [vmem:[%s17357_s27 + $0x15e0] sm:$0xff]  ;;  %10019 = vmatpush2.bf16.msra.mxu1 %v15133_v1 }
  0xdc   : > { %v15382_v3 = vcombine.high %v1219_v62, %v1223_v63  ;;  %v1083_v4 = vld [vmem:[%s17357_s27 + $0x1180] sm:$0xff]  ;;  %10031 = vmatprep.subr.bf16.mxu0 %v15254_v2  ;;  %v15381_v49 = vcombine.low %v1219_v62, %v1223_v63  ;;  %9978 = vmatmul.mubr.bf16.vlgmr.msra.gmra.mxu0 %v17555_v7 }
  0xdd   : > { %v1087_v5 = vld [vmem:[%s17357_s27 + $0x11a0] sm:$0xff]  ;;  %10032 = vmatpush1.bf16.msra.mxu0 %v15253_v12 }
  0xde   : > { %v1211_v6 = vld [vmem:[%s17357_s27 + $0x1580] sm:$0xff]  ;;  %v15246_v50 = vcombine.high %v1083_v4, %v1087_v5  ;;  %10074 = vmatprep.subr.bf16.mxu1 %v15382_v3  ;;  %10021 = vmatmul.mubr.bf16.vlgmr.msra.gmra.mxu1 %v17566_v11  ;;  %v15245_v26 = vcombine.low %v1083_v4, %v1087_v5 }
  0xdf   : > { %v1215_v8 = vld [vmem:[%s17357_s27 + $0x15a0] sm:$0xff]  ;;  %10075 = vmatpush1.bf16.msra.mxu1 %v15381_v49  ;;  %10106 = vmatprep.mubr.bf16.mxu1 %v17585_v24 }
  0xe0   : > { %v17559_v9 = vld [vmem:[%s17355_s23 + $0x20] sm:$0xff]  ;;  %v15374_v15 = vcombine.high %v1211_v6, %v1215_v8  ;;  %10033 = vmatprep.subr.bf16.mxu0 %v15246_v50  ;;  %v15373_v27 = vcombine.low %v1211_v6, %v1215_v8 }
  0xe1   : > { %v17562_v10 = vld [vmem:[%s17355_s23 + $0x80] sm:$0xff]  ;;  %10034 = vmatpush1.bf16.msra.mxu0 %v15245_v26 }
  0xe2   : > { %v1075_v18 = vld [vmem:[%s17357_s27 + $0x1140] sm:$0xff]  ;;  %v17578_v23 = vcombine.high %v17559_v9, %v17562_v10  ;;  %10076 = vmatprep.subr.bf16.mxu1 %v15374_v15 }
  0xe3   : > { %v1079_v19 = vld [vmem:[%s17357_s27 + $0x1160] sm:$0xff]  ;;  %10077 = vmatpush1.bf16.msra.mxu1 %v15373_v27 }
  0xe4   : > { %20572 = vst [vmem:[#allocation14_spill] sm:$0xff] %v17578_v23  ;;  %v1203_v53 = vld [vmem:[%s17357_s27 + $0x1540] sm:$0xff]  ;;  %v15238_v28 = vcombine.high %v1075_v18, %v1079_v19  ;;  %10063 = vmatprep.mubr.bf16.mxu0 %v17578_v23  ;;  %v15237_v34 = vcombine.low %v1075_v18, %v1079_v19 }
  0xe5   : > { %v1207_v54 = vld [vmem:[%s17357_s27 + $0x1560] sm:$0xff] }
  0xe6   : > { %v15366_v29 = vcombine.high %v1203_v53, %v1207_v54  ;;  %v1067_v30 = vld [vmem:[%s17357_s27 + $0x1100] sm:$0xff]  ;;  %10035 = vmatprep.subr.bf16.mxu0 %v15238_v28  ;;  %v15365_v35 = vcombine.low %v1203_v53, %v1207_v54 }
  0xe7   : > { %v1071_v31 = vld [vmem:[%s17357_s27 + $0x1120] sm:$0xff]  ;;  %10036 = vmatpush1.bf16.msra.mxu0 %v15237_v34 }
  0xe8   : > { %v1195_v32 = vld [vmem:[%s17357_s27 + $0x1500] sm:$0xff]  ;;  %v15230_v36 = vcombine.high %v1067_v30, %v1071_v31  ;;  %10078 = vmatprep.subr.bf16.mxu1 %v15366_v29  ;;  %v15229_v42 = vcombine.low %v1067_v30, %v1071_v31 }
  0xe9   : > { %v1199_v33 = vld [vmem:[%s17357_s27 + $0x1520] sm:$0xff]  ;;  %10079 = vmatpush1.bf16.msra.mxu1 %v15365_v35 }
  0xea   : > { %v15358_v37 = vcombine.high %v1195_v32, %v1199_v33  ;;  %v1059_v38 = vld [vmem:[%s17357_s27 + $0x10c0] sm:$0xff]  ;;  %10037 = vmatprep.subr.bf16.mxu0 %v15230_v36  ;;  %v15357_v43 = vcombine.low %v1195_v32, %v1199_v33 }
  0xeb   : > { %v1063_v39 = vld [vmem:[%s17357_s27 + $0x10e0] sm:$0xff]  ;;  %10038 = vmatpush1.bf16.msra.mxu0 %v15229_v42 }
  0xec   : > { %v1187_v40 = vld [vmem:[%s17357_s27 + $0x14c0] sm:$0xff]  ;;  %v15222_v44 = vcombine.high %v1059_v38, %v1063_v39  ;;  %10080 = vmatprep.subr.bf16.mxu1 %v15358_v37  ;;  %v15221_v17 = vcombine.low %v1059_v38, %v1063_v39 }
  0xed   : > { %v1191_v41 = vld [vmem:[%s17357_s27 + $0x14e0] sm:$0xff]  ;;  %10081 = vmatpush1.bf16.msra.mxu1 %v15357_v43 }
  0xee   : > { %v15350_v45 = vcombine.high %v1187_v40, %v1191_v41  ;;  %v1051_v46 = vld [vmem:[%s17357_s27 + $0x1080] sm:$0xff]  ;;  %10039 = vmatprep.subr.bf16.mxu0 %v15222_v44  ;;  %v15349_v55 = vcombine.low %v1187_v40, %v1191_v41 }
  0xef   : > { %v1055_v48 = vld [vmem:[%s17357_s27 + $0x10a0] sm:$0xff]  ;;  %10040 = vmatpush1.bf16.msra.mxu0 %v15221_v17 }
  0xf0   : > { %v1179_v52 = vld [vmem:[%s17357_s27 + $0x1480] sm:$0xff]  ;;  %v15214_v56 = vcombine.high %v1051_v46, %v1055_v48  ;;  %10082 = vmatprep.subr.bf16.mxu1 %v15350_v45  ;;  %v15213_v62 = vcombine.low %v1051_v46, %v1055_v48 }
  0xf1   : > { %v1183_v16 = vld [vmem:[%s17357_s27 + $0x14a0] sm:$0xff]  ;;  %10083 = vmatpush1.bf16.msra.mxu1 %v15349_v55 }
  0xf2   : > { %v15342_v57 = vcombine.high %v1179_v52, %v1183_v16  ;;  %v1043_v21 = vld [vmem:[%s17357_s27 + $0x1040] sm:$0xff]  ;;  %10041 = vmatprep.subr.bf16.mxu0 %v15214_v56  ;;  %v15341_v63 = vcombine.low %v1179_v52, %v1183_v16 }
  0xf3   : > { %v1047_v22 = vld [vmem:[%s17357_s27 + $0x1060] sm:$0xff]  ;;  %10042 = vmatpush1.bf16.msra.mxu0 %v15213_v62 }
  0xf4   : > { %v1171_v60 = vld [vmem:[%s17357_s27 + $0x1440] sm:$0xff]  ;;  %v15206_v0 = vcombine.high %v1043_v21, %v1047_v22  ;;  %10084 = vmatprep.subr.bf16.mxu1 %v15342_v57  ;;  %v15205_v6 = vcombine.low %v1043_v21, %v1047_v22 }
  0xf5   : > { %v1175_v61 = vld [vmem:[%s17357_s27 + $0x1460] sm:$0xff]  ;;  %10085 = vmatpush1.bf16.msra.mxu1 %v15341_v63 }
  0xf6   : > { %v15334_v1 = vcombine.high %v1171_v60, %v1175_v61  ;;  %v1035_v2 = vld [vmem:[%s17357_s27 + $0x1000] sm:$0xff]  ;;  %10043 = vmatprep.subr.bf16.mxu0 %v15206_v0  ;;  %v15333_v8 = vcombine.low %v1171_v60, %v1175_v61 }
  0xf7   : > { %v1039_v3 = vld [vmem:[%s17357_s27 + $0x1020] sm:$0xff]  ;;  %10044 = vmatpush1.bf16.msra.mxu0 %v15205_v6 }
  0xf8   : > { %v1163_v4 = vld [vmem:[%s17357_s27 + $0x1400] sm:$0xff]  ;;  %v15198_v12 = vcombine.high %v1035_v2, %v1039_v3  ;;  %10086 = vmatprep.subr.bf16.mxu1 %v15334_v1  ;;  %v15197_v53 = vcombine.low %v1035_v2, %v1039_v3 }
  0xf9   : > { %v1167_v5 = vld [vmem:[%s17357_s27 + $0x1420] sm:$0xff]  ;;  %10087 = vmatpush1.bf16.msra.mxu1 %v15333_v8 }
  0xfa   : > { %v15326_v49 = vcombine.high %v1163_v4, %v1167_v5  ;;  %v1155_v50 = vld [vmem:[%s17357_s27 + $0x13c0] sm:$0xff]  ;;  %10045 = vmatprep.subr.bf16.mxu0 %v15198_v12  ;;  %v15325_v54 = vcombine.low %v1163_v4, %v1167_v5 }
  0xfb   : > { %v1159_v15 = vld [vmem:[%s17357_s27 + $0x13e0] sm:$0xff]  ;;  %10046 = vmatpush1.bf16.msra.mxu0 %v15197_v53 }
  0xfc   : > { %v1283_v18 = vld [vmem:[%s17357_s27 + $0x17c0] sm:$0xff]  ;;  %v15318_v26 = vcombine.high %v1155_v50, %v1159_v15  ;;  %10088 = vmatprep.subr.bf16.mxu1 %v15326_v49  ;;  %v15317_v32 = vcombine.low %v1155_v50, %v1159_v15 }
  0xfd   : > { %v1287_v19 = vld [vmem:[%s17357_s27 + $0x17e0] sm:$0xff]  ;;  %10089 = vmatpush1.bf16.msra.mxu1 %v15325_v54 }
  0xfe   : > { %v15446_v27 = vcombine.high %v1283_v18, %v1287_v19  ;;  %v1147_v28 = vld [vmem:[%s17357_s27 + $0x1380] sm:$0xff]  ;;  %10047 = vmatprep.subr.bf16.mxu0 %v15318_v26  ;;  %v15445_v33 = vcombine.low %v1283_v18, %v1287_v19 }
  0xff   : > { %v1151_v29 = vld [vmem:[%s17357_s27 + $0x13a0] sm:$0xff]  ;;  %10048 = vmatpush2.bf16.msra.mxu0 %v15317_v32 }
 0x100   : > { %v1275_v30 = vld [vmem:[%s17357_s27 + $0x1780] sm:$0xff]  ;;  %v15310_v34 = vcombine.high %v1147_v28, %v1151_v29  ;;  %10090 = vmatprep.subr.bf16.mxu1 %v15446_v27  ;;  %v15309_v40 = vcombine.low %v1147_v28, %v1151_v29 }
 0x101   : > { %v1279_v31 = vld [vmem:[%s17357_s27 + $0x17a0] sm:$0xff]  ;;  %10091 = vmatpush2.bf16.msra.mxu1 %v15445_v33 }
 0x102   : > { %v15438_v35 = vcombine.high %v1275_v30, %v1279_v31  ;;  %v1139_v36 = vld [vmem:[%s17357_s27 + $0x1340] sm:$0xff]  ;;  %10049 = vmatprep.subr.bf16.mxu0 %v15310_v34  ;;  %v15437_v41 = vcombine.low %v1275_v30, %v1279_v31 }
 0x103   : > { %v1143_v37 = vld [vmem:[%s17357_s27 + $0x1360] sm:$0xff]  ;;  %10050 = vmatpush2.bf16.msra.mxu0 %v15309_v40 }
 0x104   : > { %v1267_v38 = vld [vmem:[%s17357_s27 + $0x1740] sm:$0xff]  ;;  %v15302_v42 = vcombine.high %v1139_v36, %v1143_v37  ;;  %10092 = vmatprep.subr.bf16.mxu1 %v15438_v35  ;;  %v15301_v52 = vcombine.low %v1139_v36, %v1143_v37 }
 0x105   : > { %v1271_v39 = vld [vmem:[%s17357_s27 + $0x1760] sm:$0xff]  ;;  %10093 = vmatpush2.bf16.msra.mxu1 %v15437_v41 }
 0x106   : > { %v15430_v43 = vcombine.high %v1267_v38, %v1271_v39  ;;  %v1131_v44 = vld [vmem:[%s17357_s27 + $0x1300] sm:$0xff]  ;;  %10051 = vmatprep.subr.bf16.mxu0 %v15302_v42  ;;  %v15429_v16 = vcombine.low %v1267_v38, %v1271_v39 }
 0x107   : > { %v1135_v45 = vld [vmem:[%s17357_s27 + $0x1320] sm:$0xff]  ;;  %10052 = vmatpush2.bf16.msra.mxu0 %v15301_v52  ;;  %v17658_v52 = vld [vmem:[%s17355_s23 + $0x90] sm:$0xff] }
 0x108   : > { %v1259_v46 = vld [vmem:[%s17357_s27 + $0x1700] sm:$0xff]  ;;  %v15294_v17 = vcombine.high %v1131_v44, %v1135_v45  ;;  %10094 = vmatprep.subr.bf16.mxu1 %v15430_v43  ;;  %v15293_v60 = vcombine.low %v1131_v44, %v1135_v45  ;;  %v17651_v45 = vcombine.low %v17559_v9, %v17562_v10 }
 0x109   : > { %v1263_v48 = vld [vmem:[%s17357_s27 + $0x1720] sm:$0xff]  ;;  %10095 = vmatpush2.bf16.msra.mxu1 %v15429_v16  ;;  %v17662_v16 = vcombine.low %v17569_v13, %v17572_v14 }
 0x10a   : > { %v15422_v55 = vcombine.high %v1259_v46, %v1263_v48  ;;  %v1123_v56 = vld [vmem:[%s17357_s27 + $0x12c0] sm:$0xff]  ;;  %10053 = vmatprep.subr.bf16.mxu0 %v15294_v17  ;;  %v15421_v61 = vcombine.low %v1259_v46, %v1263_v48  ;;  %v17655_v48 = vld [vmem:[%s17355_s23 + $0x30] sm:$0xff] }
 0x10b   : > { %v1127_v57 = vld [vmem:[%s17357_s27 + $0x12e0] sm:$0xff]  ;;  %10054 = vmatpush2.bf16.msra.mxu0 %v15293_v60  ;;  %v17674_v60 = vcombine.high %v17655_v48, %v17658_v52 }
 0x10c   : > { %v1251_v21 = vld [vmem:[%s17357_s27 + $0x16c0] sm:$0xff]  ;;  %v15286_v62 = vcombine.high %v1123_v56, %v1127_v57  ;;  %10096 = vmatprep.subr.bf16.mxu1 %v15422_v55  ;;  %v15285_v4 = vcombine.low %v1123_v56, %v1127_v57  ;;  %v17665_v55 = vld [vmem:[%s17355_s23 + $0x38] sm:$0xff] }
 0x10d   : > { %v1255_v22 = vld [vmem:[%s17357_s27 + $0x16e0] sm:$0xff]  ;;  %10097 = vmatpush2.bf16.msra.mxu1 %v15421_v61  ;;  %v17668_v56 = vld [vmem:[%s17355_s23 + $0x98] sm:$0xff] }
 0x10e   : > { %v15414_v63 = vcombine.high %v1251_v21, %v1255_v22  ;;  %v1115_v0 = vld [vmem:[%s17357_s27 + $0x1280] sm:$0xff]  ;;  %10055 = vmatprep.subr.bf16.mxu0 %v15286_v62  ;;  %v15413_v5 = vcombine.low %v1251_v21, %v1255_v22  ;;  %v17681_v61 = vcombine.high %v17665_v55, %v17668_v56 }
 0x10f   : > { %v1119_v1 = vld [vmem:[%s17357_s27 + $0x12a0] sm:$0xff]  ;;  %10056 = vmatpush2.bf16.msra.mxu0 %v15285_v4 }
 0x110   : > { %v1243_v2 = vld [vmem:[%s17357_s27 + $0x1680] sm:$0xff]  ;;  %v15278_v6 = vcombine.high %v1115_v0, %v1119_v1  ;;  %10098 = vmatprep.subr.bf16.mxu1 %v15414_v63  ;;  %v15277_v18 = vcombine.low %v1115_v0, %v1119_v1 }
 0x111   : > { %v1247_v3 = vld [vmem:[%s17357_s27 + $0x16a0] sm:$0xff]  ;;  %10099 = vmatpush2.bf16.msra.mxu1 %v15413_v5 }
 0x112   : > { %v15406_v8 = vcombine.high %v1243_v2, %v1247_v3  ;;  %v1107_v12 = vld [vmem:[%s17357_s27 + $0x1240] sm:$0xff]  ;;  %10057 = vmatprep.subr.bf16.mxu0 %v15278_v6  ;;  %v15405_v19 = vcombine.low %v1243_v2, %v1247_v3 }
 0x113   : > { %v1111_v49 = vld [vmem:[%s17357_s27 + $0x1260] sm:$0xff]  ;;  %10058 = vmatpush2.bf16.msra.mxu0 %v15277_v18 }
 0x114   : > { %v1235_v50 = vld [vmem:[%s17357_s27 + $0x1640] sm:$0xff]  ;;  %v15270_v53 = vcombine.high %v1107_v12, %v1111_v49  ;;  %10100 = vmatprep.subr.bf16.mxu1 %v15406_v8  ;;  %v15269_v30 = vcombine.low %v1107_v12, %v1111_v49 }
 0x115   : > { %v1239_v15 = vld [vmem:[%s17357_s27 + $0x1660] sm:$0xff]  ;;  %10101 = vmatpush2.bf16.msra.mxu1 %v15405_v19 }
 0x116   : > { %v15398_v54 = vcombine.high %v1235_v50, %v1239_v15  ;;  %v1099_v26 = vld [vmem:[%s17357_s27 + $0x1200] sm:$0xff]  ;;  %10059 = vmatprep.subr.bf16.mxu0 %v15270_v53  ;;  %v15397_v31 = vcombine.low %v1235_v50, %v1239_v15 }
 0x117   : > { %v1103_v27 = vld [vmem:[%s17357_s27 + $0x1220] sm:$0xff]  ;;  %10060 = vmatpush2.bf16.msra.mxu0 %v15269_v30 }
 0x118   : > { %v1227_v28 = vld [vmem:[%s17357_s27 + $0x1600] sm:$0xff]  ;;  %v15262_v32 = vcombine.high %v1099_v26, %v1103_v27  ;;  %10102 = vmatprep.subr.bf16.mxu1 %v15398_v54  ;;  %v15261_v38 = vcombine.low %v1099_v26, %v1103_v27 }
 0x119   : > { %v1231_v29 = vld [vmem:[%s17357_s27 + $0x1620] sm:$0xff]  ;;  %10103 = vmatpush2.bf16.msra.mxu1 %v15397_v31 }
 0x11a   : > { %v15390_v33 = vcombine.high %v1227_v28, %v1231_v29  ;;  %v1347_v34 = vld [vmem:[%s17357_s27 + $0x19c0] sm:$0xff]  ;;  %10061 = vmatprep.subr.bf16.mxu0 %v15262_v32  ;;  %v15389_v39 = vcombine.low %v1227_v28, %v1231_v29 }
 0x11b   : > { %v1351_v35 = vld [vmem:[%s17357_s27 + $0x19e0] sm:$0xff]  ;;  %10062 = vmatpush2.bf16.msra.mxu0 %v15261_v38 }
 0x11c   : > { %v1475_v36 = vld [vmem:[%s17357_s27 + $0x1dc0] sm:$0xff]  ;;  %v15510_v40 = vcombine.high %v1347_v34, %v1351_v35  ;;  %10104 = vmatprep.subr.bf16.mxu1 %v15390_v33  ;;  %v15509_v17 = vcombine.low %v1347_v34, %v1351_v35 }
 0x11d   : > { %v1479_v37 = vld [vmem:[%s17357_s27 + $0x1de0] sm:$0xff]  ;;  %10105 = vmatpush2.bf16.msra.mxu1 %v15389_v39 }
 0x11e   : > { %v15638_v41 = vcombine.high %v1475_v36, %v1479_v37  ;;  %v1339_v42 = vld [vmem:[%s17357_s27 + $0x1980] sm:$0xff]  ;;  %10117 = vmatprep.subr.bf16.mxu0 %v15510_v40  ;;  %v15637_v9 = vcombine.low %v1475_v36, %v1479_v37  ;;  %10064 = vmatmul.mubr.bf16.vlgmr.msra.gmra.mxu0 %v17651_v45 }
 0x11f   : > { %v1343_v43 = vld [vmem:[%s17357_s27 + $0x19a0] sm:$0xff]  ;;  %10118 = vmatpush1.bf16.msra.mxu0 %v15509_v17  ;;  %10149 = vmatprep.mubr.bf16.mxu0 %v17674_v60 }
 0x120   : > { %v1467_v44 = vld [vmem:[%s17357_s27 + $0x1d80] sm:$0xff]  ;;  %v15502_v10 = vcombine.high %v1339_v42, %v1343_v43  ;;  %10160 = vmatprep.subr.bf16.mxu1 %v15638_v41  ;;  %10107 = vmatmul.mubr.bf16.vlgmr.msra.gmra.mxu1 %v17662_v16  ;;  %v15501_v62 = vcombine.low %v1339_v42, %v1343_v43 }
 0x121   : > { %v1471_v46 = vld [vmem:[%s17357_s27 + $0x1da0] sm:$0xff]  ;;  %10161 = vmatpush1.bf16.msra.mxu1 %v15637_v9  ;;  %10192 = vmatprep.mubr.bf16.mxu1 %v17681_v61 }
 0x122   : > { %v15630_v57 = vcombine.high %v1467_v44, %v1471_v46  ;;  %v1331_v21 = vld [vmem:[%s17357_s27 + $0x1940] sm:$0xff]  ;;  %10119 = vmatprep.subr.bf16.mxu0 %v15502_v10  ;;  %v15629_v63 = vcombine.low %v1467_v44, %v1471_v46 }
 0x123   : > { %v1335_v22 = vld [vmem:[%s17357_s27 + $0x1960] sm:$0xff]  ;;  %10120 = vmatpush1.bf16.msra.mxu0 %v15501_v62 }
 0x124   : > { %v1459_v13 = vld [vmem:[%s17357_s27 + $0x1d40] sm:$0xff]  ;;  %v15494_v0 = vcombine.high %v1331_v21, %v1335_v22  ;;  %10162 = vmatprep.subr.bf16.mxu1 %v15630_v57  ;;  %v15493_v6 = vcombine.low %v1331_v21, %v1335_v22 }
 0x125   : > { %v1463_v14 = vld [vmem:[%s17357_s27 + $0x1d60] sm:$0xff]  ;;  %10163 = vmatpush1.bf16.msra.mxu1 %v15629_v63 }
 0x126   : > { %v15622_v1 = vcombine.high %v1459_v13, %v1463_v14  ;;  %v1323_v2 = vld [vmem:[%s17357_s27 + $0x1900] sm:$0xff]  ;;  %10121 = vmatprep.subr.bf16.mxu0 %v15494_v0  ;;  %v15621_v8 = vcombine.low %v1459_v13, %v1463_v14 }
 0x127   : > { %v1327_v3 = vld [vmem:[%s17357_s27 + $0x1920] sm:$0xff]  ;;  %10122 = vmatpush1.bf16.msra.mxu0 %v15493_v6 }
 0x128   : > { %v1451_v4 = vld [vmem:[%s17357_s27 + $0x1d00] sm:$0xff]  ;;  %v15486_v12 = vcombine.high %v1323_v2, %v1327_v3  ;;  %10164 = vmatprep.subr.bf16.mxu1 %v15622_v1  ;;  %v15485_v53 = vcombine.low %v1323_v2, %v1327_v3 }
 0x129   : > { %v1455_v5 = vld [vmem:[%s17357_s27 + $0x1d20] sm:$0xff]  ;;  %10165 = vmatpush1.bf16.msra.mxu1 %v15621_v8 }
 0x12a   : > { %v15614_v49 = vcombine.high %v1451_v4, %v1455_v5  ;;  %v1315_v50 = vld [vmem:[%s17357_s27 + $0x18c0] sm:$0xff]  ;;  %10123 = vmatprep.subr.bf16.mxu0 %v15486_v12  ;;  %v15613_v54 = vcombine.low %v1451_v4, %v1455_v5 }
 0x12b   : > { %v1319_v15 = vld [vmem:[%s17357_s27 + $0x18e0] sm:$0xff]  ;;  %10124 = vmatpush1.bf16.msra.mxu0 %v15485_v53 }
 0x12c   : > { %v1443_v18 = vld [vmem:[%s17357_s27 + $0x1cc0] sm:$0xff]  ;;  %v15478_v26 = vcombine.high %v1315_v50, %v1319_v15  ;;  %10166 = vmatprep.subr.bf16.mxu1 %v15614_v49  ;;  %v15477_v32 = vcombine.low %v1315_v50, %v1319_v15 }
 0x12d   : > { %v1447_v19 = vld [vmem:[%s17357_s27 + $0x1ce0] sm:$0xff]  ;;  %10167 = vmatpush1.bf16.msra.mxu1 %v15613_v54 }
 0x12e   : > { %v15606_v27 = vcombine.high %v1443_v18, %v1447_v19  ;;  %v1307_v28 = vld [vmem:[%s17357_s27 + $0x1880] sm:$0xff]  ;;  %10125 = vmatprep.subr.bf16.mxu0 %v15478_v26  ;;  %v15605_v33 = vcombine.low %v1443_v18, %v1447_v19 }
 0x12f   : > { %v1311_v29 = vld [vmem:[%s17357_s27 + $0x18a0] sm:$0xff]  ;;  %10126 = vmatpush1.bf16.msra.mxu0 %v15477_v32 }
 0x130   : > { %v1435_v30 = vld [vmem:[%s17357_s27 + $0x1c80] sm:$0xff]  ;;  %v15470_v34 = vcombine.high %v1307_v28, %v1311_v29  ;;  %10168 = vmatprep.subr.bf16.mxu1 %v15606_v27  ;;  %v15469_v40 = vcombine.low %v1307_v28, %v1311_v29 }
 0x131   : > { %v1439_v31 = vld [vmem:[%s17357_s27 + $0x1ca0] sm:$0xff]  ;;  %10169 = vmatpush1.bf16.msra.mxu1 %v15605_v33 }
 0x132   : > { %v15598_v35 = vcombine.high %v1435_v30, %v1439_v31  ;;  %v1299_v36 = vld [vmem:[%s17357_s27 + $0x1840] sm:$0xff]  ;;  %10127 = vmatprep.subr.bf16.mxu0 %v15470_v34  ;;  %v15597_v41 = vcombine.low %v1435_v30, %v1439_v31 }
 0x133   : > { %v1303_v37 = vld [vmem:[%s17357_s27 + $0x1860] sm:$0xff]  ;;  %10128 = vmatpush1.bf16.msra.mxu0 %v15469_v40 }
 0x134   : > { %v1427_v38 = vld [vmem:[%s17357_s27 + $0x1c40] sm:$0xff]  ;;  %v15462_v42 = vcombine.high %v1299_v36, %v1303_v37  ;;  %10170 = vmatprep.subr.bf16.mxu1 %v15598_v35  ;;  %v15461_v10 = vcombine.low %v1299_v36, %v1303_v37 }
 0x135   : > { %v1431_v39 = vld [vmem:[%s17357_s27 + $0x1c60] sm:$0xff]  ;;  %10171 = vmatpush1.bf16.msra.mxu1 %v15597_v41 }
 0x136   : > { %v15590_v43 = vcombine.high %v1427_v38, %v1431_v39  ;;  %v1291_v44 = vld [vmem:[%s17357_s27 + $0x1800] sm:$0xff]  ;;  %10129 = vmatprep.subr.bf16.mxu0 %v15462_v42  ;;  %v15589_v57 = vcombine.low %v1427_v38, %v1431_v39 }
 0x137   : > { %v1295_v46 = vld [vmem:[%s17357_s27 + $0x1820] sm:$0xff]  ;;  %10130 = vmatpush1.bf16.msra.mxu0 %v15461_v10 }
 0x138   : > { %v1419_v17 = vld [vmem:[%s17357_s27 + $0x1c00] sm:$0xff]  ;;  %v15454_v21 = vcombine.high %v1291_v44, %v1295_v46  ;;  %10172 = vmatprep.subr.bf16.mxu1 %v15590_v43  ;;  %v15453_v0 = vcombine.low %v1291_v44, %v1295_v46 }
 0x139   : > { %v1423_v9 = vld [vmem:[%s17357_s27 + $0x1c20] sm:$0xff]  ;;  %10173 = vmatpush1.bf16.msra.mxu1 %v15589_v57 }
 0x13a   : > { %v15582_v22 = vcombine.high %v1419_v17, %v1423_v9  ;;  %v1411_v13 = vld [vmem:[%s17357_s27 + $0x1bc0] sm:$0xff]  ;;  %10131 = vmatprep.subr.bf16.mxu0 %v15454_v21  ;;  %v15581_v1 = vcombine.low %v1419_v17, %v1423_v9 }
 0x13b   : > { %v1415_v14 = vld [vmem:[%s17357_s27 + $0x1be0] sm:$0xff]  ;;  %10132 = vmatpush1.bf16.msra.mxu0 %v15453_v0 }
 0x13c   : > { %v1539_v62 = vld [vmem:[%s17357_s27 + $0x1fc0] sm:$0xff]  ;;  %v15574_v2 = vcombine.high %v1411_v13, %v1415_v14  ;;  %10174 = vmatprep.subr.bf16.mxu1 %v15582_v22  ;;  %v15573_v12 = vcombine.low %v1411_v13, %v1415_v14 }
 0x13d   : > { %v1543_v63 = vld [vmem:[%s17357_s27 + $0x1fe0] sm:$0xff]  ;;  %10175 = vmatpush1.bf16.msra.mxu1 %v15581_v1 }
 0x13e   : > { %v15702_v3 = vcombine.high %v1539_v62, %v1543_v63  ;;  %v1403_v4 = vld [vmem:[%s17357_s27 + $0x1b80] sm:$0xff]  ;;  %10133 = vmatprep.subr.bf16.mxu0 %v15574_v2  ;;  %v15701_v49 = vcombine.low %v1539_v62, %v1543_v63 }
 0x13f   : > { %v1407_v5 = vld [vmem:[%s17357_s27 + $0x1ba0] sm:$0xff]  ;;  %10134 = vmatpush2.bf16.msra.mxu0 %v15573_v12 }
 0x140   : > { %v1531_v6 = vld [vmem:[%s17357_s27 + $0x1f80] sm:$0xff]  ;;  %v15566_v50 = vcombine.high %v1403_v4, %v1407_v5  ;;  %10176 = vmatprep.subr.bf16.mxu1 %v15702_v3  ;;  %v15565_v26 = vcombine.low %v1403_v4, %v1407_v5 }
 0x141   : > { %v1535_v8 = vld [vmem:[%s17357_s27 + $0x1fa0] sm:$0xff]  ;;  %10177 = vmatpush2.bf16.msra.mxu1 %v15701_v49 }
 0x142   : > { %v15694_v15 = vcombine.high %v1531_v6, %v1535_v8  ;;  %v1395_v18 = vld [vmem:[%s17357_s27 + $0x1b40] sm:$0xff]  ;;  %10135 = vmatprep.subr.bf16.mxu0 %v15566_v50  ;;  %v15693_v27 = vcombine.low %v1531_v6, %v1535_v8 }
 0x143   : > { %v1399_v19 = vld [vmem:[%s17357_s27 + $0x1b60] sm:$0xff]  ;;  %10136 = vmatpush2.bf16.msra.mxu0 %v15565_v26 }
 0x144   : > { %v1523_v53 = vld [vmem:[%s17357_s27 + $0x1f40] sm:$0xff]  ;;  %v15558_v28 = vcombine.high %v1395_v18, %v1399_v19  ;;  %10178 = vmatprep.subr.bf16.mxu1 %v15694_v15  ;;  %v15557_v34 = vcombine.low %v1395_v18, %v1399_v19 }
 0x145   : > { %v1527_v54 = vld [vmem:[%s17357_s27 + $0x1f60] sm:$0xff]  ;;  %10179 = vmatpush2.bf16.msra.mxu1 %v15693_v27 }
 0x146   : > { %v15686_v29 = vcombine.high %v1523_v53, %v1527_v54  ;;  %v1387_v30 = vld [vmem:[%s17357_s27 + $0x1b00] sm:$0xff]  ;;  %10137 = vmatprep.subr.bf16.mxu0 %v15558_v28  ;;  %v15685_v35 = vcombine.low %v1523_v53, %v1527_v54 }
 0x147   : > { %v1391_v31 = vld [vmem:[%s17357_s27 + $0x1b20] sm:$0xff]  ;;  %10138 = vmatpush2.bf16.msra.mxu0 %v15557_v34 }
 0x148   : > { %v1515_v32 = vld [vmem:[%s17357_s27 + $0x1f00] sm:$0xff]  ;;  %v15550_v36 = vcombine.high %v1387_v30, %v1391_v31  ;;  %10180 = vmatprep.subr.bf16.mxu1 %v15686_v29  ;;  %v15549_v42 = vcombine.low %v1387_v30, %v1391_v31 }
 0x149   : > { %v1519_v33 = vld [vmem:[%s17357_s27 + $0x1f20] sm:$0xff]  ;;  %10181 = vmatpush2.bf16.msra.mxu1 %v15685_v35  ;;  %v17747_v35 = vcombine.low %v17655_v48, %v17658_v52 }
 0x14a   : > { %v15678_v37 = vcombine.high %v1515_v32, %v1519_v33  ;;  %v1379_v38 = vld [vmem:[%s17357_s27 + $0x1ac0] sm:$0xff]  ;;  %10139 = vmatprep.subr.bf16.mxu0 %v15550_v36  ;;  %v15677_v43 = vcombine.low %v1515_v32, %v1519_v33 }
 0x14b   : > { %v1383_v39 = vld [vmem:[%s17357_s27 + $0x1ae0] sm:$0xff]  ;;  %10140 = vmatpush2.bf16.msra.mxu0 %v15549_v42  ;;  %v17764_v42 = vld [vmem:[%s17355_s23 + $0xa8] sm:$0xff] }
 0x14c   : > { %v1507_v40 = vld [vmem:[%s17357_s27 + $0x1ec0] sm:$0xff]  ;;  %v15542_v44 = vcombine.high %v1379_v38, %v1383_v39  ;;  %10182 = vmatprep.subr.bf16.mxu1 %v15678_v37  ;;  %v15541_v21 = vcombine.low %v1379_v38, %v1383_v39  ;;  %v17758_v39 = vcombine.low %v17665_v55, %v17668_v56 }
 0x14d   : > { %v1511_v41 = vld [vmem:[%s17357_s27 + $0x1ee0] sm:$0xff]  ;;  %10183 = vmatpush2.bf16.msra.mxu1 %v15677_v43 }
 0x14e   : > { %v15670_v46 = vcombine.high %v1507_v40, %v1511_v41  ;;  %v1371_v17 = vld [vmem:[%s17357_s27 + $0x1a80] sm:$0xff]  ;;  %10141 = vmatprep.subr.bf16.mxu0 %v15542_v44  ;;  %v15669_v22 = vcombine.low %v1507_v40, %v1511_v41  ;;  %v17761_v41 = vld [vmem:[%s17355_s23 + $0x48] sm:$0xff] }
 0x14f   : > { %v1375_v9 = vld [vmem:[%s17357_s27 + $0x1aa0] sm:$0xff]  ;;  %10142 = vmatpush2.bf16.msra.mxu0 %v15541_v21 }
 0x150   : > { %v1499_v10 = vld [vmem:[%s17357_s27 + $0x1e80] sm:$0xff]  ;;  %v15534_v13 = vcombine.high %v1371_v17, %v1375_v9  ;;  %10184 = vmatprep.subr.bf16.mxu1 %v15670_v46  ;;  %v15533_v2 = vcombine.low %v1371_v17, %v1375_v9  ;;  %v17777_v9 = vcombine.high %v17761_v41, %v17764_v42 }
 0x151   : > { %v1503_v57 = vld [vmem:[%s17357_s27 + $0x1ea0] sm:$0xff]  ;;  %10185 = vmatpush2.bf16.msra.mxu1 %v15669_v22 }
 0x152   : > { %v15662_v14 = vcombine.high %v1499_v10, %v1503_v57  ;;  %v1363_v62 = vld [vmem:[%s17357_s27 + $0x1a40] sm:$0xff]  ;;  %10143 = vmatprep.subr.bf16.mxu0 %v15534_v13  ;;  %v15661_v3 = vcombine.low %v1499_v10, %v1503_v57 }
 0x153   : > { %v1367_v63 = vld [vmem:[%s17357_s27 + $0x1a60] sm:$0xff]  ;;  %10144 = vmatpush2.bf16.msra.mxu0 %v15533_v2 }
 0x154   : > { %v1491_v0 = vld [vmem:[%s17357_s27 + $0x1e40] sm:$0xff]  ;;  %v15526_v4 = vcombine.high %v1363_v62, %v1367_v63  ;;  %10186 = vmatprep.subr.bf16.mxu1 %v15662_v14  ;;  %v15525_v50 = vcombine.low %v1363_v62, %v1367_v63 }
 0x155   : > { %v1495_v1 = vld [vmem:[%s17357_s27 + $0x1e60] sm:$0xff]  ;;  %10187 = vmatpush2.bf16.msra.mxu1 %v15661_v3 }
 0x156   : > { %v15654_v5 = vcombine.high %v1491_v0, %v1495_v1  ;;  %v1355_v6 = vld [vmem:[%s17357_s27 + $0x1a00] sm:$0xff]  ;;  %10145 = vmatprep.subr.bf16.mxu0 %v15526_v4  ;;  %v15653_v15 = vcombine.low %v1491_v0, %v1495_v1 }
 0x157   : > { %v1359_v8 = vld [vmem:[%s17357_s27 + $0x1a20] sm:$0xff]  ;;  %10146 = vmatpush2.bf16.msra.mxu0 %v15525_v50 }
 0x158   : > { %v1483_v12 = vld [vmem:[%s17357_s27 + $0x1e00] sm:$0xff]  ;;  %v15518_v18 = vcombine.high %v1355_v6, %v1359_v8  ;;  %10188 = vmatprep.subr.bf16.mxu1 %v15654_v5  ;;  %v15517_v28 = vcombine.low %v1355_v6, %v1359_v8 }
 0x159   : > { %v1487_v49 = vld [vmem:[%s17357_s27 + $0x1e20] sm:$0xff]  ;;  %10189 = vmatpush2.bf16.msra.mxu1 %v15653_v15 }
 0x15a   : > { %v15646_v19 = vcombine.high %v1483_v12, %v1487_v49  ;;  %v1603_v53 = vld [vmem:[%s17357_s27 + $0x21c0] sm:$0xff]  ;;  %10147 = vmatprep.subr.bf16.mxu0 %v15518_v18  ;;  %v15645_v29 = vcombine.low %v1483_v12, %v1487_v49 }
 0x15b   : > { %v1607_v54 = vld [vmem:[%s17357_s27 + $0x21e0] sm:$0xff]  ;;  %10148 = vmatpush2.bf16.msra.mxu0 %v15517_v28 }
 0x15c   : > { %v1731_v26 = vld [vmem:[%s17357_s27 + $0x25c0] sm:$0xff]  ;;  %v15766_v30 = vcombine.high %v1603_v53, %v1607_v54  ;;  %10190 = vmatprep.subr.bf16.mxu1 %v15646_v19  ;;  %v15765_v40 = vcombine.low %v1603_v53, %v1607_v54 }
 0x15d   : > { %v1735_v27 = vld [vmem:[%s17357_s27 + $0x25e0] sm:$0xff]  ;;  %10191 = vmatpush2.bf16.msra.mxu1 %v15645_v29 }
 0x15e   : > { %v15894_v31 = vcombine.high %v1731_v26, %v1735_v27  ;;  %v1595_v32 = vld [vmem:[%s17357_s27 + $0x2180] sm:$0xff]  ;;  %10203 = vmatprep.subr.bf16.mxu0 %v15766_v30  ;;  %v15893_v48 = vcombine.low %v1731_v26, %v1735_v27  ;;  %10150 = vmatmul.mubr.bf16.vlgmr.msra.gmra.mxu0 %v17747_v35 }
 0x15f   : > { %v1599_v33 = vld [vmem:[%s17357_s27 + $0x21a0] sm:$0xff]  ;;  %10204 = vmatpush1.bf16.msra.mxu0 %v15765_v40 }
 0x160   : > { %v1723_v34 = vld [vmem:[%s17357_s27 + $0x2580] sm:$0xff]  ;;  %v15758_v52 = vcombine.high %v1595_v32, %v1599_v33  ;;  %10246 = vmatprep.subr.bf16.mxu1 %v15894_v31  ;;  %10193 = vmatmul.mubr.bf16.vlgmr.msra.gmra.mxu1 %v17758_v39  ;;  %v15757_v10 = vcombine.low %v1595_v32, %v1599_v33 }
 0x161   : > { %v1727_v36 = vld [vmem:[%s17357_s27 + $0x25a0] sm:$0xff]  ;;  %10247 = vmatpush1.bf16.msra.mxu1 %v15893_v48  ;;  %10278 = vmatprep.mubr.bf16.mxu1 %v17777_v9 }
 0x162   : > { %v17751_v37 = vld [vmem:[%s17355_s23 + $0x40] sm:$0xff]  ;;  %v15886_v43 = vcombine.high %v1723_v34, %v1727_v36  ;;  %10205 = vmatprep.subr.bf16.mxu0 %v15758_v52  ;;  %v15885_v57 = vcombine.low %v1723_v34, %v1727_v36 }
 0x163   : > { %v17754_v38 = vld [vmem:[%s17355_s23 + $0xa0] sm:$0xff]  ;;  %10206 = vmatpush1.bf16.msra.mxu0 %v15757_v10 }
 0x164   : > { %v1587_v44 = vld [vmem:[%s17357_s27 + $0x2140] sm:$0xff]  ;;  %v17770_v17 = vcombine.high %v17751_v37, %v17754_v38  ;;  %10248 = vmatprep.subr.bf16.mxu1 %v15886_v43 }
 0x165   : > { %v1591_v46 = vld [vmem:[%s17357_s27 + $0x2160] sm:$0xff]  ;;  %10249 = vmatpush1.bf16.msra.mxu1 %v15885_v57 }
 0x166   : > { %v1715_v55 = vld [vmem:[%s17357_s27 + $0x2540] sm:$0xff]  ;;  %v15750_v21 = vcombine.high %v1587_v44, %v1591_v46  ;;  %10235 = vmatprep.mubr.bf16.mxu0 %v17770_v17  ;;  %v15749_v0 = vcombine.low %v1587_v44, %v1591_v46 }
 0x167   : > { %v1719_v56 = vld [vmem:[%s17357_s27 + $0x2560] sm:$0xff] }
 0x168   : > { %v15878_v22 = vcombine.high %v1715_v55, %v1719_v56  ;;  %v1579_v13 = vld [vmem:[%s17357_s27 + $0x2100] sm:$0xff]  ;;  %10207 = vmatprep.subr.bf16.mxu0 %v15750_v21  ;;  %v15877_v1 = vcombine.low %v1715_v55, %v1719_v56 }
 0x169   : > { %v1583_v14 = vld [vmem:[%s17357_s27 + $0x2120] sm:$0xff]  ;;  %10208 = vmatpush1.bf16.msra.mxu0 %v15749_v0 }
 0x16a   : > { %v1707_v62 = vld [vmem:[%s17357_s27 + $0x2500] sm:$0xff]  ;;  %v15742_v2 = vcombine.high %v1579_v13, %v1583_v14  ;;  %10250 = vmatprep.subr.bf16.mxu1 %v15878_v22  ;;  %v15741_v12 = vcombine.low %v1579_v13, %v1583_v14 }
 0x16b   : > { %v1711_v63 = vld [vmem:[%s17357_s27 + $0x2520] sm:$0xff]  ;;  %10251 = vmatpush1.bf16.msra.mxu1 %v15877_v1 }
 0x16c   : > { %v15870_v3 = vcombine.high %v1707_v62, %v1711_v63  ;;  %v1571_v4 = vld [vmem:[%s17357_s27 + $0x20c0] sm:$0xff]  ;;  %10209 = vmatprep.subr.bf16.mxu0 %v15742_v2  ;;  %v15869_v49 = vcombine.low %v1707_v62, %v1711_v63 }
 0x16d   : > { %v1575_v5 = vld [vmem:[%s17357_s27 + $0x20e0] sm:$0xff]  ;;  %10210 = vmatpush1.bf16.msra.mxu0 %v15741_v12 }
 0x16e   : > { %v1699_v6 = vld [vmem:[%s17357_s27 + $0x24c0] sm:$0xff]  ;;  %v15734_v50 = vcombine.high %v1571_v4, %v1575_v5  ;;  %10252 = vmatprep.subr.bf16.mxu1 %v15870_v3  ;;  %v15733_v26 = vcombine.low %v1571_v4, %v1575_v5 }
 0x16f   : > { %v1703_v8 = vld [vmem:[%s17357_s27 + $0x24e0] sm:$0xff]  ;;  %10253 = vmatpush1.bf16.msra.mxu1 %v15869_v49 }
 0x170   : > { %v15862_v15 = vcombine.high %v1699_v6, %v1703_v8  ;;  %v1563_v18 = vld [vmem:[%s17357_s27 + $0x2080] sm:$0xff]  ;;  %10211 = vmatprep.subr.bf16.mxu0 %v15734_v50  ;;  %v15861_v27 = vcombine.low %v1699_v6, %v1703_v8 }
 0x171   : > { %v1567_v19 = vld [vmem:[%s17357_s27 + $0x20a0] sm:$0xff]  ;;  %10212 = vmatpush1.bf16.msra.mxu0 %v15733_v26 }
 0x172   : > { %v1691_v53 = vld [vmem:[%s17357_s27 + $0x2480] sm:$0xff]  ;;  %v15726_v28 = vcombine.high %v1563_v18, %v1567_v19  ;;  %10254 = vmatprep.subr.bf16.mxu1 %v15862_v15  ;;  %v15725_v34 = vcombine.low %v1563_v18, %v1567_v19 }
 0x173   : > { %v1695_v54 = vld [vmem:[%s17357_s27 + $0x24a0] sm:$0xff]  ;;  %10255 = vmatpush1.bf16.msra.mxu1 %v15861_v27 }
 0x174   : > { %v15854_v29 = vcombine.high %v1691_v53, %v1695_v54  ;;  %v1555_v30 = vld [vmem:[%s17357_s27 + $0x2040] sm:$0xff]  ;;  %10213 = vmatprep.subr.bf16.mxu0 %v15726_v28  ;;  %v15853_v36 = vcombine.low %v1691_v53, %v1695_v54 }
 0x175   : > { %v1559_v31 = vld [vmem:[%s17357_s27 + $0x2060] sm:$0xff]  ;;  %10214 = vmatpush1.bf16.msra.mxu0 %v15725_v34 }
 0x176   : > { %v1683_v32 = vld [vmem:[%s17357_s27 + $0x2440] sm:$0xff]  ;;  %v15718_v40 = vcombine.high %v1555_v30, %v1559_v31  ;;  %10256 = vmatprep.subr.bf16.mxu1 %v15854_v29  ;;  %v15717_v55 = vcombine.low %v1555_v30, %v1559_v31 }
 0x177   : > { %v1687_v33 = vld [vmem:[%s17357_s27 + $0x2460] sm:$0xff]  ;;  %10257 = vmatpush1.bf16.msra.mxu1 %v15853_v36 }
 0x178   : > { %v15846_v48 = vcombine.high %v1683_v32, %v1687_v33  ;;  %v1547_v52 = vld [vmem:[%s17357_s27 + $0x2000] sm:$0xff]  ;;  %10215 = vmatprep.subr.bf16.mxu0 %v15718_v40  ;;  %v15845_v56 = vcombine.low %v1683_v32, %v1687_v33 }
 0x179   : > { %v1551_v43 = vld [vmem:[%s17357_s27 + $0x2020] sm:$0xff]  ;;  %10216 = vmatpush1.bf16.msra.mxu0 %v15717_v55 }
 0x17a   : > { %v1675_v44 = vld [vmem:[%s17357_s27 + $0x2400] sm:$0xff]  ;;  %v15710_v10 = vcombine.high %v1547_v52, %v1551_v43  ;;  %10258 = vmatprep.subr.bf16.mxu1 %v15846_v48  ;;  %v15709_v62 = vcombine.low %v1547_v52, %v1551_v43 }
 0x17b   : > { %v1679_v46 = vld [vmem:[%s17357_s27 + $0x2420] sm:$0xff]  ;;  %10259 = vmatpush1.bf16.msra.mxu1 %v15845_v56 }
 0x17c   : > { %v15838_v57 = vcombine.high %v1675_v44, %v1679_v46  ;;  %v1667_v21 = vld [vmem:[%s17357_s27 + $0x23c0] sm:$0xff]  ;;  %10217 = vmatprep.subr.bf16.mxu0 %v15710_v10  ;;  %v15837_v63 = vcombine.low %v1675_v44, %v1679_v46 }
 0x17d   : > { %v1671_v22 = vld [vmem:[%s17357_s27 + $0x23e0] sm:$0xff]  ;;  %10218 = vmatpush1.bf16.msra.mxu0 %v15709_v62 }
 0x17e   : > { %v1795_v13 = vld [vmem:[%s17357_s27 + $0x27c0] sm:$0xff]  ;;  %v15830_v0 = vcombine.high %v1667_v21, %v1671_v22  ;;  %10260 = vmatprep.subr.bf16.mxu1 %v15838_v57  ;;  %v15829_v6 = vcombine.low %v1667_v21, %v1671_v22 }
 0x17f   : > { %v1799_v14 = vld [vmem:[%s17357_s27 + $0x27e0] sm:$0xff]  ;;  %10261 = vmatpush1.bf16.msra.mxu1 %v15837_v63 }
 0x180   : > { %v15958_v1 = vcombine.high %v1795_v13, %v1799_v14  ;;  %v1659_v2 = vld [vmem:[%s17357_s27 + $0x2380] sm:$0xff]  ;;  %10219 = vmatprep.subr.bf16.mxu0 %v15830_v0  ;;  %v15957_v8 = vcombine.low %v1795_v13, %v1799_v14 }
 0x181   : > { %v1663_v3 = vld [vmem:[%s17357_s27 + $0x23a0] sm:$0xff]  ;;  %10220 = vmatpush2.bf16.msra.mxu0 %v15829_v6 }
 0x182   : > { %v1787_v4 = vld [vmem:[%s17357_s27 + $0x2780] sm:$0xff]  ;;  %v15822_v12 = vcombine.high %v1659_v2, %v1663_v3  ;;  %10262 = vmatprep.subr.bf16.mxu1 %v15958_v1  ;;  %v15821_v53 = vcombine.low %v1659_v2, %v1663_v3 }
 0x183   : > { %v1791_v5 = vld [vmem:[%s17357_s27 + $0x27a0] sm:$0xff]  ;;  %10263 = vmatpush2.bf16.msra.mxu1 %v15957_v8 }
 0x184   : > { %v15950_v49 = vcombine.high %v1787_v4, %v1791_v5  ;;  %v1651_v50 = vld [vmem:[%s17357_s27 + $0x2340] sm:$0xff]  ;;  %10221 = vmatprep.subr.bf16.mxu0 %v15822_v12  ;;  %v15949_v54 = vcombine.low %v1787_v4, %v1791_v5 }
 0x185   : > { %v1655_v15 = vld [vmem:[%s17357_s27 + $0x2360] sm:$0xff]  ;;  %10222 = vmatpush2.bf16.msra.mxu0 %v15821_v53 }
 0x186   : > { %v1779_v18 = vld [vmem:[%s17357_s27 + $0x2740] sm:$0xff]  ;;  %v15814_v26 = vcombine.high %v1651_v50, %v1655_v15  ;;  %10264 = vmatprep.subr.bf16.mxu1 %v15950_v49  ;;  %v15813_v32 = vcombine.low %v1651_v50, %v1655_v15 }
 0x187   : > { %v1783_v19 = vld [vmem:[%s17357_s27 + $0x2760] sm:$0xff]  ;;  %10265 = vmatpush2.bf16.msra.mxu1 %v15949_v54 }
 0x188   : > { %v15942_v27 = vcombine.high %v1779_v18, %v1783_v19  ;;  %v1643_v28 = vld [vmem:[%s17357_s27 + $0x2300] sm:$0xff]  ;;  %10223 = vmatprep.subr.bf16.mxu0 %v15814_v26  ;;  %v15941_v33 = vcombine.low %v1779_v18, %v1783_v19 }
 0x189   : > { %v1647_v29 = vld [vmem:[%s17357_s27 + $0x2320] sm:$0xff]  ;;  %10224 = vmatpush2.bf16.msra.mxu0 %v15813_v32 }
 0x18a   : > { %v1771_v30 = vld [vmem:[%s17357_s27 + $0x2700] sm:$0xff]  ;;  %v15806_v34 = vcombine.high %v1643_v28, %v1647_v29  ;;  %10266 = vmatprep.subr.bf16.mxu1 %v15942_v27  ;;  %v15805_v44 = vcombine.low %v1643_v28, %v1647_v29 }
 0x18b   : > { %v1775_v31 = vld [vmem:[%s17357_s27 + $0x2720] sm:$0xff]  ;;  %10267 = vmatpush2.bf16.msra.mxu1 %v15941_v33 }
 0x18c   : > { %v15934_v36 = vcombine.high %v1771_v30, %v1775_v31  ;;  %v1635_v40 = vld [vmem:[%s17357_s27 + $0x22c0] sm:$0xff]  ;;  %10225 = vmatprep.subr.bf16.mxu0 %v15806_v34  ;;  %v15933_v46 = vcombine.low %v1771_v30, %v1775_v31 }
 0x18d   : > { %v1639_v48 = vld [vmem:[%s17357_s27 + $0x22e0] sm:$0xff]  ;;  %10226 = vmatpush2.bf16.msra.mxu0 %v15805_v44  ;;  %v17850_v44 = vld [vmem:[%s17355_s23 + $0xb0] sm:$0xff] }
 0x18e   : > { %v1763_v52 = vld [vmem:[%s17357_s27 + $0x26c0] sm:$0xff]  ;;  %v15798_v55 = vcombine.high %v1635_v40, %v1639_v48  ;;  %10268 = vmatprep.subr.bf16.mxu1 %v15934_v36  ;;  %v15797_v13 = vcombine.low %v1635_v40, %v1639_v48  ;;  %v17843_v48 = vcombine.low %v17751_v37, %v17754_v38 }
 0x18f   : > { %v1767_v43 = vld [vmem:[%s17357_s27 + $0x26e0] sm:$0xff]  ;;  %10269 = vmatpush2.bf16.msra.mxu1 %v15933_v46  ;;  %v17854_v46 = vcombine.low %v17761_v41, %v17764_v42 }
 0x190   : > { %v15926_v56 = vcombine.high %v1763_v52, %v1767_v43  ;;  %v1627_v10 = vld [vmem:[%s17357_s27 + $0x2280] sm:$0xff]  ;;  %10227 = vmatprep.subr.bf16.mxu0 %v15798_v55  ;;  %v15925_v14 = vcombine.low %v1763_v52, %v1767_v43  ;;  %v17847_v43 = vld [vmem:[%s17355_s23 + $0x50] sm:$0xff] }
 0x191   : > { %v1631_v57 = vld [vmem:[%s17357_s27 + $0x22a0] sm:$0xff]  ;;  %10228 = vmatpush2.bf16.msra.mxu0 %v15797_v13  ;;  %v17866_v13 = vcombine.high %v17847_v43, %v17850_v44 }
 0x192   : > { %v1755_v21 = vld [vmem:[%s17357_s27 + $0x2680] sm:$0xff]  ;;  %v15790_v62 = vcombine.high %v1627_v10, %v1631_v57  ;;  %10270 = vmatprep.subr.bf16.mxu1 %v15926_v56  ;;  %v15789_v4 = vcombine.low %v1627_v10, %v1631_v57  ;;  %v17857_v56 = vld [vmem:[%s17355_s23 + $0x58] sm:$0xff] }
 0x193   : > { %v1759_v22 = vld [vmem:[%s17357_s27 + $0x26a0] sm:$0xff]  ;;  %10271 = vmatpush2.bf16.msra.mxu1 %v15925_v14  ;;  %v17860_v10 = vld [vmem:[%s17355_s23 + $0xb8] sm:$0xff] }
 0x194   : > { %v15918_v63 = vcombine.high %v1755_v21, %v1759_v22  ;;  %v1619_v0 = vld [vmem:[%s17357_s27 + $0x2240] sm:$0xff]  ;;  %10229 = vmatprep.subr.bf16.mxu0 %v15790_v62  ;;  %v15917_v5 = vcombine.low %v1755_v21, %v1759_v22  ;;  %v17873_v14 = vcombine.high %v17857_v56, %v17860_v10 }
 0x195   : > { %v1623_v1 = vld [vmem:[%s17357_s27 + $0x2260] sm:$0xff]  ;;  %10230 = vmatpush2.bf16.msra.mxu0 %v15789_v4 }
 0x196   : > { %v1747_v2 = vld [vmem:[%s17357_s27 + $0x2640] sm:$0xff]  ;;  %v15782_v6 = vcombine.high %v1619_v0, %v1623_v1  ;;  %10272 = vmatprep.subr.bf16.mxu1 %v15918_v63  ;;  %v15781_v18 = vcombine.low %v1619_v0, %v1623_v1 }
 0x197   : > { %v1751_v3 = vld [vmem:[%s17357_s27 + $0x2660] sm:$0xff]  ;;  %10273 = vmatpush2.bf16.msra.mxu1 %v15917_v5 }
 0x198   : > { %v15910_v8 = vcombine.high %v1747_v2, %v1751_v3  ;;  %v1611_v12 = vld [vmem:[%s17357_s27 + $0x2200] sm:$0xff]  ;;  %10231 = vmatprep.subr.bf16.mxu0 %v15782_v6  ;;  %v15909_v19 = vcombine.low %v1747_v2, %v1751_v3 }
 0x199   : > { %v1615_v49 = vld [vmem:[%s17357_s27 + $0x2220] sm:$0xff]  ;;  %10232 = vmatpush2.bf16.msra.mxu0 %v15781_v18 }
 0x19a   : > { %v1739_v50 = vld [vmem:[%s17357_s27 + $0x2600] sm:$0xff]  ;;  %v15774_v53 = vcombine.high %v1611_v12, %v1615_v49  ;;  %10274 = vmatprep.subr.bf16.mxu1 %v15910_v8  ;;  %v15773_v30 = vcombine.low %v1611_v12, %v1615_v49 }
 0x19b   : > { %v1743_v15 = vld [vmem:[%s17357_s27 + $0x2620] sm:$0xff]  ;;  %10275 = vmatpush2.bf16.msra.mxu1 %v15909_v19 }
 0x19c   : > { %v15902_v54 = vcombine.high %v1739_v50, %v1743_v15  ;;  %v1859_v26 = vld [vmem:[%s17357_s27 + $0x29c0] sm:$0xff]  ;;  %10233 = vmatprep.subr.bf16.mxu0 %v15774_v53  ;;  %v15901_v31 = vcombine.low %v1739_v50, %v1743_v15 }
 0x19d   : > { %v1863_v27 = vld [vmem:[%s17357_s27 + $0x29e0] sm:$0xff]  ;;  %10234 = vmatpush2.bf16.msra.mxu0 %v15773_v30 }
 0x19e   : > { %v1987_v28 = vld [vmem:[%s17357_s27 + $0x2dc0] sm:$0xff]  ;;  %v16022_v32 = vcombine.high %v1859_v26, %v1863_v27  ;;  %10276 = vmatprep.subr.bf16.mxu1 %v15902_v54  ;;  %v16021_v55 = vcombine.low %v1859_v26, %v1863_v27 }
 0x19f   : > { %v1991_v29 = vld [vmem:[%s17357_s27 + $0x2de0] sm:$0xff]  ;;  %10277 = vmatpush2.bf16.msra.mxu1 %v15901_v31 }
 0x1a0   : > { %v16150_v33 = vcombine.high %v1987_v28, %v1991_v29  ;;  %v1851_v34 = vld [vmem:[%s17357_s27 + $0x2980] sm:$0xff]  ;;  %10289 = vmatprep.subr.bf16.mxu0 %v16022_v32  ;;  %v16149_v37 = vcombine.low %v1987_v28, %v1991_v29  ;;  %10236 = vmatmul.mubr.bf16.vlgmr.msra.gmra.mxu0 %v17843_v48 }
 0x1a1   : > { %v1855_v36 = vld [vmem:[%s17357_s27 + $0x29a0] sm:$0xff]  ;;  %10290 = vmatpush1.bf16.msra.mxu0 %v16021_v55  ;;  %10321 = vmatprep.mubr.bf16.mxu0 %v17866_v13 }
 0x1a2   : > { %v1979_v40 = vld [vmem:[%s17357_s27 + $0x2d80] sm:$0xff]  ;;  %v16014_v38 = vcombine.high %v1851_v34, %v1855_v36  ;;  %10332 = vmatprep.subr.bf16.mxu1 %v16150_v33  ;;  %10279 = vmatmul.mubr.bf16.vlgmr.msra.gmra.mxu1 %v17854_v46  ;;  %v16013_v62 = vcombine.low %v1851_v34, %v1855_v36 }
 0x1a3   : > { %v1983_v52 = vld [vmem:[%s17357_s27 + $0x2da0] sm:$0xff]  ;;  %10333 = vmatpush1.bf16.msra.mxu1 %v16149_v37  ;;  %10364 = vmatprep.mubr.bf16.mxu1 %v17873_v14 }
 0x1a4   : > { %v16142_v57 = vcombine.high %v1979_v40, %v1983_v52  ;;  %v1843_v21 = vld [vmem:[%s17357_s27 + $0x2940] sm:$0xff]  ;;  %10291 = vmatprep.subr.bf16.mxu0 %v16014_v38  ;;  %v16141_v63 = vcombine.low %v1979_v40, %v1983_v52 }
 0x1a5   : > { %v1847_v22 = vld [vmem:[%s17357_s27 + $0x2960] sm:$0xff]  ;;  %10292 = vmatpush1.bf16.msra.mxu0 %v16013_v62 }
 0x1a6   : > { %v1971_v41 = vld [vmem:[%s17357_s27 + $0x2d40] sm:$0xff]  ;;  %v16006_v0 = vcombine.high %v1843_v21, %v1847_v22  ;;  %10334 = vmatprep.subr.bf16.mxu1 %v16142_v57  ;;  %v16005_v6 = vcombine.low %v1843_v21, %v1847_v22 }
 0x1a7   : > { %v1975_v42 = vld [vmem:[%s17357_s27 + $0x2d60] sm:$0xff]  ;;  %10335 = vmatpush1.bf16.msra.mxu1 %v16141_v63 }
 0x1a8   : > { %v16134_v1 = vcombine.high %v1971_v41, %v1975_v42  ;;  %v1835_v2 = vld [vmem:[%s17357_s27 + $0x2900] sm:$0xff]  ;;  %10293 = vmatprep.subr.bf16.mxu0 %v16006_v0  ;;  %v16133_v8 = vcombine.low %v1971_v41, %v1975_v42 }
 0x1a9   : > { %v1839_v3 = vld [vmem:[%s17357_s27 + $0x2920] sm:$0xff]  ;;  %10294 = vmatpush1.bf16.msra.mxu0 %v16005_v6 }
 0x1aa   : > { %v1963_v4 = vld [vmem:[%s17357_s27 + $0x2d00] sm:$0xff]  ;;  %v15998_v12 = vcombine.high %v1835_v2, %v1839_v3  ;;  %10336 = vmatprep.subr.bf16.mxu1 %v16134_v1  ;;  %v15997_v53 = vcombine.low %v1835_v2, %v1839_v3 }
 0x1ab   : > { %v1967_v5 = vld [vmem:[%s17357_s27 + $0x2d20] sm:$0xff]  ;;  %10337 = vmatpush1.bf16.msra.mxu1 %v16133_v8 }
 0x1ac   : > { %v16126_v49 = vcombine.high %v1963_v4, %v1967_v5  ;;  %v1827_v50 = vld [vmem:[%s17357_s27 + $0x28c0] sm:$0xff]  ;;  %10295 = vmatprep.subr.bf16.mxu0 %v15998_v12  ;;  %v16125_v54 = vcombine.low %v1963_v4, %v1967_v5 }
 0x1ad   : > { %v1831_v15 = vld [vmem:[%s17357_s27 + $0x28e0] sm:$0xff]  ;;  %10296 = vmatpush1.bf16.msra.mxu0 %v15997_v53 }
 0x1ae   : > { %v1955_v18 = vld [vmem:[%s17357_s27 + $0x2cc0] sm:$0xff]  ;;  %v15990_v26 = vcombine.high %v1827_v50, %v1831_v15  ;;  %10338 = vmatprep.subr.bf16.mxu1 %v16126_v49  ;;  %v15989_v32 = vcombine.low %v1827_v50, %v1831_v15 }
 0x1af   : > { %v1959_v19 = vld [vmem:[%s17357_s27 + $0x2ce0] sm:$0xff]  ;;  %10339 = vmatpush1.bf16.msra.mxu1 %v16125_v54 }
 0x1b0   : > { %v16118_v27 = vcombine.high %v1955_v18, %v1959_v19  ;;  %v1819_v28 = vld [vmem:[%s17357_s27 + $0x2880] sm:$0xff]  ;;  %10297 = vmatprep.subr.bf16.mxu0 %v15990_v26  ;;  %v16117_v33 = vcombine.low %v1955_v18, %v1959_v19 }
 0x1b1   : > { %v1823_v29 = vld [vmem:[%s17357_s27 + $0x28a0] sm:$0xff]  ;;  %10298 = vmatpush1.bf16.msra.mxu0 %v15989_v32 }
 0x1b2   : > { %v1947_v30 = vld [vmem:[%s17357_s27 + $0x2c80] sm:$0xff]  ;;  %v15982_v34 = vcombine.high %v1819_v28, %v1823_v29  ;;  %10340 = vmatprep.subr.bf16.mxu1 %v16118_v27  ;;  %v15981_v38 = vcombine.low %v1819_v28, %v1823_v29 }
 0x1b3   : > { %v1951_v31 = vld [vmem:[%s17357_s27 + $0x2ca0] sm:$0xff]  ;;  %10341 = vmatpush1.bf16.msra.mxu1 %v16117_v33 }
 0x1b4   : > { %v16110_v36 = vcombine.high %v1947_v30, %v1951_v31  ;;  %v1811_v40 = vld [vmem:[%s17357_s27 + $0x2840] sm:$0xff]  ;;  %10299 = vmatprep.subr.bf16.mxu0 %v15982_v34  ;;  %v16109_v57 = vcombine.low %v1947_v30, %v1951_v31 }
 0x1b5   : > { %v1815_v52 = vld [vmem:[%s17357_s27 + $0x2860] sm:$0xff]  ;;  %10300 = vmatpush1.bf16.msra.mxu0 %v15981_v38 }
 0x1b6   : > { %v1939_v55 = vld [vmem:[%s17357_s27 + $0x2c40] sm:$0xff]  ;;  %v15974_v21 = vcombine.high %v1811_v40, %v1815_v52  ;;  %10342 = vmatprep.subr.bf16.mxu1 %v16110_v36  ;;  %v15973_v0 = vcombine.low %v1811_v40, %v1815_v52 }
 0x1b7   : > { %v1943_v37 = vld [vmem:[%s17357_s27 + $0x2c60] sm:$0xff]  ;;  %10343 = vmatpush1.bf16.msra.mxu1 %v16109_v57 }
 0x1b8   : > { %v16102_v22 = vcombine.high %v1939_v55, %v1943_v37  ;;  %v1803_v41 = vld [vmem:[%s17357_s27 + $0x2800] sm:$0xff]  ;;  %10301 = vmatprep.subr.bf16.mxu0 %v15974_v21  ;;  %v16101_v1 = vcombine.low %v1939_v55, %v1943_v37 }
 0x1b9   : > { %v1807_v42 = vld [vmem:[%s17357_s27 + $0x2820] sm:$0xff]  ;;  %10302 = vmatpush1.bf16.msra.mxu0 %v15973_v0 }
 0x1ba   : > { %v1931_v62 = vld [vmem:[%s17357_s27 + $0x2c00] sm:$0xff]  ;;  %v15966_v2 = vcombine.high %v1803_v41, %v1807_v42  ;;  %10344 = vmatprep.subr.bf16.mxu1 %v16102_v22  ;;  %v15965_v12 = vcombine.low %v1803_v41, %v1807_v42 }
 0x1bb   : > { %v1935_v63 = vld [vmem:[%s17357_s27 + $0x2c20] sm:$0xff]  ;;  %10345 = vmatpush1.bf16.msra.mxu1 %v16101_v1 }
 0x1bc   : > { %v16094_v3 = vcombine.high %v1931_v62, %v1935_v63  ;;  %v1923_v4 = vld [vmem:[%s17357_s27 + $0x2bc0] sm:$0xff]  ;;  %10303 = vmatprep.subr.bf16.mxu0 %v15966_v2  ;;  %v16093_v49 = vcombine.low %v1931_v62, %v1935_v63 }
 0x1bd   : > { %v1927_v5 = vld [vmem:[%s17357_s27 + $0x2be0] sm:$0xff]  ;;  %10304 = vmatpush1.bf16.msra.mxu0 %v15965_v12 }
 0x1be   : > { %v2051_v6 = vld [vmem:[%s17357_s27 + $0x2fc0] sm:$0xff]  ;;  %v16086_v50 = vcombine.high %v1923_v4, %v1927_v5  ;;  %10346 = vmatprep.subr.bf16.mxu1 %v16094_v3  ;;  %v16085_v26 = vcombine.low %v1923_v4, %v1927_v5 }
 0x1bf   : > { %v2055_v8 = vld [vmem:[%s17357_s27 + $0x2fe0] sm:$0xff]  ;;  %10347 = vmatpush1.bf16.msra.mxu1 %v16093_v49 }
 0x1c0   : > { %v16214_v15 = vcombine.high %v2051_v6, %v2055_v8  ;;  %v1915_v18 = vld [vmem:[%s17357_s27 + $0x2b80] sm:$0xff]  ;;  %10305 = vmatprep.subr.bf16.mxu0 %v16086_v50  ;;  %v16213_v27 = vcombine.low %v2051_v6, %v2055_v8 }
 0x1c1   : > { %v1919_v19 = vld [vmem:[%s17357_s27 + $0x2ba0] sm:$0xff]  ;;  %10306 = vmatpush2.bf16.msra.mxu0 %v16085_v26 }
 0x1c2   : > { %v2043_v53 = vld [vmem:[%s17357_s27 + $0x2f80] sm:$0xff]  ;;  %v16078_v28 = vcombine.high %v1915_v18, %v1919_v19  ;;  %10348 = vmatprep.subr.bf16.mxu1 %v16214_v15  ;;  %v16077_v34 = vcombine.low %v1915_v18, %v1919_v19 }
 0x1c3   : > { %v2047_v54 = vld [vmem:[%s17357_s27 + $0x2fa0] sm:$0xff]  ;;  %10349 = vmatpush2.bf16.msra.mxu1 %v16213_v27 }
 0x1c4   : > { %v16206_v29 = vcombine.high %v2043_v53, %v2047_v54  ;;  %v1907_v30 = vld [vmem:[%s17357_s27 + $0x2b40] sm:$0xff]  ;;  %10307 = vmatprep.subr.bf16.mxu0 %v16078_v28  ;;  %v16205_v36 = vcombine.low %v2043_v53, %v2047_v54 }
 0x1c5   : > { %v1911_v31 = vld [vmem:[%s17357_s27 + $0x2b60] sm:$0xff]  ;;  %10308 = vmatpush2.bf16.msra.mxu0 %v16077_v34 }
 0x1c6   : > { %v2035_v32 = vld [vmem:[%s17357_s27 + $0x2f40] sm:$0xff]  ;;  %v16070_v40 = vcombine.high %v1907_v30, %v1911_v31  ;;  %10350 = vmatprep.subr.bf16.mxu1 %v16206_v29  ;;  %v16069_v21 = vcombine.low %v1907_v30, %v1911_v31 }
 0x1c7   : > { %v2039_v33 = vld [vmem:[%s17357_s27 + $0x2f60] sm:$0xff]  ;;  %10351 = vmatpush2.bf16.msra.mxu1 %v16205_v36 }
 0x1c8   : > { %v16198_v52 = vcombine.high %v2035_v32, %v2039_v33  ;;  %v1899_v55 = vld [vmem:[%s17357_s27 + $0x2b00] sm:$0xff]  ;;  %10309 = vmatprep.subr.bf16.mxu0 %v16070_v40  ;;  %v16197_v22 = vcombine.low %v2035_v32, %v2039_v33 }
 0x1c9   : > { %v1903_v37 = vld [vmem:[%s17357_s27 + $0x2b20] sm:$0xff]  ;;  %10310 = vmatpush2.bf16.msra.mxu0 %v16069_v21  ;;  %v708_v21 = vld [vmem:[%s17357_s27 + $0x5c8] sm:$0xff] }
 0x1ca   : > { %v2027_v38 = vld [vmem:[%s17357_s27 + $0x2f00] sm:$0xff]  ;;  %v16062_v41 = vcombine.high %v1899_v55, %v1903_v37  ;;  %10352 = vmatprep.subr.bf16.mxu1 %v16198_v52  ;;  %v16061_v2 = vcombine.low %v1899_v55, %v1903_v37 }
 0x1cb   : > { %v2031_v57 = vld [vmem:[%s17357_s27 + $0x2f20] sm:$0xff]  ;;  %10353 = vmatpush2.bf16.msra.mxu1 %v16197_v22  ;;  %v712_v22 = vld [vmem:[%s17357_s27 + $0x5e8] sm:$0xff] }
 0x1cc   : > { %v16190_v42 = vcombine.high %v2027_v38, %v2031_v57  ;;  %v1891_v62 = vld [vmem:[%s17357_s27 + $0x2ac0] sm:$0xff]  ;;  %10311 = vmatprep.subr.bf16.mxu0 %v16062_v41  ;;  %v16189_v3 = vcombine.low %v2027_v38, %v2031_v57  ;;  %v580_v38 = vld [vmem:[%s17357_s27 + $0x1c8] sm:$0xff] }
 0x1cd   : > { %v1895_v63 = vld [vmem:[%s17357_s27 + $0x2ae0] sm:$0xff]  ;;  %10312 = vmatpush2.bf16.msra.mxu0 %v16061_v2  ;;  %v584_v57 = vld [vmem:[%s17357_s27 + $0x1e8] sm:$0xff]  ;;  %v17938_v2 = vcombine.low %v17847_v43, %v17850_v44 }
 0x1ce   : > { %v2019_v0 = vld [vmem:[%s17357_s27 + $0x2ec0] sm:$0xff]  ;;  %v16054_v4 = vcombine.high %v1891_v62, %v1895_v63  ;;  %10354 = vmatprep.subr.bf16.mxu1 %v16190_v42  ;;  %v16053_v50 = vcombine.low %v1891_v62, %v1895_v63  ;;  %v14744_v62 = vcombine.high %v580_v38, %v584_v57  ;;  %v14872_v63 = vcombine.high %v708_v21, %v712_v22  ;;  %v568_v43 = vld [vmem:[%s17357_s27 + $0x168] sm:$0xff] }
 0x1cf   : > { %v2023_v1 = vld [vmem:[%s17357_s27 + $0x2ee0] sm:$0xff]  ;;  %10355 = vmatpush2.bf16.msra.mxu1 %v16189_v3  ;;  %v700_v3 = vld [vmem:[%s17357_s27 + $0x588] sm:$0xff] }
 0x1d0   : > { %v16182_v5 = vcombine.high %v2019_v0, %v2023_v1  ;;  %v1883_v6 = vld [vmem:[%s17357_s27 + $0x2a80] sm:$0xff]  ;;  %10313 = vmatprep.subr.bf16.mxu0 %v16054_v4  ;;  %v16181_v15 = vcombine.low %v2019_v0, %v2023_v1  ;;  %v572_v0 = vld [vmem:[%s17357_s27 + $0x188] sm:$0xff] }
 0x1d1   : > { %v1887_v8 = vld [vmem:[%s17357_s27 + $0x2aa0] sm:$0xff]  ;;  %10314 = vmatpush2.bf16.msra.mxu0 %v16053_v50  ;;  %v576_v1 = vld [vmem:[%s17357_s27 + $0x1a8] sm:$0xff] }
 0x1d2   : > { %v2011_v12 = vld [vmem:[%s17357_s27 + $0x2e80] sm:$0xff]  ;;  %v16046_v18 = vcombine.high %v1883_v6, %v1887_v8  ;;  %10356 = vmatprep.subr.bf16.mxu1 %v16182_v5  ;;  %v16045_v28 = vcombine.low %v1883_v6, %v1887_v8  ;;  %v704_v4 = vld [vmem:[%s17357_s27 + $0x5a8] sm:$0xff]  ;;  %v17944_v5 = vcombine.low %v17857_v56, %v17860_v10  ;;  %v14743_v6 = vcombine.low %v580_v38, %v584_v57 }
 0x1d3   : > { %v2015_v49 = vld [vmem:[%s17357_s27 + $0x2ea0] sm:$0xff]  ;;  %10357 = vmatpush2.bf16.msra.mxu1 %v16181_v15  ;;  %v14871_v8 = vcombine.low %v708_v21, %v712_v22  ;;  %v564_v50 = vld [vmem:[%s17357_s27 + $0x148] sm:$0xff]  ;;  %v14735_v56 = vcombine.low %v572_v0, %v576_v1  ;;  %v14863_v10 = vcombine.low %v700_v3, %v704_v4 }
 0x1d4   : > { %v16174_v19 = vcombine.high %v2011_v12, %v2015_v49  ;;  %v1875_v53 = vld [vmem:[%s17357_s27 + $0x2a40] sm:$0xff]  ;;  %10315 = vmatprep.subr.bf16.mxu0 %v16046_v18  ;;  %v16173_v29 = vcombine.low %v2011_v12, %v2015_v49  ;;  %v14736_v12 = vcombine.high %v572_v0, %v576_v1  ;;  %v14864_v49 = vcombine.high %v700_v3, %v704_v4  ;;  %v692_v44 = vld [vmem:[%s17357_s27 + $0x548] sm:$0xff] }
 0x1d5   : > { %v1879_v54 = vld [vmem:[%s17357_s27 + $0x2a60] sm:$0xff]  ;;  %10316 = vmatpush2.bf16.msra.mxu0 %v16045_v28  ;;  %v696_v15 = vld [vmem:[%s17357_s27 + $0x568] sm:$0xff]  ;;  %v14728_v18 = vcombine.high %v564_v50, %v568_v43  ;;  %v14727_v28 = vcombine.low %v564_v50, %v568_v43 }
 0x1d6   : > { %v2003_v26 = vld [vmem:[%s17357_s27 + $0x2e40] sm:$0xff]  ;;  %v16038_v30 = vcombine.high %v1875_v53, %v1879_v54  ;;  %10358 = vmatprep.subr.bf16.mxu1 %v16174_v19  ;;  %v16037_v40 = vcombine.low %v1875_v53, %v1879_v54  ;;  %v14856_v19 = vcombine.high %v692_v44, %v696_v15  ;;  %v556_v53 = vld [vmem:[%s17357_s27 + $0x108] sm:$0xff] }
 0x1d7   : > { %v2007_v27 = vld [vmem:[%s17357_s27 + $0x2e60] sm:$0xff]  ;;  %10359 = vmatpush2.bf16.msra.mxu1 %v16173_v29  ;;  %v560_v54 = vld [vmem:[%s17357_s27 + $0x128] sm:$0xff]  ;;  %v14855_v29 = vcombine.low %v692_v44, %v696_v15 }
 0x1d8   : > { %v16166_v31 = vcombine.high %v2003_v26, %v2007_v27  ;;  %v1867_v32 = vld [vmem:[%s17357_s27 + $0x2a00] sm:$0xff]  ;;  %10317 = vmatprep.subr.bf16.mxu0 %v16038_v30  ;;  %v16165_v52 = vcombine.low %v2003_v26, %v2007_v27  ;;  %v684_v26 = vld [vmem:[%s17357_s27 + $0x508] sm:$0xff]  ;;  %v14720_v30 = vcombine.high %v556_v53, %v560_v54 }
 0x1d9   : > { %v1871_v33 = vld [vmem:[%s17357_s27 + $0x2a20] sm:$0xff]  ;;  %10318 = vmatpush2.bf16.msra.mxu0 %v16037_v40  ;;  %v688_v27 = vld [vmem:[%s17357_s27 + $0x528] sm:$0xff]  ;;  %v14719_v40 = vcombine.low %v556_v53, %v560_v54 }
 0x1da   : > { %v1995_v34 = vld [vmem:[%s17357_s27 + $0x2e00] sm:$0xff]  ;;  %v16030_v55 = vcombine.high %v1867_v32, %v1871_v33  ;;  %10360 = vmatprep.subr.bf16.mxu1 %v16166_v31  ;;  %v16029_v41 = vcombine.low %v1867_v32, %v1871_v33  ;;  %v14848_v31 = vcombine.high %v684_v26, %v688_v27  ;;  %v548_v32 = vld [vmem:[%s17357_s27 + $0xc8] sm:$0xff] }
 0x1db   : > { %v1999_v36 = vld [vmem:[%s17357_s27 + $0x2e20] sm:$0xff]  ;;  %10361 = vmatpush2.bf16.msra.mxu1 %v16165_v52  ;;  %v552_v33 = vld [vmem:[%s17357_s27 + $0xe8] sm:$0xff]  ;;  %v14847_v52 = vcombine.low %v684_v26, %v688_v27 }
 0x1dc   : > { %v16158_v37 = vcombine.high %v1995_v34, %v1999_v36  ;;  %10319 = vmatprep.subr.bf16.mxu0 %v16030_v55  ;;  %v16157_v42 = vcombine.low %v1995_v34, %v1999_v36  ;;  %v676_v34 = vld [vmem:[%s17357_s27 + $0x4c8] sm:$0xff]  ;;  %v14712_v55 = vcombine.high %v548_v32, %v552_v33 }
 0x1dd   : > { %10320 = vmatpush2.bf16.msra.mxu0 %v16029_v41  ;;  %v680_v36 = vld [vmem:[%s17357_s27 + $0x4e8] sm:$0xff]  ;;  %v14711_v41 = vcombine.low %v548_v32, %v552_v33 }
 0x1de   : > { %10362 = vmatprep.subr.bf16.mxu1 %v16158_v37  ;;  %10375 = vmatprep.subr.bf16.mxu0 %v14744_v62  ;;  %v14840_v37 = vcombine.high %v676_v34, %v680_v36  ;;  %v540_v38 = vld [vmem:[%s17357_s27 + $0x88] sm:$0xff] }
 0x1df   : > { %10363 = vmatpush2.bf16.msra.mxu1 %v16157_v42  ;;  %v544_v57 = vld [vmem:[%s17357_s27 + $0xa8] sm:$0xff]  ;;  %v14839_v42 = vcombine.low %v676_v34, %v680_v36 }
 0x1e0   : > { %10418 = vmatprep.subr.bf16.mxu1 %v14872_v63  ;;  %10322 = vmatmul.mubr.bf16.vlgmr.msra.gmra.mxu0 %v17938_v2  ;;  %v668_v21 = vld [vmem:[%s17357_s27 + $0x488] sm:$0xff]  ;;  %v14704_v62 = vcombine.high %v540_v38, %v544_v57 }
 0x1e1   : > { %10376 = vmatpush1.bf16.msra.mxu0 %v14743_v6  ;;  %10407 = vmatprep.mubr.bf16.mxu0 %v17402_v20  ;;  %v672_v22 = vld [vmem:[%s17357_s27 + $0x4a8] sm:$0xff]  ;;  %v14703_v6 = vcombine.low %v540_v38, %v544_v57 }
 0x1e2   : > { %10365 = vmatmul.mubr.bf16.vlgmr.msra.gmra.mxu1 %v17944_v5  ;;  %10377 = vmatprep.subr.bf16.mxu0 %v14736_v12  ;;  %v14832_v63 = vcombine.high %v668_v21, %v672_v22  ;;  %v532_v0 = vld [vmem:[%s17357_s27 + $0x48] sm:$0xff] }
 0x1e3   : > { %10419 = vmatpush1.bf16.msra.mxu1 %v14871_v8  ;;  %10450 = vmatprep.mubr.bf16.mxu1 %v17414_v25  ;;  %v536_v1 = vld [vmem:[%s17357_s27 + $0x68] sm:$0xff]  ;;  %v14831_v8 = vcombine.low %v668_v21, %v672_v22 }
 0x1e4   : > { %10420 = vmatprep.subr.bf16.mxu1 %v14864_v49  ;;  %v660_v3 = vld [vmem:[%s17357_s27 + $0x448] sm:$0xff]  ;;  %v14696_v12 = vcombine.high %v532_v0, %v536_v1 }
 0x1e5   : > { %10378 = vmatpush1.bf16.msra.mxu0 %v14735_v56  ;;  %v664_v4 = vld [vmem:[%s17357_s27 + $0x468] sm:$0xff]  ;;  %v14695_v56 = vcombine.low %v532_v0, %v536_v1 }
 0x1e6   : > { %10379 = vmatprep.subr.bf16.mxu0 %v14728_v18  ;;  %v14824_v49 = vcombine.high %v660_v3, %v664_v4  ;;  %v524_v50 = vld [vmem:[%s17357_s27 + $0x8] sm:$0xff] }
 0x1e7   : > { %10421 = vmatpush1.bf16.msra.mxu1 %v14863_v10  ;;  %v528_v43 = vld [vmem:[%s17357_s27 + $0x28] sm:$0xff]  ;;  %v14823_v10 = vcombine.low %v660_v3, %v664_v4 }
 0x1e8   : > { %10422 = vmatprep.subr.bf16.mxu1 %v14856_v19  ;;  %v652_v44 = vld [vmem:[%s17357_s27 + $0x408] sm:$0xff]  ;;  %v14688_v18 = vcombine.high %v524_v50, %v528_v43 }
 0x1e9   : > { %10380 = vmatpush1.bf16.msra.mxu0 %v14727_v28  ;;  %v656_v15 = vld [vmem:[%s17357_s27 + $0x428] sm:$0xff]  ;;  %v14687_v28 = vcombine.low %v524_v50, %v528_v43 }
 0x1ea   : > { %10381 = vmatprep.subr.bf16.mxu0 %v14720_v30  ;;  %v14816_v19 = vcombine.high %v652_v44, %v656_v15  ;;  %v644_v53 = vld [vmem:[%s17357_s27 + $0x3c8] sm:$0xff] }
 0x1eb   : > { %10423 = vmatpush1.bf16.msra.mxu1 %v14855_v29  ;;  %v648_v54 = vld [vmem:[%s17357_s27 + $0x3e8] sm:$0xff]  ;;  %v14815_v29 = vcombine.low %v652_v44, %v656_v15 }
 0x1ec   : > { %10424 = vmatprep.subr.bf16.mxu1 %v14848_v31  ;;  %v772_v26 = vld [vmem:[%s17357_s27 + $0x7c8] sm:$0xff]  ;;  %v14808_v30 = vcombine.high %v644_v53, %v648_v54 }
 0x1ed   : > { %10382 = vmatpush1.bf16.msra.mxu0 %v14719_v40  ;;  %v776_v27 = vld [vmem:[%s17357_s27 + $0x7e8] sm:$0xff]  ;;  %v14807_v40 = vcombine.low %v644_v53, %v648_v54 }
 0x1ee   : > { %10383 = vmatprep.subr.bf16.mxu0 %v14712_v55  ;;  %v14936_v31 = vcombine.high %v772_v26, %v776_v27  ;;  %v636_v32 = vld [vmem:[%s17357_s27 + $0x388] sm:$0xff] }
 0x1ef   : > { %10425 = vmatpush1.bf16.msra.mxu1 %v14847_v52  ;;  %v640_v33 = vld [vmem:[%s17357_s27 + $0x3a8] sm:$0xff]  ;;  %v14935_v52 = vcombine.low %v772_v26, %v776_v27 }
 0x1f0   : > { %10426 = vmatprep.subr.bf16.mxu1 %v14840_v37  ;;  %v764_v34 = vld [vmem:[%s17357_s27 + $0x788] sm:$0xff]  ;;  %v14800_v55 = vcombine.high %v636_v32, %v640_v33 }
 0x1f1   : > { %10384 = vmatpush1.bf16.msra.mxu0 %v14711_v41  ;;  %v768_v36 = vld [vmem:[%s17357_s27 + $0x7a8] sm:$0xff]  ;;  %v14799_v41 = vcombine.low %v636_v32, %v640_v33 }
 0x1f2   : > { %10385 = vmatprep.subr.bf16.mxu0 %v14704_v62  ;;  %v14928_v37 = vcombine.high %v764_v34, %v768_v36  ;;  %v628_v38 = vld [vmem:[%s17357_s27 + $0x348] sm:$0xff] }
 0x1f3   : > { %10427 = vmatpush1.bf16.msra.mxu1 %v14839_v42  ;;  %v632_v57 = vld [vmem:[%s17357_s27 + $0x368] sm:$0xff]  ;;  %v14927_v42 = vcombine.low %v764_v34, %v768_v36 }
 0x1f4   : > { %10428 = vmatprep.subr.bf16.mxu1 %v14832_v63  ;;  %v756_v21 = vld [vmem:[%s17357_s27 + $0x748] sm:$0xff]  ;;  %v14792_v62 = vcombine.high %v628_v38, %v632_v57 }
 0x1f5   : > { %10386 = vmatpush1.bf16.msra.mxu0 %v14703_v6  ;;  %v760_v22 = vld [vmem:[%s17357_s27 + $0x768] sm:$0xff]  ;;  %v14791_v6 = vcombine.low %v628_v38, %v632_v57 }
 0x1f6   : > { %10387 = vmatprep.subr.bf16.mxu0 %v14696_v12  ;;  %v14920_v63 = vcombine.high %v756_v21, %v760_v22  ;;  %v620_v0 = vld [vmem:[%s17357_s27 + $0x308] sm:$0xff] }
 0x1f7   : > { %10429 = vmatpush1.bf16.msra.mxu1 %v14831_v8  ;;  %v624_v1 = vld [vmem:[%s17357_s27 + $0x328] sm:$0xff]  ;;  %v14919_v8 = vcombine.low %v756_v21, %v760_v22 }
 0x1f8   : > { %10430 = vmatprep.subr.bf16.mxu1 %v14824_v49  ;;  %v748_v3 = vld [vmem:[%s17357_s27 + $0x708] sm:$0xff]  ;;  %v14784_v12 = vcombine.high %v620_v0, %v624_v1 }
 0x1f9   : > { %10388 = vmatpush1.bf16.msra.mxu0 %v14695_v56  ;;  %v752_v4 = vld [vmem:[%s17357_s27 + $0x728] sm:$0xff]  ;;  %v14783_v56 = vcombine.low %v620_v0, %v624_v1 }
 0x1fa   : > { %10389 = vmatprep.subr.bf16.mxu0 %v14688_v18  ;;  %v14912_v49 = vcombine.high %v748_v3, %v752_v4  ;;  %v612_v50 = vld [vmem:[%s17357_s27 + $0x2c8] sm:$0xff] }
 0x1fb   : > { %10431 = vmatpush1.bf16.msra.mxu1 %v14823_v10  ;;  %v616_v43 = vld [vmem:[%s17357_s27 + $0x2e8] sm:$0xff]  ;;  %v14911_v10 = vcombine.low %v748_v3, %v752_v4 }
 0x1fc   : > { %10432 = vmatprep.subr.bf16.mxu1 %v14816_v19  ;;  %v740_v44 = vld [vmem:[%s17357_s27 + $0x6c8] sm:$0xff]  ;;  %v14776_v18 = vcombine.high %v612_v50, %v616_v43 }
 0x1fd   : > { %10390 = vmatpush1.bf16.msra.mxu0 %v14687_v28  ;;  %v744_v15 = vld [vmem:[%s17357_s27 + $0x6e8] sm:$0xff]  ;;  %v14775_v28 = vcombine.low %v612_v50, %v616_v43 }
 0x1fe   : > { %10391 = vmatprep.subr.bf16.mxu0 %v14808_v30  ;;  %v14904_v19 = vcombine.high %v740_v44, %v744_v15  ;;  %v604_v53 = vld [vmem:[%s17357_s27 + $0x288] sm:$0xff] }
 0x1ff   : > { %10433 = vmatpush1.bf16.msra.mxu1 %v14815_v29  ;;  %v608_v54 = vld [vmem:[%s17357_s27 + $0x2a8] sm:$0xff]  ;;  %v14903_v29 = vcombine.low %v740_v44, %v744_v15 }
 0x200   : > { %10434 = vmatprep.subr.bf16.mxu1 %v14936_v31  ;;  %v732_v26 = vld [vmem:[%s17357_s27 + $0x688] sm:$0xff]  ;;  %v14768_v30 = vcombine.high %v604_v53, %v608_v54 }
 0x201   : > { %10392 = vmatpush2.bf16.msra.mxu0 %v14807_v40  ;;  %v736_v27 = vld [vmem:[%s17357_s27 + $0x6a8] sm:$0xff]  ;;  %v14767_v40 = vcombine.low %v604_v53, %v608_v54 }
 0x202   : > { %10393 = vmatprep.subr.bf16.mxu0 %v14800_v55  ;;  %v14896_v31 = vcombine.high %v732_v26, %v736_v27  ;;  %v596_v32 = vld [vmem:[%s17357_s27 + $0x248] sm:$0xff] }
 0x203   : > { %10435 = vmatpush2.bf16.msra.mxu1 %v14935_v52  ;;  %v600_v33 = vld [vmem:[%s17357_s27 + $0x268] sm:$0xff]  ;;  %v14895_v52 = vcombine.low %v732_v26, %v736_v27 }
 0x204   : > { %10436 = vmatprep.subr.bf16.mxu1 %v14928_v37  ;;  %v724_v34 = vld [vmem:[%s17357_s27 + $0x648] sm:$0xff]  ;;  %v14760_v55 = vcombine.high %v596_v32, %v600_v33 }
 0x205   : > { %10394 = vmatpush2.bf16.msra.mxu0 %v14799_v41  ;;  %v728_v36 = vld [vmem:[%s17357_s27 + $0x668] sm:$0xff]  ;;  %v14759_v41 = vcombine.low %v596_v32, %v600_v33 }
 0x206   : > { %10395 = vmatprep.subr.bf16.mxu0 %v14792_v62  ;;  %v14888_v37 = vcombine.high %v724_v34, %v728_v36  ;;  %v588_v38 = vld [vmem:[%s17357_s27 + $0x208] sm:$0xff] }
 0x207   : > { %10437 = vmatpush2.bf16.msra.mxu1 %v14927_v42  ;;  %v592_v57 = vld [vmem:[%s17357_s27 + $0x228] sm:$0xff]  ;;  %v14887_v42 = vcombine.low %v724_v34, %v728_v36 }
 0x208   : > { %10438 = vmatprep.subr.bf16.mxu1 %v14920_v63  ;;  %v716_v21 = vld [vmem:[%s17357_s27 + $0x608] sm:$0xff]  ;;  %v14752_v62 = vcombine.high %v588_v38, %v592_v57 }
 0x209   : > { %10396 = vmatpush2.bf16.msra.mxu0 %v14791_v6  ;;  %v720_v22 = vld [vmem:[%s17357_s27 + $0x628] sm:$0xff]  ;;  %v14751_v6 = vcombine.low %v588_v38, %v592_v57 }
 0x20a   : > { %10397 = vmatprep.subr.bf16.mxu0 %v14784_v12  ;;  %v14880_v63 = vcombine.high %v716_v21, %v720_v22  ;;  %v836_v0 = vld [vmem:[%s17357_s27 + $0x9c8] sm:$0xff] }
 0x20b   : > { %10439 = vmatpush2.bf16.msra.mxu1 %v14919_v8  ;;  %v840_v1 = vld [vmem:[%s17357_s27 + $0x9e8] sm:$0xff]  ;;  %v14879_v8 = vcombine.low %v716_v21, %v720_v22 }
 0x20c   : > { %10440 = vmatprep.subr.bf16.mxu1 %v14912_v49  ;;  %v964_v3 = vld [vmem:[%s17357_s27 + $0xdc8] sm:$0xff]  ;;  %v15000_v12 = vcombine.high %v836_v0, %v840_v1 }
 0x20d   : > { %10398 = vmatpush2.bf16.msra.mxu0 %v14783_v56  ;;  %v968_v4 = vld [vmem:[%s17357_s27 + $0xde8] sm:$0xff]  ;;  %v14999_v56 = vcombine.low %v836_v0, %v840_v1 }
 0x20e   : > { %10399 = vmatprep.subr.bf16.mxu0 %v14776_v18  ;;  %v15128_v49 = vcombine.high %v964_v3, %v968_v4  ;;  %v828_v50 = vld [vmem:[%s17357_s27 + $0x988] sm:$0xff] }
 0x20f   : > { %10441 = vmatpush2.bf16.msra.mxu1 %v14911_v10  ;;  %v832_v43 = vld [vmem:[%s17357_s27 + $0x9a8] sm:$0xff]  ;;  %v15127_v10 = vcombine.low %v964_v3, %v968_v4 }
 0x210   : > { %10442 = vmatprep.subr.bf16.mxu1 %v14904_v19  ;;  %v956_v44 = vld [vmem:[%s17357_s27 + $0xd88] sm:$0xff]  ;;  %v14992_v18 = vcombine.high %v828_v50, %v832_v43 }
 0x211   : > { %10400 = vmatpush2.bf16.msra.mxu0 %v14775_v28  ;;  %v960_v15 = vld [vmem:[%s17357_s27 + $0xda8] sm:$0xff]  ;;  %v14991_v28 = vcombine.low %v828_v50, %v832_v43 }
 0x212   : > { %10401 = vmatprep.subr.bf16.mxu0 %v14768_v30  ;;  %v15120_v19 = vcombine.high %v956_v44, %v960_v15  ;;  %v820_v53 = vld [vmem:[%s17357_s27 + $0x948] sm:$0xff] }
 0x213   : > { %10443 = vmatpush2.bf16.msra.mxu1 %v14903_v29  ;;  %v824_v54 = vld [vmem:[%s17357_s27 + $0x968] sm:$0xff]  ;;  %v15119_v29 = vcombine.low %v956_v44, %v960_v15 }
 0x214   : > { %10444 = vmatprep.subr.bf16.mxu1 %v14896_v31  ;;  %v948_v26 = vld [vmem:[%s17357_s27 + $0xd48] sm:$0xff]  ;;  %v14984_v30 = vcombine.high %v820_v53, %v824_v54 }
 0x215   : > { %10402 = vmatpush2.bf16.msra.mxu0 %v14767_v40  ;;  %v952_v27 = vld [vmem:[%s17357_s27 + $0xd68] sm:$0xff]  ;;  %v14983_v40 = vcombine.low %v820_v53, %v824_v54 }
 0x216   : > { %10403 = vmatprep.subr.bf16.mxu0 %v14760_v55  ;;  %v15112_v31 = vcombine.high %v948_v26, %v952_v27  ;;  %v812_v32 = vld [vmem:[%s17357_s27 + $0x908] sm:$0xff] }
 0x217   : > { %10445 = vmatpush2.bf16.msra.mxu1 %v14895_v52  ;;  %v816_v33 = vld [vmem:[%s17357_s27 + $0x928] sm:$0xff]  ;;  %v15111_v52 = vcombine.low %v948_v26, %v952_v27 }
 0x218   : > { %10446 = vmatprep.subr.bf16.mxu1 %v14888_v37  ;;  %v940_v34 = vld [vmem:[%s17357_s27 + $0xd08] sm:$0xff]  ;;  %v14976_v55 = vcombine.high %v812_v32, %v816_v33 }
 0x219   : > { %10404 = vmatpush2.bf16.msra.mxu0 %v14759_v41  ;;  %v944_v36 = vld [vmem:[%s17357_s27 + $0xd28] sm:$0xff]  ;;  %v14975_v41 = vcombine.low %v812_v32, %v816_v33 }
 0x21a   : > { %10405 = vmatprep.subr.bf16.mxu0 %v14752_v62  ;;  %v15104_v37 = vcombine.high %v940_v34, %v944_v36  ;;  %v804_v38 = vld [vmem:[%s17357_s27 + $0x8c8] sm:$0xff] }
 0x21b   : > { %10447 = vmatpush2.bf16.msra.mxu1 %v14887_v42  ;;  %v808_v57 = vld [vmem:[%s17357_s27 + $0x8e8] sm:$0xff]  ;;  %v15103_v42 = vcombine.low %v940_v34, %v944_v36 }
 0x21c   : > { %10448 = vmatprep.subr.bf16.mxu1 %v14880_v63  ;;  %v932_v21 = vld [vmem:[%s17357_s27 + $0xcc8] sm:$0xff]  ;;  %v14968_v62 = vcombine.high %v804_v38, %v808_v57 }
 0x21d   : > { %10406 = vmatpush2.bf16.msra.mxu0 %v14751_v6  ;;  %v936_v22 = vld [vmem:[%s17357_s27 + $0xce8] sm:$0xff]  ;;  %v14967_v6 = vcombine.low %v804_v38, %v808_v57 }
 0x21e   : > { %10461 = vmatprep.subr.bf16.mxu0 %v15000_v12  ;;  %v15096_v63 = vcombine.high %v932_v21, %v936_v22  ;;  %v796_v0 = vld [vmem:[%s17357_s27 + $0x888] sm:$0xff] }
 0x21f   : > { %10449 = vmatpush2.bf16.msra.mxu1 %v14879_v8  ;;  %v800_v1 = vld [vmem:[%s17357_s27 + $0x8a8] sm:$0xff]  ;;  %v15095_v8 = vcombine.low %v932_v21, %v936_v22 }
 0x220   : > { %10504 = vmatprep.subr.bf16.mxu1 %v15128_v49  ;;  %10408 = vmatmul.mubr.bf16.vlgmr.msra.gmra.mxu0 %v17459_v47  ;;  %v924_v3 = vld [vmem:[%s17357_s27 + $0xc88] sm:$0xff]  ;;  %v14960_v12 = vcombine.high %v796_v0, %v800_v1 }
 0x221   : > { %10462 = vmatpush1.bf16.msra.mxu0 %v14999_v56  ;;  %10493 = vmatprep.mubr.bf16.mxu0 %v17482_v58  ;;  %v928_v4 = vld [vmem:[%s17357_s27 + $0xca8] sm:$0xff]  ;;  %v14959_v56 = vcombine.low %v796_v0, %v800_v1 }
 0x222   : > { %10451 = vmatmul.mubr.bf16.vlgmr.msra.gmra.mxu1 %v17470_v51  ;;  %10463 = vmatprep.subr.bf16.mxu0 %v14992_v18  ;;  %v15088_v49 = vcombine.high %v924_v3, %v928_v4  ;;  %v788_v50 = vld [vmem:[%s17357_s27 + $0x848] sm:$0xff] }
 0x223   : > { %10505 = vmatpush1.bf16.msra.mxu1 %v15127_v10  ;;  %10536 = vmatprep.mubr.bf16.mxu1 %v17489_v59  ;;  %v792_v43 = vld [vmem:[%s17357_s27 + $0x868] sm:$0xff]  ;;  %v15087_v10 = vcombine.low %v924_v3, %v928_v4 }
 0x224   : > { %10506 = vmatprep.subr.bf16.mxu1 %v15120_v19  ;;  %v916_v44 = vld [vmem:[%s17357_s27 + $0xc48] sm:$0xff]  ;;  %v14952_v18 = vcombine.high %v788_v50, %v792_v43 }
 0x225   : > { %10464 = vmatpush1.bf16.msra.mxu0 %v14991_v28  ;;  %v920_v15 = vld [vmem:[%s17357_s27 + $0xc68] sm:$0xff]  ;;  %v14951_v28 = vcombine.low %v788_v50, %v792_v43 }
 0x226   : > { %10465 = vmatprep.subr.bf16.mxu0 %v14984_v30  ;;  %v15080_v19 = vcombine.high %v916_v44, %v920_v15  ;;  %v780_v53 = vld [vmem:[%s17357_s27 + $0x808] sm:$0xff] }
 0x227   : > { %10507 = vmatpush1.bf16.msra.mxu1 %v15119_v29  ;;  %v784_v54 = vld [vmem:[%s17357_s27 + $0x828] sm:$0xff]  ;;  %v15079_v29 = vcombine.low %v916_v44, %v920_v15 }
 0x228   : > { %10508 = vmatprep.subr.bf16.mxu1 %v15112_v31  ;;  %v908_v26 = vld [vmem:[%s17357_s27 + $0xc08] sm:$0xff]  ;;  %v14944_v30 = vcombine.high %v780_v53, %v784_v54 }
 0x229   : > { %10466 = vmatpush1.bf16.msra.mxu0 %v14983_v40  ;;  %v912_v27 = vld [vmem:[%s17357_s27 + $0xc28] sm:$0xff]  ;;  %v14943_v40 = vcombine.low %v780_v53, %v784_v54 }
 0x22a   : > { %10467 = vmatprep.subr.bf16.mxu0 %v14976_v55  ;;  %v15072_v31 = vcombine.high %v908_v26, %v912_v27  ;;  %v900_v32 = vld [vmem:[%s17357_s27 + $0xbc8] sm:$0xff] }
 0x22b   : > { %10509 = vmatpush1.bf16.msra.mxu1 %v15111_v52  ;;  %v904_v33 = vld [vmem:[%s17357_s27 + $0xbe8] sm:$0xff]  ;;  %v15071_v52 = vcombine.low %v908_v26, %v912_v27 }
 0x22c   : > { %10510 = vmatprep.subr.bf16.mxu1 %v15104_v37  ;;  %v1028_v34 = vld [vmem:[%s17357_s27 + $0xfc8] sm:$0xff]  ;;  %v15064_v55 = vcombine.high %v900_v32, %v904_v33 }
 0x22d   : > { %10468 = vmatpush1.bf16.msra.mxu0 %v14975_v41  ;;  %v1032_v36 = vld [vmem:[%s17357_s27 + $0xfe8] sm:$0xff]  ;;  %v15063_v41 = vcombine.low %v900_v32, %v904_v33 }
 0x22e   : > { %10469 = vmatprep.subr.bf16.mxu0 %v14968_v62  ;;  %v15192_v37 = vcombine.high %v1028_v34, %v1032_v36  ;;  %v892_v38 = vld [vmem:[%s17357_s27 + $0xb88] sm:$0xff] }
 0x22f   : > { %10511 = vmatpush1.bf16.msra.mxu1 %v15103_v42  ;;  %v896_v57 = vld [vmem:[%s17357_s27 + $0xba8] sm:$0xff]  ;;  %v15191_v42 = vcombine.low %v1028_v34, %v1032_v36 }
 0x230   : > { %10512 = vmatprep.subr.bf16.mxu1 %v15096_v63  ;;  %v1020_v21 = vld [vmem:[%s17357_s27 + $0xf88] sm:$0xff]  ;;  %v15056_v62 = vcombine.high %v892_v38, %v896_v57 }
 0x231   : > { %10470 = vmatpush1.bf16.msra.mxu0 %v14967_v6  ;;  %v1024_v22 = vld [vmem:[%s17357_s27 + $0xfa8] sm:$0xff]  ;;  %v15055_v6 = vcombine.low %v892_v38, %v896_v57 }
 0x232   : > { %10471 = vmatprep.subr.bf16.mxu0 %v14960_v12  ;;  %v15184_v63 = vcombine.high %v1020_v21, %v1024_v22  ;;  %v884_v0 = vld [vmem:[%s17357_s27 + $0xb48] sm:$0xff] }
 0x233   : > { %10513 = vmatpush1.bf16.msra.mxu1 %v15095_v8  ;;  %v888_v1 = vld [vmem:[%s17357_s27 + $0xb68] sm:$0xff]  ;;  %v15183_v8 = vcombine.low %v1020_v21, %v1024_v22 }
 0x234   : > { %10514 = vmatprep.subr.bf16.mxu1 %v15088_v49  ;;  %v1012_v3 = vld [vmem:[%s17357_s27 + $0xf48] sm:$0xff]  ;;  %v15048_v12 = vcombine.high %v884_v0, %v888_v1 }
 0x235   : > { %10472 = vmatpush1.bf16.msra.mxu0 %v14959_v56  ;;  %v1016_v4 = vld [vmem:[%s17357_s27 + $0xf68] sm:$0xff]  ;;  %v15047_v56 = vcombine.low %v884_v0, %v888_v1 }
 0x236   : > { %10473 = vmatprep.subr.bf16.mxu0 %v14952_v18  ;;  %v15176_v49 = vcombine.high %v1012_v3, %v1016_v4  ;;  %v876_v50 = vld [vmem:[%s17357_s27 + $0xb08] sm:$0xff] }
 0x237   : > { %10515 = vmatpush1.bf16.msra.mxu1 %v15087_v10  ;;  %v880_v43 = vld [vmem:[%s17357_s27 + $0xb28] sm:$0xff]  ;;  %v15175_v10 = vcombine.low %v1012_v3, %v1016_v4 }
 0x238   : > { %10516 = vmatprep.subr.bf16.mxu1 %v15080_v19  ;;  %v1004_v44 = vld [vmem:[%s17357_s27 + $0xf08] sm:$0xff]  ;;  %v15040_v18 = vcombine.high %v876_v50, %v880_v43 }
 0x239   : > { %10474 = vmatpush1.bf16.msra.mxu0 %v14951_v28  ;;  %v1008_v15 = vld [vmem:[%s17357_s27 + $0xf28] sm:$0xff]  ;;  %v15039_v28 = vcombine.low %v876_v50, %v880_v43 }
 0x23a   : > { %10475 = vmatprep.subr.bf16.mxu0 %v14944_v30  ;;  %v15168_v19 = vcombine.high %v1004_v44, %v1008_v15  ;;  %v868_v53 = vld [vmem:[%s17357_s27 + $0xac8] sm:$0xff] }
 0x23b   : > { %10517 = vmatpush1.bf16.msra.mxu1 %v15079_v29  ;;  %v872_v54 = vld [vmem:[%s17357_s27 + $0xae8] sm:$0xff]  ;;  %v15167_v29 = vcombine.low %v1004_v44, %v1008_v15 }
 0x23c   : > { %10518 = vmatprep.subr.bf16.mxu1 %v15072_v31  ;;  %v996_v26 = vld [vmem:[%s17357_s27 + $0xec8] sm:$0xff]  ;;  %v15032_v30 = vcombine.high %v868_v53, %v872_v54 }
 0x23d   : > { %10476 = vmatpush1.bf16.msra.mxu0 %v14943_v40  ;;  %v1000_v27 = vld [vmem:[%s17357_s27 + $0xee8] sm:$0xff]  ;;  %v15031_v40 = vcombine.low %v868_v53, %v872_v54  ;;  %v18080_v53 = vpop.f32.mrf.mxu1 }
 0x23e   : > { %10477 = vmatprep.subr.bf16.mxu0 %v15064_v55  ;;  %v15160_v31 = vcombine.high %v996_v26, %v1000_v27  ;;  %v860_v32 = vld [vmem:[%s17357_s27 + $0xa88] sm:$0xff] }
 0x23f   : > { %10519 = vmatpush1.bf16.msra.mxu1 %v15071_v52  ;;  %v864_v33 = vld [vmem:[%s17357_s27 + $0xaa8] sm:$0xff]  ;;  %v15159_v52 = vcombine.low %v996_v26, %v1000_v27 }
 0x240   : > { %10520 = vmatprep.subr.bf16.mxu1 %v15192_v37  ;;  %v988_v34 = vld [vmem:[%s17357_s27 + $0xe88] sm:$0xff]  ;;  %v15024_v55 = vcombine.high %v860_v32, %v864_v33 }
 0x241   : > { %10478 = vmatpush2.bf16.msra.mxu0 %v15063_v41  ;;  %v992_v36 = vld [vmem:[%s17357_s27 + $0xea8] sm:$0xff]  ;;  %v15023_v41 = vcombine.low %v860_v32, %v864_v33 }
 0x242   : > { %10479 = vmatprep.subr.bf16.mxu0 %v15056_v62  ;;  %v15152_v37 = vcombine.high %v988_v34, %v992_v36  ;;  %v852_v38 = vld [vmem:[%s17357_s27 + $0xa48] sm:$0xff] }
 0x243   : > { %10521 = vmatpush2.bf16.msra.mxu1 %v15191_v42  ;;  %v856_v57 = vld [vmem:[%s17357_s27 + $0xa68] sm:$0xff]  ;;  %v15151_v42 = vcombine.low %v988_v34, %v992_v36  ;;  %v18088_v34 = vpop.f32.mrf.mxu1 }
 0x244   : > { %10522 = vmatprep.subr.bf16.mxu1 %v15184_v63  ;;  %v980_v21 = vld [vmem:[%s17357_s27 + $0xe48] sm:$0xff]  ;;  %v15016_v62 = vcombine.high %v852_v38, %v856_v57 }
 0x245   : > { %10480 = vmatpush2.bf16.msra.mxu0 %v15055_v6  ;;  %v984_v22 = vld [vmem:[%s17357_s27 + $0xe68] sm:$0xff]  ;;  %v15015_v6 = vcombine.low %v852_v38, %v856_v57 }
 0x246   : > { %10481 = vmatprep.subr.bf16.mxu0 %v15048_v12  ;;  %v15144_v63 = vcombine.high %v980_v21, %v984_v22  ;;  %v844_v0 = vld [vmem:[%s17357_s27 + $0xa08] sm:$0xff] }
 0x247   : > { %10523 = vmatpush2.bf16.msra.mxu1 %v15183_v8  ;;  %v848_v1 = vld [vmem:[%s17357_s27 + $0xa28] sm:$0xff]  ;;  %v15143_v8 = vcombine.low %v980_v21, %v984_v22 }
 0x248   : > { %10524 = vmatprep.subr.bf16.mxu1 %v15176_v49  ;;  %v972_v3 = vld [vmem:[%s17357_s27 + $0xe08] sm:$0xff]  ;;  %v15008_v12 = vcombine.high %v844_v0, %v848_v1 }
 0x249   : > { %10482 = vmatpush2.bf16.msra.mxu0 %v15047_v56  ;;  %v976_v4 = vld [vmem:[%s17357_s27 + $0xe28] sm:$0xff]  ;;  %v15007_v56 = vcombine.low %v844_v0, %v848_v1 }
 0x24a   : > { %10483 = vmatprep.subr.bf16.mxu0 %v15040_v18  ;;  %v15136_v49 = vcombine.high %v972_v3, %v976_v4  ;;  %v1092_v50 = vld [vmem:[%s17357_s27 + $0x11c8] sm:$0xff]  ;;  %v15135_v18 = vcombine.low %v972_v3, %v976_v4 }
 0x24b   : > { %10525 = vmatpush2.bf16.msra.mxu1 %v15175_v10  ;;  %v1096_v43 = vld [vmem:[%s17357_s27 + $0x11e8] sm:$0xff]  ;;  %v18078_v10 = vpop.f32.mrf.mxu0 }
 0x24c   : > { %10526 = vmatprep.subr.bf16.mxu1 %v15168_v19  ;;  %v1220_v44 = vld [vmem:[%s17357_s27 + $0x15c8] sm:$0xff]  ;;  %v15256_v19 = vcombine.high %v1092_v50, %v1096_v43 }
 0x24d   : > { %10484 = vmatpush2.bf16.msra.mxu0 %v15039_v28  ;;  %v1224_v15 = vld [vmem:[%s17357_s27 + $0x15e8] sm:$0xff] }
 0x24e   : > { %10485 = vmatprep.subr.bf16.mxu0 %v15032_v30  ;;  %v15384_v54 = vcombine.high %v1220_v44, %v1224_v15  ;;  %v1084_v26 = vld [vmem:[%s17357_s27 + $0x1188] sm:$0xff]  ;;  %v15255_v30 = vcombine.low %v1092_v50, %v1096_v43  ;;  %v15383_v32 = vcombine.low %v1220_v44, %v1224_v15 }
 0x24f   : > { %10527 = vmatpush2.bf16.msra.mxu1 %v15167_v29  ;;  %v1088_v27 = vld [vmem:[%s17357_s27 + $0x11a8] sm:$0xff] }
 0x250   : > { %10528 = vmatprep.subr.bf16.mxu1 %v15160_v31  ;;  %v1212_v28 = vld [vmem:[%s17357_s27 + $0x1588] sm:$0xff]  ;;  %v18086_v31 = vpop.f32.mrf.mxu0  ;;  %v15248_v33 = vcombine.high %v1084_v26, %v1088_v27  ;;  %v15247_v38 = vcombine.low %v1084_v26, %v1088_v27 }
 0x251   : > { %10486 = vmatpush2.bf16.msra.mxu0 %v15031_v40  ;;  %v1216_v29 = vld [vmem:[%s17357_s27 + $0x15a8] sm:$0xff] }
 0x252   : > { %10487 = vmatprep.subr.bf16.mxu0 %v15024_v55  ;;  %v15376_v36 = vcombine.high %v1212_v28, %v1216_v29  ;;  %v1076_v40 = vld [vmem:[%s17357_s27 + $0x1148] sm:$0xff]  ;;  %v18096_v57 = vpop.f32.mrf.mxu0  ;;  %v15375_v21 = vcombine.low %v1212_v28, %v1216_v29 }
 0x253   : > { %10529 = vmatpush2.bf16.msra.mxu1 %v15159_v52  ;;  %v1080_v52 = vld [vmem:[%s17357_s27 + $0x1168] sm:$0xff] }
 0x254   : > { %10530 = vmatprep.subr.bf16.mxu1 %v15152_v37  ;;  %v1204_v55 = vld [vmem:[%s17357_s27 + $0x1548] sm:$0xff]  ;;  %v15240_v22 = vcombine.high %v1076_v40, %v1080_v52  ;;  %v15239_v3 = vcombine.low %v1076_v40, %v1080_v52  ;;  %v18106_v4 = vpop.f32.mrf.mxu0 }
 0x255   : > { %10488 = vmatpush2.bf16.msra.mxu0 %v15023_v41  ;;  %v1208_v37 = vld [vmem:[%s17357_s27 + $0x1568] sm:$0xff]  ;;  %v18098_v41 = vpop.f32.mrf.mxu1 }
 0x256   : > { %10489 = vmatprep.subr.bf16.mxu0 %v15016_v62  ;;  %v1068_v62 = vld [vmem:[%s17357_s27 + $0x1108] sm:$0xff]  ;;  %v18112_v44 = vpop.f32.mrf.mxu0 }
 0x257   : > { %10531 = vmatpush2.bf16.msra.mxu1 %v15151_v42  ;;  %v15368_v42 = vcombine.high %v1204_v55, %v1208_v37  ;;  %v1196_v0 = vld [vmem:[%s17357_s27 + $0x1508] sm:$0xff] }
 0x258   : > { %10532 = vmatprep.subr.bf16.mxu1 %v15144_v63  ;;  %v1072_v63 = vld [vmem:[%s17357_s27 + $0x1128] sm:$0xff] }
 0x259   : > { %10490 = vmatpush2.bf16.msra.mxu0 %v15015_v6  ;;  %v1200_v1 = vld [vmem:[%s17357_s27 + $0x1528] sm:$0xff]  ;;  %v15367_v6 = vcombine.low %v1204_v55, %v1208_v37 }
 0x25a   : > { %10491 = vmatprep.subr.bf16.mxu0 %v15008_v12  ;;  %v18108_v12 = vpop.f32.mrf.mxu1  ;;  %v1060_v50 = vld [vmem:[%s17357_s27 + $0x10c8] sm:$0xff] }
 0x25b   : > { %10533 = vmatpush2.bf16.msra.mxu1 %v15143_v8  ;;  %v15232_v8 = vcombine.high %v1068_v62, %v1072_v63  ;;  %v1064_v43 = vld [vmem:[%s17357_s27 + $0x10e8] sm:$0xff] }
 0x25c   : > { %10534 = vmatprep.subr.bf16.mxu1 %v15136_v49  ;;  %v15360_v49 = vcombine.high %v1196_v0, %v1200_v1  ;;  %v1188_v15 = vld [vmem:[%s17357_s27 + $0x14c8] sm:$0xff]  ;;  %v15224_v26 = vcombine.high %v1060_v50, %v1064_v43  ;;  %v15223_v40 = vcombine.low %v1060_v50, %v1064_v43 }
 0x25d   : > { %10492 = vmatpush2.bf16.msra.mxu0 %v15007_v56  ;;  %v1192_v56 = vld [vmem:[%s17357_s27 + $0x14e8] sm:$0xff] }
 0x25e   : > { %10547 = vmatprep.subr.bf16.mxu0 %v15256_v19  ;;  %v15231_v19 = vcombine.low %v1068_v62, %v1072_v63  ;;  %v15352_v27 = vcombine.high %v1188_v15, %v1192_v56  ;;  %v1052_v28 = vld [vmem:[%s17357_s27 + $0x1088] sm:$0xff]  ;;  %v15351_v52 = vcombine.low %v1188_v15, %v1192_v56 }
 0x25f   : > { %10535 = vmatpush2.bf16.msra.mxu1 %v15135_v18  ;;  %v18116_v18 = vpop.f32.mrf.mxu1  ;;  %v1056_v29 = vld [vmem:[%s17357_s27 + $0x10a8] sm:$0xff] }
 0x260   : > { %10590 = vmatprep.subr.bf16.mxu1 %v15384_v54  ;;  %10494 = vmatmul.mubr.bf16.vlgmr.msra.gmra.mxu0 %v17555_v7  ;;  %v15359_v54 = vcombine.low %v1196_v0, %v1200_v1  ;;  %v15216_v55 = vcombine.high %v1052_v28, %v1056_v29  ;;  %v1176_v62 = vld [vmem:[%s17357_s27 + $0x1468] sm:$0xff]  ;;  %v15215_v0 = vcombine.low %v1052_v28, %v1056_v29 }
 0x261   : > { %10548 = vmatpush1.bf16.msra.mxu0 %v15255_v30  ;;  %10579 = vmatprep.mubr.bf16.mxu0 %v17578_v23  ;;  %v18120_v30 = vpop.f32.mrf.mxu0  ;;  %v1164_v43 = vld [vmem:[%s17357_s27 + $0x1408] sm:$0xff] }
 0x262   : > { %10537 = vmatmul.mubr.bf16.vlgmr.msra.gmra.mxu1 %v17566_v11  ;;  %10549 = vmatprep.subr.bf16.mxu0 %v15248_v33  ;;  %v1184_v33 = vld [vmem:[%s17357_s27 + $0x14a8] sm:$0xff] }
 0x263   : > { %10591 = vmatpush1.bf16.msra.mxu1 %v15383_v32  ;;  %10622 = vmatprep.mubr.bf16.mxu1 %v17585_v24  ;;  %v1180_v32 = vld [vmem:[%s17357_s27 + $0x1488] sm:$0xff] }
 0x264   : > { %10592 = vmatprep.subr.bf16.mxu1 %v15376_v36  ;;  %v18124_v36 = vpop.f32.mrf.mxu1  ;;  %v15344_v37 = vcombine.high %v1180_v32, %v1184_v33  ;;  %v15343_v1 = vcombine.low %v1180_v32, %v1184_v33  ;;  %v1168_v15 = vld [vmem:[%s17357_s27 + $0x1428] sm:$0xff] }
 0x265   : > { %10550 = vmatpush1.bf16.msra.mxu0 %v15247_v38  ;;  %v1044_v38 = vld [vmem:[%s17357_s27 + $0x1048] sm:$0xff]  ;;  %v15328_v29 = vcombine.high %v1164_v43, %v1168_v15 }
 0x266   : > { %10551 = vmatprep.subr.bf16.mxu0 %v15240_v22  ;;  %v18128_v22 = vpop.f32.mrf.mxu0  ;;  %v18132_v63 = vpop.f32.mrf.mxu1  ;;  %v1156_v32 = vld [vmem:[%s17357_s27 + $0x13c8] sm:$0xff] }
 0x267   : > { %10593 = vmatpush1.bf16.msra.mxu1 %v15375_v21  ;;  %v1048_v21 = vld [vmem:[%s17357_s27 + $0x1068] sm:$0xff] }
 0x268   : > { %10594 = vmatprep.subr.bf16.mxu1 %v15368_v42  ;;  %v1172_v42 = vld [vmem:[%s17357_s27 + $0x1448] sm:$0xff]  ;;  %v18136_v50 = vpop.f32.mrf.mxu0  ;;  %v18140_v56 = vpop.f32.mrf.mxu1 }
 0x269   : > { %10552 = vmatpush1.bf16.msra.mxu0 %v15239_v3  ;;  %v15208_v3 = vcombine.high %v1044_v38, %v1048_v21  ;;  %v1160_v33 = vld [vmem:[%s17357_s27 + $0x13e8] sm:$0xff] }
 0x26a   : > { %10553 = vmatprep.subr.bf16.mxu0 %v15232_v8  ;;  %v1036_v8 = vld [vmem:[%s17357_s27 + $0x1008] sm:$0xff]  ;;  %v18144_v28 = vpop.f32.mrf.mxu1 }
 0x26b   : > { %10595 = vmatpush1.bf16.msra.mxu1 %v15367_v6  ;;  %v15336_v6 = vcombine.high %v1172_v42, %v1176_v62  ;;  %v1268_v24 = vld [vmem:[%s17357_s27 + $0x1748] sm:$0xff] }
 0x26c   : > { %10596 = vmatprep.subr.bf16.mxu1 %v15360_v49  ;;  %v1040_v49 = vld [vmem:[%s17357_s27 + $0x1028] sm:$0xff] }
 0x26d   : > { %10554 = vmatpush1.bf16.msra.mxu0 %v15231_v19  ;;  %v15207_v19 = vcombine.low %v1044_v38, %v1048_v21  ;;  %v15327_v38 = vcombine.low %v1164_v43, %v1168_v15  ;;  %v15320_v21 = vcombine.high %v1156_v32, %v1160_v33  ;;  %v1272_v23 = vld [vmem:[%s17357_s27 + $0x1768] sm:$0xff] }
 0x26e   : > { %10555 = vmatprep.subr.bf16.mxu0 %v15224_v26  ;;  %v15335_v26 = vcombine.low %v1172_v42, %v1176_v62  ;;  %v18152_v42 = vpop.f32.mrf.mxu1  ;;  %v1260_v7 = vld [vmem:[%s17357_s27 + $0x1708] sm:$0xff] }
 0x26f   : > { %10597 = vmatpush1.bf16.msra.mxu1 %v15359_v54  ;;  %v18142_v54 = vpop.f32.mrf.mxu0  ;;  %v1128_v59 = vld [vmem:[%s17357_s27 + $0x12e8] sm:$0xff] }
 0x270   : > { %10598 = vmatprep.subr.bf16.mxu1 %v15352_v27  ;;  %v15200_v27 = vcombine.high %v1036_v8, %v1040_v49  ;;  %v1252_v51 = vld [vmem:[%s17357_s27 + $0x16c8] sm:$0xff] }
 0x271   : > { %10556 = vmatpush1.bf16.msra.mxu0 %v15223_v40  ;;  %v1284_v40 = vld [vmem:[%s17357_s27 + $0x17c8] sm:$0xff] }
 0x272   : > { %10557 = vmatprep.subr.bf16.mxu0 %v15216_v55  ;;  %v15199_v55 = vcombine.low %v1036_v8, %v1040_v49  ;;  %v15319_v8 = vcombine.low %v1156_v32, %v1160_v33  ;;  %v1256_v47 = vld [vmem:[%s17357_s27 + $0x16e8] sm:$0xff] }
 0x273   : > { %10599 = vmatpush1.bf16.msra.mxu1 %v15351_v52  ;;  %v1288_v52 = vld [vmem:[%s17357_s27 + $0x17e8] sm:$0xff] }
 0x274   : > { %10600 = vmatprep.subr.bf16.mxu1 %v15344_v37  ;;  %v18150_v37 = vpop.f32.mrf.mxu0  ;;  %v15448_v62 = vcombine.high %v1284_v40, %v1288_v52  ;;  %v15447_v43 = vcombine.low %v1284_v40, %v1288_v52 }
 0x275   : > { %10558 = vmatpush1.bf16.msra.mxu0 %v15215_v0  ;;  %v1148_v0 = vld [vmem:[%s17357_s27 + $0x1388] sm:$0xff] }
 0x276   : > { %10559 = vmatprep.subr.bf16.mxu0 %v15208_v3  ;;  %v1276_v3 = vld [vmem:[%s17357_s27 + $0x1788] sm:$0xff]  ;;  %v18158_v49 = vpop.f32.mrf.mxu0 }
 0x277   : > { %10601 = vmatpush1.bf16.msra.mxu1 %v15343_v1  ;;  %v1152_v1 = vld [vmem:[%s17357_s27 + $0x13a8] sm:$0xff] }
 0x278   : > { %10602 = vmatprep.subr.bf16.mxu1 %v15336_v6  ;;  %v1280_v6 = vld [vmem:[%s17357_s27 + $0x17a8] sm:$0xff]  ;;  %v15312_v15 = vcombine.high %v1148_v0, %v1152_v1  ;;  %v15311_v32 = vcombine.low %v1148_v0, %v1152_v1  ;;  %v18166_v33 = vpop.f32.mrf.mxu0 }
 0x279   : > { %10560 = vmatpush1.bf16.msra.mxu0 %v15207_v19  ;;  %v18160_v19 = vpop.f32.mrf.mxu1  ;;  %v15439_v40 = vcombine.low %v1276_v3, %v1280_v6  ;;  %v1264_v0 = vld [vmem:[%s17357_s27 + $0x1728] sm:$0xff] }
 0x27a   : > { %10561 = vmatprep.subr.bf16.mxu0 %v15200_v27  ;;  %v1140_v27 = vld [vmem:[%s17357_s27 + $0x1348] sm:$0xff]  ;;  %v18172_v11 = vpop.f32.mrf.mxu0 }
 0x27b   : > { %10603 = vmatpush1.bf16.msra.mxu1 %v15335_v26  ;;  %v15440_v26 = vcombine.high %v1276_v3, %v1280_v6  ;;  %v15431_v3 = vcombine.low %v1268_v24, %v1272_v23 }
 0x27c   : > { %10604 = vmatprep.subr.bf16.mxu1 %v15328_v29  ;;  %v1144_v29 = vld [vmem:[%s17357_s27 + $0x1368] sm:$0xff]  ;;  %v18182_v58 = vpop.f32.mrf.mxu0 }
 0x27d   : > { %10562 = vmatpush1.bf16.msra.mxu0 %v15199_v55  ;;  %v15304_v52 = vcombine.high %v1140_v27, %v1144_v29  ;;  %v18168_v55 = vpop.f32.mrf.mxu1 }
 0x27e   : > { %10563 = vmatprep.subr.bf16.mxu0 %v15320_v21  ;;  %v1132_v21 = vld [vmem:[%s17357_s27 + $0x1308] sm:$0xff] }
 0x27f   : > { %10605 = vmatpush1.bf16.msra.mxu1 %v15327_v38  ;;  %v15432_v38 = vcombine.high %v1268_v24, %v1272_v23  ;;  %v18176_v1 = vpop.f32.mrf.mxu1 }
 0x280   : > { %10606 = vmatprep.subr.bf16.mxu1 %v15448_v62  ;;  %v1136_v62 = vld [vmem:[%s17357_s27 + $0x1328] sm:$0xff] }
 0x281   : > { %10564 = vmatpush2.bf16.msra.mxu0 %v15319_v8  ;;  %v15303_v8 = vcombine.low %v1140_v27, %v1144_v29  ;;  %v15296_v6 = vcombine.high %v1132_v21, %v1136_v62  ;;  %v9939_v27 = vadd.f32 %v18088_v34, %v18086_v31  ;;  %v18189_v24 = vpop.f32.mrf.mxu1  ;;  %v1116_v31 = vld [vmem:[%s17357_s27 + $0x1288] sm:$0xff] }
 0x282   : > { %10565 = vmatprep.subr.bf16.mxu0 %v15312_v15  ;;  %v15424_v15 = vcombine.high %v1260_v7, %v1264_v0  ;;  %v1120_v34 = vld [vmem:[%s17357_s27 + $0x12a8] sm:$0xff] }
 0x283   : > { %10607 = vmatpush2.bf16.msra.mxu1 %v15447_v43  ;;  %v9937_v43 = vadd.f32 %v18080_v53, %v18078_v10  ;;  %v15295_v10 = vcombine.low %v1132_v21, %v1136_v62  ;;  %v15423_v53 = vcombine.low %v1260_v7, %v1264_v0  ;;  %v9943_v21 = vadd.f32 %v18108_v12, %v18106_v4 }
 0x284   : > { %10608 = vmatprep.subr.bf16.mxu1 %v15440_v26  ;;  %v1124_v26 = vld [vmem:[%s17357_s27 + $0x12c8] sm:$0xff]  ;;  %v15280_v0 = vcombine.high %v1116_v31, %v1120_v34 }
 0x285   : > { %10566 = vmatpush2.bf16.msra.mxu0 %v15311_v32  ;;  %v9980_v23 = vadd.f32 %v18112_v44, %v9937_v43  ;;  %v15288_v29 = vcombine.high %v1124_v26, %v1128_v59  ;;  %v9941_v32 = vadd.f32 %v18098_v41, %v18096_v57  ;;  %v1244_v44 = vld [vmem:[%s17357_s27 + $0x1688] sm:$0xff]  ;;  %v18204_v57 = vpop.f32.mrf.mxu1  ;;  %v15287_v41 = vcombine.low %v1124_v26, %v1128_v59 }
 0x286   : > { %10567 = vmatprep.subr.bf16.mxu0 %v15304_v52  ;;  %v15416_v52 = vcombine.high %v1252_v51, %v1256_v47  ;;  %v1248_v43 = vld [vmem:[%s17357_s27 + $0x16a8] sm:$0xff] }
 0x287   : > { %10609 = vmatpush2.bf16.msra.mxu1 %v15439_v40  ;;  %v9982_v40 = vadd.f32 %v18120_v30, %v9939_v27  ;;  %v10023_v7 = vadd.f32 %v18116_v18, %v9980_v23  ;;  %v9984_v62 = vadd.f32 %v18128_v22, %v9941_v32  ;;  %v15415_v30 = vcombine.low %v1252_v51, %v1256_v47  ;;  %v1108_v18 = vld [vmem:[%s17357_s27 + $0x1248] sm:$0xff]  ;;  %v18215_v47 = vpop.f32.mrf.mxu1 }
 0x288   : > { %10610 = vmatprep.subr.bf16.mxu1 %v15432_v38  ;;  %v18196_v38 = vpop.f32.mrf.mxu0  ;;  %v15408_v12 = vcombine.high %v1244_v44, %v1248_v43  ;;  %v1112_v22 = vld [vmem:[%s17357_s27 + $0x1268] sm:$0xff]  ;;  %v15279_v51 = vcombine.low %v1116_v31, %v1120_v34 }
 0x289   : > { %10568 = vmatpush2.bf16.msra.mxu0 %v15303_v8  ;;  %v10025_v8 = vadd.f32 %v18124_v36, %v9982_v40  ;;  %v10066_v4 = vadd.f32 %v18142_v54, %v10023_v7  ;;  %v1240_v27 = vld [vmem:[%s17357_s27 + $0x1668] sm:$0xff]  ;;  %v10027_v23 = vadd.f32 %v18132_v63, %v9984_v62  ;;  %v15272_v54 = vcombine.high %v1108_v18, %v1112_v22 }
 0x28a   : > { %10569 = vmatprep.subr.bf16.mxu0 %v15296_v6  ;;  %v10157_v6 = vpop.f32.mrf.mxu0  ;;  %v1104_v32 = vld [vmem:[%s17357_s27 + $0x1228] sm:$0xff] }
 0x28b   : > { %10611 = vmatpush2.bf16.msra.mxu1 %v15431_v3  ;;  %v9986_v3 = vadd.f32 %v18136_v50, %v9943_v21  ;;  %v10068_v59 = vadd.f32 %v18150_v37, %v10025_v8  ;;  %v15407_v50 = vcombine.low %v1244_v44, %v1248_v43  ;;  %v10070_v63 = vadd.f32 %v18158_v49, %v10027_v23  ;;  %v1228_v40 = vld [vmem:[%s17357_s27 + $0x1608] sm:$0xff] }
 0x28c   : > { %10612 = vmatprep.subr.bf16.mxu1 %v15424_v15  ;;  %v1236_v15 = vld [vmem:[%s17357_s27 + $0x1648] sm:$0xff]  ;;  %v10237_v36 = vpop.f32.mrf.mxu0 }
 0x28d   : > { %10570 = vmatpush2.bf16.msra.mxu0 %v15295_v10  ;;  %v10029_v26 = vadd.f32 %v18140_v56, %v9986_v3  ;;  %v10109_v10 = vadd.f32 %v18144_v28, %v10066_v4  ;;  %v15400_v37 = vcombine.high %v1236_v15, %v1240_v27  ;;  %v10111_v31 = vadd.f32 %v18152_v42, %v10068_v59  ;;  %v1344_v23 = vld [vmem:[%s17357_s27 + $0x19a8] sm:$0xff] }
 0x28e   : > { %10571 = vmatprep.subr.bf16.mxu0 %v15288_v29  ;;  %v1100_v29 = vld [vmem:[%s17357_s27 + $0x1208] sm:$0xff]  ;;  %v15271_v28 = vcombine.low %v1108_v18, %v1112_v22  ;;  %v10239_v49 = vpop.f32.mrf.mxu0  ;;  %v15399_v44 = vcombine.low %v1236_v15, %v1240_v27  ;;  %v10113_v21 = vadd.f32 %v18160_v19, %v10070_v63 }
 0x28f   : > { %10613 = vmatpush2.bf16.msra.mxu1 %v15423_v53  ;;  %v10280_v53 = vpop.f32.mrf.mxu1  ;;  %v10072_v34 = vadd.f32 %v18166_v33, %v10029_v26  ;;  %v10152_v56 = vadd.f32 %v18172_v11, %v10109_v10  ;;  %v15264_v43 = vcombine.high %v1100_v29, %v1104_v32  ;;  %v10154_v7 = vadd.f32 %v18182_v58, %v10111_v31  ;;  %v1352_v33 = vld [vmem:[%s17357_s27 + $0x19e8] sm:$0xff] }
 0x290   : > { %10614 = vmatprep.subr.bf16.mxu1 %v15416_v52  ;;  %v1232_v52 = vld [vmem:[%s17357_s27 + $0x1628] sm:$0xff]  ;;  %v10156_v3 = vadd.f32 %v18196_v38, %v10113_v21  ;;  %v15263_v19 = vcombine.low %v1100_v29, %v1104_v32  ;;  %v10241_v58 = vpop.f32.mrf.mxu0 }
 0x291   : > { %10572 = vmatpush2.bf16.msra.mxu0 %v15287_v41  ;;  %v10282_v62 = vpop.f32.mrf.mxu1  ;;  %v15392_v42 = vcombine.high %v1228_v40, %v1232_v52  ;;  %v1348_v41 = vld [vmem:[%s17357_s27 + $0x19c8] sm:$0xff]  ;;  %v10115_v11 = vadd.f32 %v18168_v55, %v10072_v34  ;;  %v10195_v8 = vadd.f32 %v18176_v1, %v10152_v56  ;;  %v15391_v4 = vcombine.low %v1228_v40, %v1232_v52 }
 0x292   : > { %10573 = vmatprep.subr.bf16.mxu0 %v15280_v0  ;;  %v1480_v0 = vld [vmem:[%s17357_s27 + $0x1de8] sm:$0xff]  ;;  %v10197_v18 = vadd.f32 %v18189_v24, %v10154_v7  ;;  %v10243_v26 = vpop.f32.mrf.mxu0 }
 0x293   : > { %10615 = vmatpush2.bf16.msra.mxu1 %v15415_v30  ;;  %v1476_v30 = vld [vmem:[%s17357_s27 + $0x1dc8] sm:$0xff]  ;;  %v10158_v22 = vadd.f32 %v10157_v6, %v10115_v11  ;;  %v10238_v15 = vadd.f32 %v10237_v36, %v10195_v8  ;;  %v10284_v55 = vpop.f32.mrf.mxu1  ;;  %v484_v11 = vld [vmem:[#allocation2] sm:$0xff] }
 0x294   : > { %10616 = vmatprep.subr.bf16.mxu1 %v15408_v12  ;;  %v15512_v12 = vcombine.high %v1348_v41, %v1352_v33  ;;  %v15640_v1 = vcombine.high %v1476_v30, %v1480_v0  ;;  %v1340_v27 = vld [vmem:[%s17357_s27 + $0x1988] sm:$0xff]  ;;  %v15639_v24 = vcombine.low %v1476_v30, %v1480_v0 }
 0x295   : > { %10574 = vmatpush2.bf16.msra.mxu0 %v15279_v51  ;;  %v1468_v38 = vld [vmem:[%s17357_s27 + $0x1d88] sm:$0xff]  ;;  %v10199_v51 = vadd.f32 %v18204_v57, %v10156_v3  ;;  %v15504_v6 = vcombine.high %v1340_v27, %v1344_v23  ;;  %v10201_v10 = vadd.f32 %v18215_v47, %v10158_v22  ;;  %v10281_v63 = vadd.f32 %v10280_v53, %v10238_v15  ;;  %v10286_v29 = vpop.f32.mrf.mxu1 }
 0x296   : > { %10575 = vmatprep.subr.bf16.mxu0 %v15272_v54  ;;  %v1472_v59 = vld [vmem:[%s17357_s27 + $0x1da8] sm:$0xff]  ;;  %v15511_v54 = vcombine.low %v1348_v41, %v1352_v33  ;;  %v15503_v34 = vcombine.low %v1340_v27, %v1344_v23 }
 0x297   : > { %10617 = vmatpush2.bf16.msra.mxu1 %v15407_v50  ;;  %v10240_v50 = vadd.f32 %v10239_v49, %v10197_v18  ;;  %v18243_v36 = vld [vmem:[%s17357_s27 + $0x1948] sm:$0xff]  ;;  %v15632_v57 = vcombine.high %v1468_v38, %v1472_v59 }
 0x298   : > { %10618 = vmatprep.subr.bf16.mxu1 %v15400_v37  ;;  %v10242_v37 = vadd.f32 %v10241_v58, %v10199_v51  ;;  %v1336_v32 = vld [vmem:[%s17357_s27 + $0x1968] sm:$0xff] }
 0x299   : > { %10576 = vmatpush2.bf16.msra.mxu0 %v15271_v28  ;;  %v1460_v40 = vld [vmem:[%s17357_s27 + $0x1d48] sm:$0xff]  ;;  %v10283_v56 = vadd.f32 %v10282_v62, %v10240_v50  ;;  %v10244_v28 = vadd.f32 %v10243_v26, %v10201_v10  ;;  %v15496_v21 = vcombine.high %v18243_v36, %v1336_v32  ;;  %v15495_v3 = vcombine.low %v18243_v36, %v1336_v32 }
 0x29a   : > { %10577 = vmatprep.subr.bf16.mxu0 %v15264_v43  ;;  %v1464_v52 = vld [vmem:[%s17357_s27 + $0x1d68] sm:$0xff]  ;;  %v15631_v43 = vcombine.low %v1468_v38, %v1472_v59 }
 0x29b   : > { %10619 = vmatpush2.bf16.msra.mxu1 %v15399_v44  ;;  %v483_v47 = vld [vmem:[#allocation2 + $0x30] sm:$0xff]  ;;  %v15624_v7 = vcombine.high %v1460_v40, %v1464_v52  ;;  %v15623_v27 = vcombine.low %v1460_v40, %v1464_v52 }
 0x29c   : > { %10620 = vmatprep.subr.bf16.mxu1 %v15392_v42  ;;  %v10285_v42 = vadd.f32 %v10284_v55, %v10242_v37  ;;  %v1324_v30 = vld [vmem:[%s17357_s27 + $0x1908] sm:$0xff]  ;;  %v491_v55 = vld [vmem:[#allocation2 + $0x40] sm:$0xff] }
 0x29d   : > { %10578 = vmatpush2.bf16.msra.mxu0 %v15263_v19  ;;  %v1328_v0 = vld [vmem:[%s17357_s27 + $0x1928] sm:$0xff] }
 0x29e   : > { %10633 = vmatprep.subr.bf16.mxu0 %v15512_v12  ;;  %v1452_v19 = vld [vmem:[%s17357_s27 + $0x1d08] sm:$0xff]  ;;  %v15488_v23 = vcombine.high %v1324_v30, %v1328_v0 }
 0x29f   : > { %10621 = vmatpush2.bf16.msra.mxu1 %v15391_v4  ;;  %v1456_v58 = vld [vmem:[%s17357_s27 + $0x1d28] sm:$0xff]  ;;  %v10287_v4 = vadd.f32 %v10286_v29, %v10244_v28  ;;  %v15487_v29 = vcombine.low %v1324_v30, %v1328_v0 }
 0x2a0   : > { %10676 = vmatprep.subr.bf16.mxu1 %v15640_v1  ;;  %v10323_v31 = vpop.f32.mrf.mxu0  ;;  %10580 = vmatmul.mubr.bf16.vlgmr.msra.gmra.mxu0 %v17651_v45  ;;  %v15616_v50 = vcombine.high %v1452_v19, %v1456_v58  ;;  %v1320_v26 = vld [vmem:[%s17357_s27 + $0x18e8] sm:$0xff] }
 0x2a1   : > { %v10324_v49 = vadd.f32 %v10323_v31, %v10281_v63  ;;  %10634 = vmatpush1.bf16.msra.mxu0 %v15511_v54  ;;  %10665 = vmatprep.mubr.bf16.mxu0 %v17674_v60  ;;  %v1316_v54 = vld [vmem:[%s17357_s27 + $0x18c8] sm:$0xff] }
 0x2a2   : > { %v10366_v44 = vpop.f32.mrf.mxu1  ;;  %10623 = vmatmul.mubr.bf16.vlgmr.msra.gmra.mxu1 %v17662_v16  ;;  %v10325_v53 = vpop.f32.mrf.mxu0  ;;  %10635 = vmatprep.subr.bf16.mxu0 %v15504_v6  ;;  %v1444_v36 = vld [vmem:[%s17357_s27 + $0x1cc8] sm:$0xff]  ;;  %v15480_v32 = vcombine.high %v1316_v54, %v1320_v26 }
 0x2a3   : > { %10677 = vmatpush1.bf16.msra.mxu1 %v15639_v24  ;;  %v10367_v62 = vadd.f32 %v10366_v44, %v10324_v49  ;;  %v10326_v41 = vadd.f32 %v10325_v53, %v10283_v56  ;;  %10708 = vmatprep.mubr.bf16.mxu1 %v17681_v61  ;;  %v492_v24 = vld [vmem:[#allocation2 + $0x20] sm:$0xff]  ;;  %v1448_v10 = vld [vmem:[%s17357_s27 + $0x1ce8] sm:$0xff]  ;;  %v15479_v49 = vcombine.low %v1316_v54, %v1320_v26 }
 0x2a4   : > { %v10368_v33 = vpop.f32.mrf.mxu1  ;;  %10678 = vmatprep.subr.bf16.mxu1 %v15632_v57  ;;  %v10327_v8 = vpop.f32.mrf.mxu0  ;;  %v15615_v57 = vcombine.low %v1452_v19, %v1456_v58  ;;  %v15608_v52 = vcombine.high %v1444_v36, %v1448_v10  ;;  %v1308_v31 = vld [vmem:[%s17357_s27 + $0x1888] sm:$0xff]  ;;  %v15607_v44 = vcombine.low %v1444_v36, %v1448_v10 }
 0x2a5   : > { %v11923_v12 = vadd.f32 %v10367_v62, %v483_v47  ;;  %v10369_v18 = vadd.f32 %v10368_v33, %v10326_v41  ;;  %v10328_v22 = vadd.f32 %v10327_v8, %v10285_v42  ;;  %10636 = vmatpush1.bf16.msra.mxu0 %v15503_v34  ;;  %v1312_v34 = vld [vmem:[%s17357_s27 + $0x18a8] sm:$0xff] }
 0x2a6   : > { %v10370_v15 = vpop.f32.mrf.mxu1  ;;  %v10329_v1 = vpop.f32.mrf.mxu0  ;;  %10637 = vmatprep.subr.bf16.mxu0 %v15496_v21  ;;  %v1436_v56 = vld [vmem:[%s17357_s27 + $0x1c88] sm:$0xff]  ;;  %v15472_v47 = vcombine.high %v1308_v31, %v1312_v34  ;;  %v15471_v62 = vcombine.low %v1308_v31, %v1312_v34 }
 0x2a7   : > { %10679 = vmatpush1.bf16.msra.mxu1 %v15631_v43  ;;  %11939 = vst [vmem:[#allocation2 + $0x30] sm:$0xff] %v11923_v12  ;;  %v11924_v38 = vadd.f32 %v10369_v18, %v484_v11  ;;  %v10371_v59 = vadd.f32 %v10370_v15, %v10328_v22  ;;  %v10330_v51 = vadd.f32 %v10329_v1, %v10287_v4  ;;  %v1440_v28 = vld [vmem:[%s17357_s27 + $0x1ca8] sm:$0xff] }
 0x2a8   : > { %10680 = vmatprep.subr.bf16.mxu1 %v15624_v7  ;;  %v10372_v6 = vpop.f32.mrf.mxu1  ;;  %v15600_v53 = vcombine.high %v1436_v56, %v1440_v28  ;;  %v1300_v43 = vld [vmem:[%s17357_s27 + $0x1848] sm:$0xff]  ;;  %v15599_v41 = vcombine.low %v1436_v56, %v1440_v28 }
 0x2a9   : > { %11940 = vst [vmem:[#allocation2] sm:$0xff] %v11924_v38  ;;  %v11931_v63 = vadd.f32 %v10371_v59, %v491_v55  ;;  %v10373_v37 = vadd.f32 %v10372_v6, %v10330_v51  ;;  %10638 = vmatpush1.bf16.msra.mxu0 %v15495_v3  ;;  %v1304_v21 = vld [vmem:[%s17357_s27 + $0x1868] sm:$0xff] }
 0x2aa   : > { %10639 = vmatprep.subr.bf16.mxu0 %v15488_v23  ;;  %v1428_v7 = vld [vmem:[%s17357_s27 + $0x1c48] sm:$0xff]  ;;  %v15464_v33 = vcombine.high %v1300_v43, %v1304_v21  ;;  %v15463_v19 = vcombine.low %v1300_v43, %v1304_v21 }
 0x2ab   : > { %10681 = vmatpush1.bf16.msra.mxu1 %v15623_v27  ;;  %11947 = vst [vmem:[#allocation2 + $0x40] sm:$0xff] %v11931_v63  ;;  %v11932_v40 = vadd.f32 %v10373_v37, %v492_v24  ;;  %v1432_v42 = vld [vmem:[%s17357_s27 + $0x1c68] sm:$0xff] }
 0x2ac   : > { %10682 = vmatprep.subr.bf16.mxu1 %v15616_v50  ;;  %v15592_v30 = vcombine.high %v1428_v7, %v1432_v42  ;;  %v1292_v0 = vld [vmem:[%s17357_s27 + $0x1808] sm:$0xff]  ;;  %v15591_v58 = vcombine.low %v1428_v7, %v1432_v42 }
 0x2ad   : > { %11948 = vst [vmem:[#allocation2 + $0x20] sm:$0xff] %v11932_v40  ;;  %10640 = vmatpush1.bf16.msra.mxu0 %v15487_v29  ;;  %v1296_v11 = vld [vmem:[%s17357_s27 + $0x1828] sm:$0xff] }
 0x2ae   : > { %10641 = vmatprep.subr.bf16.mxu0 %v15480_v32  ;;  %v1420_v8 = vld [vmem:[%s17357_s27 + $0x1c08] sm:$0xff]  ;;  %v15456_v4 = vcombine.high %v1292_v0, %v1296_v11  ;;  %v15455_v1 = vcombine.low %v1292_v0, %v1296_v11 }
 0x2af   : > { %10683 = vmatpush1.bf16.msra.mxu1 %v15615_v57  ;;  %v1424_v3 = vld [vmem:[%s17357_s27 + $0x1c28] sm:$0xff] }
 0x2b0   : > { %10684 = vmatprep.subr.bf16.mxu1 %v15608_v52  ;;  %v15584_v12 = vcombine.high %v1420_v8, %v1424_v3  ;;  %v1412_v18 = vld [vmem:[%s17357_s27 + $0x1bc8] sm:$0xff]  ;;  %v15583_v27 = vcombine.low %v1420_v8, %v1424_v3 }
 0x2b1   : > { %10642 = vmatpush1.bf16.msra.mxu0 %v15479_v49  ;;  %v1416_v22 = vld [vmem:[%s17357_s27 + $0x1be8] sm:$0xff] }
 0x2b2   : > { %10643 = vmatprep.subr.bf16.mxu0 %v15472_v47  ;;  %v1540_v15 = vld [vmem:[%s17357_s27 + $0x1fc8] sm:$0xff]  ;;  %v15576_v23 = vcombine.high %v1412_v18, %v1416_v22  ;;  %v15575_v26 = vcombine.low %v1412_v18, %v1416_v22 }
 0x2b3   : > { %10685 = vmatpush1.bf16.msra.mxu1 %v15607_v44  ;;  %v1544_v55 = vld [vmem:[%s17357_s27 + $0x1fe8] sm:$0xff] }
 0x2b4   : > { %10686 = vmatprep.subr.bf16.mxu1 %v15600_v53  ;;  %v15704_v38 = vcombine.high %v1540_v15, %v1544_v55  ;;  %v1404_v59 = vld [vmem:[%s17357_s27 + $0x1b88] sm:$0xff]  ;;  %v15703_v24 = vcombine.low %v1540_v15, %v1544_v55 }
 0x2b5   : > { %10644 = vmatpush1.bf16.msra.mxu0 %v15471_v62  ;;  %v1408_v51 = vld [vmem:[%s17357_s27 + $0x1ba8] sm:$0xff] }
 0x2b6   : > { %10645 = vmatprep.subr.bf16.mxu0 %v15464_v33  ;;  %v1532_v50 = vld [vmem:[%s17357_s27 + $0x1f88] sm:$0xff]  ;;  %v15568_v6 = vcombine.high %v1404_v59, %v1408_v51  ;;  %v15567_v57 = vcombine.low %v1404_v59, %v1408_v51 }
 0x2b7   : > { %10687 = vmatpush1.bf16.msra.mxu1 %v15599_v41  ;;  %v1536_v54 = vld [vmem:[%s17357_s27 + $0x1fa8] sm:$0xff] }
 0x2b8   : > { %10688 = vmatprep.subr.bf16.mxu1 %v15592_v30  ;;  %v15696_v36 = vcombine.high %v1532_v50, %v1536_v54  ;;  %v1396_v10 = vld [vmem:[%s17357_s27 + $0x1b48] sm:$0xff]  ;;  %v15695_v32 = vcombine.low %v1532_v50, %v1536_v54 }
 0x2b9   : > { %10646 = vmatpush1.bf16.msra.mxu0 %v15463_v19  ;;  %v1400_v63 = vld [vmem:[%s17357_s27 + $0x1b68] sm:$0xff] }
 0x2ba   : > { %10647 = vmatprep.subr.bf16.mxu0 %v15456_v4  ;;  %v1524_v37 = vld [vmem:[%s17357_s27 + $0x1f48] sm:$0xff]  ;;  %v15560_v40 = vcombine.high %v1396_v10, %v1400_v63  ;;  %v15559_v49 = vcombine.low %v1396_v10, %v1400_v63 }
 0x2bb   : > { %10689 = vmatpush1.bf16.msra.mxu1 %v15591_v58  ;;  %v1528_v29 = vld [vmem:[%s17357_s27 + $0x1f68] sm:$0xff] }
 0x2bc   : > { %10690 = vmatprep.subr.bf16.mxu1 %v15584_v12  ;;  %v15688_v52 = vcombine.high %v1524_v37, %v1528_v29  ;;  %v1388_v31 = vld [vmem:[%s17357_s27 + $0x1b08] sm:$0xff]  ;;  %v15687_v44 = vcombine.low %v1524_v37, %v1528_v29 }
 0x2bd   : > { %10648 = vmatpush1.bf16.msra.mxu0 %v15455_v1  ;;  %v1392_v34 = vld [vmem:[%s17357_s27 + $0x1b28] sm:$0xff] }
 0x2be   : > { %10649 = vmatprep.subr.bf16.mxu0 %v15576_v23  ;;  %v1516_v56 = vld [vmem:[%s17357_s27 + $0x1f08] sm:$0xff]  ;;  %v15552_v47 = vcombine.high %v1388_v31, %v1392_v34  ;;  %v15551_v62 = vcombine.low %v1388_v31, %v1392_v34 }
 0x2bf   : > { %10691 = vmatpush1.bf16.msra.mxu1 %v15583_v27  ;;  %v1520_v28 = vld [vmem:[%s17357_s27 + $0x1f28] sm:$0xff] }
 0x2c0   : > { %10692 = vmatprep.subr.bf16.mxu1 %v15704_v38  ;;  %v15680_v53 = vcombine.high %v1516_v56, %v1520_v28  ;;  %v1380_v43 = vld [vmem:[%s17357_s27 + $0x1ac8] sm:$0xff]  ;;  %v15679_v41 = vcombine.low %v1516_v56, %v1520_v28 }
 0x2c1   : > { %10650 = vmatpush2.bf16.msra.mxu0 %v15575_v26  ;;  %v1384_v21 = vld [vmem:[%s17357_s27 + $0x1ae8] sm:$0xff] }
 0x2c2   : > { %10651 = vmatprep.subr.bf16.mxu0 %v15568_v6  ;;  %v1508_v7 = vld [vmem:[%s17357_s27 + $0x1ec8] sm:$0xff]  ;;  %v15544_v33 = vcombine.high %v1380_v43, %v1384_v21  ;;  %v15543_v19 = vcombine.low %v1380_v43, %v1384_v21 }
 0x2c3   : > { %10693 = vmatpush2.bf16.msra.mxu1 %v15703_v24  ;;  %v1512_v42 = vld [vmem:[%s17357_s27 + $0x1ee8] sm:$0xff] }
 0x2c4   : > { %10694 = vmatprep.subr.bf16.mxu1 %v15696_v36  ;;  %v15672_v30 = vcombine.high %v1508_v7, %v1512_v42  ;;  %v1372_v0 = vld [vmem:[%s17357_s27 + $0x1a88] sm:$0xff]  ;;  %v15671_v58 = vcombine.low %v1508_v7, %v1512_v42 }
 0x2c5   : > { %10652 = vmatpush2.bf16.msra.mxu0 %v15567_v57  ;;  %v1376_v11 = vld [vmem:[%s17357_s27 + $0x1aa8] sm:$0xff] }
 0x2c6   : > { %10653 = vmatprep.subr.bf16.mxu0 %v15560_v40  ;;  %v1500_v8 = vld [vmem:[%s17357_s27 + $0x1e88] sm:$0xff]  ;;  %v15536_v4 = vcombine.high %v1372_v0, %v1376_v11  ;;  %v15535_v1 = vcombine.low %v1372_v0, %v1376_v11 }
 0x2c7   : > { %10695 = vmatpush2.bf16.msra.mxu1 %v15695_v32  ;;  %v1504_v3 = vld [vmem:[%s17357_s27 + $0x1ea8] sm:$0xff] }
 0x2c8   : > { %10696 = vmatprep.subr.bf16.mxu1 %v15688_v52  ;;  %v15664_v12 = vcombine.high %v1500_v8, %v1504_v3  ;;  %v1364_v18 = vld [vmem:[%s17357_s27 + $0x1a48] sm:$0xff]  ;;  %v15663_v27 = vcombine.low %v1500_v8, %v1504_v3 }
 0x2c9   : > { %10654 = vmatpush2.bf16.msra.mxu0 %v15559_v49  ;;  %v1368_v22 = vld [vmem:[%s17357_s27 + $0x1a68] sm:$0xff] }
 0x2ca   : > { %10655 = vmatprep.subr.bf16.mxu0 %v15552_v47  ;;  %v1492_v15 = vld [vmem:[%s17357_s27 + $0x1e48] sm:$0xff]  ;;  %v15528_v23 = vcombine.high %v1364_v18, %v1368_v22  ;;  %v15527_v26 = vcombine.low %v1364_v18, %v1368_v22 }
 0x2cb   : > { %10697 = vmatpush2.bf16.msra.mxu1 %v15687_v44  ;;  %v1496_v55 = vld [vmem:[%s17357_s27 + $0x1e68] sm:$0xff] }
 0x2cc   : > { %10698 = vmatprep.subr.bf16.mxu1 %v15680_v53  ;;  %v15656_v38 = vcombine.high %v1492_v15, %v1496_v55  ;;  %v1356_v59 = vld [vmem:[%s17357_s27 + $0x1a08] sm:$0xff]  ;;  %v15655_v24 = vcombine.low %v1492_v15, %v1496_v55 }
 0x2cd   : > { %10656 = vmatpush2.bf16.msra.mxu0 %v15551_v62  ;;  %v1360_v51 = vld [vmem:[%s17357_s27 + $0x1a28] sm:$0xff] }
 0x2ce   : > { %10657 = vmatprep.subr.bf16.mxu0 %v15544_v33  ;;  %v1484_v50 = vld [vmem:[%s17357_s27 + $0x1e08] sm:$0xff]  ;;  %v15520_v6 = vcombine.high %v1356_v59, %v1360_v51  ;;  %v15519_v57 = vcombine.low %v1356_v59, %v1360_v51 }
 0x2cf   : > { %10699 = vmatpush2.bf16.msra.mxu1 %v15679_v41  ;;  %v1488_v54 = vld [vmem:[%s17357_s27 + $0x1e28] sm:$0xff] }
 0x2d0   : > { %10700 = vmatprep.subr.bf16.mxu1 %v15672_v30  ;;  %v15648_v36 = vcombine.high %v1484_v50, %v1488_v54  ;;  %v1604_v10 = vld [vmem:[%s17357_s27 + $0x21c8] sm:$0xff]  ;;  %v15647_v32 = vcombine.low %v1484_v50, %v1488_v54 }
 0x2d1   : > { %10658 = vmatpush2.bf16.msra.mxu0 %v15543_v19  ;;  %v1608_v63 = vld [vmem:[%s17357_s27 + $0x21e8] sm:$0xff] }
 0x2d2   : > { %10659 = vmatprep.subr.bf16.mxu0 %v15536_v4  ;;  %v1732_v37 = vld [vmem:[%s17357_s27 + $0x25c8] sm:$0xff]  ;;  %v15768_v40 = vcombine.high %v1604_v10, %v1608_v63  ;;  %v15767_v49 = vcombine.low %v1604_v10, %v1608_v63 }
 0x2d3   : > { %10701 = vmatpush2.bf16.msra.mxu1 %v15671_v58  ;;  %v1736_v29 = vld [vmem:[%s17357_s27 + $0x25e8] sm:$0xff] }
 0x2d4   : > { %10702 = vmatprep.subr.bf16.mxu1 %v15664_v12  ;;  %v15896_v52 = vcombine.high %v1732_v37, %v1736_v29  ;;  %v1596_v31 = vld [vmem:[%s17357_s27 + $0x2188] sm:$0xff]  ;;  %v15895_v44 = vcombine.low %v1732_v37, %v1736_v29 }
 0x2d5   : > { %10660 = vmatpush2.bf16.msra.mxu0 %v15535_v1  ;;  %v1600_v34 = vld [vmem:[%s17357_s27 + $0x21a8] sm:$0xff] }
 0x2d6   : > { %10661 = vmatprep.subr.bf16.mxu0 %v15528_v23  ;;  %v1724_v56 = vld [vmem:[%s17357_s27 + $0x2588] sm:$0xff]  ;;  %v15760_v47 = vcombine.high %v1596_v31, %v1600_v34  ;;  %v15759_v62 = vcombine.low %v1596_v31, %v1600_v34 }
 0x2d7   : > { %10703 = vmatpush2.bf16.msra.mxu1 %v15663_v27  ;;  %v1728_v28 = vld [vmem:[%s17357_s27 + $0x25a8] sm:$0xff] }
 0x2d8   : > { %10704 = vmatprep.subr.bf16.mxu1 %v15656_v38  ;;  %v15888_v53 = vcombine.high %v1724_v56, %v1728_v28  ;;  %v1588_v43 = vld [vmem:[%s17357_s27 + $0x2148] sm:$0xff]  ;;  %v15887_v41 = vcombine.low %v1724_v56, %v1728_v28 }
 0x2d9   : > { %10662 = vmatpush2.bf16.msra.mxu0 %v15527_v26  ;;  %v1592_v21 = vld [vmem:[%s17357_s27 + $0x2168] sm:$0xff] }
 0x2da   : > { %10663 = vmatprep.subr.bf16.mxu0 %v15520_v6  ;;  %v1716_v7 = vld [vmem:[%s17357_s27 + $0x2548] sm:$0xff]  ;;  %v15752_v33 = vcombine.high %v1588_v43, %v1592_v21  ;;  %v15751_v19 = vcombine.low %v1588_v43, %v1592_v21 }
 0x2db   : > { %10705 = vmatpush2.bf16.msra.mxu1 %v15655_v24  ;;  %v1720_v42 = vld [vmem:[%s17357_s27 + $0x2568] sm:$0xff] }
 0x2dc   : > { %10706 = vmatprep.subr.bf16.mxu1 %v15648_v36  ;;  %v15880_v30 = vcombine.high %v1716_v7, %v1720_v42  ;;  %v1580_v0 = vld [vmem:[%s17357_s27 + $0x2108] sm:$0xff]  ;;  %v15879_v58 = vcombine.low %v1716_v7, %v1720_v42 }
 0x2dd   : > { %10664 = vmatpush2.bf16.msra.mxu0 %v15519_v57  ;;  %v1584_v11 = vld [vmem:[%s17357_s27 + $0x2128] sm:$0xff] }
 0x2de   : > { %10719 = vmatprep.subr.bf16.mxu0 %v15768_v40  ;;  %v1708_v8 = vld [vmem:[%s17357_s27 + $0x2508] sm:$0xff]  ;;  %v15744_v4 = vcombine.high %v1580_v0, %v1584_v11  ;;  %v15743_v1 = vcombine.low %v1580_v0, %v1584_v11 }
 0x2df   : > { %10707 = vmatpush2.bf16.msra.mxu1 %v15647_v32  ;;  %v1712_v3 = vld [vmem:[%s17357_s27 + $0x2528] sm:$0xff] }
 0x2e0   : > { %10762 = vmatprep.subr.bf16.mxu1 %v15896_v52  ;;  %10666 = vmatmul.mubr.bf16.vlgmr.msra.gmra.mxu0 %v17747_v35  ;;  %v15872_v12 = vcombine.high %v1708_v8, %v1712_v3  ;;  %v1572_v18 = vld [vmem:[%s17357_s27 + $0x20c8] sm:$0xff]  ;;  %v15871_v27 = vcombine.low %v1708_v8, %v1712_v3 }
 0x2e1   : > { %10720 = vmatpush1.bf16.msra.mxu0 %v15767_v49  ;;  %10751 = vmatprep.mubr.bf16.mxu0 %v17770_v17  ;;  %v1576_v22 = vld [vmem:[%s17357_s27 + $0x20e8] sm:$0xff] }
 0x2e2   : > { %10709 = vmatmul.mubr.bf16.vlgmr.msra.gmra.mxu1 %v17758_v39  ;;  %10721 = vmatprep.subr.bf16.mxu0 %v15760_v47  ;;  %v1700_v15 = vld [vmem:[%s17357_s27 + $0x24c8] sm:$0xff]  ;;  %v15736_v23 = vcombine.high %v1572_v18, %v1576_v22  ;;  %v15735_v26 = vcombine.low %v1572_v18, %v1576_v22 }
 0x2e3   : > { %10763 = vmatpush1.bf16.msra.mxu1 %v15895_v44  ;;  %10794 = vmatprep.mubr.bf16.mxu1 %v17777_v9  ;;  %v1704_v55 = vld [vmem:[%s17357_s27 + $0x24e8] sm:$0xff] }
 0x2e4   : > { %10764 = vmatprep.subr.bf16.mxu1 %v15888_v53  ;;  %v15864_v38 = vcombine.high %v1700_v15, %v1704_v55  ;;  %v1564_v59 = vld [vmem:[%s17357_s27 + $0x2088] sm:$0xff]  ;;  %v15863_v24 = vcombine.low %v1700_v15, %v1704_v55 }
 0x2e5   : > { %10722 = vmatpush1.bf16.msra.mxu0 %v15759_v62  ;;  %v1568_v51 = vld [vmem:[%s17357_s27 + $0x20a8] sm:$0xff] }
 0x2e6   : > { %10723 = vmatprep.subr.bf16.mxu0 %v15752_v33  ;;  %v1692_v50 = vld [vmem:[%s17357_s27 + $0x2488] sm:$0xff]  ;;  %v15728_v6 = vcombine.high %v1564_v59, %v1568_v51  ;;  %v15727_v57 = vcombine.low %v1564_v59, %v1568_v51 }
 0x2e7   : > { %10765 = vmatpush1.bf16.msra.mxu1 %v15887_v41  ;;  %v1696_v54 = vld [vmem:[%s17357_s27 + $0x24a8] sm:$0xff] }
 0x2e8   : > { %10766 = vmatprep.subr.bf16.mxu1 %v15880_v30  ;;  %v15856_v36 = vcombine.high %v1692_v50, %v1696_v54  ;;  %v1556_v10 = vld [vmem:[%s17357_s27 + $0x2048] sm:$0xff]  ;;  %v15855_v32 = vcombine.low %v1692_v50, %v1696_v54 }
 0x2e9   : > { %10724 = vmatpush1.bf16.msra.mxu0 %v15751_v19  ;;  %v1560_v63 = vld [vmem:[%s17357_s27 + $0x2068] sm:$0xff] }
 0x2ea   : > { %10725 = vmatprep.subr.bf16.mxu0 %v15744_v4  ;;  %v1684_v37 = vld [vmem:[%s17357_s27 + $0x2448] sm:$0xff]  ;;  %v15720_v40 = vcombine.high %v1556_v10, %v1560_v63  ;;  %v15719_v49 = vcombine.low %v1556_v10, %v1560_v63 }
 0x2eb   : > { %10767 = vmatpush1.bf16.msra.mxu1 %v15879_v58  ;;  %v1688_v29 = vld [vmem:[%s17357_s27 + $0x2468] sm:$0xff] }
 0x2ec   : > { %10768 = vmatprep.subr.bf16.mxu1 %v15872_v12  ;;  %v15848_v52 = vcombine.high %v1684_v37, %v1688_v29  ;;  %v1548_v31 = vld [vmem:[%s17357_s27 + $0x2008] sm:$0xff]  ;;  %v15847_v44 = vcombine.low %v1684_v37, %v1688_v29 }
 0x2ed   : > { %10726 = vmatpush1.bf16.msra.mxu0 %v15743_v1  ;;  %v1552_v34 = vld [vmem:[%s17357_s27 + $0x2028] sm:$0xff] }
 0x2ee   : > { %10727 = vmatprep.subr.bf16.mxu0 %v15736_v23  ;;  %v1676_v56 = vld [vmem:[%s17357_s27 + $0x2408] sm:$0xff]  ;;  %v15712_v47 = vcombine.high %v1548_v31, %v1552_v34  ;;  %v15711_v62 = vcombine.low %v1548_v31, %v1552_v34 }
 0x2ef   : > { %10769 = vmatpush1.bf16.msra.mxu1 %v15871_v27  ;;  %v1680_v28 = vld [vmem:[%s17357_s27 + $0x2428] sm:$0xff] }
 0x2f0   : > { %10770 = vmatprep.subr.bf16.mxu1 %v15864_v38  ;;  %v15840_v53 = vcombine.high %v1676_v56, %v1680_v28  ;;  %v1668_v43 = vld [vmem:[%s17357_s27 + $0x23c8] sm:$0xff]  ;;  %v15839_v41 = vcombine.low %v1676_v56, %v1680_v28 }
 0x2f1   : > { %10728 = vmatpush1.bf16.msra.mxu0 %v15735_v26  ;;  %v1672_v21 = vld [vmem:[%s17357_s27 + $0x23e8] sm:$0xff] }
 0x2f2   : > { %10729 = vmatprep.subr.bf16.mxu0 %v15728_v6  ;;  %v1796_v7 = vld [vmem:[%s17357_s27 + $0x27c8] sm:$0xff]  ;;  %v15832_v33 = vcombine.high %v1668_v43, %v1672_v21  ;;  %v15831_v19 = vcombine.low %v1668_v43, %v1672_v21 }
 0x2f3   : > { %10771 = vmatpush1.bf16.msra.mxu1 %v15863_v24  ;;  %v1800_v42 = vld [vmem:[%s17357_s27 + $0x27e8] sm:$0xff] }
 0x2f4   : > { %10772 = vmatprep.subr.bf16.mxu1 %v15856_v36  ;;  %v15960_v30 = vcombine.high %v1796_v7, %v1800_v42  ;;  %v1660_v0 = vld [vmem:[%s17357_s27 + $0x2388] sm:$0xff]  ;;  %v15959_v58 = vcombine.low %v1796_v7, %v1800_v42 }
 0x2f5   : > { %10730 = vmatpush1.bf16.msra.mxu0 %v15727_v57  ;;  %v1664_v11 = vld [vmem:[%s17357_s27 + $0x23a8] sm:$0xff] }
 0x2f6   : > { %10731 = vmatprep.subr.bf16.mxu0 %v15720_v40  ;;  %v1788_v8 = vld [vmem:[%s17357_s27 + $0x2788] sm:$0xff]  ;;  %v15824_v4 = vcombine.high %v1660_v0, %v1664_v11  ;;  %v15823_v1 = vcombine.low %v1660_v0, %v1664_v11 }
 0x2f7   : > { %10773 = vmatpush1.bf16.msra.mxu1 %v15855_v32  ;;  %v1792_v3 = vld [vmem:[%s17357_s27 + $0x27a8] sm:$0xff] }
 0x2f8   : > { %10774 = vmatprep.subr.bf16.mxu1 %v15848_v52  ;;  %v15952_v12 = vcombine.high %v1788_v8, %v1792_v3  ;;  %v1652_v18 = vld [vmem:[%s17357_s27 + $0x2348] sm:$0xff]  ;;  %v15951_v27 = vcombine.low %v1788_v8, %v1792_v3 }
 0x2f9   : > { %10732 = vmatpush1.bf16.msra.mxu0 %v15719_v49  ;;  %v1656_v22 = vld [vmem:[%s17357_s27 + $0x2368] sm:$0xff] }
 0x2fa   : > { %10733 = vmatprep.subr.bf16.mxu0 %v15712_v47  ;;  %v1780_v15 = vld [vmem:[%s17357_s27 + $0x2748] sm:$0xff]  ;;  %v15816_v23 = vcombine.high %v1652_v18, %v1656_v22  ;;  %v15815_v26 = vcombine.low %v1652_v18, %v1656_v22 }
 0x2fb   : > { %10775 = vmatpush1.bf16.msra.mxu1 %v15847_v44  ;;  %v1784_v55 = vld [vmem:[%s17357_s27 + $0x2768] sm:$0xff] }
 0x2fc   : > { %10776 = vmatprep.subr.bf16.mxu1 %v15840_v53  ;;  %v15944_v38 = vcombine.high %v1780_v15, %v1784_v55  ;;  %v1644_v59 = vld [vmem:[%s17357_s27 + $0x2308] sm:$0xff]  ;;  %v15943_v24 = vcombine.low %v1780_v15, %v1784_v55 }
 0x2fd   : > { %10734 = vmatpush1.bf16.msra.mxu0 %v15711_v62  ;;  %v1648_v51 = vld [vmem:[%s17357_s27 + $0x2328] sm:$0xff] }
 0x2fe   : > { %10735 = vmatprep.subr.bf16.mxu0 %v15832_v33  ;;  %v1772_v50 = vld [vmem:[%s17357_s27 + $0x2708] sm:$0xff]  ;;  %v15808_v6 = vcombine.high %v1644_v59, %v1648_v51  ;;  %v15807_v57 = vcombine.low %v1644_v59, %v1648_v51 }
 0x2ff   : > { %10777 = vmatpush1.bf16.msra.mxu1 %v15839_v41  ;;  %v1776_v54 = vld [vmem:[%s17357_s27 + $0x2728] sm:$0xff] }
 0x300   : > { %10778 = vmatprep.subr.bf16.mxu1 %v15960_v30  ;;  %v15936_v36 = vcombine.high %v1772_v50, %v1776_v54  ;;  %v1636_v10 = vld [vmem:[%s17357_s27 + $0x22c8] sm:$0xff]  ;;  %v15935_v32 = vcombine.low %v1772_v50, %v1776_v54 }
 0x301   : > { %10736 = vmatpush2.bf16.msra.mxu0 %v15831_v19  ;;  %v1640_v63 = vld [vmem:[%s17357_s27 + $0x22e8] sm:$0xff] }
 0x302   : > { %10737 = vmatprep.subr.bf16.mxu0 %v15824_v4  ;;  %v1764_v37 = vld [vmem:[%s17357_s27 + $0x26c8] sm:$0xff]  ;;  %v15800_v40 = vcombine.high %v1636_v10, %v1640_v63  ;;  %v15799_v49 = vcombine.low %v1636_v10, %v1640_v63 }
 0x303   : > { %10779 = vmatpush2.bf16.msra.mxu1 %v15959_v58  ;;  %v1768_v29 = vld [vmem:[%s17357_s27 + $0x26e8] sm:$0xff] }
 0x304   : > { %10780 = vmatprep.subr.bf16.mxu1 %v15952_v12  ;;  %v15928_v52 = vcombine.high %v1764_v37, %v1768_v29  ;;  %v1628_v31 = vld [vmem:[%s17357_s27 + $0x2288] sm:$0xff]  ;;  %v15927_v44 = vcombine.low %v1764_v37, %v1768_v29 }
 0x305   : > { %10738 = vmatpush2.bf16.msra.mxu0 %v15823_v1  ;;  %v1632_v34 = vld [vmem:[%s17357_s27 + $0x22a8] sm:$0xff] }
 0x306   : > { %10739 = vmatprep.subr.bf16.mxu0 %v15816_v23  ;;  %v1756_v56 = vld [vmem:[%s17357_s27 + $0x2688] sm:$0xff]  ;;  %v15792_v47 = vcombine.high %v1628_v31, %v1632_v34  ;;  %v15791_v62 = vcombine.low %v1628_v31, %v1632_v34 }
 0x307   : > { %10781 = vmatpush2.bf16.msra.mxu1 %v15951_v27  ;;  %v1760_v28 = vld [vmem:[%s17357_s27 + $0x26a8] sm:$0xff] }
 0x308   : > { %10782 = vmatprep.subr.bf16.mxu1 %v15944_v38  ;;  %v15920_v53 = vcombine.high %v1756_v56, %v1760_v28  ;;  %v1620_v43 = vld [vmem:[%s17357_s27 + $0x2248] sm:$0xff]  ;;  %v15919_v41 = vcombine.low %v1756_v56, %v1760_v28 }
 0x309   : > { %10740 = vmatpush2.bf16.msra.mxu0 %v15815_v26  ;;  %v1624_v21 = vld [vmem:[%s17357_s27 + $0x2268] sm:$0xff] }
 0x30a   : > { %10741 = vmatprep.subr.bf16.mxu0 %v15808_v6  ;;  %v1748_v7 = vld [vmem:[%s17357_s27 + $0x2648] sm:$0xff]  ;;  %v15784_v33 = vcombine.high %v1620_v43, %v1624_v21  ;;  %v15783_v19 = vcombine.low %v1620_v43, %v1624_v21 }
 0x30b   : > { %10783 = vmatpush2.bf16.msra.mxu1 %v15943_v24  ;;  %v1752_v42 = vld [vmem:[%s17357_s27 + $0x2668] sm:$0xff] }
 0x30c   : > { %10784 = vmatprep.subr.bf16.mxu1 %v15936_v36  ;;  %v15912_v30 = vcombine.high %v1748_v7, %v1752_v42  ;;  %v1612_v0 = vld [vmem:[%s17357_s27 + $0x2208] sm:$0xff]  ;;  %v15911_v58 = vcombine.low %v1748_v7, %v1752_v42 }
 0x30d   : > { %10742 = vmatpush2.bf16.msra.mxu0 %v15807_v57  ;;  %v1616_v11 = vld [vmem:[%s17357_s27 + $0x2228] sm:$0xff] }
 0x30e   : > { %10743 = vmatprep.subr.bf16.mxu0 %v15800_v40  ;;  %v1740_v8 = vld [vmem:[%s17357_s27 + $0x2608] sm:$0xff]  ;;  %v15776_v4 = vcombine.high %v1612_v0, %v1616_v11  ;;  %v15775_v1 = vcombine.low %v1612_v0, %v1616_v11 }
 0x30f   : > { %10785 = vmatpush2.bf16.msra.mxu1 %v15935_v32  ;;  %v1744_v3 = vld [vmem:[%s17357_s27 + $0x2628] sm:$0xff] }
 0x310   : > { %10786 = vmatprep.subr.bf16.mxu1 %v15928_v52  ;;  %v15904_v12 = vcombine.high %v1740_v8, %v1744_v3  ;;  %v1860_v18 = vld [vmem:[%s17357_s27 + $0x29c8] sm:$0xff]  ;;  %v15903_v27 = vcombine.low %v1740_v8, %v1744_v3 }
 0x311   : > { %10744 = vmatpush2.bf16.msra.mxu0 %v15799_v49  ;;  %v1864_v22 = vld [vmem:[%s17357_s27 + $0x29e8] sm:$0xff] }
 0x312   : > { %10745 = vmatprep.subr.bf16.mxu0 %v15792_v47  ;;  %v1988_v15 = vld [vmem:[%s17357_s27 + $0x2dc8] sm:$0xff]  ;;  %v16024_v23 = vcombine.high %v1860_v18, %v1864_v22  ;;  %v16023_v26 = vcombine.low %v1860_v18, %v1864_v22 }
 0x313   : > { %10787 = vmatpush2.bf16.msra.mxu1 %v15927_v44  ;;  %v1992_v55 = vld [vmem:[%s17357_s27 + $0x2de8] sm:$0xff] }
 0x314   : > { %10788 = vmatprep.subr.bf16.mxu1 %v15920_v53  ;;  %v16152_v38 = vcombine.high %v1988_v15, %v1992_v55  ;;  %v1852_v59 = vld [vmem:[%s17357_s27 + $0x2988] sm:$0xff]  ;;  %v16151_v24 = vcombine.low %v1988_v15, %v1992_v55 }
 0x315   : > { %10746 = vmatpush2.bf16.msra.mxu0 %v15791_v62  ;;  %v1856_v51 = vld [vmem:[%s17357_s27 + $0x29a8] sm:$0xff] }
 0x316   : > { %10747 = vmatprep.subr.bf16.mxu0 %v15784_v33  ;;  %v1980_v50 = vld [vmem:[%s17357_s27 + $0x2d88] sm:$0xff]  ;;  %v16016_v6 = vcombine.high %v1852_v59, %v1856_v51  ;;  %v16015_v57 = vcombine.low %v1852_v59, %v1856_v51 }
 0x317   : > { %10789 = vmatpush2.bf16.msra.mxu1 %v15919_v41  ;;  %v1984_v54 = vld [vmem:[%s17357_s27 + $0x2da8] sm:$0xff] }
 0x318   : > { %10790 = vmatprep.subr.bf16.mxu1 %v15912_v30  ;;  %v16144_v36 = vcombine.high %v1980_v50, %v1984_v54  ;;  %v1844_v10 = vld [vmem:[%s17357_s27 + $0x2948] sm:$0xff]  ;;  %v16143_v32 = vcombine.low %v1980_v50, %v1984_v54 }
 0x319   : > { %10748 = vmatpush2.bf16.msra.mxu0 %v15783_v19  ;;  %v1848_v63 = vld [vmem:[%s17357_s27 + $0x2968] sm:$0xff] }
 0x31a   : > { %10749 = vmatprep.subr.bf16.mxu0 %v15776_v4  ;;  %v1972_v37 = vld [vmem:[%s17357_s27 + $0x2d48] sm:$0xff]  ;;  %v16008_v40 = vcombine.high %v1844_v10, %v1848_v63  ;;  %v16007_v49 = vcombine.low %v1844_v10, %v1848_v63 }
 0x31b   : > { %10791 = vmatpush2.bf16.msra.mxu1 %v15911_v58  ;;  %v1976_v29 = vld [vmem:[%s17357_s27 + $0x2d68] sm:$0xff] }
 0x31c   : > { %10792 = vmatprep.subr.bf16.mxu1 %v15904_v12  ;;  %v16136_v52 = vcombine.high %v1972_v37, %v1976_v29  ;;  %v1836_v31 = vld [vmem:[%s17357_s27 + $0x2908] sm:$0xff]  ;;  %v16135_v44 = vcombine.low %v1972_v37, %v1976_v29 }
 0x31d   : > { %10750 = vmatpush2.bf16.msra.mxu0 %v15775_v1  ;;  %v1840_v34 = vld [vmem:[%s17357_s27 + $0x2928] sm:$0xff] }
 0x31e   : > { %10805 = vmatprep.subr.bf16.mxu0 %v16024_v23  ;;  %v1964_v56 = vld [vmem:[%s17357_s27 + $0x2d08] sm:$0xff]  ;;  %v16000_v47 = vcombine.high %v1836_v31, %v1840_v34  ;;  %v15999_v62 = vcombine.low %v1836_v31, %v1840_v34 }
 0x31f   : > { %10793 = vmatpush2.bf16.msra.mxu1 %v15903_v27  ;;  %v1968_v28 = vld [vmem:[%s17357_s27 + $0x2d28] sm:$0xff] }
 0x320   : > { %10848 = vmatprep.subr.bf16.mxu1 %v16152_v38  ;;  %10752 = vmatmul.mubr.bf16.vlgmr.msra.gmra.mxu0 %v17843_v48  ;;  %v16128_v53 = vcombine.high %v1964_v56, %v1968_v28  ;;  %v1828_v43 = vld [vmem:[%s17357_s27 + $0x28c8] sm:$0xff]  ;;  %v16127_v41 = vcombine.low %v1964_v56, %v1968_v28 }
 0x321   : > { %10806 = vmatpush1.bf16.msra.mxu0 %v16023_v26  ;;  %10837 = vmatprep.mubr.bf16.mxu0 %v17866_v13  ;;  %v1832_v21 = vld [vmem:[%s17357_s27 + $0x28e8] sm:$0xff] }
 0x322   : > { %10795 = vmatmul.mubr.bf16.vlgmr.msra.gmra.mxu1 %v17854_v46  ;;  %10807 = vmatprep.subr.bf16.mxu0 %v16016_v6  ;;  %v1956_v7 = vld [vmem:[%s17357_s27 + $0x2cc8] sm:$0xff]  ;;  %v15992_v33 = vcombine.high %v1828_v43, %v1832_v21  ;;  %v15991_v19 = vcombine.low %v1828_v43, %v1832_v21 }
 0x323   : > { %10849 = vmatpush1.bf16.msra.mxu1 %v16151_v24  ;;  %10880 = vmatprep.mubr.bf16.mxu1 %v17873_v14  ;;  %v1960_v42 = vld [vmem:[%s17357_s27 + $0x2ce8] sm:$0xff] }
 0x324   : > { %10850 = vmatprep.subr.bf16.mxu1 %v16144_v36  ;;  %v16120_v30 = vcombine.high %v1956_v7, %v1960_v42  ;;  %v1820_v0 = vld [vmem:[%s17357_s27 + $0x2888] sm:$0xff]  ;;  %v16119_v58 = vcombine.low %v1956_v7, %v1960_v42 }
 0x325   : > { %10808 = vmatpush1.bf16.msra.mxu0 %v16015_v57  ;;  %v1824_v11 = vld [vmem:[%s17357_s27 + $0x28a8] sm:$0xff] }
 0x326   : > { %10809 = vmatprep.subr.bf16.mxu0 %v16008_v40  ;;  %v1948_v8 = vld [vmem:[%s17357_s27 + $0x2c88] sm:$0xff]  ;;  %v15984_v4 = vcombine.high %v1820_v0, %v1824_v11  ;;  %v15983_v1 = vcombine.low %v1820_v0, %v1824_v11 }
 0x327   : > { %10851 = vmatpush1.bf16.msra.mxu1 %v16143_v32  ;;  %v1952_v3 = vld [vmem:[%s17357_s27 + $0x2ca8] sm:$0xff] }
 0x328   : > { %10852 = vmatprep.subr.bf16.mxu1 %v16136_v52  ;;  %v16112_v12 = vcombine.high %v1948_v8, %v1952_v3  ;;  %v1812_v18 = vld [vmem:[%s17357_s27 + $0x2848] sm:$0xff]  ;;  %v16111_v27 = vcombine.low %v1948_v8, %v1952_v3 }
 0x329   : > { %10810 = vmatpush1.bf16.msra.mxu0 %v16007_v49  ;;  %v1816_v22 = vld [vmem:[%s17357_s27 + $0x2868] sm:$0xff] }
 0x32a   : > { %10811 = vmatprep.subr.bf16.mxu0 %v16000_v47  ;;  %v1940_v15 = vld [vmem:[%s17357_s27 + $0x2c48] sm:$0xff]  ;;  %v15976_v23 = vcombine.high %v1812_v18, %v1816_v22  ;;  %v15975_v26 = vcombine.low %v1812_v18, %v1816_v22 }
 0x32b   : > { %10853 = vmatpush1.bf16.msra.mxu1 %v16135_v44  ;;  %v1944_v55 = vld [vmem:[%s17357_s27 + $0x2c68] sm:$0xff] }
 0x32c   : > { %10854 = vmatprep.subr.bf16.mxu1 %v16128_v53  ;;  %v16104_v38 = vcombine.high %v1940_v15, %v1944_v55  ;;  %v1804_v59 = vld [vmem:[%s17357_s27 + $0x2808] sm:$0xff]  ;;  %v16103_v24 = vcombine.low %v1940_v15, %v1944_v55 }
 0x32d   : > { %10812 = vmatpush1.bf16.msra.mxu0 %v15999_v62  ;;  %v1808_v51 = vld [vmem:[%s17357_s27 + $0x2828] sm:$0xff] }
 0x32e   : > { %10813 = vmatprep.subr.bf16.mxu0 %v15992_v33  ;;  %v1932_v50 = vld [vmem:[%s17357_s27 + $0x2c08] sm:$0xff]  ;;  %v15968_v6 = vcombine.high %v1804_v59, %v1808_v51  ;;  %v15967_v57 = vcombine.low %v1804_v59, %v1808_v51 }
 0x32f   : > { %10855 = vmatpush1.bf16.msra.mxu1 %v16127_v41  ;;  %v1936_v54 = vld [vmem:[%s17357_s27 + $0x2c28] sm:$0xff] }
 0x330   : > { %10856 = vmatprep.subr.bf16.mxu1 %v16120_v30  ;;  %v16096_v36 = vcombine.high %v1932_v50, %v1936_v54  ;;  %v1924_v10 = vld [vmem:[%s17357_s27 + $0x2bc8] sm:$0xff]  ;;  %v16095_v32 = vcombine.low %v1932_v50, %v1936_v54 }
 0x331   : > { %10814 = vmatpush1.bf16.msra.mxu0 %v15991_v19  ;;  %v1928_v63 = vld [vmem:[%s17357_s27 + $0x2be8] sm:$0xff] }
 0x332   : > { %10815 = vmatprep.subr.bf16.mxu0 %v15984_v4  ;;  %v2052_v37 = vld [vmem:[%s17357_s27 + $0x2fc8] sm:$0xff]  ;;  %v16088_v40 = vcombine.high %v1924_v10, %v1928_v63  ;;  %v16087_v49 = vcombine.low %v1924_v10, %v1928_v63 }
 0x333   : > { %10857 = vmatpush1.bf16.msra.mxu1 %v16119_v58  ;;  %v2056_v29 = vld [vmem:[%s17357_s27 + $0x2fe8] sm:$0xff] }
 0x334   : > { %10858 = vmatprep.subr.bf16.mxu1 %v16112_v12  ;;  %v16216_v52 = vcombine.high %v2052_v37, %v2056_v29  ;;  %v1916_v31 = vld [vmem:[%s17357_s27 + $0x2b88] sm:$0xff]  ;;  %v16215_v44 = vcombine.low %v2052_v37, %v2056_v29 }
 0x335   : > { %10816 = vmatpush1.bf16.msra.mxu0 %v15983_v1  ;;  %v1920_v34 = vld [vmem:[%s17357_s27 + $0x2ba8] sm:$0xff] }
 0x336   : > { %10817 = vmatprep.subr.bf16.mxu0 %v15976_v23  ;;  %v2044_v56 = vld [vmem:[%s17357_s27 + $0x2f88] sm:$0xff]  ;;  %v16080_v47 = vcombine.high %v1916_v31, %v1920_v34  ;;  %v16079_v62 = vcombine.low %v1916_v31, %v1920_v34 }
 0x337   : > { %10859 = vmatpush1.bf16.msra.mxu1 %v16111_v27  ;;  %v2048_v28 = vld [vmem:[%s17357_s27 + $0x2fa8] sm:$0xff] }
 0x338   : > { %10860 = vmatprep.subr.bf16.mxu1 %v16104_v38  ;;  %v16208_v53 = vcombine.high %v2044_v56, %v2048_v28  ;;  %v1908_v43 = vld [vmem:[%s17357_s27 + $0x2b48] sm:$0xff]  ;;  %v16207_v41 = vcombine.low %v2044_v56, %v2048_v28 }
 0x339   : > { %10818 = vmatpush1.bf16.msra.mxu0 %v15975_v26  ;;  %v1912_v21 = vld [vmem:[%s17357_s27 + $0x2b68] sm:$0xff] }
 0x33a   : > { %10819 = vmatprep.subr.bf16.mxu0 %v15968_v6  ;;  %v2036_v7 = vld [vmem:[%s17357_s27 + $0x2f48] sm:$0xff]  ;;  %v16072_v33 = vcombine.high %v1908_v43, %v1912_v21  ;;  %v16071_v19 = vcombine.low %v1908_v43, %v1912_v21  ;;  %v581_v43 = vld [vmem:[%s17357_s27 + $0x1d0] sm:$0xff] }
 0x33b   : > { %10861 = vmatpush1.bf16.msra.mxu1 %v16103_v24  ;;  %v2040_v42 = vld [vmem:[%s17357_s27 + $0x2f68] sm:$0xff]  ;;  %v585_v21 = vld [vmem:[%s17357_s27 + $0x1f0] sm:$0xff] }
 0x33c   : > { %10862 = vmatprep.subr.bf16.mxu1 %v16096_v36  ;;  %v16200_v30 = vcombine.high %v2036_v7, %v2040_v42  ;;  %v1900_v0 = vld [vmem:[%s17357_s27 + $0x2b08] sm:$0xff]  ;;  %v16199_v58 = vcombine.low %v2036_v7, %v2040_v42  ;;  %v709_v7 = vld [vmem:[%s17357_s27 + $0x5d0] sm:$0xff] }
 0x33d   : > { %10820 = vmatpush1.bf16.msra.mxu0 %v15967_v57  ;;  %v1904_v11 = vld [vmem:[%s17357_s27 + $0x2b28] sm:$0xff]  ;;  %v713_v42 = vld [vmem:[%s17357_s27 + $0x5f0] sm:$0xff] }
 0x33e   : > { %10821 = vmatprep.subr.bf16.mxu0 %v16088_v40  ;;  %v2028_v8 = vld [vmem:[%s17357_s27 + $0x2f08] sm:$0xff]  ;;  %v16064_v4 = vcombine.high %v1900_v0, %v1904_v11  ;;  %v16063_v1 = vcombine.low %v1900_v0, %v1904_v11  ;;  %v573_v0 = vld [vmem:[%s17357_s27 + $0x190] sm:$0xff] }
 0x33f   : > { %10863 = vmatpush1.bf16.msra.mxu1 %v16095_v32  ;;  %v2032_v3 = vld [vmem:[%s17357_s27 + $0x2f28] sm:$0xff]  ;;  %v577_v11 = vld [vmem:[%s17357_s27 + $0x1b0] sm:$0xff] }
 0x340   : > { %10864 = vmatprep.subr.bf16.mxu1 %v16216_v52  ;;  %v16192_v12 = vcombine.high %v2028_v8, %v2032_v3  ;;  %v1892_v18 = vld [vmem:[%s17357_s27 + $0x2ac8] sm:$0xff]  ;;  %v16191_v27 = vcombine.low %v2028_v8, %v2032_v3  ;;  %v701_v8 = vld [vmem:[%s17357_s27 + $0x590] sm:$0xff] }
 0x341   : > { %10822 = vmatpush2.bf16.msra.mxu0 %v16087_v49  ;;  %v1896_v22 = vld [vmem:[%s17357_s27 + $0x2ae8] sm:$0xff]  ;;  %v705_v3 = vld [vmem:[%s17357_s27 + $0x5b0] sm:$0xff] }
 0x342   : > { %10823 = vmatprep.subr.bf16.mxu0 %v16080_v47  ;;  %v2020_v15 = vld [vmem:[%s17357_s27 + $0x2ec8] sm:$0xff]  ;;  %v16056_v23 = vcombine.high %v1892_v18, %v1896_v22  ;;  %v16055_v26 = vcombine.low %v1892_v18, %v1896_v22  ;;  %v565_v18 = vld [vmem:[%s17357_s27 + $0x150] sm:$0xff] }
 0x343   : > { %10865 = vmatpush2.bf16.msra.mxu1 %v16215_v44  ;;  %v2024_v55 = vld [vmem:[%s17357_s27 + $0x2ee8] sm:$0xff]  ;;  %v569_v22 = vld [vmem:[%s17357_s27 + $0x170] sm:$0xff] }
 0x344   : > { %10866 = vmatprep.subr.bf16.mxu1 %v16208_v53  ;;  %v16184_v38 = vcombine.high %v2020_v15, %v2024_v55  ;;  %v1884_v59 = vld [vmem:[%s17357_s27 + $0x2a88] sm:$0xff]  ;;  %v16183_v24 = vcombine.low %v2020_v15, %v2024_v55  ;;  %v693_v15 = vld [vmem:[%s17357_s27 + $0x550] sm:$0xff] }
 0x345   : > { %10824 = vmatpush2.bf16.msra.mxu0 %v16079_v62  ;;  %v1888_v51 = vld [vmem:[%s17357_s27 + $0x2aa8] sm:$0xff]  ;;  %v697_v55 = vld [vmem:[%s17357_s27 + $0x570] sm:$0xff] }
 0x346   : > { %10825 = vmatprep.subr.bf16.mxu0 %v16072_v33  ;;  %v2012_v50 = vld [vmem:[%s17357_s27 + $0x2e88] sm:$0xff]  ;;  %v16048_v6 = vcombine.high %v1884_v59, %v1888_v51  ;;  %v16047_v57 = vcombine.low %v1884_v59, %v1888_v51  ;;  %v14746_v33 = vcombine.high %v581_v43, %v585_v21  ;;  %v557_v59 = vld [vmem:[%s17357_s27 + $0x110] sm:$0xff] }
 0x347   : > { %10867 = vmatpush2.bf16.msra.mxu1 %v16207_v41  ;;  %v2016_v54 = vld [vmem:[%s17357_s27 + $0x2ea8] sm:$0xff]  ;;  %v561_v51 = vld [vmem:[%s17357_s27 + $0x130] sm:$0xff] }
 0x348   : > { %10868 = vmatprep.subr.bf16.mxu1 %v16200_v30  ;;  %v16176_v36 = vcombine.high %v2012_v50, %v2016_v54  ;;  %v1876_v10 = vld [vmem:[%s17357_s27 + $0x2a48] sm:$0xff]  ;;  %v16175_v32 = vcombine.low %v2012_v50, %v2016_v54  ;;  %v14874_v30 = vcombine.high %v709_v7, %v713_v42  ;;  %v685_v50 = vld [vmem:[%s17357_s27 + $0x510] sm:$0xff] }
 0x349   : > { %10826 = vmatpush2.bf16.msra.mxu0 %v16071_v19  ;;  %v1880_v63 = vld [vmem:[%s17357_s27 + $0x2a68] sm:$0xff]  ;;  %v14745_v19 = vcombine.low %v581_v43, %v585_v21  ;;  %v689_v54 = vld [vmem:[%s17357_s27 + $0x530] sm:$0xff] }
 0x34a   : > { %10827 = vmatprep.subr.bf16.mxu0 %v16064_v4  ;;  %v2004_v37 = vld [vmem:[%s17357_s27 + $0x2e48] sm:$0xff]  ;;  %v16040_v40 = vcombine.high %v1876_v10, %v1880_v63  ;;  %v16039_v49 = vcombine.low %v1876_v10, %v1880_v63  ;;  %v14738_v4 = vcombine.high %v573_v0, %v577_v11  ;;  %v549_v10 = vld [vmem:[%s17357_s27 + $0xd0] sm:$0xff] }
 0x34b   : > { %10869 = vmatpush2.bf16.msra.mxu1 %v16199_v58  ;;  %v2008_v29 = vld [vmem:[%s17357_s27 + $0x2e68] sm:$0xff]  ;;  %v14873_v58 = vcombine.low %v709_v7, %v713_v42  ;;  %v553_v63 = vld [vmem:[%s17357_s27 + $0xf0] sm:$0xff] }
 0x34c   : > { %10870 = vmatprep.subr.bf16.mxu1 %v16192_v12  ;;  %v16168_v52 = vcombine.high %v2004_v37, %v2008_v29  ;;  %v1868_v31 = vld [vmem:[%s17357_s27 + $0x2a08] sm:$0xff]  ;;  %v16167_v44 = vcombine.low %v2004_v37, %v2008_v29  ;;  %v14866_v12 = vcombine.high %v701_v8, %v705_v3  ;;  %v677_v37 = vld [vmem:[%s17357_s27 + $0x4d0] sm:$0xff] }
 0x34d   : > { %10828 = vmatpush2.bf16.msra.mxu0 %v16063_v1  ;;  %v1872_v34 = vld [vmem:[%s17357_s27 + $0x2a28] sm:$0xff]  ;;  %v14737_v1 = vcombine.low %v573_v0, %v577_v11  ;;  %v681_v29 = vld [vmem:[%s17357_s27 + $0x4f0] sm:$0xff] }
 0x34e   : > { %10829 = vmatprep.subr.bf16.mxu0 %v16056_v23  ;;  %v1996_v56 = vld [vmem:[%s17357_s27 + $0x2e08] sm:$0xff]  ;;  %v16032_v47 = vcombine.high %v1868_v31, %v1872_v34  ;;  %v16031_v62 = vcombine.low %v1868_v31, %v1872_v34  ;;  %v14730_v23 = vcombine.high %v565_v18, %v569_v22  ;;  %v541_v31 = vld [vmem:[%s17357_s27 + $0x90] sm:$0xff] }
 0x34f   : > { %10871 = vmatpush2.bf16.msra.mxu1 %v16191_v27  ;;  %v2000_v28 = vld [vmem:[%s17357_s27 + $0x2e28] sm:$0xff]  ;;  %v14865_v27 = vcombine.low %v701_v8, %v705_v3  ;;  %v545_v34 = vld [vmem:[%s17357_s27 + $0xb0] sm:$0xff] }
 0x350   : > { %10872 = vmatprep.subr.bf16.mxu1 %v16184_v38  ;;  %v16160_v53 = vcombine.high %v1996_v56, %v2000_v28  ;;  %v16159_v41 = vcombine.low %v1996_v56, %v2000_v28  ;;  %v14858_v38 = vcombine.high %v693_v15, %v697_v55  ;;  %v669_v56 = vld [vmem:[%s17357_s27 + $0x490] sm:$0xff] }
 0x351   : > { %10830 = vmatpush2.bf16.msra.mxu0 %v16055_v26  ;;  %v14729_v26 = vcombine.low %v565_v18, %v569_v22  ;;  %v673_v28 = vld [vmem:[%s17357_s27 + $0x4b0] sm:$0xff] }
 0x352   : > { %10831 = vmatprep.subr.bf16.mxu0 %v16048_v6  ;;  %v14722_v6 = vcombine.high %v557_v59, %v561_v51  ;;  %v533_v43 = vld [vmem:[%s17357_s27 + $0x50] sm:$0xff] }
 0x353   : > { %10873 = vmatpush2.bf16.msra.mxu1 %v16183_v24  ;;  %v14857_v24 = vcombine.low %v693_v15, %v697_v55  ;;  %v537_v21 = vld [vmem:[%s17357_s27 + $0x70] sm:$0xff] }
 0x354   : > { %10874 = vmatprep.subr.bf16.mxu1 %v16176_v36  ;;  %v14850_v36 = vcombine.high %v685_v50, %v689_v54  ;;  %v661_v7 = vld [vmem:[%s17357_s27 + $0x450] sm:$0xff] }
 0x355   : > { %10832 = vmatpush2.bf16.msra.mxu0 %v16047_v57  ;;  %v14721_v57 = vcombine.low %v557_v59, %v561_v51  ;;  %v665_v42 = vld [vmem:[%s17357_s27 + $0x470] sm:$0xff] }
 0x356   : > { %10833 = vmatprep.subr.bf16.mxu0 %v16040_v40  ;;  %v14714_v40 = vcombine.high %v549_v10, %v553_v63  ;;  %v525_v0 = vld [vmem:[%s17357_s27 + $0x10] sm:$0xff] }
 0x357   : > { %10875 = vmatpush2.bf16.msra.mxu1 %v16175_v32  ;;  %v14849_v32 = vcombine.low %v685_v50, %v689_v54  ;;  %v529_v11 = vld [vmem:[%s17357_s27 + $0x30] sm:$0xff] }
 0x358   : > { %10876 = vmatprep.subr.bf16.mxu1 %v16168_v52  ;;  %v14842_v52 = vcombine.high %v677_v37, %v681_v29  ;;  %v653_v8 = vld [vmem:[%s17357_s27 + $0x410] sm:$0xff] }
 0x359   : > { %10834 = vmatpush2.bf16.msra.mxu0 %v16039_v49  ;;  %v14713_v49 = vcombine.low %v549_v10, %v553_v63  ;;  %v657_v3 = vld [vmem:[%s17357_s27 + $0x430] sm:$0xff] }
 0x35a   : > { %10835 = vmatprep.subr.bf16.mxu0 %v16032_v47  ;;  %v14706_v47 = vcombine.high %v541_v31, %v545_v34  ;;  %v645_v18 = vld [vmem:[%s17357_s27 + $0x3d0] sm:$0xff] }
 0x35b   : > { %10877 = vmatpush2.bf16.msra.mxu1 %v16167_v44  ;;  %v14841_v44 = vcombine.low %v677_v37, %v681_v29  ;;  %v649_v22 = vld [vmem:[%s17357_s27 + $0x3f0] sm:$0xff] }
 0x35c   : > { %10878 = vmatprep.subr.bf16.mxu1 %v16160_v53  ;;  %v14834_v53 = vcombine.high %v669_v56, %v673_v28  ;;  %v773_v15 = vld [vmem:[%s17357_s27 + $0x7d0] sm:$0xff] }
 0x35d   : > { %10836 = vmatpush2.bf16.msra.mxu0 %v16031_v62  ;;  %v14705_v62 = vcombine.low %v541_v31, %v545_v34  ;;  %v777_v55 = vld [vmem:[%s17357_s27 + $0x7f0] sm:$0xff] }
 0x35e   : > { %10891 = vmatprep.subr.bf16.mxu0 %v14746_v33  ;;  %v14698_v33 = vcombine.high %v533_v43, %v537_v21  ;;  %v637_v59 = vld [vmem:[%s17357_s27 + $0x390] sm:$0xff] }
 0x35f   : > { %10879 = vmatpush2.bf16.msra.mxu1 %v16159_v41  ;;  %v14833_v41 = vcombine.low %v669_v56, %v673_v28  ;;  %v641_v51 = vld [vmem:[%s17357_s27 + $0x3b0] sm:$0xff] }
 0x360   : > { %10934 = vmatprep.subr.bf16.mxu1 %v14874_v30  ;;  %10838 = vmatmul.mubr.bf16.vlgmr.msra.gmra.mxu0 %v17938_v2  ;;  %v14826_v30 = vcombine.high %v661_v7, %v665_v42  ;;  %v765_v50 = vld [vmem:[%s17357_s27 + $0x790] sm:$0xff] }
 0x361   : > { %10892 = vmatpush1.bf16.msra.mxu0 %v14745_v19  ;;  %10923 = vmatprep.mubr.bf16.mxu0 %v17402_v20  ;;  %v14697_v19 = vcombine.low %v533_v43, %v537_v21  ;;  %v769_v54 = vld [vmem:[%s17357_s27 + $0x7b0] sm:$0xff] }
 0x362   : > { %10881 = vmatmul.mubr.bf16.vlgmr.msra.gmra.mxu1 %v17944_v5  ;;  %10893 = vmatprep.subr.bf16.mxu0 %v14738_v4  ;;  %v14690_v4 = vcombine.high %v525_v0, %v529_v11  ;;  %v629_v10 = vld [vmem:[%s17357_s27 + $0x350] sm:$0xff] }
 0x363   : > { %10935 = vmatpush1.bf16.msra.mxu1 %v14873_v58  ;;  %10966 = vmatprep.mubr.bf16.mxu1 %v17414_v25  ;;  %v14825_v58 = vcombine.low %v661_v7, %v665_v42  ;;  %v633_v63 = vld [vmem:[%s17357_s27 + $0x370] sm:$0xff] }
 0x364   : > { %10936 = vmatprep.subr.bf16.mxu1 %v14866_v12  ;;  %v14818_v12 = vcombine.high %v653_v8, %v657_v3  ;;  %v757_v37 = vld [vmem:[%s17357_s27 + $0x750] sm:$0xff] }
 0x365   : > { %10894 = vmatpush1.bf16.msra.mxu0 %v14737_v1  ;;  %v14689_v1 = vcombine.low %v525_v0, %v529_v11  ;;  %v761_v29 = vld [vmem:[%s17357_s27 + $0x770] sm:$0xff] }
 0x366   : > { %10895 = vmatprep.subr.bf16.mxu0 %v14730_v23  ;;  %v14810_v23 = vcombine.high %v645_v18, %v649_v22  ;;  %v621_v31 = vld [vmem:[%s17357_s27 + $0x310] sm:$0xff] }
 0x367   : > { %10937 = vmatpush1.bf16.msra.mxu1 %v14865_v27  ;;  %v14817_v27 = vcombine.low %v653_v8, %v657_v3  ;;  %v625_v34 = vld [vmem:[%s17357_s27 + $0x330] sm:$0xff] }
 0x368   : > { %10938 = vmatprep.subr.bf16.mxu1 %v14858_v38  ;;  %v14938_v38 = vcombine.high %v773_v15, %v777_v55  ;;  %v749_v56 = vld [vmem:[%s17357_s27 + $0x710] sm:$0xff] }
 0x369   : > { %10896 = vmatpush1.bf16.msra.mxu0 %v14729_v26  ;;  %v14809_v26 = vcombine.low %v645_v18, %v649_v22  ;;  %v753_v28 = vld [vmem:[%s17357_s27 + $0x730] sm:$0xff] }
 0x36a   : > { %10897 = vmatprep.subr.bf16.mxu0 %v14722_v6  ;;  %v14802_v6 = vcombine.high %v637_v59, %v641_v51  ;;  %v613_v43 = vld [vmem:[%s17357_s27 + $0x2d0] sm:$0xff] }
 0x36b   : > { %10939 = vmatpush1.bf16.msra.mxu1 %v14857_v24  ;;  %v14937_v24 = vcombine.low %v773_v15, %v777_v55  ;;  %v617_v21 = vld [vmem:[%s17357_s27 + $0x2f0] sm:$0xff] }
 0x36c   : > { %10940 = vmatprep.subr.bf16.mxu1 %v14850_v36  ;;  %v14930_v36 = vcombine.high %v765_v50, %v769_v54  ;;  %v741_v7 = vld [vmem:[%s17357_s27 + $0x6d0] sm:$0xff] }
 0x36d   : > { %10898 = vmatpush1.bf16.msra.mxu0 %v14721_v57  ;;  %v14801_v57 = vcombine.low %v637_v59, %v641_v51  ;;  %v745_v42 = vld [vmem:[%s17357_s27 + $0x6f0] sm:$0xff] }
 0x36e   : > { %10899 = vmatprep.subr.bf16.mxu0 %v14714_v40  ;;  %v14794_v40 = vcombine.high %v629_v10, %v633_v63  ;;  %v605_v0 = vld [vmem:[%s17357_s27 + $0x290] sm:$0xff] }
 0x36f   : > { %10941 = vmatpush1.bf16.msra.mxu1 %v14849_v32  ;;  %v14929_v32 = vcombine.low %v765_v50, %v769_v54  ;;  %v609_v11 = vld [vmem:[%s17357_s27 + $0x2b0] sm:$0xff] }
 0x370   : > { %10942 = vmatprep.subr.bf16.mxu1 %v14842_v52  ;;  %v14922_v52 = vcombine.high %v757_v37, %v761_v29  ;;  %v733_v8 = vld [vmem:[%s17357_s27 + $0x690] sm:$0xff] }
 0x371   : > { %10900 = vmatpush1.bf16.msra.mxu0 %v14713_v49  ;;  %v14793_v49 = vcombine.low %v629_v10, %v633_v63  ;;  %v737_v3 = vld [vmem:[%s17357_s27 + $0x6b0] sm:$0xff] }
 0x372   : > { %10901 = vmatprep.subr.bf16.mxu0 %v14706_v47  ;;  %v14786_v47 = vcombine.high %v621_v31, %v625_v34  ;;  %v597_v18 = vld [vmem:[%s17357_s27 + $0x250] sm:$0xff] }
 0x373   : > { %10943 = vmatpush1.bf16.msra.mxu1 %v14841_v44  ;;  %v14921_v44 = vcombine.low %v757_v37, %v761_v29  ;;  %v601_v22 = vld [vmem:[%s17357_s27 + $0x270] sm:$0xff] }
 0x374   : > { %10944 = vmatprep.subr.bf16.mxu1 %v14834_v53  ;;  %v14914_v53 = vcombine.high %v749_v56, %v753_v28  ;;  %v725_v15 = vld [vmem:[%s17357_s27 + $0x650] sm:$0xff] }
 0x375   : > { %10902 = vmatpush1.bf16.msra.mxu0 %v14705_v62  ;;  %v14785_v62 = vcombine.low %v621_v31, %v625_v34  ;;  %v729_v55 = vld [vmem:[%s17357_s27 + $0x670] sm:$0xff] }
 0x376   : > { %10903 = vmatprep.subr.bf16.mxu0 %v14698_v33  ;;  %v14778_v33 = vcombine.high %v613_v43, %v617_v21  ;;  %v589_v59 = vld [vmem:[%s17357_s27 + $0x210] sm:$0xff] }
 0x377   : > { %10945 = vmatpush1.bf16.msra.mxu1 %v14833_v41  ;;  %v14913_v41 = vcombine.low %v749_v56, %v753_v28  ;;  %v593_v51 = vld [vmem:[%s17357_s27 + $0x230] sm:$0xff] }
 0x378   : > { %10946 = vmatprep.subr.bf16.mxu1 %v14826_v30  ;;  %v14906_v30 = vcombine.high %v741_v7, %v745_v42  ;;  %v717_v50 = vld [vmem:[%s17357_s27 + $0x610] sm:$0xff] }
 0x379   : > { %10904 = vmatpush1.bf16.msra.mxu0 %v14697_v19  ;;  %v14777_v19 = vcombine.low %v613_v43, %v617_v21  ;;  %v721_v54 = vld [vmem:[%s17357_s27 + $0x630] sm:$0xff] }
 0x37a   : > { %10905 = vmatprep.subr.bf16.mxu0 %v14690_v4  ;;  %v14770_v4 = vcombine.high %v605_v0, %v609_v11  ;;  %v837_v10 = vld [vmem:[%s17357_s27 + $0x9d0] sm:$0xff] }
 0x37b   : > { %10947 = vmatpush1.bf16.msra.mxu1 %v14825_v58  ;;  %v14905_v58 = vcombine.low %v741_v7, %v745_v42  ;;  %v841_v63 = vld [vmem:[%s17357_s27 + $0x9f0] sm:$0xff]  ;;  %v20574_v7 = vld [vmem:[#allocation8_spill] sm:$0xff] }
 0x37c   : > { %10948 = vmatprep.subr.bf16.mxu1 %v14818_v12  ;;  %v14898_v12 = vcombine.high %v733_v8, %v737_v3  ;;  %v965_v37 = vld [vmem:[%s17357_s27 + $0xdd0] sm:$0xff] }
 0x37d   : > { %10906 = vmatpush1.bf16.msra.mxu0 %v14689_v1  ;;  %v14769_v1 = vcombine.low %v605_v0, %v609_v11  ;;  %v969_v29 = vld [vmem:[%s17357_s27 + $0xdf0] sm:$0xff] }
 0x37e   : > { %10907 = vmatprep.subr.bf16.mxu0 %v14810_v23  ;;  %v14762_v23 = vcombine.high %v597_v18, %v601_v22  ;;  %v829_v31 = vld [vmem:[%s17357_s27 + $0x990] sm:$0xff] }
 0x37f   : > { %10949 = vmatpush1.bf16.msra.mxu1 %v14817_v27  ;;  %v14897_v27 = vcombine.low %v733_v8, %v737_v3  ;;  %v833_v34 = vld [vmem:[%s17357_s27 + $0x9b0] sm:$0xff] }
 0x380   : > { %10950 = vmatprep.subr.bf16.mxu1 %v14938_v38  ;;  %v14890_v38 = vcombine.high %v725_v15, %v729_v55  ;;  %v957_v56 = vld [vmem:[%s17357_s27 + $0xd90] sm:$0xff] }
 0x381   : > { %10908 = vmatpush2.bf16.msra.mxu0 %v14809_v26  ;;  %v14761_v26 = vcombine.low %v597_v18, %v601_v22  ;;  %v961_v28 = vld [vmem:[%s17357_s27 + $0xdb0] sm:$0xff] }
 0x382   : > { %10909 = vmatprep.subr.bf16.mxu0 %v14802_v6  ;;  %v14754_v6 = vcombine.high %v589_v59, %v593_v51  ;;  %v821_v43 = vld [vmem:[%s17357_s27 + $0x950] sm:$0xff] }
 0x383   : > { %10951 = vmatpush2.bf16.msra.mxu1 %v14937_v24  ;;  %v14889_v24 = vcombine.low %v725_v15, %v729_v55  ;;  %v825_v21 = vld [vmem:[%s17357_s27 + $0x970] sm:$0xff] }
 0x384   : > { %10952 = vmatprep.subr.bf16.mxu1 %v14930_v36  ;;  %v14882_v36 = vcombine.high %v717_v50, %v721_v54  ;;  %v949_v42 = vld [vmem:[%s17357_s27 + $0xd50] sm:$0xff]  ;;  %v14986_v0 = vcombine.high %v821_v43, %v825_v21  ;;  %v14985_v18 = vcombine.low %v821_v43, %v825_v21 }
 0x385   : > { %10910 = vmatpush2.bf16.msra.mxu0 %v14801_v57  ;;  %v14753_v57 = vcombine.low %v589_v59, %v593_v51  ;;  %v813_v8 = vld [vmem:[%s17357_s27 + $0x910] sm:$0xff] }
 0x386   : > { %10911 = vmatprep.subr.bf16.mxu0 %v14794_v40  ;;  %v15002_v40 = vcombine.high %v837_v10, %v841_v63  ;;  %v817_v3 = vld [vmem:[%s17357_s27 + $0x930] sm:$0xff] }
 0x387   : > { %10953 = vmatpush2.bf16.msra.mxu1 %v14929_v32  ;;  %v14881_v32 = vcombine.low %v717_v50, %v721_v54  ;;  %v14978_v15 = vcombine.high %v813_v8, %v817_v3  ;;  %v14977_v59 = vcombine.low %v813_v8, %v817_v3 }
 0x388   : > { %10954 = vmatprep.subr.bf16.mxu1 %v14922_v52  ;;  %v15130_v52 = vcombine.high %v965_v37, %v969_v29 }
 0x389   : > { %10912 = vmatpush2.bf16.msra.mxu0 %v14793_v49  ;;  %v15001_v49 = vcombine.low %v837_v10, %v841_v63 }
 0x38a   : > { %10913 = vmatprep.subr.bf16.mxu0 %v14786_v47  ;;  %v14994_v47 = vcombine.high %v829_v31, %v833_v34 }
 0x38b   : > { %10955 = vmatpush2.bf16.msra.mxu1 %v14921_v44  ;;  %v15129_v44 = vcombine.low %v965_v37, %v969_v29 }
 0x38c   : > { %10956 = vmatprep.subr.bf16.mxu1 %v14914_v53  ;;  %v15122_v53 = vcombine.high %v957_v56, %v961_v28 }
 0x38d   : > { %10914 = vmatpush2.bf16.msra.mxu0 %v14785_v62  ;;  %v953_v62 = vld [vmem:[%s17357_s27 + $0xd70] sm:$0xff] }
 0x38e   : > { %10915 = vmatprep.subr.bf16.mxu0 %v14778_v33  ;;  %v14993_v33 = vcombine.low %v829_v31, %v833_v34  ;;  %v15114_v11 = vcombine.high %v949_v42, %v953_v62  ;;  %v15113_v22 = vcombine.low %v949_v42, %v953_v62 }
 0x38f   : > { %10957 = vmatpush2.bf16.msra.mxu1 %v14913_v41  ;;  %v20575_v41 = vld [vmem:[#allocation9_spill] sm:$0xff] }
 0x390   : > { %10958 = vmatprep.subr.bf16.mxu1 %v14906_v30  ;;  %v15121_v30 = vcombine.low %v957_v56, %v961_v28 }
 0x391   : > { %10916 = vmatpush2.bf16.msra.mxu0 %v14777_v19  ;;  %v20576_v19 = vld [vmem:[#allocation10_spill] sm:$0xff] }
 0x392   : > { %10917 = vmatprep.subr.bf16.mxu0 %v14770_v4  ;;  %v945_v4 = vld [vmem:[%s17357_s27 + $0xd30] sm:$0xff] }
 0x393   : > { %10959 = vmatpush2.bf16.msra.mxu1 %v14905_v58  ;;  %v941_v58 = vld [vmem:[%s17357_s27 + $0xd10] sm:$0xff] }
 0x394   : > { %10960 = vmatprep.subr.bf16.mxu1 %v14898_v12  ;;  %v20577_v12 = vld [vmem:[#allocation11_spill] sm:$0xff]  ;;  %v15106_v55 = vcombine.high %v941_v58, %v945_v4  ;;  %v15105_v51 = vcombine.low %v941_v58, %v945_v4 }
 0x395   : > { %10918 = vmatpush2.bf16.msra.mxu0 %v14769_v1  ;;  %v805_v1 = vld [vmem:[%s17357_s27 + $0x8d0] sm:$0xff] }
 0x396   : > { %10919 = vmatprep.subr.bf16.mxu0 %v14762_v23  ;;  %v933_v23 = vld [vmem:[%s17357_s27 + $0xcd0] sm:$0xff] }
 0x397   : > { %10961 = vmatpush2.bf16.msra.mxu1 %v14897_v27  ;;  %v809_v27 = vld [vmem:[%s17357_s27 + $0x8f0] sm:$0xff] }
 0x398   : > { %10962 = vmatprep.subr.bf16.mxu1 %v14890_v38  ;;  %v937_v38 = vld [vmem:[%s17357_s27 + $0xcf0] sm:$0xff]  ;;  %v14970_v50 = vcombine.high %v805_v1, %v809_v27  ;;  %v14969_v10 = vcombine.low %v805_v1, %v809_v27 }
 0x399   : > { %10920 = vmatpush2.bf16.msra.mxu0 %v14761_v26  ;;  %v15098_v54 = vcombine.high %v933_v23, %v937_v38  ;;  %v797_v26 = vld [vmem:[%s17357_s27 + $0x890] sm:$0xff]  ;;  %v15097_v63 = vcombine.low %v933_v23, %v937_v38 }
 0x39a   : > { %10921 = vmatprep.subr.bf16.mxu0 %v14754_v6  ;;  %v925_v6 = vld [vmem:[%s17357_s27 + $0xc90] sm:$0xff] }
 0x39b   : > { %10963 = vmatpush2.bf16.msra.mxu1 %v14889_v24  ;;  %v801_v24 = vld [vmem:[%s17357_s27 + $0x8b0] sm:$0xff] }
 0x39c   : > { %10964 = vmatprep.subr.bf16.mxu1 %v14882_v36  ;;  %v929_v36 = vld [vmem:[%s17357_s27 + $0xcb0] sm:$0xff]  ;;  %v14962_v37 = vcombine.high %v797_v26, %v801_v24  ;;  %v14961_v31 = vcombine.low %v797_v26, %v801_v24 }
 0x39d   : > { %10922 = vmatpush2.bf16.msra.mxu0 %v14753_v57  ;;  %v15090_v29 = vcombine.high %v925_v6, %v929_v36  ;;  %v789_v57 = vld [vmem:[%s17357_s27 + $0x850] sm:$0xff]  ;;  %v15089_v34 = vcombine.low %v925_v6, %v929_v36 }
 0x39e   : > { %10977 = vmatprep.subr.bf16.mxu0 %v15002_v40  ;;  %v917_v40 = vld [vmem:[%s17357_s27 + $0xc50] sm:$0xff] }
 0x39f   : > { %10965 = vmatpush2.bf16.msra.mxu1 %v14881_v32  ;;  %v793_v32 = vld [vmem:[%s17357_s27 + $0x870] sm:$0xff] }
 0x3a0   : > { %11020 = vmatprep.subr.bf16.mxu1 %v15130_v52  ;;  %10924 = vmatmul.mubr.bf16.vlgmr.msra.gmra.mxu0 %v20574_v7  ;;  %v921_v52 = vld [vmem:[%s17357_s27 + $0xc70] sm:$0xff]  ;;  %v14954_v56 = vcombine.high %v789_v57, %v793_v32  ;;  %v14953_v43 = vcombine.low %v789_v57, %v793_v32 }
 0x3a1   : > { %10978 = vmatpush1.bf16.msra.mxu0 %v15001_v49  ;;  %11009 = vmatprep.mubr.bf16.mxu0 %v20576_v19  ;;  %v15082_v28 = vcombine.high %v917_v40, %v921_v52  ;;  %v781_v49 = vld [vmem:[%s17357_s27 + $0x810] sm:$0xff]  ;;  %v15081_v21 = vcombine.low %v917_v40, %v921_v52 }
 0x3a2   : > { %10967 = vmatmul.mubr.bf16.vlgmr.msra.gmra.mxu1 %v20575_v41  ;;  %10979 = vmatprep.subr.bf16.mxu0 %v14994_v47  ;;  %v909_v47 = vld [vmem:[%s17357_s27 + $0xc10] sm:$0xff] }
 0x3a3   : > { %11021 = vmatpush1.bf16.msra.mxu1 %v15129_v44  ;;  %11052 = vmatprep.mubr.bf16.mxu1 %v20577_v12  ;;  %v785_v44 = vld [vmem:[%s17357_s27 + $0x830] sm:$0xff] }
 0x3a4   : > { %11022 = vmatprep.subr.bf16.mxu1 %v15122_v53  ;;  %v913_v53 = vld [vmem:[%s17357_s27 + $0xc30] sm:$0xff]  ;;  %v14946_v42 = vcombine.high %v781_v49, %v785_v44  ;;  %v14945_v8 = vcombine.low %v781_v49, %v785_v44 }
 0x3a5   : > { %10980 = vmatpush1.bf16.msra.mxu0 %v14993_v33  ;;  %v15074_v62 = vcombine.high %v909_v47, %v913_v53  ;;  %v901_v33 = vld [vmem:[%s17357_s27 + $0xbd0] sm:$0xff]  ;;  %v15073_v3 = vcombine.low %v909_v47, %v913_v53 }
 0x3a6   : > { %10981 = vmatprep.subr.bf16.mxu0 %v14986_v0  ;;  %v1029_v0 = vld [vmem:[%s17357_s27 + $0xfd0] sm:$0xff] }
 0x3a7   : > { %11023 = vmatpush1.bf16.msra.mxu1 %v15121_v30  ;;  %v905_v30 = vld [vmem:[%s17357_s27 + $0xbf0] sm:$0xff] }
 0x3a8   : > { %11024 = vmatprep.subr.bf16.mxu1 %v15114_v11  ;;  %v1033_v11 = vld [vmem:[%s17357_s27 + $0xff0] sm:$0xff]  ;;  %v15066_v58 = vcombine.high %v901_v33, %v905_v30  ;;  %v15065_v1 = vcombine.low %v901_v33, %v905_v30 }
 0x3a9   : > { %10982 = vmatpush1.bf16.msra.mxu0 %v14985_v18  ;;  %v15194_v4 = vcombine.high %v1029_v0, %v1033_v11  ;;  %v893_v18 = vld [vmem:[%s17357_s27 + $0xb90] sm:$0xff]  ;;  %v15193_v27 = vcombine.low %v1029_v0, %v1033_v11 }
 0x3aa   : > { %10983 = vmatprep.subr.bf16.mxu0 %v14978_v15  ;;  %v1021_v15 = vld [vmem:[%s17357_s27 + $0xf90] sm:$0xff] }
 0x3ab   : > { %11025 = vmatpush1.bf16.msra.mxu1 %v15113_v22  ;;  %v897_v22 = vld [vmem:[%s17357_s27 + $0xbb0] sm:$0xff] }
 0x3ac   : > { %11026 = vmatprep.subr.bf16.mxu1 %v15106_v55  ;;  %v1025_v55 = vld [vmem:[%s17357_s27 + $0xfb0] sm:$0xff]  ;;  %v15058_v23 = vcombine.high %v893_v18, %v897_v22  ;;  %v15057_v26 = vcombine.low %v893_v18, %v897_v22 }
 0x3ad   : > { %10984 = vmatpush1.bf16.msra.mxu0 %v14977_v59  ;;  %v15186_v38 = vcombine.high %v1021_v15, %v1025_v55  ;;  %v885_v59 = vld [vmem:[%s17357_s27 + $0xb50] sm:$0xff]  ;;  %v15185_v24 = vcombine.low %v1021_v15, %v1025_v55 }
 0x3ae   : > { %10985 = vmatprep.subr.bf16.mxu0 %v14970_v50  ;;  %v1013_v50 = vld [vmem:[%s17357_s27 + $0xf50] sm:$0xff] }
 0x3af   : > { %11027 = vmatpush1.bf16.msra.mxu1 %v15105_v51  ;;  %v889_v51 = vld [vmem:[%s17357_s27 + $0xb70] sm:$0xff] }
 0x3b0   : > { %11028 = vmatprep.subr.bf16.mxu1 %v15098_v54  ;;  %v1017_v54 = vld [vmem:[%s17357_s27 + $0xf70] sm:$0xff]  ;;  %v15050_v6 = vcombine.high %v885_v59, %v889_v51  ;;  %v15049_v57 = vcombine.low %v885_v59, %v889_v51 }
 0x3b1   : > { %10986 = vmatpush1.bf16.msra.mxu0 %v14969_v10  ;;  %v15178_v36 = vcombine.high %v1013_v50, %v1017_v54  ;;  %v877_v10 = vld [vmem:[%s17357_s27 + $0xb10] sm:$0xff]  ;;  %v15177_v32 = vcombine.low %v1013_v50, %v1017_v54 }
 0x3b2   : > { %10987 = vmatprep.subr.bf16.mxu0 %v14962_v37  ;;  %v1005_v37 = vld [vmem:[%s17357_s27 + $0xf10] sm:$0xff] }
 0x3b3   : > { %11029 = vmatpush1.bf16.msra.mxu1 %v15097_v63  ;;  %v881_v63 = vld [vmem:[%s17357_s27 + $0xb30] sm:$0xff] }
 0x3b4   : > { %11030 = vmatprep.subr.bf16.mxu1 %v15090_v29  ;;  %v1009_v29 = vld [vmem:[%s17357_s27 + $0xf30] sm:$0xff]  ;;  %v15042_v40 = vcombine.high %v877_v10, %v881_v63  ;;  %v15041_v49 = vcombine.low %v877_v10, %v881_v63  ;;  %v18583_v63 = vpop.f32.mrf.mxu0 }
 0x3b5   : > { %10988 = vmatpush1.bf16.msra.mxu0 %v14961_v31  ;;  %v15170_v52 = vcombine.high %v1005_v37, %v1009_v29  ;;  %v869_v31 = vld [vmem:[%s17357_s27 + $0xad0] sm:$0xff]  ;;  %v15169_v44 = vcombine.low %v1005_v37, %v1009_v29 }
 0x3b6   : > { %10989 = vmatprep.subr.bf16.mxu0 %v14954_v56  ;;  %v997_v56 = vld [vmem:[%s17357_s27 + $0xed0] sm:$0xff] }
 0x3b7   : > { %11031 = vmatpush1.bf16.msra.mxu1 %v15089_v34  ;;  %v873_v34 = vld [vmem:[%s17357_s27 + $0xaf0] sm:$0xff] }
 0x3b8   : > { %11032 = vmatprep.subr.bf16.mxu1 %v15082_v28  ;;  %v1001_v28 = vld [vmem:[%s17357_s27 + $0xef0] sm:$0xff]  ;;  %v15034_v47 = vcombine.high %v869_v31, %v873_v34  ;;  %v15033_v33 = vcombine.low %v869_v31, %v873_v34 }
 0x3b9   : > { %10990 = vmatpush1.bf16.msra.mxu0 %v14953_v43  ;;  %v15162_v53 = vcombine.high %v997_v56, %v1001_v28  ;;  %v861_v43 = vld [vmem:[%s17357_s27 + $0xa90] sm:$0xff]  ;;  %v15161_v30 = vcombine.low %v997_v56, %v1001_v28  ;;  %v18591_v28 = vpop.f32.mrf.mxu0 }
 0x3ba   : > { %10991 = vmatprep.subr.bf16.mxu0 %v14946_v42  ;;  %v989_v42 = vld [vmem:[%s17357_s27 + $0xe90] sm:$0xff] }
 0x3bb   : > { %11033 = vmatpush1.bf16.msra.mxu1 %v15081_v21  ;;  %v865_v21 = vld [vmem:[%s17357_s27 + $0xab0] sm:$0xff] }
 0x3bc   : > { %11034 = vmatprep.subr.bf16.mxu1 %v15074_v62  ;;  %v993_v62 = vld [vmem:[%s17357_s27 + $0xeb0] sm:$0xff]  ;;  %v15026_v0 = vcombine.high %v861_v43, %v865_v21  ;;  %v15025_v18 = vcombine.low %v861_v43, %v865_v21 }
 0x3bd   : > { %10992 = vmatpush1.bf16.msra.mxu0 %v14945_v8  ;;  %v15154_v11 = vcombine.high %v989_v42, %v993_v62  ;;  %v853_v8 = vld [vmem:[%s17357_s27 + $0xa50] sm:$0xff]  ;;  %v15153_v22 = vcombine.low %v989_v42, %v993_v62  ;;  %v20578_v42 = vld [vmem:[#allocation12_spill] sm:$0xff] }
 0x3be   : > { %10993 = vmatprep.subr.bf16.mxu0 %v15066_v58  ;;  %v981_v58 = vld [vmem:[%s17357_s27 + $0xe50] sm:$0xff] }
 0x3bf   : > { %11035 = vmatpush1.bf16.msra.mxu1 %v15073_v3  ;;  %v857_v3 = vld [vmem:[%s17357_s27 + $0xa70] sm:$0xff] }
 0x3c0   : > { %11036 = vmatprep.subr.bf16.mxu1 %v15194_v4  ;;  %v985_v4 = vld [vmem:[%s17357_s27 + $0xe70] sm:$0xff]  ;;  %v15018_v15 = vcombine.high %v853_v8, %v857_v3  ;;  %v15017_v59 = vcombine.low %v853_v8, %v857_v3 }
 0x3c1   : > { %10994 = vmatpush2.bf16.msra.mxu0 %v15065_v1  ;;  %v15146_v55 = vcombine.high %v981_v58, %v985_v4  ;;  %v845_v1 = vld [vmem:[%s17357_s27 + $0xa10] sm:$0xff]  ;;  %v15145_v51 = vcombine.low %v981_v58, %v985_v4 }
 0x3c2   : > { %10995 = vmatprep.subr.bf16.mxu0 %v15058_v23  ;;  %v973_v23 = vld [vmem:[%s17357_s27 + $0xe10] sm:$0xff] }
 0x3c3   : > { %11037 = vmatpush2.bf16.msra.mxu1 %v15193_v27  ;;  %v849_v27 = vld [vmem:[%s17357_s27 + $0xa30] sm:$0xff] }
 0x3c4   : > { %11038 = vmatprep.subr.bf16.mxu1 %v15186_v38  ;;  %v977_v38 = vld [vmem:[%s17357_s27 + $0xe30] sm:$0xff]  ;;  %v15010_v50 = vcombine.high %v845_v1, %v849_v27  ;;  %v15009_v10 = vcombine.low %v845_v1, %v849_v27  ;;  %v20581_v27 = vld [vmem:[#allocation15_spill] sm:$0xff] }
 0x3c5   : > { %10996 = vmatpush2.bf16.msra.mxu0 %v15057_v26  ;;  %v15138_v54 = vcombine.high %v973_v23, %v977_v38  ;;  %v1093_v26 = vld [vmem:[%s17357_s27 + $0x11d0] sm:$0xff]  ;;  %v15137_v37 = vcombine.low %v973_v23, %v977_v38 }
 0x3c6   : > { %10997 = vmatprep.subr.bf16.mxu0 %v15050_v6  ;;  %v1221_v6 = vld [vmem:[%s17357_s27 + $0x15d0] sm:$0xff] }
 0x3c7   : > { %11039 = vmatpush2.bf16.msra.mxu1 %v15185_v24  ;;  %v1097_v24 = vld [vmem:[%s17357_s27 + $0x11f0] sm:$0xff] }
 0x3c8   : > { %11040 = vmatprep.subr.bf16.mxu1 %v15178_v36  ;;  %v1225_v36 = vld [vmem:[%s17357_s27 + $0x15f0] sm:$0xff]  ;;  %v15258_v29 = vcombine.high %v1093_v26, %v1097_v24  ;;  %v15257_v56 = vcombine.low %v1093_v26, %v1097_v24 }
 0x3c9   : > { %10998 = vmatpush2.bf16.msra.mxu0 %v15049_v57  ;;  %v18585_v57 = vpop.f32.mrf.mxu1  ;;  %v1213_v31 = vld [vmem:[%s17357_s27 + $0x1590] sm:$0xff] }
 0x3ca   : > { %10999 = vmatprep.subr.bf16.mxu0 %v15042_v40  ;;  %v1085_v40 = vld [vmem:[%s17357_s27 + $0x1190] sm:$0xff] }
 0x3cb   : > { %11041 = vmatpush2.bf16.msra.mxu1 %v15177_v32  ;;  %v15386_v32 = vcombine.high %v1221_v6, %v1225_v36  ;;  %v1217_v34 = vld [vmem:[%s17357_s27 + $0x15b0] sm:$0xff] }
 0x3cc   : > { %11042 = vmatprep.subr.bf16.mxu1 %v15170_v52  ;;  %v1089_v52 = vld [vmem:[%s17357_s27 + $0x11b0] sm:$0xff]  ;;  %v15377_v8 = vcombine.low %v1213_v31, %v1217_v34 }
 0x3cd   : > { %11000 = vmatpush2.bf16.msra.mxu0 %v15041_v49  ;;  %v15385_v49 = vcombine.low %v1221_v6, %v1225_v36  ;;  %v1077_v43 = vld [vmem:[%s17357_s27 + $0x1150] sm:$0xff] }
 0x3ce   : > { %11001 = vmatprep.subr.bf16.mxu0 %v15034_v47  ;;  %v18593_v47 = vpop.f32.mrf.mxu1  ;;  %v1081_v21 = vld [vmem:[%s17357_s27 + $0x1170] sm:$0xff] }
 0x3cf   : > { %11043 = vmatpush2.bf16.msra.mxu1 %v15169_v44  ;;  %v15250_v44 = vcombine.high %v1085_v40, %v1089_v52  ;;  %v1205_v62 = vld [vmem:[%s17357_s27 + $0x1550] sm:$0xff]  ;;  %v15242_v3 = vcombine.high %v1077_v43, %v1081_v21  ;;  %v15241_v23 = vcombine.low %v1077_v43, %v1081_v21 }
 0x3d0   : > { %11044 = vmatprep.subr.bf16.mxu1 %v15162_v53  ;;  %v15378_v53 = vcombine.high %v1213_v31, %v1217_v34  ;;  %v18603_v58 = vpop.f32.mrf.mxu1  ;;  %v1201_v1 = vld [vmem:[%s17357_s27 + $0x1530] sm:$0xff] }
 0x3d1   : > { %11002 = vmatpush2.bf16.msra.mxu0 %v15033_v33  ;;  %v1209_v33 = vld [vmem:[%s17357_s27 + $0x1570] sm:$0xff] }
 0x3d2   : > { %11003 = vmatprep.subr.bf16.mxu0 %v15026_v0  ;;  %v15249_v0 = vcombine.low %v1085_v40, %v1089_v52  ;;  %v15370_v4 = vcombine.high %v1205_v62, %v1209_v33  ;;  %v1061_v26 = vld [vmem:[%s17357_s27 + $0x10d0] sm:$0xff] }
 0x3d3   : > { %11045 = vmatpush2.bf16.msra.mxu1 %v15161_v30  ;;  %v20579_v30 = vld [vmem:[#allocation13_spill] sm:$0xff]  ;;  %v1065_v24 = vld [vmem:[%s17357_s27 + $0x10f0] sm:$0xff] }
 0x3d4   : > { %11046 = vmatprep.subr.bf16.mxu1 %v15154_v11  ;;  %v18601_v11 = vpop.f32.mrf.mxu0  ;;  %v1189_v36 = vld [vmem:[%s17357_s27 + $0x14d0] sm:$0xff]  ;;  %v15226_v40 = vcombine.high %v1061_v26, %v1065_v24  ;;  %v15225_v43 = vcombine.low %v1061_v26, %v1065_v24 }
 0x3d5   : > { %11004 = vmatpush2.bf16.msra.mxu0 %v15025_v18  ;;  %v1069_v18 = vld [vmem:[%s17357_s27 + $0x1110] sm:$0xff] }
 0x3d6   : > { %11005 = vmatprep.subr.bf16.mxu0 %v15018_v15  ;;  %v20580_v15 = vld [vmem:[#allocation14_spill] sm:$0xff]  ;;  %v18611_v38 = vpop.f32.mrf.mxu0 }
 0x3d7   : > { %11047 = vmatpush2.bf16.msra.mxu1 %v15153_v22  ;;  %v1073_v22 = vld [vmem:[%s17357_s27 + $0x1130] sm:$0xff] }
 0x3d8   : > { %11048 = vmatprep.subr.bf16.mxu1 %v15146_v55  ;;  %v1197_v55 = vld [vmem:[%s17357_s27 + $0x1510] sm:$0xff]  ;;  %v18617_v6 = vpop.f32.mrf.mxu0 }
 0x3d9   : > { %11006 = vmatpush2.bf16.msra.mxu0 %v15017_v59  ;;  %v15369_v59 = vcombine.low %v1205_v62, %v1209_v33  ;;  %v1053_v31 = vld [vmem:[%s17357_s27 + $0x1090] sm:$0xff] }
 0x3da   : > { %11007 = vmatprep.subr.bf16.mxu0 %v15010_v50  ;;  %v18613_v50 = vpop.f32.mrf.mxu1  ;;  %v1057_v34 = vld [vmem:[%s17357_s27 + $0x10b0] sm:$0xff] }
 0x3db   : > { %11049 = vmatpush2.bf16.msra.mxu1 %v15145_v51  ;;  %v15234_v51 = vcombine.high %v1069_v18, %v1073_v22  ;;  %v15218_v62 = vcombine.high %v1053_v31, %v1057_v34  ;;  %v1165_v24 = vld [vmem:[%s17357_s27 + $0x1410] sm:$0xff] }
 0x3dc   : > { %11050 = vmatprep.subr.bf16.mxu1 %v15138_v54  ;;  %v15362_v54 = vcombine.high %v1197_v55, %v1201_v1  ;;  %v1129_v12 = vld [vmem:[%s17357_s27 + $0x12f0] sm:$0xff] }
 0x3dd   : > { %11008 = vmatpush2.bf16.msra.mxu0 %v15009_v10  ;;  %v1193_v10 = vld [vmem:[%s17357_s27 + $0x14f0] sm:$0xff] }
 0x3de   : > { %11063 = vmatprep.subr.bf16.mxu0 %v15258_v29  ;;  %v15233_v29 = vcombine.low %v1069_v18, %v1073_v22  ;;  %v15354_v52 = vcombine.high %v1189_v36, %v1193_v10  ;;  %v15353_v21 = vcombine.low %v1189_v36, %v1193_v10  ;;  %v1177_v18 = vld [vmem:[%s17357_s27 + $0x1470] sm:$0xff] }
 0x3df   : > { %11051 = vmatpush2.bf16.msra.mxu1 %v15137_v37  ;;  %v18621_v37 = vpop.f32.mrf.mxu1  ;;  %v1169_v36 = vld [vmem:[%s17357_s27 + $0x1430] sm:$0xff] }
 0x3e0   : > { %11106 = vmatprep.subr.bf16.mxu1 %v15386_v32  ;;  %11010 = vmatmul.mubr.bf16.vlgmr.msra.gmra.mxu0 %v20578_v42  ;;  %v15361_v32 = vcombine.low %v1197_v55, %v1201_v1  ;;  %v15217_v55 = vcombine.low %v1053_v31, %v1057_v34  ;;  %v15330_v34 = vcombine.high %v1165_v24, %v1169_v36  ;;  %v1261_v42 = vld [vmem:[%s17357_s27 + $0x1710] sm:$0xff] }
 0x3e1   : > { %11064 = vmatpush1.bf16.msra.mxu0 %v15257_v56  ;;  %11095 = vmatprep.mubr.bf16.mxu0 %v20580_v15  ;;  %v18625_v56 = vpop.f32.mrf.mxu0  ;;  %v1273_v15 = vld [vmem:[%s17357_s27 + $0x1770] sm:$0xff] }
 0x3e2   : > { %11053 = vmatmul.mubr.bf16.vlgmr.msra.gmra.mxu1 %v20579_v30  ;;  %11065 = vmatprep.subr.bf16.mxu0 %v15250_v44  ;;  %v1185_v44 = vld [vmem:[%s17357_s27 + $0x14b0] sm:$0xff] }
 0x3e3   : > { %11107 = vmatpush1.bf16.msra.mxu1 %v15385_v49  ;;  %11138 = vmatprep.mubr.bf16.mxu1 %v20581_v27  ;;  %v1181_v49 = vld [vmem:[%s17357_s27 + $0x1490] sm:$0xff] }
 0x3e4   : > { %11108 = vmatprep.subr.bf16.mxu1 %v15378_v53  ;;  %v18629_v53 = vpop.f32.mrf.mxu1  ;;  %v15346_v33 = vcombine.high %v1181_v49, %v1185_v44  ;;  %v15345_v1 = vcombine.low %v1181_v49, %v1185_v44  ;;  %v1157_v49 = vld [vmem:[%s17357_s27 + $0x13d0] sm:$0xff] }
 0x3e5   : > { %11066 = vmatpush1.bf16.msra.mxu0 %v15249_v0  ;;  %v1045_v0 = vld [vmem:[%s17357_s27 + $0x1050] sm:$0xff] }
 0x3e6   : > { %11067 = vmatprep.subr.bf16.mxu0 %v15242_v3  ;;  %v18633_v3 = vpop.f32.mrf.mxu0  ;;  %v18637_v22 = vpop.f32.mrf.mxu1  ;;  %v1161_v44 = vld [vmem:[%s17357_s27 + $0x13f0] sm:$0xff] }
 0x3e7   : > { %11109 = vmatpush1.bf16.msra.mxu1 %v15377_v8  ;;  %v1049_v8 = vld [vmem:[%s17357_s27 + $0x1070] sm:$0xff] }
 0x3e8   : > { %11110 = vmatprep.subr.bf16.mxu1 %v15370_v4  ;;  %v1173_v4 = vld [vmem:[%s17357_s27 + $0x1450] sm:$0xff]  ;;  %v18641_v26 = vpop.f32.mrf.mxu0  ;;  %v18645_v10 = vpop.f32.mrf.mxu1 }
 0x3e9   : > { %11068 = vmatpush1.bf16.msra.mxu0 %v15241_v23  ;;  %v15210_v23 = vcombine.high %v1045_v0, %v1049_v8  ;;  %v1269_v27 = vld [vmem:[%s17357_s27 + $0x1750] sm:$0xff] }
 0x3ea   : > { %11069 = vmatprep.subr.bf16.mxu0 %v15234_v51  ;;  %v1037_v51 = vld [vmem:[%s17357_s27 + $0x1010] sm:$0xff]  ;;  %v18649_v31 = vpop.f32.mrf.mxu1 }
 0x3eb   : > { %11111 = vmatpush1.bf16.msra.mxu1 %v15369_v59  ;;  %v15338_v59 = vcombine.high %v1173_v4, %v1177_v18  ;;  %v1253_v41 = vld [vmem:[%s17357_s27 + $0x16d0] sm:$0xff] }
 0x3ec   : > { %11112 = vmatprep.subr.bf16.mxu1 %v15362_v54  ;;  %v1041_v54 = vld [vmem:[%s17357_s27 + $0x1030] sm:$0xff] }
 0x3ed   : > { %11070 = vmatpush1.bf16.msra.mxu0 %v15233_v29  ;;  %v15209_v29 = vcombine.low %v1045_v0, %v1049_v8  ;;  %v15329_v0 = vcombine.low %v1165_v24, %v1169_v36  ;;  %v15322_v8 = vcombine.high %v1157_v49, %v1161_v44  ;;  %v1257_v7 = vld [vmem:[%s17357_s27 + $0x16f0] sm:$0xff] }
 0x3ee   : > { %11071 = vmatprep.subr.bf16.mxu0 %v15226_v40  ;;  %v15337_v40 = vcombine.low %v1173_v4, %v1177_v18  ;;  %v18657_v4 = vpop.f32.mrf.mxu1 }
 0x3ef   : > { %11113 = vmatpush1.bf16.msra.mxu1 %v15361_v32  ;;  %v18647_v32 = vpop.f32.mrf.mxu0 }
 0x3f0   : > { %11114 = vmatprep.subr.bf16.mxu1 %v15354_v52  ;;  %v15202_v52 = vcombine.high %v1037_v51, %v1041_v54 }
 0x3f1   : > { %11072 = vmatpush1.bf16.msra.mxu0 %v15225_v43  ;;  %v1285_v43 = vld [vmem:[%s17357_s27 + $0x17d0] sm:$0xff] }
 0x3f2   : > { %11073 = vmatprep.subr.bf16.mxu0 %v15218_v62  ;;  %v15201_v62 = vcombine.low %v1037_v51, %v1041_v54  ;;  %v15321_v51 = vcombine.low %v1157_v49, %v1161_v44 }
 0x3f3   : > { %11115 = vmatpush1.bf16.msra.mxu1 %v15353_v21  ;;  %v1289_v21 = vld [vmem:[%s17357_s27 + $0x17f0] sm:$0xff] }
 0x3f4   : > { %11116 = vmatprep.subr.bf16.mxu1 %v15346_v33  ;;  %v18655_v33 = vpop.f32.mrf.mxu0  ;;  %v15450_v18 = vcombine.high %v1285_v43, %v1289_v21  ;;  %v15449_v24 = vcombine.low %v1285_v43, %v1289_v21 }
 0x3f5   : > { %11074 = vmatpush1.bf16.msra.mxu0 %v15217_v55  ;;  %v1149_v55 = vld [vmem:[%s17357_s27 + $0x1390] sm:$0xff] }
 0x3f6   : > { %11075 = vmatprep.subr.bf16.mxu0 %v15210_v23  ;;  %v1277_v23 = vld [vmem:[%s17357_s27 + $0x1790] sm:$0xff]  ;;  %v18663_v54 = vpop.f32.mrf.mxu0 }
 0x3f7   : > { %11117 = vmatpush1.bf16.msra.mxu1 %v15345_v1  ;;  %v1153_v1 = vld [vmem:[%s17357_s27 + $0x13b0] sm:$0xff] }
 0x3f8   : > { %11118 = vmatprep.subr.bf16.mxu1 %v15338_v59  ;;  %v1281_v59 = vld [vmem:[%s17357_s27 + $0x17b0] sm:$0xff]  ;;  %v15314_v36 = vcombine.high %v1149_v55, %v1153_v1  ;;  %v15313_v49 = vcombine.low %v1149_v55, %v1153_v1  ;;  %v18671_v44 = vpop.f32.mrf.mxu0 }
 0x3f9   : > { %11076 = vmatpush1.bf16.msra.mxu0 %v15209_v29  ;;  %v18665_v29 = vpop.f32.mrf.mxu1  ;;  %v15441_v43 = vcombine.low %v1277_v23, %v1281_v59  ;;  %v1265_v55 = vld [vmem:[%s17357_s27 + $0x1730] sm:$0xff] }
 0x3fa   : > { %11077 = vmatprep.subr.bf16.mxu0 %v15202_v52  ;;  %v1141_v52 = vld [vmem:[%s17357_s27 + $0x1350] sm:$0xff]  ;;  %v18677_v30 = vpop.f32.mrf.mxu0 }
 0x3fb   : > { %11119 = vmatpush1.bf16.msra.mxu1 %v15337_v40  ;;  %v15442_v40 = vcombine.high %v1277_v23, %v1281_v59  ;;  %v15433_v23 = vcombine.low %v1269_v27, %v1273_v15 }
 0x3fc   : > { %11120 = vmatprep.subr.bf16.mxu1 %v15330_v34  ;;  %v1145_v34 = vld [vmem:[%s17357_s27 + $0x1370] sm:$0xff]  ;;  %v18687_v19 = vpop.f32.mrf.mxu0 }
 0x3fd   : > { %11078 = vmatpush1.bf16.msra.mxu0 %v15201_v62  ;;  %v15306_v21 = vcombine.high %v1141_v52, %v1145_v34  ;;  %v18673_v62 = vpop.f32.mrf.mxu1 }
 0x3fe   : > { %11079 = vmatprep.subr.bf16.mxu0 %v15322_v8  ;;  %v1133_v8 = vld [vmem:[%s17357_s27 + $0x1310] sm:$0xff] }
 0x3ff   : > { %11121 = vmatpush1.bf16.msra.mxu1 %v15329_v0  ;;  %v15434_v0 = vcombine.high %v1269_v27, %v1273_v15  ;;  %v18681_v1 = vpop.f32.mrf.mxu1 }
 0x400   : > { %11122 = vmatprep.subr.bf16.mxu1 %v15450_v18  ;;  %v1137_v18 = vld [vmem:[%s17357_s27 + $0x1330] sm:$0xff] }
 0x401   : > { %11080 = vmatpush2.bf16.msra.mxu0 %v15321_v51  ;;  %v15305_v51 = vcombine.low %v1141_v52, %v1145_v34  ;;  %v15298_v59 = vcombine.high %v1133_v8, %v1137_v18  ;;  %v10455_v52 = vadd.f32 %v18593_v47, %v18591_v28  ;;  %v18694_v27 = vpop.f32.mrf.mxu1  ;;  %v1117_v28 = vld [vmem:[%s17357_s27 + $0x1290] sm:$0xff] }
 0x402   : > { %11081 = vmatprep.subr.bf16.mxu0 %v15314_v36  ;;  %v15426_v36 = vcombine.high %v1261_v42, %v1265_v55  ;;  %v1121_v47 = vld [vmem:[%s17357_s27 + $0x12b0] sm:$0xff] }
 0x403   : > { %11123 = vmatpush2.bf16.msra.mxu1 %v15449_v24  ;;  %v10453_v24 = vadd.f32 %v18585_v57, %v18583_v63  ;;  %v15297_v63 = vcombine.low %v1133_v8, %v1137_v18  ;;  %v15425_v57 = vcombine.low %v1261_v42, %v1265_v55  ;;  %v10459_v8 = vadd.f32 %v18613_v50, %v18611_v38 }
 0x404   : > { %11124 = vmatprep.subr.bf16.mxu1 %v15442_v40  ;;  %v1125_v40 = vld [vmem:[%s17357_s27 + $0x12d0] sm:$0xff]  ;;  %v15282_v55 = vcombine.high %v1117_v28, %v1121_v47 }
 0x405   : > { %11082 = vmatpush2.bf16.msra.mxu0 %v15313_v49  ;;  %v10496_v15 = vadd.f32 %v18617_v6, %v10453_v24  ;;  %v15290_v34 = vcombine.high %v1125_v40, %v1129_v12  ;;  %v10457_v49 = vadd.f32 %v18603_v58, %v18601_v11  ;;  %v1245_v6 = vld [vmem:[%s17357_s27 + $0x1690] sm:$0xff]  ;;  %v18709_v11 = vpop.f32.mrf.mxu1  ;;  %v15289_v58 = vcombine.low %v1125_v40, %v1129_v12 }
 0x406   : > { %11083 = vmatprep.subr.bf16.mxu0 %v15306_v21  ;;  %v15418_v21 = vcombine.high %v1253_v41, %v1257_v7  ;;  %v1249_v24 = vld [vmem:[%s17357_s27 + $0x16b0] sm:$0xff] }
 0x407   : > { %11125 = vmatpush2.bf16.msra.mxu1 %v15441_v43  ;;  %v10498_v43 = vadd.f32 %v18625_v56, %v10455_v52  ;;  %v10539_v42 = vadd.f32 %v18621_v37, %v10496_v15  ;;  %v10500_v18 = vadd.f32 %v18633_v3, %v10457_v49  ;;  %v15417_v56 = vcombine.low %v1253_v41, %v1257_v7  ;;  %v1109_v37 = vld [vmem:[%s17357_s27 + $0x1250] sm:$0xff]  ;;  %v18720_v7 = vpop.f32.mrf.mxu1 }
 0x408   : > { %11126 = vmatprep.subr.bf16.mxu1 %v15434_v0  ;;  %v18701_v0 = vpop.f32.mrf.mxu0  ;;  %v15410_v50 = vcombine.high %v1245_v6, %v1249_v24  ;;  %v1113_v3 = vld [vmem:[%s17357_s27 + $0x1270] sm:$0xff]  ;;  %v15281_v41 = vcombine.low %v1117_v28, %v1121_v47 }
 0x409   : > { %11084 = vmatpush2.bf16.msra.mxu0 %v15305_v51  ;;  %v10541_v51 = vadd.f32 %v18629_v53, %v10498_v43  ;;  %v10582_v38 = vadd.f32 %v18647_v32, %v10539_v42  ;;  %v1241_v52 = vld [vmem:[%s17357_s27 + $0x1670] sm:$0xff]  ;;  %v10543_v15 = vadd.f32 %v18637_v22, %v10500_v18  ;;  %v15274_v32 = vcombine.high %v1109_v37, %v1113_v3 }
 0x40a   : > { %11085 = vmatprep.subr.bf16.mxu0 %v15298_v59  ;;  %v10673_v59 = vpop.f32.mrf.mxu0  ;;  %v1105_v49 = vld [vmem:[%s17357_s27 + $0x1230] sm:$0xff] }
 0x40b   : > { %11127 = vmatpush2.bf16.msra.mxu1 %v15433_v23  ;;  %v10502_v23 = vadd.f32 %v18641_v26, %v10459_v8  ;;  %v10584_v12 = vadd.f32 %v18655_v33, %v10541_v51  ;;  %v15409_v26 = vcombine.low %v1245_v6, %v1249_v24  ;;  %v10586_v22 = vadd.f32 %v18663_v54, %v10543_v15  ;;  %v1229_v43 = vld [vmem:[%s17357_s27 + $0x1610] sm:$0xff] }
 0x40c   : > { %11128 = vmatprep.subr.bf16.mxu1 %v15426_v36  ;;  %v1237_v36 = vld [vmem:[%s17357_s27 + $0x1650] sm:$0xff]  ;;  %v10753_v53 = vpop.f32.mrf.mxu0 }
 0x40d   : > { %11086 = vmatpush2.bf16.msra.mxu0 %v15297_v63  ;;  %v10545_v40 = vadd.f32 %v18645_v10, %v10502_v23  ;;  %v10625_v63 = vadd.f32 %v18649_v31, %v10582_v38  ;;  %v15402_v33 = vcombine.high %v1237_v36, %v1241_v52  ;;  %v10627_v28 = vadd.f32 %v18657_v4, %v10584_v12  ;;  %v1345_v15 = vld [vmem:[%s17357_s27 + $0x19b0] sm:$0xff] }
 0x40e   : > { %11087 = vmatprep.subr.bf16.mxu0 %v15290_v34  ;;  %v1101_v34 = vld [vmem:[%s17357_s27 + $0x1210] sm:$0xff]  ;;  %v15273_v31 = vcombine.low %v1109_v37, %v1113_v3  ;;  %v10755_v54 = vpop.f32.mrf.mxu0  ;;  %v15401_v6 = vcombine.low %v1237_v36, %v1241_v52  ;;  %v10629_v8 = vadd.f32 %v18665_v29, %v10586_v22 }
 0x40f   : > { %11129 = vmatpush2.bf16.msra.mxu1 %v15425_v57  ;;  %v10796_v57 = vpop.f32.mrf.mxu1  ;;  %v10588_v47 = vadd.f32 %v18671_v44, %v10545_v40  ;;  %v10668_v10 = vadd.f32 %v18677_v30, %v10625_v63  ;;  %v15266_v24 = vcombine.high %v1101_v34, %v1105_v49  ;;  %v10670_v42 = vadd.f32 %v18687_v19, %v10627_v28  ;;  %v1353_v44 = vld [vmem:[%s17357_s27 + $0x19f0] sm:$0xff] }
 0x410   : > { %11130 = vmatprep.subr.bf16.mxu1 %v15418_v21  ;;  %v1233_v21 = vld [vmem:[%s17357_s27 + $0x1630] sm:$0xff]  ;;  %v10672_v23 = vadd.f32 %v18701_v0, %v10629_v8  ;;  %v15265_v29 = vcombine.low %v1101_v34, %v1105_v49  ;;  %v10757_v19 = vpop.f32.mrf.mxu0 }
 0x411   : > { %11088 = vmatpush2.bf16.msra.mxu0 %v15289_v58  ;;  %v10798_v18 = vpop.f32.mrf.mxu1  ;;  %v15394_v4 = vcombine.high %v1229_v43, %v1233_v21  ;;  %v1349_v58 = vld [vmem:[%s17357_s27 + $0x19d0] sm:$0xff]  ;;  %v10631_v30 = vadd.f32 %v18673_v62, %v10588_v47  ;;  %v10711_v51 = vadd.f32 %v18681_v1, %v10668_v10  ;;  %v15393_v38 = vcombine.low %v1229_v43, %v1233_v21 }
 0x412   : > { %11089 = vmatprep.subr.bf16.mxu0 %v15282_v55  ;;  %v1481_v55 = vld [vmem:[%s17357_s27 + $0x1df0] sm:$0xff]  ;;  %v10713_v37 = vadd.f32 %v18694_v27, %v10670_v42  ;;  %v10759_v40 = vpop.f32.mrf.mxu0 }
 0x413   : > { %11131 = vmatpush2.bf16.msra.mxu1 %v15417_v56  ;;  %v1477_v56 = vld [vmem:[%s17357_s27 + $0x1dd0] sm:$0xff]  ;;  %v10674_v3 = vadd.f32 %v10673_v59, %v10631_v30  ;;  %v10754_v36 = vadd.f32 %v10753_v53, %v10711_v51  ;;  %v10800_v62 = vpop.f32.mrf.mxu1 }
 0x414   : > { %11132 = vmatprep.subr.bf16.mxu1 %v15410_v50  ;;  %v15514_v50 = vcombine.high %v1349_v58, %v1353_v44  ;;  %v15642_v1 = vcombine.high %v1477_v56, %v1481_v55  ;;  %v1341_v52 = vld [vmem:[%s17357_s27 + $0x1990] sm:$0xff]  ;;  %v15641_v27 = vcombine.low %v1477_v56, %v1481_v55 }
 0x415   : > { %11090 = vmatpush2.bf16.msra.mxu0 %v15281_v41  ;;  %v1469_v0 = vld [vmem:[%s17357_s27 + $0x1d90] sm:$0xff]  ;;  %v10715_v41 = vadd.f32 %v18709_v11, %v10672_v23  ;;  %v15506_v59 = vcombine.high %v1341_v52, %v1345_v15  ;;  %v10717_v63 = vadd.f32 %v18720_v7, %v10674_v3  ;;  %v10797_v22 = vadd.f32 %v10796_v57, %v10754_v36  ;;  %v10802_v34 = vpop.f32.mrf.mxu1 }
 0x416   : > { %11091 = vmatprep.subr.bf16.mxu0 %v15274_v32  ;;  %v1473_v12 = vld [vmem:[%s17357_s27 + $0x1db0] sm:$0xff]  ;;  %v15513_v32 = vcombine.low %v1349_v58, %v1353_v44  ;;  %v15505_v47 = vcombine.low %v1341_v52, %v1345_v15 }
 0x417   : > { %11133 = vmatpush2.bf16.msra.mxu1 %v15409_v26  ;;  %v10756_v26 = vadd.f32 %v10755_v54, %v10713_v37  ;;  %v18748_v53 = vld [vmem:[%s17357_s27 + $0x1950] sm:$0xff]  ;;  %v15634_v11 = vcombine.high %v1469_v0, %v1473_v12 }
 0x418   : > { %11134 = vmatprep.subr.bf16.mxu1 %v15402_v33  ;;  %v10758_v33 = vadd.f32 %v10757_v19, %v10715_v41  ;;  %v1337_v49 = vld [vmem:[%s17357_s27 + $0x1970] sm:$0xff] }
 0x419   : > { %11092 = vmatpush2.bf16.msra.mxu0 %v15273_v31  ;;  %v1461_v43 = vld [vmem:[%s17357_s27 + $0x1d50] sm:$0xff]  ;;  %v10799_v10 = vadd.f32 %v10798_v18, %v10756_v26  ;;  %v10760_v31 = vadd.f32 %v10759_v40, %v10717_v63  ;;  %v15498_v8 = vcombine.high %v18748_v53, %v1337_v49  ;;  %v15497_v23 = vcombine.low %v18748_v53, %v1337_v49 }
 0x41a   : > { %11093 = vmatprep.subr.bf16.mxu0 %v15266_v24  ;;  %v1465_v21 = vld [vmem:[%s17357_s27 + $0x1d70] sm:$0xff]  ;;  %v15633_v24 = vcombine.low %v1469_v0, %v1473_v12 }
 0x41b   : > { %11135 = vmatpush2.bf16.msra.mxu1 %v15401_v6  ;;  %v485_v7 = vld [vmem:[#allocation2 + $0x58] sm:$0xff]  ;;  %v15626_v42 = vcombine.high %v1461_v43, %v1465_v21  ;;  %v15625_v52 = vcombine.low %v1461_v43, %v1465_v21 }
 0x41c   : > { %11136 = vmatprep.subr.bf16.mxu1 %v15394_v4  ;;  %v10801_v4 = vadd.f32 %v10800_v62, %v10758_v33  ;;  %v1325_v56 = vld [vmem:[%s17357_s27 + $0x1910] sm:$0xff] }
 0x41d   : > { %11094 = vmatpush2.bf16.msra.mxu0 %v15265_v29  ;;  %v1329_v55 = vld [vmem:[%s17357_s27 + $0x1930] sm:$0xff] }
 0x41e   : > { %11149 = vmatprep.subr.bf16.mxu0 %v15514_v50  ;;  %v486_v30 = vld [vmem:[#allocation2 + $0x18] sm:$0xff]  ;;  %v493_v62 = vld [vmem:[#allocation2 + $0x10] sm:$0xff]  ;;  %v15490_v15 = vcombine.high %v1325_v56, %v1329_v55 }
 0x41f   : > { %11137 = vmatpush2.bf16.msra.mxu1 %v15393_v38  ;;  %v1453_v29 = vld [vmem:[%s17357_s27 + $0x1d10] sm:$0xff]  ;;  %v10803_v38 = vadd.f32 %v10802_v34, %v10760_v31  ;;  %v15489_v34 = vcombine.low %v1325_v56, %v1329_v55 }
 0x420   : > { %11192 = vmatprep.subr.bf16.mxu1 %v15642_v1  ;;  %v10839_v28 = vpop.f32.mrf.mxu0  ;;  %11096 = vmatmul.mubr.bf16.vlgmr.msra.gmra.mxu0 %v17651_v45  ;;  %v1457_v19 = vld [vmem:[%s17357_s27 + $0x1d30] sm:$0xff] }
 0x421   : > { %v10840_v54 = vadd.f32 %v10839_v28, %v10797_v22  ;;  %11150 = vmatpush1.bf16.msra.mxu0 %v15513_v32  ;;  %11181 = vmatprep.mubr.bf16.mxu0 %v17674_v60  ;;  %v15618_v26 = vcombine.high %v1453_v29, %v1457_v19  ;;  %v1317_v32 = vld [vmem:[%s17357_s27 + $0x18d0] sm:$0xff] }
 0x422   : > { %v10882_v6 = vpop.f32.mrf.mxu1  ;;  %11139 = vmatmul.mubr.bf16.vlgmr.msra.gmra.mxu1 %v17662_v16  ;;  %v10841_v57 = vpop.f32.mrf.mxu0  ;;  %11151 = vmatprep.subr.bf16.mxu0 %v15506_v59  ;;  %v1321_v40 = vld [vmem:[%s17357_s27 + $0x18f0] sm:$0xff] }
 0x423   : > { %11193 = vmatpush1.bf16.msra.mxu1 %v15641_v27  ;;  %v10883_v18 = vadd.f32 %v10882_v6, %v10840_v54  ;;  %v10842_v58 = vadd.f32 %v10841_v57, %v10799_v10  ;;  %11224 = vmatprep.mubr.bf16.mxu1 %v17681_v61  ;;  %v494_v27 = vld [vmem:[#allocation2 + $0x38] sm:$0xff]  ;;  %v15482_v49 = vcombine.high %v1317_v32, %v1321_v40 }
 0x424   : > { %v10884_v44 = vpop.f32.mrf.mxu1  ;;  %11194 = vmatprep.subr.bf16.mxu1 %v15634_v11  ;;  %v10843_v51 = vpop.f32.mrf.mxu0  ;;  %v1445_v53 = vld [vmem:[%s17357_s27 + $0x1cd0] sm:$0xff]  ;;  %v15617_v11 = vcombine.low %v1453_v29, %v1457_v19  ;;  %v15481_v54 = vcombine.low %v1317_v32, %v1321_v40 }
 0x425   : > { %v11925_v50 = vadd.f32 %v10883_v18, %v485_v7  ;;  %v10885_v37 = vadd.f32 %v10884_v44, %v10842_v58  ;;  %v10844_v3 = vadd.f32 %v10843_v51, %v10801_v4  ;;  %11152 = vmatpush1.bf16.msra.mxu0 %v15505_v47  ;;  %v1449_v63 = vld [vmem:[%s17357_s27 + $0x1cf0] sm:$0xff] }
 0x426   : > { %v10886_v36 = vpop.f32.mrf.mxu1  ;;  %v10845_v1 = vpop.f32.mrf.mxu0  ;;  %11153 = vmatprep.subr.bf16.mxu0 %v15498_v8  ;;  %v15610_v21 = vcombine.high %v1445_v53, %v1449_v63  ;;  %v1309_v28 = vld [vmem:[%s17357_s27 + $0x1890] sm:$0xff]  ;;  %v15609_v6 = vcombine.low %v1445_v53, %v1449_v63 }
 0x427   : > { %11195 = vmatpush1.bf16.msra.mxu1 %v15633_v24  ;;  %11941 = vst [vmem:[#allocation2 + $0x58] sm:$0xff] %v11925_v50  ;;  %v11926_v0 = vadd.f32 %v10885_v37, %v486_v30  ;;  %v10887_v12 = vadd.f32 %v10886_v36, %v10844_v3  ;;  %v10846_v41 = vadd.f32 %v10845_v1, %v10803_v38  ;;  %v1313_v47 = vld [vmem:[%s17357_s27 + $0x18b0] sm:$0xff] }
 0x428   : > { %11196 = vmatprep.subr.bf16.mxu1 %v15626_v42  ;;  %v10888_v59 = vpop.f32.mrf.mxu1  ;;  %v1437_v10 = vld [vmem:[%s17357_s27 + $0x1c90] sm:$0xff]  ;;  %v15474_v7 = vcombine.high %v1309_v28, %v1313_v47  ;;  %v15473_v18 = vcombine.low %v1309_v28, %v1313_v47 }
 0x429   : > { %11942 = vst [vmem:[#allocation2 + $0x18] sm:$0xff] %v11926_v0  ;;  %v11933_v22 = vadd.f32 %v10887_v12, %v493_v62  ;;  %v10889_v33 = vadd.f32 %v10888_v59, %v10846_v41  ;;  %11154 = vmatpush1.bf16.msra.mxu0 %v15497_v23  ;;  %v1441_v31 = vld [vmem:[%s17357_s27 + $0x1cb0] sm:$0xff] }
 0x42a   : > { %11155 = vmatprep.subr.bf16.mxu0 %v15490_v15  ;;  %v15602_v57 = vcombine.high %v1437_v10, %v1441_v31  ;;  %v1301_v24 = vld [vmem:[%s17357_s27 + $0x1850] sm:$0xff]  ;;  %v15601_v58 = vcombine.low %v1437_v10, %v1441_v31 }
 0x42b   : > { %11197 = vmatpush1.bf16.msra.mxu1 %v15625_v52  ;;  %11949 = vst [vmem:[#allocation2 + $0x10] sm:$0xff] %v11933_v22  ;;  %v11934_v43 = vadd.f32 %v10889_v33, %v494_v27  ;;  %v1305_v8 = vld [vmem:[%s17357_s27 + $0x1870] sm:$0xff] }
 0x42c   : > { %11198 = vmatprep.subr.bf16.mxu1 %v15618_v26  ;;  %v1429_v42 = vld [vmem:[%s17357_s27 + $0x1c50] sm:$0xff]  ;;  %v15466_v44 = vcombine.high %v1301_v24, %v1305_v8  ;;  %v15465_v29 = vcombine.low %v1301_v24, %v1305_v8 }
 0x42d   : > { %11950 = vst [vmem:[#allocation2 + $0x38] sm:$0xff] %v11934_v43  ;;  %11156 = vmatpush1.bf16.msra.mxu0 %v15489_v34  ;;  %v1433_v4 = vld [vmem:[%s17357_s27 + $0x1c70] sm:$0xff] }
 0x42e   : > { %11157 = vmatprep.subr.bf16.mxu0 %v15482_v49  ;;  %v15594_v56 = vcombine.high %v1429_v42, %v1433_v4  ;;  %v1293_v55 = vld [vmem:[%s17357_s27 + $0x1810] sm:$0xff]  ;;  %v15593_v19 = vcombine.low %v1429_v42, %v1433_v4 }
 0x42f   : > { %11199 = vmatpush1.bf16.msra.mxu1 %v15617_v11  ;;  %v1297_v30 = vld [vmem:[%s17357_s27 + $0x1830] sm:$0xff] }
 0x430   : > { %11200 = vmatprep.subr.bf16.mxu1 %v15610_v21  ;;  %v1421_v51 = vld [vmem:[%s17357_s27 + $0x1c10] sm:$0xff]  ;;  %v15458_v38 = vcombine.high %v1293_v55, %v1297_v30  ;;  %v15457_v1 = vcombine.low %v1293_v55, %v1297_v30 }
 0x431   : > { %11158 = vmatpush1.bf16.msra.mxu0 %v15481_v54  ;;  %v1425_v23 = vld [vmem:[%s17357_s27 + $0x1c30] sm:$0xff] }
 0x432   : > { %11159 = vmatprep.subr.bf16.mxu0 %v15474_v7  ;;  %v15586_v50 = vcombine.high %v1421_v51, %v1425_v23  ;;  %v1413_v37 = vld [vmem:[%s17357_s27 + $0x1bd0] sm:$0xff]  ;;  %v15585_v52 = vcombine.low %v1421_v51, %v1425_v23 }
 0x433   : > { %11201 = vmatpush1.bf16.msra.mxu1 %v15609_v6  ;;  %v1417_v3 = vld [vmem:[%s17357_s27 + $0x1bf0] sm:$0xff] }
 0x434   : > { %11202 = vmatprep.subr.bf16.mxu1 %v15602_v57  ;;  %v1541_v36 = vld [vmem:[%s17357_s27 + $0x1fd0] sm:$0xff]  ;;  %v15578_v15 = vcombine.high %v1413_v37, %v1417_v3  ;;  %v15577_v40 = vcombine.low %v1413_v37, %v1417_v3 }
 0x435   : > { %11160 = vmatpush1.bf16.msra.mxu0 %v15473_v18  ;;  %v1545_v62 = vld [vmem:[%s17357_s27 + $0x1ff0] sm:$0xff] }
 0x436   : > { %11161 = vmatprep.subr.bf16.mxu0 %v15466_v44  ;;  %v15706_v0 = vcombine.high %v1541_v36, %v1545_v62  ;;  %v1405_v12 = vld [vmem:[%s17357_s27 + $0x1b90] sm:$0xff]  ;;  %v15705_v27 = vcombine.low %v1541_v36, %v1545_v62 }
 0x437   : > { %11203 = vmatpush1.bf16.msra.mxu1 %v15601_v58  ;;  %v1409_v41 = vld [vmem:[%s17357_s27 + $0x1bb0] sm:$0xff] }
 0x438   : > { %11204 = vmatprep.subr.bf16.mxu1 %v15594_v56  ;;  %v1533_v26 = vld [vmem:[%s17357_s27 + $0x1f90] sm:$0xff]  ;;  %v15570_v59 = vcombine.high %v1405_v12, %v1409_v41  ;;  %v15569_v11 = vcombine.low %v1405_v12, %v1409_v41 }
 0x439   : > { %11162 = vmatpush1.bf16.msra.mxu0 %v15465_v29  ;;  %v1537_v32 = vld [vmem:[%s17357_s27 + $0x1fb0] sm:$0xff] }
 0x43a   : > { %11163 = vmatprep.subr.bf16.mxu0 %v15458_v38  ;;  %v15698_v53 = vcombine.high %v1533_v26, %v1537_v32  ;;  %v1397_v63 = vld [vmem:[%s17357_s27 + $0x1b50] sm:$0xff]  ;;  %v15697_v49 = vcombine.low %v1533_v26, %v1537_v32 }
 0x43b   : > { %11205 = vmatpush1.bf16.msra.mxu1 %v15593_v19  ;;  %v1401_v22 = vld [vmem:[%s17357_s27 + $0x1b70] sm:$0xff] }
 0x43c   : > { %11206 = vmatprep.subr.bf16.mxu1 %v15586_v50  ;;  %v1525_v33 = vld [vmem:[%s17357_s27 + $0x1f50] sm:$0xff]  ;;  %v15562_v43 = vcombine.high %v1397_v63, %v1401_v22  ;;  %v15561_v54 = vcombine.low %v1397_v63, %v1401_v22 }
 0x43d   : > { %11164 = vmatpush1.bf16.msra.mxu0 %v15457_v1  ;;  %v1529_v34 = vld [vmem:[%s17357_s27 + $0x1f70] sm:$0xff] }
 0x43e   : > { %11165 = vmatprep.subr.bf16.mxu0 %v15578_v15  ;;  %v15690_v21 = vcombine.high %v1525_v33, %v1529_v34  ;;  %v1389_v28 = vld [vmem:[%s17357_s27 + $0x1b10] sm:$0xff]  ;;  %v15689_v6 = vcombine.low %v1525_v33, %v1529_v34 }
 0x43f   : > { %11207 = vmatpush1.bf16.msra.mxu1 %v15585_v52  ;;  %v1393_v47 = vld [vmem:[%s17357_s27 + $0x1b30] sm:$0xff] }
 0x440   : > { %11208 = vmatprep.subr.bf16.mxu1 %v15706_v0  ;;  %v1517_v10 = vld [vmem:[%s17357_s27 + $0x1f10] sm:$0xff]  ;;  %v15554_v7 = vcombine.high %v1389_v28, %v1393_v47  ;;  %v15553_v18 = vcombine.low %v1389_v28, %v1393_v47 }
 0x441   : > { %11166 = vmatpush2.bf16.msra.mxu0 %v15577_v40  ;;  %v1521_v31 = vld [vmem:[%s17357_s27 + $0x1f30] sm:$0xff] }
 0x442   : > { %11167 = vmatprep.subr.bf16.mxu0 %v15570_v59  ;;  %v15682_v57 = vcombine.high %v1517_v10, %v1521_v31  ;;  %v1381_v24 = vld [vmem:[%s17357_s27 + $0x1ad0] sm:$0xff]  ;;  %v15681_v58 = vcombine.low %v1517_v10, %v1521_v31 }
 0x443   : > { %11209 = vmatpush2.bf16.msra.mxu1 %v15705_v27  ;;  %v1385_v8 = vld [vmem:[%s17357_s27 + $0x1af0] sm:$0xff] }
 0x444   : > { %11210 = vmatprep.subr.bf16.mxu1 %v15698_v53  ;;  %v1509_v42 = vld [vmem:[%s17357_s27 + $0x1ed0] sm:$0xff]  ;;  %v15546_v44 = vcombine.high %v1381_v24, %v1385_v8  ;;  %v15545_v29 = vcombine.low %v1381_v24, %v1385_v8 }
 0x445   : > { %11168 = vmatpush2.bf16.msra.mxu0 %v15569_v11  ;;  %v1513_v4 = vld [vmem:[%s17357_s27 + $0x1ef0] sm:$0xff] }
 0x446   : > { %11169 = vmatprep.subr.bf16.mxu0 %v15562_v43  ;;  %v15674_v56 = vcombine.high %v1509_v42, %v1513_v4  ;;  %v1373_v55 = vld [vmem:[%s17357_s27 + $0x1a90] sm:$0xff]  ;;  %v15673_v19 = vcombine.low %v1509_v42, %v1513_v4 }
 0x447   : > { %11211 = vmatpush2.bf16.msra.mxu1 %v15697_v49  ;;  %v1377_v30 = vld [vmem:[%s17357_s27 + $0x1ab0] sm:$0xff] }
 0x448   : > { %11212 = vmatprep.subr.bf16.mxu1 %v15690_v21  ;;  %v1501_v51 = vld [vmem:[%s17357_s27 + $0x1e90] sm:$0xff]  ;;  %v15538_v38 = vcombine.high %v1373_v55, %v1377_v30  ;;  %v15537_v1 = vcombine.low %v1373_v55, %v1377_v30 }
 0x449   : > { %11170 = vmatpush2.bf16.msra.mxu0 %v15561_v54  ;;  %v1505_v23 = vld [vmem:[%s17357_s27 + $0x1eb0] sm:$0xff] }
 0x44a   : > { %11171 = vmatprep.subr.bf16.mxu0 %v15554_v7  ;;  %v15666_v50 = vcombine.high %v1501_v51, %v1505_v23  ;;  %v1365_v37 = vld [vmem:[%s17357_s27 + $0x1a50] sm:$0xff]  ;;  %v15665_v52 = vcombine.low %v1501_v51, %v1505_v23 }
 0x44b   : > { %11213 = vmatpush2.bf16.msra.mxu1 %v15689_v6  ;;  %v1369_v3 = vld [vmem:[%s17357_s27 + $0x1a70] sm:$0xff] }
 0x44c   : > { %11214 = vmatprep.subr.bf16.mxu1 %v15682_v57  ;;  %v1493_v36 = vld [vmem:[%s17357_s27 + $0x1e50] sm:$0xff]  ;;  %v15530_v15 = vcombine.high %v1365_v37, %v1369_v3  ;;  %v15529_v40 = vcombine.low %v1365_v37, %v1369_v3 }
 0x44d   : > { %11172 = vmatpush2.bf16.msra.mxu0 %v15553_v18  ;;  %v1497_v62 = vld [vmem:[%s17357_s27 + $0x1e70] sm:$0xff] }
 0x44e   : > { %11173 = vmatprep.subr.bf16.mxu0 %v15546_v44  ;;  %v15658_v0 = vcombine.high %v1493_v36, %v1497_v62  ;;  %v1357_v12 = vld [vmem:[%s17357_s27 + $0x1a10] sm:$0xff]  ;;  %v15657_v27 = vcombine.low %v1493_v36, %v1497_v62 }
 0x44f   : > { %11215 = vmatpush2.bf16.msra.mxu1 %v15681_v58  ;;  %v1361_v41 = vld [vmem:[%s17357_s27 + $0x1a30] sm:$0xff] }
 0x450   : > { %11216 = vmatprep.subr.bf16.mxu1 %v15674_v56  ;;  %v1485_v26 = vld [vmem:[%s17357_s27 + $0x1e10] sm:$0xff]  ;;  %v15522_v59 = vcombine.high %v1357_v12, %v1361_v41  ;;  %v15521_v11 = vcombine.low %v1357_v12, %v1361_v41 }
 0x451   : > { %11174 = vmatpush2.bf16.msra.mxu0 %v15545_v29  ;;  %v1489_v32 = vld [vmem:[%s17357_s27 + $0x1e30] sm:$0xff] }
 0x452   : > { %11175 = vmatprep.subr.bf16.mxu0 %v15538_v38  ;;  %v15650_v53 = vcombine.high %v1485_v26, %v1489_v32  ;;  %v1605_v63 = vld [vmem:[%s17357_s27 + $0x21d0] sm:$0xff]  ;;  %v15649_v49 = vcombine.low %v1485_v26, %v1489_v32 }
 0x453   : > { %11217 = vmatpush2.bf16.msra.mxu1 %v15673_v19  ;;  %v1609_v22 = vld [vmem:[%s17357_s27 + $0x21f0] sm:$0xff] }
 0x454   : > { %11218 = vmatprep.subr.bf16.mxu1 %v15666_v50  ;;  %v1733_v33 = vld [vmem:[%s17357_s27 + $0x25d0] sm:$0xff]  ;;  %v15770_v43 = vcombine.high %v1605_v63, %v1609_v22  ;;  %v15769_v54 = vcombine.low %v1605_v63, %v1609_v22 }
 0x455   : > { %11176 = vmatpush2.bf16.msra.mxu0 %v15537_v1  ;;  %v1737_v34 = vld [vmem:[%s17357_s27 + $0x25f0] sm:$0xff] }
 0x456   : > { %11177 = vmatprep.subr.bf16.mxu0 %v15530_v15  ;;  %v15898_v21 = vcombine.high %v1733_v33, %v1737_v34  ;;  %v1597_v28 = vld [vmem:[%s17357_s27 + $0x2190] sm:$0xff]  ;;  %v15897_v6 = vcombine.low %v1733_v33, %v1737_v34 }
 0x457   : > { %11219 = vmatpush2.bf16.msra.mxu1 %v15665_v52  ;;  %v1601_v47 = vld [vmem:[%s17357_s27 + $0x21b0] sm:$0xff] }
 0x458   : > { %11220 = vmatprep.subr.bf16.mxu1 %v15658_v0  ;;  %v1725_v10 = vld [vmem:[%s17357_s27 + $0x2590] sm:$0xff]  ;;  %v15762_v7 = vcombine.high %v1597_v28, %v1601_v47  ;;  %v15761_v18 = vcombine.low %v1597_v28, %v1601_v47 }
 0x459   : > { %11178 = vmatpush2.bf16.msra.mxu0 %v15529_v40  ;;  %v1729_v31 = vld [vmem:[%s17357_s27 + $0x25b0] sm:$0xff] }
 0x45a   : > { %11179 = vmatprep.subr.bf16.mxu0 %v15522_v59  ;;  %v15890_v57 = vcombine.high %v1725_v10, %v1729_v31  ;;  %v1589_v24 = vld [vmem:[%s17357_s27 + $0x2150] sm:$0xff]  ;;  %v15889_v58 = vcombine.low %v1725_v10, %v1729_v31 }
 0x45b   : > { %11221 = vmatpush2.bf16.msra.mxu1 %v15657_v27  ;;  %v1593_v8 = vld [vmem:[%s17357_s27 + $0x2170] sm:$0xff] }
 0x45c   : > { %11222 = vmatprep.subr.bf16.mxu1 %v15650_v53  ;;  %v1717_v42 = vld [vmem:[%s17357_s27 + $0x2550] sm:$0xff]  ;;  %v15754_v44 = vcombine.high %v1589_v24, %v1593_v8  ;;  %v15753_v29 = vcombine.low %v1589_v24, %v1593_v8 }
 0x45d   : > { %11180 = vmatpush2.bf16.msra.mxu0 %v15521_v11  ;;  %v1721_v4 = vld [vmem:[%s17357_s27 + $0x2570] sm:$0xff] }
 0x45e   : > { %11235 = vmatprep.subr.bf16.mxu0 %v15770_v43  ;;  %v15882_v56 = vcombine.high %v1717_v42, %v1721_v4  ;;  %v1581_v55 = vld [vmem:[%s17357_s27 + $0x2110] sm:$0xff]  ;;  %v15881_v19 = vcombine.low %v1717_v42, %v1721_v4 }
 0x45f   : > { %11223 = vmatpush2.bf16.msra.mxu1 %v15649_v49  ;;  %v1585_v30 = vld [vmem:[%s17357_s27 + $0x2130] sm:$0xff] }
 0x460   : > { %11278 = vmatprep.subr.bf16.mxu1 %v15898_v21  ;;  %11182 = vmatmul.mubr.bf16.vlgmr.msra.gmra.mxu0 %v17747_v35  ;;  %v1709_v51 = vld [vmem:[%s17357_s27 + $0x2510] sm:$0xff]  ;;  %v15746_v38 = vcombine.high %v1581_v55, %v1585_v30  ;;  %v15745_v1 = vcombine.low %v1581_v55, %v1585_v30 }
 0x461   : > { %11236 = vmatpush1.bf16.msra.mxu0 %v15769_v54  ;;  %11267 = vmatprep.mubr.bf16.mxu0 %v17770_v17  ;;  %v1713_v23 = vld [vmem:[%s17357_s27 + $0x2530] sm:$0xff] }
 0x462   : > { %11225 = vmatmul.mubr.bf16.vlgmr.msra.gmra.mxu1 %v17758_v39  ;;  %11237 = vmatprep.subr.bf16.mxu0 %v15762_v7  ;;  %v15874_v50 = vcombine.high %v1709_v51, %v1713_v23  ;;  %v1573_v37 = vld [vmem:[%s17357_s27 + $0x20d0] sm:$0xff]  ;;  %v15873_v52 = vcombine.low %v1709_v51, %v1713_v23 }
 0x463   : > { %11279 = vmatpush1.bf16.msra.mxu1 %v15897_v6  ;;  %11310 = vmatprep.mubr.bf16.mxu1 %v17777_v9  ;;  %v1577_v3 = vld [vmem:[%s17357_s27 + $0x20f0] sm:$0xff] }
 0x464   : > { %11280 = vmatprep.subr.bf16.mxu1 %v15890_v57  ;;  %v1701_v36 = vld [vmem:[%s17357_s27 + $0x24d0] sm:$0xff]  ;;  %v15738_v15 = vcombine.high %v1573_v37, %v1577_v3  ;;  %v15737_v40 = vcombine.low %v1573_v37, %v1577_v3 }
 0x465   : > { %11238 = vmatpush1.bf16.msra.mxu0 %v15761_v18  ;;  %v1705_v62 = vld [vmem:[%s17357_s27 + $0x24f0] sm:$0xff] }
 0x466   : > { %11239 = vmatprep.subr.bf16.mxu0 %v15754_v44  ;;  %v15866_v0 = vcombine.high %v1701_v36, %v1705_v62  ;;  %v1565_v12 = vld [vmem:[%s17357_s27 + $0x2090] sm:$0xff]  ;;  %v15865_v27 = vcombine.low %v1701_v36, %v1705_v62 }
 0x467   : > { %11281 = vmatpush1.bf16.msra.mxu1 %v15889_v58  ;;  %v1569_v41 = vld [vmem:[%s17357_s27 + $0x20b0] sm:$0xff] }
 0x468   : > { %11282 = vmatprep.subr.bf16.mxu1 %v15882_v56  ;;  %v1693_v26 = vld [vmem:[%s17357_s27 + $0x2490] sm:$0xff]  ;;  %v15730_v59 = vcombine.high %v1565_v12, %v1569_v41  ;;  %v15729_v11 = vcombine.low %v1565_v12, %v1569_v41 }
 0x469   : > { %11240 = vmatpush1.bf16.msra.mxu0 %v15753_v29  ;;  %v1697_v32 = vld [vmem:[%s17357_s27 + $0x24b0] sm:$0xff] }
 0x46a   : > { %11241 = vmatprep.subr.bf16.mxu0 %v15746_v38  ;;  %v15858_v53 = vcombine.high %v1693_v26, %v1697_v32  ;;  %v1557_v63 = vld [vmem:[%s17357_s27 + $0x2050] sm:$0xff]  ;;  %v15857_v49 = vcombine.low %v1693_v26, %v1697_v32 }
 0x46b   : > { %11283 = vmatpush1.bf16.msra.mxu1 %v15881_v19  ;;  %v1561_v22 = vld [vmem:[%s17357_s27 + $0x2070] sm:$0xff] }
 0x46c   : > { %11284 = vmatprep.subr.bf16.mxu1 %v15874_v50  ;;  %v1685_v33 = vld [vmem:[%s17357_s27 + $0x2450] sm:$0xff]  ;;  %v15722_v43 = vcombine.high %v1557_v63, %v1561_v22  ;;  %v15721_v54 = vcombine.low %v1557_v63, %v1561_v22 }
 0x46d   : > { %11242 = vmatpush1.bf16.msra.mxu0 %v15745_v1  ;;  %v1689_v34 = vld [vmem:[%s17357_s27 + $0x2470] sm:$0xff] }
 0x46e   : > { %11243 = vmatprep.subr.bf16.mxu0 %v15738_v15  ;;  %v15850_v21 = vcombine.high %v1685_v33, %v1689_v34  ;;  %v1549_v28 = vld [vmem:[%s17357_s27 + $0x2010] sm:$0xff]  ;;  %v15849_v6 = vcombine.low %v1685_v33, %v1689_v34 }
 0x46f   : > { %11285 = vmatpush1.bf16.msra.mxu1 %v15873_v52  ;;  %v1553_v47 = vld [vmem:[%s17357_s27 + $0x2030] sm:$0xff] }
 0x470   : > { %11286 = vmatprep.subr.bf16.mxu1 %v15866_v0  ;;  %v1677_v10 = vld [vmem:[%s17357_s27 + $0x2410] sm:$0xff]  ;;  %v15714_v7 = vcombine.high %v1549_v28, %v1553_v47  ;;  %v15713_v18 = vcombine.low %v1549_v28, %v1553_v47 }
 0x471   : > { %11244 = vmatpush1.bf16.msra.mxu0 %v15737_v40  ;;  %v1681_v31 = vld [vmem:[%s17357_s27 + $0x2430] sm:$0xff] }
 0x472   : > { %11245 = vmatprep.subr.bf16.mxu0 %v15730_v59  ;;  %v15842_v57 = vcombine.high %v1677_v10, %v1681_v31  ;;  %v1669_v24 = vld [vmem:[%s17357_s27 + $0x23d0] sm:$0xff]  ;;  %v15841_v58 = vcombine.low %v1677_v10, %v1681_v31 }
 0x473   : > { %11287 = vmatpush1.bf16.msra.mxu1 %v15865_v27  ;;  %v1673_v8 = vld [vmem:[%s17357_s27 + $0x23f0] sm:$0xff] }
 0x474   : > { %11288 = vmatprep.subr.bf16.mxu1 %v15858_v53  ;;  %v1797_v42 = vld [vmem:[%s17357_s27 + $0x27d0] sm:$0xff]  ;;  %v15834_v44 = vcombine.high %v1669_v24, %v1673_v8  ;;  %v15833_v29 = vcombine.low %v1669_v24, %v1673_v8 }
 0x475   : > { %11246 = vmatpush1.bf16.msra.mxu0 %v15729_v11  ;;  %v1801_v4 = vld [vmem:[%s17357_s27 + $0x27f0] sm:$0xff] }
 0x476   : > { %11247 = vmatprep.subr.bf16.mxu0 %v15722_v43  ;;  %v15962_v56 = vcombine.high %v1797_v42, %v1801_v4  ;;  %v1661_v55 = vld [vmem:[%s17357_s27 + $0x2390] sm:$0xff]  ;;  %v15961_v19 = vcombine.low %v1797_v42, %v1801_v4 }
 0x477   : > { %11289 = vmatpush1.bf16.msra.mxu1 %v15857_v49  ;;  %v1665_v30 = vld [vmem:[%s17357_s27 + $0x23b0] sm:$0xff] }
 0x478   : > { %11290 = vmatprep.subr.bf16.mxu1 %v15850_v21  ;;  %v1789_v51 = vld [vmem:[%s17357_s27 + $0x2790] sm:$0xff]  ;;  %v15826_v38 = vcombine.high %v1661_v55, %v1665_v30  ;;  %v15825_v1 = vcombine.low %v1661_v55, %v1665_v30 }
 0x479   : > { %11248 = vmatpush1.bf16.msra.mxu0 %v15721_v54  ;;  %v1793_v23 = vld [vmem:[%s17357_s27 + $0x27b0] sm:$0xff] }
 0x47a   : > { %11249 = vmatprep.subr.bf16.mxu0 %v15714_v7  ;;  %v15954_v50 = vcombine.high %v1789_v51, %v1793_v23  ;;  %v1653_v37 = vld [vmem:[%s17357_s27 + $0x2350] sm:$0xff]  ;;  %v15953_v52 = vcombine.low %v1789_v51, %v1793_v23 }
 0x47b   : > { %11291 = vmatpush1.bf16.msra.mxu1 %v15849_v6  ;;  %v1657_v3 = vld [vmem:[%s17357_s27 + $0x2370] sm:$0xff] }
 0x47c   : > { %11292 = vmatprep.subr.bf16.mxu1 %v15842_v57  ;;  %v1781_v36 = vld [vmem:[%s17357_s27 + $0x2750] sm:$0xff]  ;;  %v15818_v15 = vcombine.high %v1653_v37, %v1657_v3  ;;  %v15817_v40 = vcombine.low %v1653_v37, %v1657_v3 }
 0x47d   : > { %11250 = vmatpush1.bf16.msra.mxu0 %v15713_v18  ;;  %v1785_v62 = vld [vmem:[%s17357_s27 + $0x2770] sm:$0xff] }
 0x47e   : > { %11251 = vmatprep.subr.bf16.mxu0 %v15834_v44  ;;  %v15946_v0 = vcombine.high %v1781_v36, %v1785_v62  ;;  %v1645_v12 = vld [vmem:[%s17357_s27 + $0x2310] sm:$0xff]  ;;  %v15945_v27 = vcombine.low %v1781_v36, %v1785_v62 }
 0x47f   : > { %11293 = vmatpush1.bf16.msra.mxu1 %v15841_v58  ;;  %v1649_v41 = vld [vmem:[%s17357_s27 + $0x2330] sm:$0xff] }
 0x480   : > { %11294 = vmatprep.subr.bf16.mxu1 %v15962_v56  ;;  %v1773_v26 = vld [vmem:[%s17357_s27 + $0x2710] sm:$0xff]  ;;  %v15810_v59 = vcombine.high %v1645_v12, %v1649_v41  ;;  %v15809_v11 = vcombine.low %v1645_v12, %v1649_v41 }
 0x481   : > { %11252 = vmatpush2.bf16.msra.mxu0 %v15833_v29  ;;  %v1777_v32 = vld [vmem:[%s17357_s27 + $0x2730] sm:$0xff] }
 0x482   : > { %11253 = vmatprep.subr.bf16.mxu0 %v15826_v38  ;;  %v15938_v53 = vcombine.high %v1773_v26, %v1777_v32  ;;  %v1637_v63 = vld [vmem:[%s17357_s27 + $0x22d0] sm:$0xff]  ;;  %v15937_v49 = vcombine.low %v1773_v26, %v1777_v32 }
 0x483   : > { %11295 = vmatpush2.bf16.msra.mxu1 %v15961_v19  ;;  %v1641_v22 = vld [vmem:[%s17357_s27 + $0x22f0] sm:$0xff] }
 0x484   : > { %11296 = vmatprep.subr.bf16.mxu1 %v15954_v50  ;;  %v1765_v33 = vld [vmem:[%s17357_s27 + $0x26d0] sm:$0xff]  ;;  %v15802_v43 = vcombine.high %v1637_v63, %v1641_v22  ;;  %v15801_v54 = vcombine.low %v1637_v63, %v1641_v22 }
 0x485   : > { %11254 = vmatpush2.bf16.msra.mxu0 %v15825_v1  ;;  %v1769_v34 = vld [vmem:[%s17357_s27 + $0x26f0] sm:$0xff] }
 0x486   : > { %11255 = vmatprep.subr.bf16.mxu0 %v15818_v15  ;;  %v15930_v21 = vcombine.high %v1765_v33, %v1769_v34  ;;  %v1629_v28 = vld [vmem:[%s17357_s27 + $0x2290] sm:$0xff]  ;;  %v15929_v6 = vcombine.low %v1765_v33, %v1769_v34 }
 0x487   : > { %11297 = vmatpush2.bf16.msra.mxu1 %v15953_v52  ;;  %v1633_v47 = vld [vmem:[%s17357_s27 + $0x22b0] sm:$0xff] }
 0x488   : > { %11298 = vmatprep.subr.bf16.mxu1 %v15946_v0  ;;  %v1757_v10 = vld [vmem:[%s17357_s27 + $0x2690] sm:$0xff]  ;;  %v15794_v7 = vcombine.high %v1629_v28, %v1633_v47  ;;  %v15793_v18 = vcombine.low %v1629_v28, %v1633_v47 }
 0x489   : > { %11256 = vmatpush2.bf16.msra.mxu0 %v15817_v40  ;;  %v1761_v31 = vld [vmem:[%s17357_s27 + $0x26b0] sm:$0xff] }
 0x48a   : > { %11257 = vmatprep.subr.bf16.mxu0 %v15810_v59  ;;  %v15922_v57 = vcombine.high %v1757_v10, %v1761_v31  ;;  %v1621_v24 = vld [vmem:[%s17357_s27 + $0x2250] sm:$0xff]  ;;  %v15921_v58 = vcombine.low %v1757_v10, %v1761_v31 }
 0x48b   : > { %11299 = vmatpush2.bf16.msra.mxu1 %v15945_v27  ;;  %v1625_v8 = vld [vmem:[%s17357_s27 + $0x2270] sm:$0xff] }
 0x48c   : > { %11300 = vmatprep.subr.bf16.mxu1 %v15938_v53  ;;  %v1749_v42 = vld [vmem:[%s17357_s27 + $0x2650] sm:$0xff]  ;;  %v15786_v44 = vcombine.high %v1621_v24, %v1625_v8  ;;  %v15785_v29 = vcombine.low %v1621_v24, %v1625_v8 }
 0x48d   : > { %11258 = vmatpush2.bf16.msra.mxu0 %v15809_v11  ;;  %v1753_v4 = vld [vmem:[%s17357_s27 + $0x2670] sm:$0xff] }
 0x48e   : > { %11259 = vmatprep.subr.bf16.mxu0 %v15802_v43  ;;  %v15914_v56 = vcombine.high %v1749_v42, %v1753_v4  ;;  %v1613_v55 = vld [vmem:[%s17357_s27 + $0x2210] sm:$0xff]  ;;  %v15913_v19 = vcombine.low %v1749_v42, %v1753_v4 }
 0x48f   : > { %11301 = vmatpush2.bf16.msra.mxu1 %v15937_v49  ;;  %v1617_v30 = vld [vmem:[%s17357_s27 + $0x2230] sm:$0xff] }
 0x490   : > { %11302 = vmatprep.subr.bf16.mxu1 %v15930_v21  ;;  %v1741_v51 = vld [vmem:[%s17357_s27 + $0x2610] sm:$0xff]  ;;  %v15778_v38 = vcombine.high %v1613_v55, %v1617_v30  ;;  %v15777_v1 = vcombine.low %v1613_v55, %v1617_v30 }
 0x491   : > { %11260 = vmatpush2.bf16.msra.mxu0 %v15801_v54  ;;  %v1745_v23 = vld [vmem:[%s17357_s27 + $0x2630] sm:$0xff] }
 0x492   : > { %11261 = vmatprep.subr.bf16.mxu0 %v15794_v7  ;;  %v15906_v50 = vcombine.high %v1741_v51, %v1745_v23  ;;  %v1861_v37 = vld [vmem:[%s17357_s27 + $0x29d0] sm:$0xff]  ;;  %v15905_v52 = vcombine.low %v1741_v51, %v1745_v23 }
 0x493   : > { %11303 = vmatpush2.bf16.msra.mxu1 %v15929_v6  ;;  %v1865_v3 = vld [vmem:[%s17357_s27 + $0x29f0] sm:$0xff] }
 0x494   : > { %11304 = vmatprep.subr.bf16.mxu1 %v15922_v57  ;;  %v1989_v36 = vld [vmem:[%s17357_s27 + $0x2dd0] sm:$0xff]  ;;  %v16026_v15 = vcombine.high %v1861_v37, %v1865_v3  ;;  %v16025_v40 = vcombine.low %v1861_v37, %v1865_v3 }
 0x495   : > { %11262 = vmatpush2.bf16.msra.mxu0 %v15793_v18  ;;  %v1993_v62 = vld [vmem:[%s17357_s27 + $0x2df0] sm:$0xff] }
 0x496   : > { %11263 = vmatprep.subr.bf16.mxu0 %v15786_v44  ;;  %v16154_v0 = vcombine.high %v1989_v36, %v1993_v62  ;;  %v1853_v12 = vld [vmem:[%s17357_s27 + $0x2990] sm:$0xff]  ;;  %v16153_v27 = vcombine.low %v1989_v36, %v1993_v62 }
 0x497   : > { %11305 = vmatpush2.bf16.msra.mxu1 %v15921_v58  ;;  %v1857_v41 = vld [vmem:[%s17357_s27 + $0x29b0] sm:$0xff] }
 0x498   : > { %11306 = vmatprep.subr.bf16.mxu1 %v15914_v56  ;;  %v1981_v26 = vld [vmem:[%s17357_s27 + $0x2d90] sm:$0xff]  ;;  %v16018_v59 = vcombine.high %v1853_v12, %v1857_v41  ;;  %v16017_v11 = vcombine.low %v1853_v12, %v1857_v41 }
 0x499   : > { %11264 = vmatpush2.bf16.msra.mxu0 %v15785_v29  ;;  %v1985_v32 = vld [vmem:[%s17357_s27 + $0x2db0] sm:$0xff] }
 0x49a   : > { %11265 = vmatprep.subr.bf16.mxu0 %v15778_v38  ;;  %v16146_v53 = vcombine.high %v1981_v26, %v1985_v32  ;;  %v1845_v63 = vld [vmem:[%s17357_s27 + $0x2950] sm:$0xff]  ;;  %v16145_v49 = vcombine.low %v1981_v26, %v1985_v32 }
 0x49b   : > { %11307 = vmatpush2.bf16.msra.mxu1 %v15913_v19  ;;  %v1849_v22 = vld [vmem:[%s17357_s27 + $0x2970] sm:$0xff] }
 0x49c   : > { %11308 = vmatprep.subr.bf16.mxu1 %v15906_v50  ;;  %v1973_v33 = vld [vmem:[%s17357_s27 + $0x2d50] sm:$0xff]  ;;  %v16010_v43 = vcombine.high %v1845_v63, %v1849_v22  ;;  %v16009_v54 = vcombine.low %v1845_v63, %v1849_v22 }
 0x49d   : > { %11266 = vmatpush2.bf16.msra.mxu0 %v15777_v1  ;;  %v1977_v34 = vld [vmem:[%s17357_s27 + $0x2d70] sm:$0xff] }
 0x49e   : > { %11321 = vmatprep.subr.bf16.mxu0 %v16026_v15  ;;  %v16138_v21 = vcombine.high %v1973_v33, %v1977_v34  ;;  %v1837_v28 = vld [vmem:[%s17357_s27 + $0x2910] sm:$0xff]  ;;  %v16137_v6 = vcombine.low %v1973_v33, %v1977_v34 }
 0x49f   : > { %11309 = vmatpush2.bf16.msra.mxu1 %v15905_v52  ;;  %v1841_v47 = vld [vmem:[%s17357_s27 + $0x2930] sm:$0xff] }
 0x4a0   : > { %11364 = vmatprep.subr.bf16.mxu1 %v16154_v0  ;;  %11268 = vmatmul.mubr.bf16.vlgmr.msra.gmra.mxu0 %v17843_v48  ;;  %v1965_v10 = vld [vmem:[%s17357_s27 + $0x2d10] sm:$0xff]  ;;  %v16002_v7 = vcombine.high %v1837_v28, %v1841_v47  ;;  %v16001_v18 = vcombine.low %v1837_v28, %v1841_v47 }
 0x4a1   : > { %11322 = vmatpush1.bf16.msra.mxu0 %v16025_v40  ;;  %11353 = vmatprep.mubr.bf16.mxu0 %v17866_v13  ;;  %v1969_v31 = vld [vmem:[%s17357_s27 + $0x2d30] sm:$0xff] }
 0x4a2   : > { %11311 = vmatmul.mubr.bf16.vlgmr.msra.gmra.mxu1 %v17854_v46  ;;  %11323 = vmatprep.subr.bf16.mxu0 %v16018_v59  ;;  %v16130_v57 = vcombine.high %v1965_v10, %v1969_v31  ;;  %v1829_v24 = vld [vmem:[%s17357_s27 + $0x28d0] sm:$0xff]  ;;  %v16129_v58 = vcombine.low %v1965_v10, %v1969_v31 }
 0x4a3   : > { %11365 = vmatpush1.bf16.msra.mxu1 %v16153_v27  ;;  %11396 = vmatprep.mubr.bf16.mxu1 %v17873_v14  ;;  %v1833_v8 = vld [vmem:[%s17357_s27 + $0x28f0] sm:$0xff] }
 0x4a4   : > { %11366 = vmatprep.subr.bf16.mxu1 %v16146_v53  ;;  %v1957_v42 = vld [vmem:[%s17357_s27 + $0x2cd0] sm:$0xff]  ;;  %v15994_v44 = vcombine.high %v1829_v24, %v1833_v8  ;;  %v15993_v29 = vcombine.low %v1829_v24, %v1833_v8 }
 0x4a5   : > { %11324 = vmatpush1.bf16.msra.mxu0 %v16017_v11  ;;  %v1961_v4 = vld [vmem:[%s17357_s27 + $0x2cf0] sm:$0xff] }
 0x4a6   : > { %11325 = vmatprep.subr.bf16.mxu0 %v16010_v43  ;;  %v16122_v56 = vcombine.high %v1957_v42, %v1961_v4  ;;  %v1821_v55 = vld [vmem:[%s17357_s27 + $0x2890] sm:$0xff]  ;;  %v16121_v19 = vcombine.low %v1957_v42, %v1961_v4 }
 0x4a7   : > { %11367 = vmatpush1.bf16.msra.mxu1 %v16145_v49  ;;  %v1825_v30 = vld [vmem:[%s17357_s27 + $0x28b0] sm:$0xff] }
 0x4a8   : > { %11368 = vmatprep.subr.bf16.mxu1 %v16138_v21  ;;  %v1949_v51 = vld [vmem:[%s17357_s27 + $0x2c90] sm:$0xff]  ;;  %v15986_v38 = vcombine.high %v1821_v55, %v1825_v30  ;;  %v15985_v1 = vcombine.low %v1821_v55, %v1825_v30 }
 0x4a9   : > { %11326 = vmatpush1.bf16.msra.mxu0 %v16009_v54  ;;  %v1953_v23 = vld [vmem:[%s17357_s27 + $0x2cb0] sm:$0xff] }
 0x4aa   : > { %11327 = vmatprep.subr.bf16.mxu0 %v16002_v7  ;;  %v16114_v50 = vcombine.high %v1949_v51, %v1953_v23  ;;  %v1813_v37 = vld [vmem:[%s17357_s27 + $0x2850] sm:$0xff]  ;;  %v16113_v52 = vcombine.low %v1949_v51, %v1953_v23 }
 0x4ab   : > { %11369 = vmatpush1.bf16.msra.mxu1 %v16137_v6  ;;  %v1817_v3 = vld [vmem:[%s17357_s27 + $0x2870] sm:$0xff] }
 0x4ac   : > { %11370 = vmatprep.subr.bf16.mxu1 %v16130_v57  ;;  %v1941_v36 = vld [vmem:[%s17357_s27 + $0x2c50] sm:$0xff]  ;;  %v15978_v15 = vcombine.high %v1813_v37, %v1817_v3  ;;  %v15977_v40 = vcombine.low %v1813_v37, %v1817_v3 }
 0x4ad   : > { %11328 = vmatpush1.bf16.msra.mxu0 %v16001_v18  ;;  %v1945_v62 = vld [vmem:[%s17357_s27 + $0x2c70] sm:$0xff] }
 0x4ae   : > { %11329 = vmatprep.subr.bf16.mxu0 %v15994_v44  ;;  %v16106_v0 = vcombine.high %v1941_v36, %v1945_v62  ;;  %v1805_v12 = vld [vmem:[%s17357_s27 + $0x2810] sm:$0xff]  ;;  %v16105_v27 = vcombine.low %v1941_v36, %v1945_v62 }
 0x4af   : > { %11371 = vmatpush1.bf16.msra.mxu1 %v16129_v58  ;;  %v1809_v41 = vld [vmem:[%s17357_s27 + $0x2830] sm:$0xff] }
 0x4b0   : > { %11372 = vmatprep.subr.bf16.mxu1 %v16122_v56  ;;  %v1933_v26 = vld [vmem:[%s17357_s27 + $0x2c10] sm:$0xff]  ;;  %v15970_v59 = vcombine.high %v1805_v12, %v1809_v41  ;;  %v15969_v11 = vcombine.low %v1805_v12, %v1809_v41 }
 0x4b1   : > { %11330 = vmatpush1.bf16.msra.mxu0 %v15993_v29  ;;  %v1937_v32 = vld [vmem:[%s17357_s27 + $0x2c30] sm:$0xff] }
 0x4b2   : > { %11331 = vmatprep.subr.bf16.mxu0 %v15986_v38  ;;  %v16098_v53 = vcombine.high %v1933_v26, %v1937_v32  ;;  %v1925_v63 = vld [vmem:[%s17357_s27 + $0x2bd0] sm:$0xff]  ;;  %v16097_v49 = vcombine.low %v1933_v26, %v1937_v32 }
 0x4b3   : > { %11373 = vmatpush1.bf16.msra.mxu1 %v16121_v19  ;;  %v1929_v22 = vld [vmem:[%s17357_s27 + $0x2bf0] sm:$0xff] }
 0x4b4   : > { %11374 = vmatprep.subr.bf16.mxu1 %v16114_v50  ;;  %v2053_v33 = vld [vmem:[%s17357_s27 + $0x2fd0] sm:$0xff]  ;;  %v16090_v43 = vcombine.high %v1925_v63, %v1929_v22  ;;  %v16089_v54 = vcombine.low %v1925_v63, %v1929_v22 }
 0x4b5   : > { %11332 = vmatpush1.bf16.msra.mxu0 %v15985_v1  ;;  %v2057_v34 = vld [vmem:[%s17357_s27 + $0x2ff0] sm:$0xff] }
 0x4b6   : > { %11333 = vmatprep.subr.bf16.mxu0 %v15978_v15  ;;  %v16218_v21 = vcombine.high %v2053_v33, %v2057_v34  ;;  %v1917_v28 = vld [vmem:[%s17357_s27 + $0x2b90] sm:$0xff]  ;;  %v16217_v6 = vcombine.low %v2053_v33, %v2057_v34 }
 0x4b7   : > { %11375 = vmatpush1.bf16.msra.mxu1 %v16113_v52  ;;  %v1921_v47 = vld [vmem:[%s17357_s27 + $0x2bb0] sm:$0xff] }
 0x4b8   : > { %11376 = vmatprep.subr.bf16.mxu1 %v16106_v0  ;;  %v2045_v10 = vld [vmem:[%s17357_s27 + $0x2f90] sm:$0xff]  ;;  %v16082_v7 = vcombine.high %v1917_v28, %v1921_v47  ;;  %v16081_v18 = vcombine.low %v1917_v28, %v1921_v47 }
 0x4b9   : > { %11334 = vmatpush1.bf16.msra.mxu0 %v15977_v40  ;;  %v2049_v31 = vld [vmem:[%s17357_s27 + $0x2fb0] sm:$0xff] }
 0x4ba   : > { %11335 = vmatprep.subr.bf16.mxu0 %v15970_v59  ;;  %v16210_v57 = vcombine.high %v2045_v10, %v2049_v31  ;;  %v1909_v24 = vld [vmem:[%s17357_s27 + $0x2b50] sm:$0xff]  ;;  %v16209_v58 = vcombine.low %v2045_v10, %v2049_v31 }
 0x4bb   : > { %11377 = vmatpush1.bf16.msra.mxu1 %v16105_v27  ;;  %v1913_v8 = vld [vmem:[%s17357_s27 + $0x2b70] sm:$0xff] }
 0x4bc   : > { %11378 = vmatprep.subr.bf16.mxu1 %v16098_v53  ;;  %v2037_v42 = vld [vmem:[%s17357_s27 + $0x2f50] sm:$0xff]  ;;  %v16074_v44 = vcombine.high %v1909_v24, %v1913_v8  ;;  %v16073_v29 = vcombine.low %v1909_v24, %v1913_v8  ;;  %v582_v24 = vld [vmem:[%s17357_s27 + $0x1d8] sm:$0xff] }
 0x4bd   : > { %11336 = vmatpush1.bf16.msra.mxu0 %v15969_v11  ;;  %v2041_v4 = vld [vmem:[%s17357_s27 + $0x2f70] sm:$0xff]  ;;  %v586_v8 = vld [vmem:[%s17357_s27 + $0x1f8] sm:$0xff] }
 0x4be   : > { %11337 = vmatprep.subr.bf16.mxu0 %v16090_v43  ;;  %v16202_v56 = vcombine.high %v2037_v42, %v2041_v4  ;;  %v1901_v55 = vld [vmem:[%s17357_s27 + $0x2b10] sm:$0xff]  ;;  %v16201_v19 = vcombine.low %v2037_v42, %v2041_v4  ;;  %v710_v42 = vld [vmem:[%s17357_s27 + $0x5d8] sm:$0xff] }
 0x4bf   : > { %11379 = vmatpush1.bf16.msra.mxu1 %v16097_v49  ;;  %v1905_v30 = vld [vmem:[%s17357_s27 + $0x2b30] sm:$0xff]  ;;  %v714_v4 = vld [vmem:[%s17357_s27 + $0x5f8] sm:$0xff] }
 0x4c0   : > { %11380 = vmatprep.subr.bf16.mxu1 %v16218_v21  ;;  %v2029_v51 = vld [vmem:[%s17357_s27 + $0x2f10] sm:$0xff]  ;;  %v16066_v38 = vcombine.high %v1901_v55, %v1905_v30  ;;  %v16065_v1 = vcombine.low %v1901_v55, %v1905_v30  ;;  %v574_v55 = vld [vmem:[%s17357_s27 + $0x198] sm:$0xff] }
 0x4c1   : > { %11338 = vmatpush2.bf16.msra.mxu0 %v16089_v54  ;;  %v2033_v23 = vld [vmem:[%s17357_s27 + $0x2f30] sm:$0xff]  ;;  %v578_v30 = vld [vmem:[%s17357_s27 + $0x1b8] sm:$0xff] }
 0x4c2   : > { %11339 = vmatprep.subr.bf16.mxu0 %v16082_v7  ;;  %v16194_v50 = vcombine.high %v2029_v51, %v2033_v23  ;;  %v1893_v37 = vld [vmem:[%s17357_s27 + $0x2ad0] sm:$0xff]  ;;  %v16193_v52 = vcombine.low %v2029_v51, %v2033_v23  ;;  %v702_v51 = vld [vmem:[%s17357_s27 + $0x598] sm:$0xff] }
 0x4c3   : > { %11381 = vmatpush2.bf16.msra.mxu1 %v16217_v6  ;;  %v1897_v3 = vld [vmem:[%s17357_s27 + $0x2af0] sm:$0xff]  ;;  %v706_v23 = vld [vmem:[%s17357_s27 + $0x5b8] sm:$0xff] }
 0x4c4   : > { %11382 = vmatprep.subr.bf16.mxu1 %v16210_v57  ;;  %v2021_v36 = vld [vmem:[%s17357_s27 + $0x2ed0] sm:$0xff]  ;;  %v16058_v15 = vcombine.high %v1893_v37, %v1897_v3  ;;  %v16057_v40 = vcombine.low %v1893_v37, %v1897_v3  ;;  %v566_v37 = vld [vmem:[%s17357_s27 + $0x158] sm:$0xff] }
 0x4c5   : > { %11340 = vmatpush2.bf16.msra.mxu0 %v16081_v18  ;;  %v2025_v62 = vld [vmem:[%s17357_s27 + $0x2ef0] sm:$0xff]  ;;  %v570_v3 = vld [vmem:[%s17357_s27 + $0x178] sm:$0xff] }
 0x4c6   : > { %11341 = vmatprep.subr.bf16.mxu0 %v16074_v44  ;;  %v16186_v0 = vcombine.high %v2021_v36, %v2025_v62  ;;  %v1885_v12 = vld [vmem:[%s17357_s27 + $0x2a90] sm:$0xff]  ;;  %v16185_v27 = vcombine.low %v2021_v36, %v2025_v62  ;;  %v14748_v44 = vcombine.high %v582_v24, %v586_v8  ;;  %v694_v36 = vld [vmem:[%s17357_s27 + $0x558] sm:$0xff] }
 0x4c7   : > { %11383 = vmatpush2.bf16.msra.mxu1 %v16209_v58  ;;  %v1889_v41 = vld [vmem:[%s17357_s27 + $0x2ab0] sm:$0xff]  ;;  %v698_v62 = vld [vmem:[%s17357_s27 + $0x578] sm:$0xff] }
 0x4c8   : > { %11384 = vmatprep.subr.bf16.mxu1 %v16202_v56  ;;  %v2013_v26 = vld [vmem:[%s17357_s27 + $0x2e90] sm:$0xff]  ;;  %v16050_v59 = vcombine.high %v1885_v12, %v1889_v41  ;;  %v16049_v11 = vcombine.low %v1885_v12, %v1889_v41  ;;  %v14876_v56 = vcombine.high %v710_v42, %v714_v4  ;;  %v558_v12 = vld [vmem:[%s17357_s27 + $0x118] sm:$0xff] }
 0x4c9   : > { %11342 = vmatpush2.bf16.msra.mxu0 %v16073_v29  ;;  %v2017_v32 = vld [vmem:[%s17357_s27 + $0x2eb0] sm:$0xff]  ;;  %v14747_v29 = vcombine.low %v582_v24, %v586_v8  ;;  %v562_v41 = vld [vmem:[%s17357_s27 + $0x138] sm:$0xff] }
 0x4ca   : > { %11343 = vmatprep.subr.bf16.mxu0 %v16066_v38  ;;  %v16178_v53 = vcombine.high %v2013_v26, %v2017_v32  ;;  %v1877_v63 = vld [vmem:[%s17357_s27 + $0x2a50] sm:$0xff]  ;;  %v16177_v49 = vcombine.low %v2013_v26, %v2017_v32  ;;  %v14740_v38 = vcombine.high %v574_v55, %v578_v30  ;;  %v686_v26 = vld [vmem:[%s17357_s27 + $0x518] sm:$0xff] }
 0x4cb   : > { %11385 = vmatpush2.bf16.msra.mxu1 %v16201_v19  ;;  %v1881_v22 = vld [vmem:[%s17357_s27 + $0x2a70] sm:$0xff]  ;;  %v14875_v19 = vcombine.low %v710_v42, %v714_v4  ;;  %v690_v32 = vld [vmem:[%s17357_s27 + $0x538] sm:$0xff] }
 0x4cc   : > { %11386 = vmatprep.subr.bf16.mxu1 %v16194_v50  ;;  %v2005_v33 = vld [vmem:[%s17357_s27 + $0x2e50] sm:$0xff]  ;;  %v16042_v43 = vcombine.high %v1877_v63, %v1881_v22  ;;  %v16041_v54 = vcombine.low %v1877_v63, %v1881_v22  ;;  %v14868_v50 = vcombine.high %v702_v51, %v706_v23  ;;  %v550_v63 = vld [vmem:[%s17357_s27 + $0xd8] sm:$0xff] }
 0x4cd   : > { %11344 = vmatpush2.bf16.msra.mxu0 %v16065_v1  ;;  %v2009_v34 = vld [vmem:[%s17357_s27 + $0x2e70] sm:$0xff]  ;;  %v14739_v1 = vcombine.low %v574_v55, %v578_v30  ;;  %v554_v22 = vld [vmem:[%s17357_s27 + $0xf8] sm:$0xff] }
 0x4ce   : > { %11345 = vmatprep.subr.bf16.mxu0 %v16058_v15  ;;  %v16170_v21 = vcombine.high %v2005_v33, %v2009_v34  ;;  %v1869_v28 = vld [vmem:[%s17357_s27 + $0x2a10] sm:$0xff]  ;;  %v16169_v6 = vcombine.low %v2005_v33, %v2009_v34  ;;  %v14732_v15 = vcombine.high %v566_v37, %v570_v3  ;;  %v678_v33 = vld [vmem:[%s17357_s27 + $0x4d8] sm:$0xff]  ;;  %v14723_v34 = vcombine.low %v558_v12, %v562_v41 }
 0x4cf   : > { %11387 = vmatpush2.bf16.msra.mxu1 %v16193_v52  ;;  %v1873_v47 = vld [vmem:[%s17357_s27 + $0x2a30] sm:$0xff]  ;;  %v14867_v52 = vcombine.low %v702_v51, %v706_v23  ;;  %v662_v24 = vld [vmem:[%s17357_s27 + $0x458] sm:$0xff] }
 0x4d0   : > { %11388 = vmatprep.subr.bf16.mxu1 %v16186_v0  ;;  %v1997_v10 = vld [vmem:[%s17357_s27 + $0x2e10] sm:$0xff]  ;;  %v16034_v7 = vcombine.high %v1869_v28, %v1873_v47  ;;  %v16033_v18 = vcombine.low %v1869_v28, %v1873_v47  ;;  %v14860_v0 = vcombine.high %v694_v36, %v698_v62  ;;  %v670_v28 = vld [vmem:[%s17357_s27 + $0x498] sm:$0xff] }
 0x4d1   : > { %11346 = vmatpush2.bf16.msra.mxu0 %v16057_v40  ;;  %v2001_v31 = vld [vmem:[%s17357_s27 + $0x2e30] sm:$0xff]  ;;  %v14731_v40 = vcombine.low %v566_v37, %v570_v3  ;;  %v674_v47 = vld [vmem:[%s17357_s27 + $0x4b8] sm:$0xff] }
 0x4d2   : > { %11347 = vmatprep.subr.bf16.mxu0 %v16050_v59  ;;  %v16162_v57 = vcombine.high %v1997_v10, %v2001_v31  ;;  %v16161_v58 = vcombine.low %v1997_v10, %v2001_v31  ;;  %v14724_v59 = vcombine.high %v558_v12, %v562_v41  ;;  %v14715_v10 = vcombine.low %v550_v63, %v554_v22  ;;  %v666_v8 = vld [vmem:[%s17357_s27 + $0x478] sm:$0xff] }
 0x4d3   : > { %11389 = vmatpush2.bf16.msra.mxu1 %v16185_v27  ;;  %v14859_v27 = vcombine.low %v694_v36, %v698_v62  ;;  %v14835_v4 = vcombine.low %v670_v28, %v674_v47  ;;  %v654_v55 = vld [vmem:[%s17357_s27 + $0x418] sm:$0xff]  ;;  %v14827_v23 = vcombine.low %v662_v24, %v666_v8 }
 0x4d4   : > { %11390 = vmatprep.subr.bf16.mxu1 %v16178_v53  ;;  %v14852_v53 = vcombine.high %v686_v26, %v690_v32  ;;  %v658_v30 = vld [vmem:[%s17357_s27 + $0x438] sm:$0xff] }
 0x4d5   : > { %11348 = vmatpush2.bf16.msra.mxu0 %v16049_v11  ;;  %v14716_v11 = vcombine.high %v550_v63, %v554_v22  ;;  %v774_v37 = vld [vmem:[%s17357_s27 + $0x7d8] sm:$0xff]  ;;  %v14819_v62 = vcombine.low %v654_v55, %v658_v30 }
 0x4d6   : > { %11349 = vmatprep.subr.bf16.mxu0 %v16042_v43  ;;  %v542_v43 = vld [vmem:[%s17357_s27 + $0x98] sm:$0xff] }
 0x4d7   : > { %11391 = vmatpush2.bf16.msra.mxu1 %v16177_v49  ;;  %v778_v3 = vld [vmem:[%s17357_s27 + $0x7f8] sm:$0xff] }
 0x4d8   : > { %11392 = vmatprep.subr.bf16.mxu1 %v16170_v21  ;;  %v546_v21 = vld [vmem:[%s17357_s27 + $0xb8] sm:$0xff] }
 0x4d9   : > { %11350 = vmatpush2.bf16.msra.mxu0 %v16041_v54  ;;  %v14708_v54 = vcombine.high %v542_v43, %v546_v21  ;;  %v14707_v42 = vcombine.low %v542_v43, %v546_v21  ;;  %v766_v12 = vld [vmem:[%s17357_s27 + $0x798] sm:$0xff] }
 0x4da   : > { %11351 = vmatprep.subr.bf16.mxu0 %v16034_v7  ;;  %v534_v7 = vld [vmem:[%s17357_s27 + $0x58] sm:$0xff] }
 0x4db   : > { %11393 = vmatpush2.bf16.msra.mxu1 %v16169_v6  ;;  %v14836_v6 = vcombine.high %v670_v28, %v674_v47  ;;  %v770_v41 = vld [vmem:[%s17357_s27 + $0x7b8] sm:$0xff] }
 0x4dc   : > { %11394 = vmatprep.subr.bf16.mxu1 %v16162_v57  ;;  %v538_v57 = vld [vmem:[%s17357_s27 + $0x78] sm:$0xff] }
 0x4dd   : > { %11352 = vmatpush2.bf16.msra.mxu0 %v16033_v18  ;;  %v14700_v18 = vcombine.high %v534_v7, %v538_v57  ;;  %v14699_v51 = vcombine.low %v534_v7, %v538_v57  ;;  %v758_v63 = vld [vmem:[%s17357_s27 + $0x758] sm:$0xff] }
 0x4de   : > { %11407 = vmatprep.subr.bf16.mxu0 %v14748_v44  ;;  %v526_v44 = vld [vmem:[%s17357_s27 + $0x18] sm:$0xff] }
 0x4df   : > { %11395 = vmatpush2.bf16.msra.mxu1 %v16161_v58  ;;  %v14828_v58 = vcombine.high %v662_v24, %v666_v8  ;;  %v762_v22 = vld [vmem:[%s17357_s27 + $0x778] sm:$0xff] }
 0x4e0   : > { %11450 = vmatprep.subr.bf16.mxu1 %v14876_v56  ;;  %11354 = vmatmul.mubr.bf16.vlgmr.msra.gmra.mxu0 %v17938_v2  ;;  %v530_v56 = vld [vmem:[%s17357_s27 + $0x38] sm:$0xff]  ;;  %v14923_v47 = vcombine.low %v758_v63, %v762_v22 }
 0x4e1   : > { %11408 = vmatpush1.bf16.msra.mxu0 %v14747_v29  ;;  %11439 = vmatprep.mubr.bf16.mxu0 %v17402_v20  ;;  %v682_v20 = vld [vmem:[%s17357_s27 + $0x4f8] sm:$0xff]  ;;  %v14692_v29 = vcombine.high %v526_v44, %v530_v56  ;;  %v14691_v36 = vcombine.low %v526_v44, %v530_v56 }
 0x4e2   : > { %11397 = vmatmul.mubr.bf16.vlgmr.msra.gmra.mxu1 %v17944_v5  ;;  %11409 = vmatprep.subr.bf16.mxu0 %v14740_v38  ;;  %v14844_v49 = vcombine.high %v678_v33, %v682_v20  ;;  %v14843_v31 = vcombine.low %v678_v33, %v682_v20  ;;  %v646_v38 = vld [vmem:[%s17357_s27 + $0x3d8] sm:$0xff]  ;;  %v14931_v20 = vcombine.low %v766_v12, %v770_v41 }
 0x4e3   : > { %11451 = vmatpush1.bf16.msra.mxu1 %v14875_v19  ;;  %11482 = vmatprep.mubr.bf16.mxu1 %v17414_v25  ;;  %v14851_v25 = vcombine.low %v686_v26, %v690_v32  ;;  %v14820_v19 = vcombine.high %v654_v55, %v658_v30  ;;  %v14939_v32 = vcombine.low %v774_v37, %v778_v3  ;;  %v750_v43 = vld [vmem:[%s17357_s27 + $0x718] sm:$0xff] }
 0x4e4   : > { %11452 = vmatprep.subr.bf16.mxu1 %v14868_v50  ;;  %v650_v50 = vld [vmem:[%s17357_s27 + $0x3f8] sm:$0xff] }
 0x4e5   : > { %11410 = vmatpush1.bf16.msra.mxu0 %v14739_v1  ;;  %v14812_v1 = vcombine.high %v646_v38, %v650_v50  ;;  %v14811_v26 = vcombine.low %v646_v38, %v650_v50  ;;  %v754_v21 = vld [vmem:[%s17357_s27 + $0x738] sm:$0xff] }
 0x4e6   : > { %11411 = vmatprep.subr.bf16.mxu0 %v14732_v15  ;;  %v638_v15 = vld [vmem:[%s17357_s27 + $0x398] sm:$0xff]  ;;  %v14915_v8 = vcombine.low %v750_v43, %v754_v21 }
 0x4e7   : > { %11453 = vmatpush1.bf16.msra.mxu1 %v14867_v52  ;;  %v14940_v52 = vcombine.high %v774_v37, %v778_v3  ;;  %v742_v7 = vld [vmem:[%s17357_s27 + $0x6d8] sm:$0xff] }
 0x4e8   : > { %11454 = vmatprep.subr.bf16.mxu1 %v14860_v0  ;;  %v642_v0 = vld [vmem:[%s17357_s27 + $0x3b8] sm:$0xff] }
 0x4e9   : > { %11412 = vmatpush1.bf16.msra.mxu0 %v14731_v40  ;;  %v14804_v40 = vcombine.high %v638_v15, %v642_v0  ;;  %v14803_v33 = vcombine.low %v638_v15, %v642_v0  ;;  %v746_v57 = vld [vmem:[%s17357_s27 + $0x6f8] sm:$0xff] }
 0x4ea   : > { %11413 = vmatprep.subr.bf16.mxu0 %v14724_v59  ;;  %v630_v59 = vld [vmem:[%s17357_s27 + $0x358] sm:$0xff]  ;;  %v14907_v30 = vcombine.low %v742_v7, %v746_v57 }
 0x4eb   : > { %11455 = vmatpush1.bf16.msra.mxu1 %v14859_v27  ;;  %v14932_v27 = vcombine.high %v766_v12, %v770_v41  ;;  %v734_v44 = vld [vmem:[%s17357_s27 + $0x698] sm:$0xff] }
 0x4ec   : > { %11456 = vmatprep.subr.bf16.mxu1 %v14852_v53  ;;  %v634_v53 = vld [vmem:[%s17357_s27 + $0x378] sm:$0xff] }
 0x4ed   : > { %11414 = vmatpush1.bf16.msra.mxu0 %v14723_v34  ;;  %v14796_v34 = vcombine.high %v630_v59, %v634_v53  ;;  %v14795_v28 = vcombine.low %v630_v59, %v634_v53  ;;  %v738_v56 = vld [vmem:[%s17357_s27 + $0x6b8] sm:$0xff] }
 0x4ee   : > { %11415 = vmatprep.subr.bf16.mxu0 %v14716_v11  ;;  %v622_v11 = vld [vmem:[%s17357_s27 + $0x318] sm:$0xff]  ;;  %v14899_v3 = vcombine.low %v734_v44, %v738_v56 }
 0x4ef   : > { %11457 = vmatpush1.bf16.msra.mxu1 %v14851_v25  ;;  %v14924_v25 = vcombine.high %v758_v63, %v762_v22  ;;  %v726_v38 = vld [vmem:[%s17357_s27 + $0x658] sm:$0xff] }
 0x4f0   : > { %11458 = vmatprep.subr.bf16.mxu1 %v14844_v49  ;;  %v626_v49 = vld [vmem:[%s17357_s27 + $0x338] sm:$0xff] }
 0x4f1   : > { %11416 = vmatpush1.bf16.msra.mxu0 %v14715_v10  ;;  %v14788_v10 = vcombine.high %v622_v11, %v626_v49  ;;  %v14787_v24 = vcombine.low %v622_v11, %v626_v49  ;;  %v730_v50 = vld [vmem:[%s17357_s27 + $0x678] sm:$0xff] }
 0x4f2   : > { %11417 = vmatprep.subr.bf16.mxu0 %v14708_v54  ;;  %v614_v54 = vld [vmem:[%s17357_s27 + $0x2d8] sm:$0xff]  ;;  %v14891_v41 = vcombine.low %v726_v38, %v730_v50 }
 0x4f3   : > { %11459 = vmatpush1.bf16.msra.mxu1 %v14843_v31  ;;  %v14916_v31 = vcombine.high %v750_v43, %v754_v21  ;;  %v718_v15 = vld [vmem:[%s17357_s27 + $0x618] sm:$0xff] }
 0x4f4   : > { %11460 = vmatprep.subr.bf16.mxu1 %v14836_v6  ;;  %v618_v6 = vld [vmem:[%s17357_s27 + $0x2f8] sm:$0xff] }
 0x4f5   : > { %11418 = vmatpush1.bf16.msra.mxu0 %v14707_v42  ;;  %v14780_v42 = vcombine.high %v614_v54, %v618_v6  ;;  %v14779_v55 = vcombine.low %v614_v54, %v618_v6  ;;  %v722_v0 = vld [vmem:[%s17357_s27 + $0x638] sm:$0xff]  ;;  %v20582_v54 = vld [vmem:[#allocation8_spill] sm:$0xff] }
 0x4f6   : > { %11419 = vmatprep.subr.bf16.mxu0 %v14700_v18  ;;  %v606_v18 = vld [vmem:[%s17357_s27 + $0x298] sm:$0xff]  ;;  %v14883_v22 = vcombine.low %v718_v15, %v722_v0 }
 0x4f7   : > { %11461 = vmatpush1.bf16.msra.mxu1 %v14835_v4  ;;  %v14908_v4 = vcombine.high %v742_v7, %v746_v57  ;;  %v966_v59 = vld [vmem:[%s17357_s27 + $0xdd8] sm:$0xff]  ;;  %v20583_v57 = vld [vmem:[#allocation9_spill] sm:$0xff] }
 0x4f8   : > { %11462 = vmatprep.subr.bf16.mxu1 %v14828_v58  ;;  %v610_v58 = vld [vmem:[%s17357_s27 + $0x2b8] sm:$0xff] }
 0x4f9   : > { %11420 = vmatpush1.bf16.msra.mxu0 %v14699_v51  ;;  %v14772_v51 = vcombine.high %v606_v18, %v610_v58  ;;  %v14771_v37 = vcombine.low %v606_v18, %v610_v58  ;;  %v970_v53 = vld [vmem:[%s17357_s27 + $0xdf8] sm:$0xff] }
 0x4fa   : > { %11421 = vmatprep.subr.bf16.mxu0 %v14692_v29  ;;  %v598_v29 = vld [vmem:[%s17357_s27 + $0x258] sm:$0xff]  ;;  %v15131_v21 = vcombine.low %v966_v59, %v970_v53 }
 0x4fb   : > { %11463 = vmatpush1.bf16.msra.mxu1 %v14827_v23  ;;  %v14900_v23 = vcombine.high %v734_v44, %v738_v56  ;;  %v958_v11 = vld [vmem:[%s17357_s27 + $0xd98] sm:$0xff]  ;;  %v20584_v44 = vld [vmem:[#allocation10_spill] sm:$0xff] }
 0x4fc   : > { %11464 = vmatprep.subr.bf16.mxu1 %v14820_v19  ;;  %v602_v19 = vld [vmem:[%s17357_s27 + $0x278] sm:$0xff] }
 0x4fd   : > { %11422 = vmatpush1.bf16.msra.mxu0 %v14691_v36  ;;  %v14764_v36 = vcombine.high %v598_v29, %v602_v19  ;;  %v14763_v12 = vcombine.low %v598_v29, %v602_v19  ;;  %v962_v49 = vld [vmem:[%s17357_s27 + $0xdb8] sm:$0xff] }
 0x4fe   : > { %11423 = vmatprep.subr.bf16.mxu0 %v14812_v1  ;;  %v590_v1 = vld [vmem:[%s17357_s27 + $0x218] sm:$0xff] }
 0x4ff   : > { %11465 = vmatpush1.bf16.msra.mxu1 %v14819_v62  ;;  %v14892_v62 = vcombine.high %v726_v38, %v730_v50  ;;  %v950_v6 = vld [vmem:[%s17357_s27 + $0xd58] sm:$0xff] }
 0x500   : > { %11466 = vmatprep.subr.bf16.mxu1 %v14940_v52  ;;  %v594_v52 = vld [vmem:[%s17357_s27 + $0x238] sm:$0xff] }
 0x501   : > { %11424 = vmatpush2.bf16.msra.mxu0 %v14811_v26  ;;  %v14756_v26 = vcombine.high %v590_v1, %v594_v52  ;;  %v14755_v63 = vcombine.low %v590_v1, %v594_v52  ;;  %v954_v7 = vld [vmem:[%s17357_s27 + $0xd78] sm:$0xff] }
 0x502   : > { %11425 = vmatprep.subr.bf16.mxu0 %v14804_v40  ;;  %v838_v40 = vld [vmem:[%s17357_s27 + $0x9d8] sm:$0xff] }
 0x503   : > { %11467 = vmatpush2.bf16.msra.mxu1 %v14939_v32  ;;  %v14884_v32 = vcombine.high %v718_v15, %v722_v0  ;;  %v814_v18 = vld [vmem:[%s17357_s27 + $0x918] sm:$0xff] }
 0x504   : > { %11468 = vmatprep.subr.bf16.mxu1 %v14932_v27  ;;  %v842_v27 = vld [vmem:[%s17357_s27 + $0x9f8] sm:$0xff] }
 0x505   : > { %11426 = vmatpush2.bf16.msra.mxu0 %v14803_v33  ;;  %v15004_v33 = vcombine.high %v838_v40, %v842_v27  ;;  %v15003_v43 = vcombine.low %v838_v40, %v842_v27  ;;  %v818_v58 = vld [vmem:[%s17357_s27 + $0x938] sm:$0xff] }
 0x506   : > { %11427 = vmatprep.subr.bf16.mxu0 %v14796_v34  ;;  %v830_v34 = vld [vmem:[%s17357_s27 + $0x998] sm:$0xff]  ;;  %v14980_v29 = vcombine.high %v814_v18, %v818_v58 }
 0x507   : > { %11469 = vmatpush2.bf16.msra.mxu1 %v14931_v20  ;;  %v15132_v20 = vcombine.high %v966_v59, %v970_v53  ;;  %v942_v56 = vld [vmem:[%s17357_s27 + $0xd18] sm:$0xff] }
 0x508   : > { %11470 = vmatprep.subr.bf16.mxu1 %v14924_v25  ;;  %v834_v25 = vld [vmem:[%s17357_s27 + $0x9b8] sm:$0xff] }
 0x509   : > { %11428 = vmatpush2.bf16.msra.mxu0 %v14795_v28  ;;  %v14996_v28 = vcombine.high %v830_v34, %v834_v25  ;;  %v806_v38 = vld [vmem:[%s17357_s27 + $0x8d8] sm:$0xff] }
 0x50a   : > { %11429 = vmatprep.subr.bf16.mxu0 %v14788_v10  ;;  %v822_v10 = vld [vmem:[%s17357_s27 + $0x958] sm:$0xff] }
 0x50b   : > { %11471 = vmatpush2.bf16.msra.mxu1 %v14923_v47  ;;  %v15124_v47 = vcombine.high %v958_v11, %v962_v49  ;;  %v810_v50 = vld [vmem:[%s17357_s27 + $0x8f8] sm:$0xff] }
 0x50c   : > { %11472 = vmatprep.subr.bf16.mxu1 %v14916_v31  ;;  %v826_v31 = vld [vmem:[%s17357_s27 + $0x978] sm:$0xff]  ;;  %v14972_v1 = vcombine.high %v806_v38, %v810_v50 }
 0x50d   : > { %11430 = vmatpush2.bf16.msra.mxu0 %v14787_v24  ;;  %v14995_v24 = vcombine.low %v830_v34, %v834_v25  ;;  %v798_v15 = vld [vmem:[%s17357_s27 + $0x898] sm:$0xff] }
 0x50e   : > { %11431 = vmatprep.subr.bf16.mxu0 %v14780_v42  ;;  %v14988_v42 = vcombine.high %v822_v10, %v826_v31  ;;  %v802_v0 = vld [vmem:[%s17357_s27 + $0x8b8] sm:$0xff] }
 0x50f   : > { %11473 = vmatpush2.bf16.msra.mxu1 %v14915_v8  ;;  %v15123_v8 = vcombine.low %v958_v11, %v962_v49  ;;  %v14964_v40 = vcombine.high %v798_v15, %v802_v0  ;;  %v790_v59 = vld [vmem:[%s17357_s27 + $0x858] sm:$0xff] }
 0x510   : > { %11474 = vmatprep.subr.bf16.mxu1 %v14908_v4  ;;  %v15116_v4 = vcombine.high %v950_v6, %v954_v7  ;;  %v794_v53 = vld [vmem:[%s17357_s27 + $0x878] sm:$0xff] }
 0x511   : > { %11432 = vmatpush2.bf16.msra.mxu0 %v14779_v55  ;;  %v946_v55 = vld [vmem:[%s17357_s27 + $0xd38] sm:$0xff]  ;;  %v14956_v34 = vcombine.high %v790_v59, %v794_v53 }
 0x512   : > { %11433 = vmatprep.subr.bf16.mxu0 %v14772_v51  ;;  %v14987_v51 = vcombine.low %v822_v10, %v826_v31  ;;  %v15108_v19 = vcombine.high %v942_v56, %v946_v55  ;;  %v782_v11 = vld [vmem:[%s17357_s27 + $0x818] sm:$0xff] }
 0x513   : > { %11475 = vmatpush2.bf16.msra.mxu1 %v14907_v30  ;;  %v20585_v30 = vld [vmem:[#allocation11_spill] sm:$0xff] }
 0x514   : > { %11476 = vmatprep.subr.bf16.mxu1 %v14900_v23  ;;  %v15115_v23 = vcombine.low %v950_v6, %v954_v7  ;;  %v786_v49 = vld [vmem:[%s17357_s27 + $0x838] sm:$0xff] }
 0x515   : > { %11434 = vmatpush2.bf16.msra.mxu0 %v14771_v37  ;;  %v934_v37 = vld [vmem:[%s17357_s27 + $0xcd8] sm:$0xff]  ;;  %v14948_v10 = vcombine.high %v782_v11, %v786_v49 }
 0x516   : > { %11435 = vmatprep.subr.bf16.mxu0 %v14764_v36  ;;  %v14979_v36 = vcombine.low %v814_v18, %v818_v58  ;;  %v906_v6 = vld [vmem:[%s17357_s27 + $0xbf8] sm:$0xff] }
 0x517   : > { %11477 = vmatpush2.bf16.msra.mxu1 %v14899_v3  ;;  %v938_v3 = vld [vmem:[%s17357_s27 + $0xcf8] sm:$0xff] }
 0x518   : > { %11478 = vmatprep.subr.bf16.mxu1 %v14892_v62  ;;  %v15107_v62 = vcombine.low %v942_v56, %v946_v55  ;;  %v15100_v52 = vcombine.high %v934_v37, %v938_v3  ;;  %v1030_v7 = vld [vmem:[%s17357_s27 + $0xfd8] sm:$0xff] }
 0x519   : > { %11436 = vmatpush2.bf16.msra.mxu0 %v14763_v12  ;;  %v926_v12 = vld [vmem:[%s17357_s27 + $0xc98] sm:$0xff] }
 0x51a   : > { %11437 = vmatprep.subr.bf16.mxu0 %v14756_v26  ;;  %v14971_v26 = vcombine.low %v806_v38, %v810_v50  ;;  %v894_v18 = vld [vmem:[%s17357_s27 + $0xb98] sm:$0xff] }
 0x51b   : > { %11479 = vmatpush2.bf16.msra.mxu1 %v14891_v41  ;;  %v930_v41 = vld [vmem:[%s17357_s27 + $0xcb8] sm:$0xff] }
 0x51c   : > { %11480 = vmatprep.subr.bf16.mxu1 %v14884_v32  ;;  %v15099_v32 = vcombine.low %v934_v37, %v938_v3  ;;  %v15092_v27 = vcombine.high %v926_v12, %v930_v41  ;;  %v898_v58 = vld [vmem:[%s17357_s27 + $0xbb8] sm:$0xff] }
 0x51d   : > { %11438 = vmatpush2.bf16.msra.mxu0 %v14755_v63  ;;  %v918_v63 = vld [vmem:[%s17357_s27 + $0xc58] sm:$0xff]  ;;  %v15059_v37 = vcombine.low %v894_v18, %v898_v58 }
 0x51e   : > { %11493 = vmatprep.subr.bf16.mxu0 %v15004_v33  ;;  %v14963_v33 = vcombine.low %v798_v15, %v802_v0  ;;  %v1026_v56 = vld [vmem:[%s17357_s27 + $0xfb8] sm:$0xff] }
 0x51f   : > { %11481 = vmatpush2.bf16.msra.mxu1 %v14883_v22  ;;  %v922_v22 = vld [vmem:[%s17357_s27 + $0xc78] sm:$0xff] }
 0x520   : > { %11536 = vmatprep.subr.bf16.mxu1 %v15132_v20  ;;  %11440 = vmatmul.mubr.bf16.vlgmr.msra.gmra.mxu0 %v20582_v54  ;;  %v15091_v20 = vcombine.low %v926_v12, %v930_v41  ;;  %v15084_v25 = vcombine.high %v918_v63, %v922_v22  ;;  %v902_v54 = vld [vmem:[%s17357_s27 + $0xbd8] sm:$0xff] }
 0x521   : > { %11494 = vmatpush1.bf16.msra.mxu0 %v15003_v43  ;;  %11525 = vmatprep.mubr.bf16.mxu0 %v20584_v44  ;;  %v910_v43 = vld [vmem:[%s17357_s27 + $0xc18] sm:$0xff]  ;;  %v15067_v55 = vcombine.low %v902_v54, %v906_v6 }
 0x522   : > { %11483 = vmatmul.mubr.bf16.vlgmr.msra.gmra.mxu1 %v20583_v57  ;;  %11495 = vmatprep.subr.bf16.mxu0 %v14996_v28  ;;  %v14955_v28 = vcombine.low %v790_v59, %v794_v53  ;;  %v1034_v57 = vld [vmem:[%s17357_s27 + $0xff8] sm:$0xff] }
 0x523   : > { %11537 = vmatpush1.bf16.msra.mxu1 %v15131_v21  ;;  %11568 = vmatprep.mubr.bf16.mxu1 %v20585_v30  ;;  %v914_v21 = vld [vmem:[%s17357_s27 + $0xc38] sm:$0xff]  ;;  %v15195_v30 = vcombine.low %v1030_v7, %v1034_v57 }
 0x524   : > { %11538 = vmatprep.subr.bf16.mxu1 %v15124_v47  ;;  %v15083_v47 = vcombine.low %v918_v63, %v922_v22  ;;  %v15076_v31 = vcombine.high %v910_v43, %v914_v21  ;;  %v1022_v44 = vld [vmem:[%s17357_s27 + $0xf98] sm:$0xff] }
 0x525   : > { %11496 = vmatpush1.bf16.msra.mxu0 %v14995_v24  ;;  %v14947_v24 = vcombine.low %v782_v11, %v786_v49  ;;  %v1014_v38 = vld [vmem:[%s17357_s27 + $0xf58] sm:$0xff]  ;;  %v15187_v3 = vcombine.low %v1022_v44, %v1026_v56 }
 0x526   : > { %11497 = vmatprep.subr.bf16.mxu0 %v14988_v42  ;;  %v15068_v42 = vcombine.high %v902_v54, %v906_v6  ;;  %v1018_v50 = vld [vmem:[%s17357_s27 + $0xf78] sm:$0xff] }
 0x527   : > { %11539 = vmatpush1.bf16.msra.mxu1 %v15123_v8  ;;  %v15075_v8 = vcombine.low %v910_v43, %v914_v21  ;;  %v1006_v15 = vld [vmem:[%s17357_s27 + $0xf18] sm:$0xff]  ;;  %v15179_v41 = vcombine.low %v1014_v38, %v1018_v50 }
 0x528   : > { %11540 = vmatprep.subr.bf16.mxu1 %v15116_v4  ;;  %v15196_v4 = vcombine.high %v1030_v7, %v1034_v57  ;;  %v1010_v0 = vld [vmem:[%s17357_s27 + $0xf38] sm:$0xff] }
 0x529   : > { %11498 = vmatpush1.bf16.msra.mxu0 %v14987_v51  ;;  %v15060_v51 = vcombine.high %v894_v18, %v898_v58  ;;  %v998_v59 = vld [vmem:[%s17357_s27 + $0xed8] sm:$0xff]  ;;  %v15171_v22 = vcombine.low %v1006_v15, %v1010_v0 }
 0x52a   : > { %11499 = vmatprep.subr.bf16.mxu0 %v14980_v29  ;;  %v886_v29 = vld [vmem:[%s17357_s27 + $0xb58] sm:$0xff] }
 0x52b   : > { %11541 = vmatpush1.bf16.msra.mxu1 %v15115_v23  ;;  %v15188_v23 = vcombine.high %v1022_v44, %v1026_v56  ;;  %v1002_v53 = vld [vmem:[%s17357_s27 + $0xef8] sm:$0xff] }
 0x52c   : > { %11542 = vmatprep.subr.bf16.mxu1 %v15108_v19  ;;  %v890_v19 = vld [vmem:[%s17357_s27 + $0xb78] sm:$0xff]  ;;  %v15163_v21 = vcombine.low %v998_v59, %v1002_v53 }
 0x52d   : > { %11500 = vmatpush1.bf16.msra.mxu0 %v14979_v36  ;;  %v15052_v36 = vcombine.high %v886_v29, %v890_v19  ;;  %v15051_v12 = vcombine.low %v886_v29, %v890_v19  ;;  %v990_v11 = vld [vmem:[%s17357_s27 + $0xe98] sm:$0xff] }
 0x52e   : > { %11501 = vmatprep.subr.bf16.mxu0 %v14972_v1  ;;  %v878_v1 = vld [vmem:[%s17357_s27 + $0xb18] sm:$0xff] }
 0x52f   : > { %11543 = vmatpush1.bf16.msra.mxu1 %v15107_v62  ;;  %v15180_v62 = vcombine.high %v1014_v38, %v1018_v50  ;;  %v994_v49 = vld [vmem:[%s17357_s27 + $0xeb8] sm:$0xff]  ;;  %v19088_v50 = vpop.f32.mrf.mxu0 }
 0x530   : > { %11544 = vmatprep.subr.bf16.mxu1 %v15100_v52  ;;  %v882_v52 = vld [vmem:[%s17357_s27 + $0xb38] sm:$0xff]  ;;  %v15155_v57 = vcombine.low %v990_v11, %v994_v49 }
 0x531   : > { %11502 = vmatpush1.bf16.msra.mxu0 %v14971_v26  ;;  %v15044_v26 = vcombine.high %v878_v1, %v882_v52  ;;  %v15043_v63 = vcombine.low %v878_v1, %v882_v52  ;;  %v982_v54 = vld [vmem:[%s17357_s27 + $0xe58] sm:$0xff] }
 0x532   : > { %11503 = vmatprep.subr.bf16.mxu0 %v14964_v40  ;;  %v870_v40 = vld [vmem:[%s17357_s27 + $0xad8] sm:$0xff] }
 0x533   : > { %11545 = vmatpush1.bf16.msra.mxu1 %v15099_v32  ;;  %v15172_v32 = vcombine.high %v1006_v15, %v1010_v0  ;;  %v986_v6 = vld [vmem:[%s17357_s27 + $0xe78] sm:$0xff] }
 0x534   : > { %11546 = vmatprep.subr.bf16.mxu1 %v15092_v27  ;;  %v874_v27 = vld [vmem:[%s17357_s27 + $0xaf8] sm:$0xff]  ;;  %v15147_v56 = vcombine.low %v982_v54, %v986_v6 }
 0x535   : > { %11504 = vmatpush1.bf16.msra.mxu0 %v14963_v33  ;;  %v15036_v33 = vcombine.high %v870_v40, %v874_v27  ;;  %v15035_v43 = vcombine.low %v870_v40, %v874_v27  ;;  %v974_v18 = vld [vmem:[%s17357_s27 + $0xe18] sm:$0xff] }
 0x536   : > { %11505 = vmatprep.subr.bf16.mxu0 %v14956_v34  ;;  %v862_v34 = vld [vmem:[%s17357_s27 + $0xa98] sm:$0xff] }
 0x537   : > { %11547 = vmatpush1.bf16.msra.mxu1 %v15091_v20  ;;  %v15164_v20 = vcombine.high %v998_v59, %v1002_v53  ;;  %v978_v58 = vld [vmem:[%s17357_s27 + $0xe38] sm:$0xff] }
 0x538   : > { %11548 = vmatprep.subr.bf16.mxu1 %v15084_v25  ;;  %v866_v25 = vld [vmem:[%s17357_s27 + $0xab8] sm:$0xff] }
 0x539   : > { %11506 = vmatpush1.bf16.msra.mxu0 %v14955_v28  ;;  %v15028_v28 = vcombine.high %v862_v34, %v866_v25  ;;  %v15027_v7 = vcombine.low %v862_v34, %v866_v25  ;;  %v1222_v29 = vld [vmem:[%s17357_s27 + $0x15d8] sm:$0xff] }
 0x53a   : > { %11507 = vmatprep.subr.bf16.mxu0 %v14948_v10  ;;  %v854_v10 = vld [vmem:[%s17357_s27 + $0xa58] sm:$0xff] }
 0x53b   : > { %11549 = vmatpush1.bf16.msra.mxu1 %v15083_v47  ;;  %v15156_v47 = vcombine.high %v990_v11, %v994_v49  ;;  %v1226_v19 = vld [vmem:[%s17357_s27 + $0x15f8] sm:$0xff] }
 0x53c   : > { %11550 = vmatprep.subr.bf16.mxu1 %v15076_v31  ;;  %v858_v31 = vld [vmem:[%s17357_s27 + $0xa78] sm:$0xff] }
 0x53d   : > { %11508 = vmatpush1.bf16.msra.mxu0 %v14947_v24  ;;  %v15020_v24 = vcombine.high %v854_v10, %v858_v31  ;;  %v15019_v44 = vcombine.low %v854_v10, %v858_v31  ;;  %v1086_v1 = vld [vmem:[%s17357_s27 + $0x1198] sm:$0xff]  ;;  %v20588_v10 = vld [vmem:[#allocation14_spill] sm:$0xff] }
 0x53e   : > { %11509 = vmatprep.subr.bf16.mxu0 %v15068_v42  ;;  %v846_v42 = vld [vmem:[%s17357_s27 + $0xa18] sm:$0xff] }
 0x53f   : > { %11551 = vmatpush1.bf16.msra.mxu1 %v15075_v8  ;;  %v15148_v8 = vcombine.high %v982_v54, %v986_v6  ;;  %v1090_v52 = vld [vmem:[%s17357_s27 + $0x11b8] sm:$0xff] }
 0x540   : > { %11552 = vmatprep.subr.bf16.mxu1 %v15196_v4  ;;  %v850_v4 = vld [vmem:[%s17357_s27 + $0xa38] sm:$0xff]  ;;  %v15251_v34 = vcombine.low %v1086_v1, %v1090_v52 }
 0x541   : > { %11510 = vmatpush2.bf16.msra.mxu0 %v15067_v55  ;;  %v15012_v55 = vcombine.high %v846_v42, %v850_v4  ;;  %v15011_v38 = vcombine.low %v846_v42, %v850_v4  ;;  %v1214_v15 = vld [vmem:[%s17357_s27 + $0x1598] sm:$0xff] }
 0x542   : > { %11511 = vmatprep.subr.bf16.mxu0 %v15060_v51  ;;  %v1094_v51 = vld [vmem:[%s17357_s27 + $0x11d8] sm:$0xff] }
 0x543   : > { %11553 = vmatpush2.bf16.msra.mxu1 %v15195_v30  ;;  %v15140_v30 = vcombine.high %v974_v18, %v978_v58  ;;  %v1218_v0 = vld [vmem:[%s17357_s27 + $0x15b8] sm:$0xff] }
 0x544   : > { %11554 = vmatprep.subr.bf16.mxu1 %v15188_v23  ;;  %v1098_v23 = vld [vmem:[%s17357_s27 + $0x11f8] sm:$0xff]  ;;  %v15380_v27 = vcombine.high %v1214_v15, %v1218_v0  ;;  %v15379_v11 = vcombine.low %v1214_v15, %v1218_v0 }
 0x545   : > { %11512 = vmatpush2.bf16.msra.mxu0 %v15059_v37  ;;  %v15139_v37 = vcombine.low %v974_v18, %v978_v58  ;;  %v1078_v59 = vld [vmem:[%s17357_s27 + $0x1158] sm:$0xff] }
 0x546   : > { %11513 = vmatprep.subr.bf16.mxu0 %v15052_v36  ;;  %v19090_v36 = vpop.f32.mrf.mxu1  ;;  %v1082_v53 = vld [vmem:[%s17357_s27 + $0x1178] sm:$0xff] }
 0x547   : > { %11555 = vmatpush2.bf16.msra.mxu1 %v15187_v3  ;;  %v15260_v3 = vcombine.high %v1094_v51, %v1098_v23  ;;  %v15244_v49 = vcombine.high %v1078_v59, %v1082_v53  ;;  %v1198_v31 = vld [vmem:[%s17357_s27 + $0x1518] sm:$0xff] }
 0x548   : > { %11556 = vmatprep.subr.bf16.mxu1 %v15180_v62  ;;  %v15388_v62 = vcombine.high %v1222_v29, %v1226_v19  ;;  %v19098_v40 = vpop.f32.mrf.mxu1  ;;  %v1202_v54 = vld [vmem:[%s17357_s27 + $0x1538] sm:$0xff] }
 0x549   : > { %11514 = vmatpush2.bf16.msra.mxu0 %v15051_v12  ;;  %v15259_v12 = vcombine.low %v1094_v51, %v1098_v23  ;;  %v20589_v6 = vld [vmem:[#allocation15_spill] sm:$0xff]  ;;  %v15364_v4 = vcombine.high %v1198_v31, %v1202_v54  ;;  %v15363_v23 = vcombine.low %v1198_v31, %v1202_v54 }
 0x54a   : > { %11515 = vmatprep.subr.bf16.mxu0 %v15044_v26  ;;  %v15387_v26 = vcombine.low %v1222_v29, %v1226_v19  ;;  %v1062_v18 = vld [vmem:[%s17357_s27 + $0x10d8] sm:$0xff] }
 0x54b   : > { %11557 = vmatpush2.bf16.msra.mxu1 %v15179_v41  ;;  %v19096_v41 = vpop.f32.mrf.mxu0  ;;  %v1066_v58 = vld [vmem:[%s17357_s27 + $0x10f8] sm:$0xff] }
 0x54c   : > { %11558 = vmatprep.subr.bf16.mxu1 %v15172_v32  ;;  %v15252_v32 = vcombine.high %v1086_v1, %v1090_v52  ;;  %v15228_v29 = vcombine.high %v1062_v18, %v1066_v58  ;;  %v1186_v1 = vld [vmem:[%s17357_s27 + $0x14b8] sm:$0xff]  ;;  %v15227_v15 = vcombine.low %v1062_v18, %v1066_v58 }
 0x54d   : > { %11516 = vmatpush2.bf16.msra.mxu0 %v15043_v63  ;;  %v20586_v63 = vld [vmem:[#allocation12_spill] sm:$0xff]  ;;  %v19106_v25 = vpop.f32.mrf.mxu0  ;;  %v1158_v18 = vld [vmem:[%s17357_s27 + $0x13d8] sm:$0xff] }
 0x54e   : > { %11517 = vmatprep.subr.bf16.mxu0 %v15036_v33  ;;  %v1210_v33 = vld [vmem:[%s17357_s27 + $0x1578] sm:$0xff] }
 0x54f   : > { %11559 = vmatpush2.bf16.msra.mxu1 %v15171_v22  ;;  %v1206_v22 = vld [vmem:[%s17357_s27 + $0x1558] sm:$0xff] }
 0x550   : > { %11560 = vmatprep.subr.bf16.mxu1 %v15164_v20  ;;  %v20587_v20 = vld [vmem:[#allocation13_spill] sm:$0xff]  ;;  %v1162_v58 = vld [vmem:[%s17357_s27 + $0x13f8] sm:$0xff] }
 0x551   : > { %11518 = vmatpush2.bf16.msra.mxu0 %v15035_v43  ;;  %v19108_v43 = vpop.f32.mrf.mxu1 }
 0x552   : > { %11519 = vmatprep.subr.bf16.mxu0 %v15028_v28  ;;  %v1070_v28 = vld [vmem:[%s17357_s27 + $0x1118] sm:$0xff] }
 0x553   : > { %11561 = vmatpush2.bf16.msra.mxu1 %v15163_v21  ;;  %v15372_v21 = vcombine.high %v1206_v22, %v1210_v33  ;;  %v19118_v42 = vpop.f32.mrf.mxu1 }
 0x554   : > { %11562 = vmatprep.subr.bf16.mxu1 %v15156_v47  ;;  %v1074_v47 = vld [vmem:[%s17357_s27 + $0x1138] sm:$0xff] }
 0x555   : > { %11520 = vmatpush2.bf16.msra.mxu0 %v15027_v7  ;;  %v15243_v7 = vcombine.low %v1078_v59, %v1082_v53  ;;  %v15235_v51 = vcombine.low %v1070_v28, %v1074_v47  ;;  %v1174_v53 = vld [vmem:[%s17357_s27 + $0x1458] sm:$0xff] }
 0x556   : > { %11521 = vmatprep.subr.bf16.mxu0 %v15020_v24  ;;  %v15371_v24 = vcombine.low %v1206_v22, %v1210_v33 }
 0x557   : > { %11563 = vmatpush2.bf16.msra.mxu1 %v15155_v57  ;;  %v19116_v57 = vpop.f32.mrf.mxu0 }
 0x558   : > { %11564 = vmatprep.subr.bf16.mxu1 %v15148_v8  ;;  %v15236_v8 = vcombine.high %v1070_v28, %v1074_v47  ;;  %v1166_v47 = vld [vmem:[%s17357_s27 + $0x1418] sm:$0xff] }
 0x559   : > { %11522 = vmatpush2.bf16.msra.mxu0 %v15019_v44  ;;  %v19122_v44 = vpop.f32.mrf.mxu0 }
 0x55a   : > { %11523 = vmatprep.subr.bf16.mxu0 %v15012_v55  ;;  %v1194_v55 = vld [vmem:[%s17357_s27 + $0x14f8] sm:$0xff] }
 0x55b   : > { %11565 = vmatpush2.bf16.msra.mxu1 %v15147_v56  ;;  %v1190_v56 = vld [vmem:[%s17357_s27 + $0x14d8] sm:$0xff] }
 0x55c   : > { %11566 = vmatprep.subr.bf16.mxu1 %v15140_v30  ;;  %v19126_v30 = vpop.f32.mrf.mxu1  ;;  %v15356_v19 = vcombine.high %v1190_v56, %v1194_v55  ;;  %v15355_v0 = vcombine.low %v1190_v56, %v1194_v55  ;;  %v1286_v56 = vld [vmem:[%s17357_s27 + $0x17d8] sm:$0xff] }
 0x55d   : > { %11524 = vmatpush2.bf16.msra.mxu0 %v15011_v38  ;;  %v1054_v38 = vld [vmem:[%s17357_s27 + $0x1098] sm:$0xff] }
 0x55e   : > { %11579 = vmatprep.subr.bf16.mxu0 %v15260_v3  ;;  %v19130_v3 = vpop.f32.mrf.mxu0  ;;  %v19134_v52 = vpop.f32.mrf.mxu1  ;;  %v1290_v55 = vld [vmem:[%s17357_s27 + $0x17f8] sm:$0xff] }
 0x55f   : > { %11567 = vmatpush2.bf16.msra.mxu1 %v15139_v37  ;;  %v1058_v37 = vld [vmem:[%s17357_s27 + $0x10b8] sm:$0xff] }
 0x560   : > { %11622 = vmatprep.subr.bf16.mxu1 %v15388_v62  ;;  %11526 = vmatmul.mubr.bf16.vlgmr.msra.gmra.mxu0 %v20586_v63  ;;  %v1182_v62 = vld [vmem:[%s17357_s27 + $0x1498] sm:$0xff]  ;;  %v19138_v59 = vpop.f32.mrf.mxu0  ;;  %v19142_v22 = vpop.f32.mrf.mxu1  ;;  %v15219_v33 = vcombine.low %v1054_v38, %v1058_v37 }
 0x561   : > { %11580 = vmatpush1.bf16.msra.mxu0 %v15259_v12  ;;  %11611 = vmatprep.mubr.bf16.mxu0 %v20588_v10  ;;  %v15220_v12 = vcombine.high %v1054_v38, %v1058_v37  ;;  %v1178_v63 = vld [vmem:[%s17357_s27 + $0x1478] sm:$0xff]  ;;  %v15452_v37 = vcombine.high %v1286_v56, %v1290_v55 }
 0x562   : > { %11569 = vmatmul.mubr.bf16.vlgmr.msra.gmra.mxu1 %v20587_v20  ;;  %11581 = vmatprep.subr.bf16.mxu0 %v15252_v32  ;;  %v1046_v32 = vld [vmem:[%s17357_s27 + $0x1058] sm:$0xff]  ;;  %v15347_v20 = vcombine.low %v1182_v62, %v1186_v1  ;;  %v19146_v28 = vpop.f32.mrf.mxu0  ;;  %v19150_v31 = vpop.f32.mrf.mxu1 }
 0x563   : > { %11623 = vmatpush1.bf16.msra.mxu1 %v15387_v26  ;;  %11654 = vmatprep.mubr.bf16.mxu1 %v20589_v6  ;;  %v15348_v26 = vcombine.high %v1182_v62, %v1186_v1  ;;  %v1170_v10 = vld [vmem:[%s17357_s27 + $0x1438] sm:$0xff] }
 0x564   : > { %11624 = vmatprep.subr.bf16.mxu1 %v15380_v27  ;;  %v1050_v27 = vld [vmem:[%s17357_s27 + $0x1078] sm:$0xff]  ;;  %v19152_v6 = vpop.f32.mrf.mxu0 }
 0x565   : > { %11582 = vmatpush1.bf16.msra.mxu0 %v15251_v34  ;;  %v15212_v34 = vcombine.high %v1046_v32, %v1050_v27  ;;  %v15211_v54 = vcombine.low %v1046_v32, %v1050_v27  ;;  %v1150_v62 = vld [vmem:[%s17357_s27 + $0x1398] sm:$0xff]  ;;  %v15451_v32 = vcombine.low %v1286_v56, %v1290_v55 }
 0x566   : > { %11583 = vmatprep.subr.bf16.mxu0 %v15244_v49  ;;  %v1038_v49 = vld [vmem:[%s17357_s27 + $0x1018] sm:$0xff] }
 0x567   : > { %11625 = vmatpush1.bf16.msra.mxu1 %v15379_v11  ;;  %v15340_v11 = vcombine.high %v1174_v53, %v1178_v63  ;;  %v1154_v1 = vld [vmem:[%s17357_s27 + $0x13b8] sm:$0xff] }
 0x568   : > { %11626 = vmatprep.subr.bf16.mxu1 %v15372_v21  ;;  %v1042_v21 = vld [vmem:[%s17357_s27 + $0x1038] sm:$0xff]  ;;  %v15316_v27 = vcombine.high %v1150_v62, %v1154_v1 }
 0x569   : > { %11584 = vmatpush1.bf16.msra.mxu0 %v15243_v7  ;;  %v15339_v7 = vcombine.low %v1174_v53, %v1178_v63  ;;  %v1266_v56 = vld [vmem:[%s17357_s27 + $0x1738] sm:$0xff] }
 0x56a   : > { %11585 = vmatprep.subr.bf16.mxu0 %v15236_v8  ;;  %v19154_v8 = vpop.f32.mrf.mxu1 }
 0x56b   : > { %11627 = vmatpush1.bf16.msra.mxu1 %v15371_v24  ;;  %v15204_v24 = vcombine.high %v1038_v49, %v1042_v21 }
 0x56c   : > { %11628 = vmatprep.subr.bf16.mxu1 %v15364_v4  ;;  %v15332_v4 = vcombine.high %v1166_v47, %v1170_v10  ;;  %v19162_v38 = vpop.f32.mrf.mxu1 }
 0x56d   : > { %11586 = vmatpush1.bf16.msra.mxu0 %v15235_v51  ;;  %v15203_v51 = vcombine.low %v1038_v49, %v1042_v21  ;;  %v15315_v49 = vcombine.low %v1150_v62, %v1154_v1  ;;  %v1126_v1 = vld [vmem:[%s17357_s27 + $0x12d8] sm:$0xff] }
 0x56e   : > { %11587 = vmatprep.subr.bf16.mxu0 %v15228_v29  ;;  %v15331_v29 = vcombine.low %v1166_v47, %v1170_v10  ;;  %v19170_v53 = vpop.f32.mrf.mxu1 }
 0x56f   : > { %11629 = vmatpush1.bf16.msra.mxu1 %v15363_v23  ;;  %v19160_v23 = vpop.f32.mrf.mxu0 }
 0x570   : > { %11630 = vmatprep.subr.bf16.mxu1 %v15356_v19  ;;  %v15324_v19 = vcombine.high %v1158_v18, %v1162_v58 }
 0x571   : > { %11588 = vmatpush1.bf16.msra.mxu0 %v15227_v15  ;;  %v1278_v15 = vld [vmem:[%s17357_s27 + $0x1798] sm:$0xff] }
 0x572   : > { %11589 = vmatprep.subr.bf16.mxu0 %v15220_v12  ;;  %v15323_v12 = vcombine.low %v1158_v18, %v1162_v58  ;;  %v1262_v58 = vld [vmem:[%s17357_s27 + $0x1718] sm:$0xff] }
 0x573   : > { %11631 = vmatpush1.bf16.msra.mxu1 %v15355_v0  ;;  %v1282_v0 = vld [vmem:[%s17357_s27 + $0x17b8] sm:$0xff]  ;;  %v15428_v62 = vcombine.high %v1262_v58, %v1266_v56 }
 0x574   : > { %11632 = vmatprep.subr.bf16.mxu1 %v15348_v26  ;;  %v19168_v26 = vpop.f32.mrf.mxu0  ;;  %v15444_v63 = vcombine.high %v1278_v15, %v1282_v0  ;;  %v15443_v47 = vcombine.low %v1278_v15, %v1282_v0  ;;  %v1130_v15 = vld [vmem:[%s17357_s27 + $0x12f8] sm:$0xff] }
 0x575   : > { %11590 = vmatpush1.bf16.msra.mxu0 %v15219_v33  ;;  %v1142_v33 = vld [vmem:[%s17357_s27 + $0x1358] sm:$0xff] }
 0x576   : > { %11591 = vmatprep.subr.bf16.mxu0 %v15212_v34  ;;  %v1270_v34 = vld [vmem:[%s17357_s27 + $0x1758] sm:$0xff]  ;;  %v19176_v21 = vpop.f32.mrf.mxu0 }
 0x577   : > { %11633 = vmatpush1.bf16.msra.mxu1 %v15347_v20  ;;  %v1146_v20 = vld [vmem:[%s17357_s27 + $0x1378] sm:$0xff] }
 0x578   : > { %11634 = vmatprep.subr.bf16.mxu1 %v15340_v11  ;;  %v1274_v11 = vld [vmem:[%s17357_s27 + $0x1778] sm:$0xff]  ;;  %v15308_v10 = vcombine.high %v1142_v33, %v1146_v20  ;;  %v19182_v18 = vpop.f32.mrf.mxu0 }
 0x579   : > { %11592 = vmatpush1.bf16.msra.mxu0 %v15211_v54  ;;  %v19178_v54 = vpop.f32.mrf.mxu1 }
 0x57a   : > { %11593 = vmatprep.subr.bf16.mxu0 %v15204_v24  ;;  %v1134_v24 = vld [vmem:[%s17357_s27 + $0x1318] sm:$0xff]  ;;  %v19192_v0 = vpop.f32.mrf.mxu0 }
 0x57b   : > { %11635 = vmatpush1.bf16.msra.mxu1 %v15339_v7  ;;  %v15436_v7 = vcombine.high %v1270_v34, %v1274_v11  ;;  %v19186_v55 = vpop.f32.mrf.mxu1 }
 0x57c   : > { %11636 = vmatprep.subr.bf16.mxu1 %v15332_v4  ;;  %v1138_v4 = vld [vmem:[%s17357_s27 + $0x1338] sm:$0xff] }
 0x57d   : > { %11594 = vmatpush1.bf16.msra.mxu0 %v15203_v51  ;;  %v15307_v51 = vcombine.low %v1142_v33, %v1146_v20  ;;  %v19199_v33 = vpop.f32.mrf.mxu1  ;;  %v15292_v20 = vcombine.high %v1126_v1, %v1130_v15 }
 0x57e   : > { %11595 = vmatprep.subr.bf16.mxu0 %v15324_v19  ;;  %v15300_v19 = vcombine.high %v1134_v24, %v1138_v4 }
 0x57f   : > { %11637 = vmatpush1.bf16.msra.mxu1 %v15331_v29  ;;  %v15435_v29 = vcombine.low %v1270_v34, %v1274_v11  ;;  %v10973_v34 = vadd.f32 %v19108_v43, %v19106_v25  ;;  %v19214_v25 = vpop.f32.mrf.mxu1  ;;  %v15291_v43 = vcombine.low %v1126_v1, %v1130_v15 }
 0x580   : > { %11638 = vmatprep.subr.bf16.mxu1 %v15452_v37  ;;  %v10969_v37 = vadd.f32 %v19090_v36, %v19088_v50  ;;  %v15299_v50 = vcombine.low %v1134_v24, %v1138_v4  ;;  %v15427_v36 = vcombine.low %v1262_v58, %v1266_v56 }
 0x581   : > { %11596 = vmatpush2.bf16.msra.mxu0 %v15323_v12  ;;  %v1254_v12 = vld [vmem:[%s17357_s27 + $0x16d8] sm:$0xff]  ;;  %v11016_v4 = vadd.f32 %v19138_v59, %v10973_v34  ;;  %v19225_v15 = vpop.f32.mrf.mxu1 }
 0x582   : > { %11597 = vmatprep.subr.bf16.mxu0 %v15316_v27  ;;  %v10971_v27 = vadd.f32 %v19098_v40, %v19096_v41  ;;  %v1118_v41 = vld [vmem:[%s17357_s27 + $0x1298] sm:$0xff] }
 0x583   : > { %11639 = vmatpush2.bf16.msra.mxu1 %v15451_v32  ;;  %v1258_v32 = vld [vmem:[%s17357_s27 + $0x16f8] sm:$0xff] }
 0x584   : > { %11640 = vmatprep.subr.bf16.mxu1 %v15444_v63  ;;  %v11012_v63 = vadd.f32 %v19122_v44, %v10969_v37  ;;  %v11014_v11 = vadd.f32 %v19130_v3, %v10971_v27  ;;  %v1122_v40 = vld [vmem:[%s17357_s27 + $0x12b8] sm:$0xff]  ;;  %v15419_v3 = vcombine.low %v1254_v12, %v1258_v32 }
 0x585   : > { %11598 = vmatpush2.bf16.msra.mxu0 %v15315_v49  ;;  %v15420_v49 = vcombine.high %v1254_v12, %v1258_v32  ;;  %v1246_v44 = vld [vmem:[%s17357_s27 + $0x1698] sm:$0xff]  ;;  %v15284_v58 = vcombine.high %v1118_v41, %v1122_v40 }
 0x586   : > { %11599 = vmatprep.subr.bf16.mxu0 %v15308_v10  ;;  %v1250_v10 = vld [vmem:[%s17357_s27 + $0x16b8] sm:$0xff]  ;;  %v11055_v24 = vadd.f32 %v19126_v30, %v11012_v63  ;;  %v11057_v56 = vadd.f32 %v19134_v52, %v11014_v11  ;;  %v15283_v52 = vcombine.low %v1118_v41, %v1122_v40  ;;  %v11312_v63 = vpop.f32.mrf.mxu1 }
 0x587   : > { %11641 = vmatpush2.bf16.msra.mxu1 %v15443_v47  ;;  %v19206_v47 = vpop.f32.mrf.mxu0  ;;  %v1110_v30 = vld [vmem:[%s17357_s27 + $0x1258] sm:$0xff] }
 0x588   : > { %11642 = vmatprep.subr.bf16.mxu1 %v15436_v7  ;;  %v10975_v7 = vadd.f32 %v19118_v42, %v19116_v57  ;;  %v11098_v57 = vadd.f32 %v19152_v6, %v11055_v24  ;;  %v15412_v42 = vcombine.high %v1246_v44, %v1250_v10  ;;  %v1114_v59 = vld [vmem:[%s17357_s27 + $0x1278] sm:$0xff]  ;;  %v11100_v1 = vadd.f32 %v19160_v23, %v11057_v56 }
 0x589   : > { %11600 = vmatpush2.bf16.msra.mxu0 %v15307_v51  ;;  %v1242_v37 = vld [vmem:[%s17357_s27 + $0x1678] sm:$0xff]  ;;  %v15411_v6 = vcombine.low %v1246_v44, %v1250_v10  ;;  %v15276_v12 = vcombine.high %v1110_v30, %v1114_v59 }
 0x58a   : > { %11601 = vmatprep.subr.bf16.mxu0 %v15300_v19  ;;  %v11018_v51 = vadd.f32 %v19146_v28, %v10975_v7  ;;  %v1238_v19 = vld [vmem:[%s17357_s27 + $0x1658] sm:$0xff]  ;;  %v11141_v27 = vadd.f32 %v19154_v8, %v11098_v57  ;;  %v11143_v11 = vadd.f32 %v19162_v38, %v11100_v1  ;;  %v15275_v8 = vcombine.low %v1110_v30, %v1114_v59  ;;  %v11314_v7 = vpop.f32.mrf.mxu1 }
 0x58b   : > { %11643 = vmatpush2.bf16.msra.mxu1 %v15435_v29  ;;  %v11189_v29 = vpop.f32.mrf.mxu0  ;;  %v15404_v23 = vcombine.high %v1238_v19, %v1242_v37  ;;  %v1234_v34 = vld [vmem:[%s17357_s27 + $0x1638] sm:$0xff]  ;;  %v15403_v41 = vcombine.low %v1238_v19, %v1242_v37 }
 0x58c   : > { %11644 = vmatprep.subr.bf16.mxu1 %v15428_v62  ;;  %v11059_v62 = vadd.f32 %v19142_v22, %v11016_v4  ;;  %v11061_v32 = vadd.f32 %v19150_v31, %v11018_v51  ;;  %v11184_v31 = vadd.f32 %v19182_v18, %v11141_v27  ;;  %v11186_v10 = vadd.f32 %v19192_v0, %v11143_v11  ;;  %v1350_v24 = vld [vmem:[%s17357_s27 + $0x19d8] sm:$0xff] }
 0x58d   : > { %11602 = vmatpush2.bf16.msra.mxu0 %v15299_v50  ;;  %v11269_v28 = vpop.f32.mrf.mxu0  ;;  %v1102_v50 = vld [vmem:[%s17357_s27 + $0x1218] sm:$0xff] }
 0x58e   : > { %11603 = vmatprep.subr.bf16.mxu0 %v15292_v20  ;;  %v11102_v22 = vadd.f32 %v19168_v26, %v11059_v62  ;;  %v1230_v20 = vld [vmem:[%s17357_s27 + $0x1618] sm:$0xff]  ;;  %v11229_v57 = vadd.f32 %v19199_v33, %v11186_v10 }
 0x58f   : > { %11645 = vmatpush2.bf16.msra.mxu1 %v15427_v36  ;;  %v1106_v36 = vld [vmem:[%s17357_s27 + $0x1238] sm:$0xff]  ;;  %v11271_v26 = vpop.f32.mrf.mxu0  ;;  %v15396_v38 = vcombine.high %v1230_v20, %v1234_v34  ;;  %v15395_v56 = vcombine.low %v1230_v20, %v1234_v34 }
 0x590   : > { %11646 = vmatprep.subr.bf16.mxu1 %v15420_v49  ;;  %v11104_v49 = vadd.f32 %v19176_v21, %v11061_v32  ;;  %v15268_v40 = vcombine.high %v1102_v50, %v1106_v36  ;;  %v11145_v44 = vadd.f32 %v19170_v53, %v11102_v22  ;;  %v1354_v21 = vld [vmem:[%s17357_s27 + $0x19f8] sm:$0xff]  ;;  %v15267_v53 = vcombine.low %v1102_v50, %v1106_v36 }
 0x591   : > { %11604 = vmatpush2.bf16.msra.mxu0 %v15291_v43  ;;  %v1478_v4 = vld [vmem:[%s17357_s27 + $0x1dd8] sm:$0xff]  ;;  %v11273_v0 = vpop.f32.mrf.mxu0  ;;  %v15516_v51 = vcombine.high %v1350_v24, %v1354_v21  ;;  %v11272_v1 = vadd.f32 %v11271_v26, %v11229_v57 }
 0x592   : > { %11605 = vmatprep.subr.bf16.mxu0 %v15284_v58  ;;  %v1482_v43 = vld [vmem:[%s17357_s27 + $0x1df8] sm:$0xff]  ;;  %v11147_v18 = vadd.f32 %v19178_v54, %v11104_v49  ;;  %v11188_v58 = vadd.f32 %v19206_v47, %v11145_v44  ;;  %v11316_v54 = vpop.f32.mrf.mxu1 }
 0x593   : > { %11647 = vmatpush2.bf16.msra.mxu1 %v15419_v3  ;;  %v11227_v3 = vadd.f32 %v19186_v55, %v11184_v31  ;;  %v15644_v55 = vcombine.high %v1478_v4, %v1482_v43  ;;  %v1342_v59 = vld [vmem:[%s17357_s27 + $0x1998] sm:$0xff]  ;;  %v15643_v33 = vcombine.low %v1478_v4, %v1482_v43  ;;  %v11315_v11 = vadd.f32 %v11314_v7, %v11272_v1 }
 0x594   : > { %11648 = vmatprep.subr.bf16.mxu1 %v15412_v42  ;;  %v11190_v42 = vadd.f32 %v11189_v29, %v11147_v18  ;;  %v1346_v19 = vld [vmem:[%s17357_s27 + $0x19b8] sm:$0xff]  ;;  %v11231_v62 = vadd.f32 %v19214_v25, %v11188_v58  ;;  %v11318_v22 = vpop.f32.mrf.mxu1 }
 0x595   : > { %11606 = vmatpush2.bf16.msra.mxu0 %v15283_v52  ;;  %v11270_v30 = vadd.f32 %v11269_v28, %v11227_v3  ;;  %v1470_v47 = vld [vmem:[%s17357_s27 + $0x1d98] sm:$0xff]  ;;  %v15515_v52 = vcombine.low %v1350_v24, %v1354_v21  ;;  %v15508_v29 = vcombine.high %v1342_v59, %v1346_v19  ;;  %v15507_v34 = vcombine.low %v1342_v59, %v1346_v19 }
 0x596   : > { %11607 = vmatprep.subr.bf16.mxu0 %v15276_v12  ;;  %v1474_v37 = vld [vmem:[%s17357_s27 + $0x1db8] sm:$0xff]  ;;  %v11233_v12 = vadd.f32 %v19225_v15, %v11190_v42  ;;  %v11274_v27 = vadd.f32 %v11273_v0, %v11231_v62  ;;  %v487_v15 = vld [vmem:[#allocation2 + $0x50] sm:$0xff] }
 0x597   : > { %11649 = vmatpush2.bf16.msra.mxu1 %v15411_v6  ;;  %v11275_v6 = vpop.f32.mrf.mxu0  ;;  %v19253_v28 = vld [vmem:[%s17357_s27 + $0x1958] sm:$0xff]  ;;  %v11313_v32 = vadd.f32 %v11312_v63, %v11270_v30  ;;  %v15636_v25 = vcombine.high %v1470_v47, %v1474_v37  ;;  %v15635_v26 = vcombine.low %v1470_v47, %v1474_v37  ;;  %v496_v47 = vld [vmem:[#allocation2 + $0x70] sm:$0xff] }
 0x598   : > { %11650 = vmatprep.subr.bf16.mxu1 %v15404_v23  ;;  %v1338_v23 = vld [vmem:[%s17357_s27 + $0x1978] sm:$0xff]  ;;  %v11276_v49 = vadd.f32 %v11275_v6, %v11233_v12 }
 0x599   : > { %11608 = vmatpush2.bf16.msra.mxu0 %v15275_v8  ;;  %v1462_v50 = vld [vmem:[%s17357_s27 + $0x1d58] sm:$0xff]  ;;  %v15499_v4 = vcombine.low %v19253_v28, %v1338_v23 }
 0x59a   : > { %11609 = vmatprep.subr.bf16.mxu0 %v15268_v40  ;;  %v1466_v36 = vld [vmem:[%s17357_s27 + $0x1d78] sm:$0xff]  ;;  %v11317_v40 = vadd.f32 %v11316_v54, %v11274_v27  ;;  %v11319_v3 = vadd.f32 %v11318_v22, %v11276_v49 }
 0x59b   : > { %11651 = vmatpush2.bf16.msra.mxu1 %v15403_v41  ;;  %v15500_v41 = vcombine.high %v19253_v28, %v1338_v23  ;;  %v1330_v24 = vld [vmem:[%s17357_s27 + $0x1938] sm:$0xff]  ;;  %v15627_v57 = vcombine.low %v1462_v50, %v1466_v36 }
 0x59c   : > { %11652 = vmatprep.subr.bf16.mxu1 %v15396_v38  ;;  %v1326_v38 = vld [vmem:[%s17357_s27 + $0x1918] sm:$0xff] }
 0x59d   : > { %11610 = vmatpush2.bf16.msra.mxu0 %v15267_v53  ;;  %v1454_v43 = vld [vmem:[%s17357_s27 + $0x1d18] sm:$0xff]  ;;  %v15492_v42 = vcombine.high %v1326_v38, %v1330_v24 }
 0x59e   : > { %11665 = vmatprep.subr.bf16.mxu0 %v15516_v51  ;;  %v1458_v18 = vld [vmem:[%s17357_s27 + $0x1d38] sm:$0xff] }
 0x59f   : > { %11653 = vmatpush2.bf16.msra.mxu1 %v15395_v56  ;;  %v495_v51 = vld [vmem:[#allocation2 + $0x60] sm:$0xff] }
 0x5a0   : > { %11708 = vmatprep.subr.bf16.mxu1 %v15644_v55  ;;  %v11355_v20 = vpop.f32.mrf.mxu0  ;;  %11612 = vmatmul.mubr.bf16.vlgmr.msra.gmra.mxu0 %v17651_v45  ;;  %v15628_v45 = vcombine.high %v1462_v50, %v1466_v36  ;;  %v15620_v55 = vcombine.high %v1454_v43, %v1458_v18  ;;  %v1318_v59 = vld [vmem:[%s17357_s27 + $0x18d8] sm:$0xff] }
 0x5a1   : > { %v11356_v31 = vadd.f32 %v11355_v20, %v11313_v32  ;;  %11666 = vmatpush1.bf16.msra.mxu0 %v15515_v52  ;;  %11697 = vmatprep.mubr.bf16.mxu0 %v17674_v60  ;;  %v1322_v19 = vld [vmem:[%s17357_s27 + $0x18f8] sm:$0xff] }
 0x5a2   : > { %v11398_v8 = vpop.f32.mrf.mxu1  ;;  %11655 = vmatmul.mubr.bf16.vlgmr.msra.gmra.mxu1 %v17662_v16  ;;  %v11357_v63 = vpop.f32.mrf.mxu0  ;;  %11667 = vmatprep.subr.bf16.mxu0 %v15508_v29  ;;  %v488_v16 = vld [vmem:[#allocation2 + $0x68] sm:$0xff]  ;;  %v1446_v62 = vld [vmem:[%s17357_s27 + $0x1cd8] sm:$0xff]  ;;  %v15619_v29 = vcombine.low %v1454_v43, %v1458_v18  ;;  %v15484_v28 = vcombine.high %v1318_v59, %v1322_v19  ;;  %v15483_v50 = vcombine.low %v1318_v59, %v1322_v19 }
 0x5a3   : > { %11709 = vmatpush1.bf16.msra.mxu1 %v15643_v33  ;;  %v11399_v44 = vadd.f32 %v11398_v8, %v11356_v31  ;;  %v11358_v10 = vadd.f32 %v11357_v63, %v11315_v11  ;;  %11740 = vmatprep.mubr.bf16.mxu1 %v17681_v61  ;;  %v1450_v1 = vld [vmem:[%s17357_s27 + $0x1cf8] sm:$0xff]  ;;  %v15491_v33 = vcombine.low %v1326_v38, %v1330_v24 }
 0x5a4   : > { %v11400_v7 = vpop.f32.mrf.mxu1  ;;  %11710 = vmatprep.subr.bf16.mxu1 %v15636_v25  ;;  %v11359_v21 = vpop.f32.mrf.mxu0  ;;  %v15612_v32 = vcombine.high %v1446_v62, %v1450_v1  ;;  %v1310_v27 = vld [vmem:[%s17357_s27 + $0x1898] sm:$0xff]  ;;  %v15611_v36 = vcombine.low %v1446_v62, %v1450_v1 }
 0x5a5   : > { %v11927_v58 = vadd.f32 %v11399_v44, %v487_v15  ;;  %v11401_v53 = vadd.f32 %v11400_v7, %v11358_v10  ;;  %v11360_v0 = vadd.f32 %v11359_v21, %v11317_v40  ;;  %11668 = vmatpush1.bf16.msra.mxu0 %v15507_v34  ;;  %v1314_v22 = vld [vmem:[%s17357_s27 + $0x18b8] sm:$0xff] }
 0x5a6   : > { %v11402_v56 = vpop.f32.mrf.mxu1  ;;  %v11361_v60 = vpop.f32.mrf.mxu0  ;;  %11669 = vmatprep.subr.bf16.mxu0 %v15500_v41  ;;  %v1438_v25 = vld [vmem:[%s17357_s27 + $0x1c98] sm:$0xff]  ;;  %v15476_v20 = vcombine.high %v1310_v27, %v1314_v22  ;;  %v15475_v15 = vcombine.low %v1310_v27, %v1314_v22 }
 0x5a7   : > { %11711 = vmatpush1.bf16.msra.mxu1 %v15635_v26  ;;  %11943 = vst [vmem:[#allocation2 + $0x50] sm:$0xff] %v11927_v58  ;;  %v11928_v30 = vadd.f32 %v11401_v53, %v488_v16  ;;  %v11403_v54 = vadd.f32 %v11402_v56, %v11360_v0  ;;  %v11362_v61 = vadd.f32 %v11361_v60, %v11319_v3  ;;  %v1442_v23 = vld [vmem:[%s17357_s27 + $0x1cb8] sm:$0xff] }
 0x5a8   : > { %11712 = vmatprep.subr.bf16.mxu1 %v15628_v45  ;;  %v11404_v37 = vpop.f32.mrf.mxu1  ;;  %v15604_v34 = vcombine.high %v1438_v25, %v1442_v23  ;;  %v1302_v11 = vld [vmem:[%s17357_s27 + $0x1858] sm:$0xff]  ;;  %v15603_v63 = vcombine.low %v1438_v25, %v1442_v23 }
 0x5a9   : > { %11944 = vst [vmem:[#allocation2 + $0x68] sm:$0xff] %v11928_v30  ;;  %v11935_v52 = vadd.f32 %v11403_v54, %v495_v51  ;;  %v11405_v6 = vadd.f32 %v11404_v37, %v11362_v61  ;;  %11670 = vmatpush1.bf16.msra.mxu0 %v15499_v4  ;;  %v1306_v49 = vld [vmem:[%s17357_s27 + $0x1878] sm:$0xff] }
 0x5aa   : > { %11671 = vmatprep.subr.bf16.mxu0 %v15492_v42  ;;  %v1430_v31 = vld [vmem:[%s17357_s27 + $0x1c58] sm:$0xff]  ;;  %v15468_v26 = vcombine.high %v1302_v11, %v1306_v49  ;;  %v15467_v7 = vcombine.low %v1302_v11, %v1306_v49 }
 0x5ab   : > { %11713 = vmatpush1.bf16.msra.mxu1 %v15627_v57  ;;  %11951 = vst [vmem:[#allocation2 + $0x60] sm:$0xff] %v11935_v52  ;;  %v11936_v12 = vadd.f32 %v11405_v6, %v496_v47  ;;  %v1434_v8 = vld [vmem:[%s17357_s27 + $0x1c78] sm:$0xff] }
 0x5ac   : > { %11714 = vmatprep.subr.bf16.mxu1 %v15620_v55  ;;  %v15596_v41 = vcombine.high %v1430_v31, %v1434_v8  ;;  %v1294_v45 = vld [vmem:[%s17357_s27 + $0x1818] sm:$0xff]  ;;  %v15595_v38 = vcombine.low %v1430_v31, %v1434_v8 }
 0x5ad   : > { %11952 = vst [vmem:[#allocation2 + $0x70] sm:$0xff] %v11936_v12  ;;  %11672 = vmatpush1.bf16.msra.mxu0 %v15491_v33  ;;  %v1298_v40 = vld [vmem:[%s17357_s27 + $0x1838] sm:$0xff] }
 0x5ae   : > { %11673 = vmatprep.subr.bf16.mxu0 %v15484_v28  ;;  %v1422_v44 = vld [vmem:[%s17357_s27 + $0x1c18] sm:$0xff]  ;;  %v15460_v24 = vcombine.high %v1294_v45, %v1298_v40  ;;  %v15459_v3 = vcombine.low %v1294_v45, %v1298_v40 }
 0x5af   : > { %11715 = vmatpush1.bf16.msra.mxu1 %v15619_v29  ;;  %v1426_v10 = vld [vmem:[%s17357_s27 + $0x1c38] sm:$0xff] }
 0x5b0   : > { %11716 = vmatprep.subr.bf16.mxu1 %v15612_v32  ;;  %v15588_v16 = vcombine.high %v1422_v44, %v1426_v10  ;;  %v1414_v21 = vld [vmem:[%s17357_s27 + $0x1bd8] sm:$0xff]  ;;  %v15587_v58 = vcombine.low %v1422_v44, %v1426_v10 }
 0x5b1   : > { %11674 = vmatpush1.bf16.msra.mxu0 %v15483_v50  ;;  %v1418_v4 = vld [vmem:[%s17357_s27 + $0x1bf8] sm:$0xff] }
 0x5b2   : > { %11675 = vmatprep.subr.bf16.mxu0 %v15476_v20  ;;  %v1542_v43 = vld [vmem:[%s17357_s27 + $0x1fd8] sm:$0xff]  ;;  %v15580_v53 = vcombine.high %v1414_v21, %v1418_v4  ;;  %v15579_v42 = vcombine.low %v1414_v21, %v1418_v4 }
 0x5b3   : > { %11717 = vmatpush1.bf16.msra.mxu1 %v15611_v36  ;;  %v1546_v18 = vld [vmem:[%s17357_s27 + $0x1ff8] sm:$0xff] }
 0x5b4   : > { %11718 = vmatprep.subr.bf16.mxu1 %v15604_v34  ;;  %v15708_v0 = vcombine.high %v1542_v43, %v1546_v18  ;;  %v1406_v56 = vld [vmem:[%s17357_s27 + $0x1b98] sm:$0xff]  ;;  %v15707_v30 = vcombine.low %v1542_v43, %v1546_v18 }
 0x5b5   : > { %11676 = vmatpush1.bf16.msra.mxu0 %v15475_v15  ;;  %v1410_v51 = vld [vmem:[%s17357_s27 + $0x1bb8] sm:$0xff] }
 0x5b6   : > { %11677 = vmatprep.subr.bf16.mxu0 %v15468_v26  ;;  %v1534_v60 = vld [vmem:[%s17357_s27 + $0x1f98] sm:$0xff]  ;;  %v15572_v54 = vcombine.high %v1406_v56, %v1410_v51  ;;  %v15571_v37 = vcombine.low %v1406_v56, %v1410_v51 }
 0x5b7   : > { %11719 = vmatpush1.bf16.msra.mxu1 %v15603_v63  ;;  %v1538_v57 = vld [vmem:[%s17357_s27 + $0x1fb8] sm:$0xff] }
 0x5b8   : > { %11720 = vmatprep.subr.bf16.mxu1 %v15596_v41  ;;  %v15700_v61 = vcombine.high %v1534_v60, %v1538_v57  ;;  %v1398_v55 = vld [vmem:[%s17357_s27 + $0x1b58] sm:$0xff]  ;;  %v15699_v62 = vcombine.low %v1534_v60, %v1538_v57 }
 0x5b9   : > { %11678 = vmatpush1.bf16.msra.mxu0 %v15467_v7  ;;  %v1402_v59 = vld [vmem:[%s17357_s27 + $0x1b78] sm:$0xff] }
 0x5ba   : > { %11679 = vmatprep.subr.bf16.mxu0 %v15460_v24  ;;  %v1526_v19 = vld [vmem:[%s17357_s27 + $0x1f58] sm:$0xff]  ;;  %v15564_v1 = vcombine.high %v1398_v55, %v1402_v59  ;;  %v15563_v12 = vcombine.low %v1398_v55, %v1402_v59 }
 0x5bb   : > { %11721 = vmatpush1.bf16.msra.mxu1 %v15595_v38  ;;  %v1530_v47 = vld [vmem:[%s17357_s27 + $0x1f78] sm:$0xff] }
 0x5bc   : > { %11722 = vmatprep.subr.bf16.mxu1 %v15588_v16  ;;  %v15692_v52 = vcombine.high %v1526_v19, %v1530_v47  ;;  %v1390_v6 = vld [vmem:[%s17357_s27 + $0x1b18] sm:$0xff]  ;;  %v15691_v32 = vcombine.low %v1526_v19, %v1530_v47 }
 0x5bd   : > { %11680 = vmatpush1.bf16.msra.mxu0 %v15459_v3  ;;  %v1394_v33 = vld [vmem:[%s17357_s27 + $0x1b38] sm:$0xff] }
 0x5be   : > { %11681 = vmatprep.subr.bf16.mxu0 %v15580_v53  ;;  %v1518_v29 = vld [vmem:[%s17357_s27 + $0x1f18] sm:$0xff]  ;;  %v15556_v27 = vcombine.high %v1390_v6, %v1394_v33  ;;  %v15555_v20 = vcombine.low %v1390_v6, %v1394_v33 }
 0x5bf   : > { %11723 = vmatpush1.bf16.msra.mxu1 %v15587_v58  ;;  %v1522_v28 = vld [vmem:[%s17357_s27 + $0x1f38] sm:$0xff] }
 0x5c0   : > { %11724 = vmatprep.subr.bf16.mxu1 %v15708_v0  ;;  %v15684_v22 = vcombine.high %v1518_v29, %v1522_v28  ;;  %v1382_v25 = vld [vmem:[%s17357_s27 + $0x1ad8] sm:$0xff]  ;;  %v15683_v34 = vcombine.low %v1518_v29, %v1522_v28 }
 0x5c1   : > { %11682 = vmatpush2.bf16.msra.mxu0 %v15579_v42  ;;  %v1386_v23 = vld [vmem:[%s17357_s27 + $0x1af8] sm:$0xff] }
 0x5c2   : > { %11683 = vmatprep.subr.bf16.mxu0 %v15572_v54  ;;  %v1510_v50 = vld [vmem:[%s17357_s27 + $0x1ed8] sm:$0xff]  ;;  %v15548_v11 = vcombine.high %v1382_v25, %v1386_v23  ;;  %v15547_v26 = vcombine.low %v1382_v25, %v1386_v23 }
 0x5c3   : > { %11725 = vmatpush2.bf16.msra.mxu1 %v15707_v30  ;;  %v1514_v36 = vld [vmem:[%s17357_s27 + $0x1ef8] sm:$0xff] }
 0x5c4   : > { %11726 = vmatprep.subr.bf16.mxu1 %v15700_v61  ;;  %v15676_v49 = vcombine.high %v1510_v50, %v1514_v36  ;;  %v1374_v31 = vld [vmem:[%s17357_s27 + $0x1a98] sm:$0xff]  ;;  %v15675_v41 = vcombine.low %v1510_v50, %v1514_v36 }
 0x5c5   : > { %11684 = vmatpush2.bf16.msra.mxu0 %v15571_v37  ;;  %v1378_v8 = vld [vmem:[%s17357_s27 + $0x1ab8] sm:$0xff] }
 0x5c6   : > { %11685 = vmatprep.subr.bf16.mxu0 %v15564_v1  ;;  %v1502_v15 = vld [vmem:[%s17357_s27 + $0x1e98] sm:$0xff]  ;;  %v15540_v45 = vcombine.high %v1374_v31, %v1378_v8  ;;  %v15539_v24 = vcombine.low %v1374_v31, %v1378_v8 }
 0x5c7   : > { %11727 = vmatpush2.bf16.msra.mxu1 %v15699_v62  ;;  %v1506_v63 = vld [vmem:[%s17357_s27 + $0x1eb8] sm:$0xff] }
 0x5c8   : > { %11728 = vmatprep.subr.bf16.mxu1 %v15692_v52  ;;  %v15668_v40 = vcombine.high %v1502_v15, %v1506_v63  ;;  %v1366_v44 = vld [vmem:[%s17357_s27 + $0x1a58] sm:$0xff]  ;;  %v15667_v16 = vcombine.low %v1502_v15, %v1506_v63 }
 0x5c9   : > { %11686 = vmatpush2.bf16.msra.mxu0 %v15563_v12  ;;  %v1370_v10 = vld [vmem:[%s17357_s27 + $0x1a78] sm:$0xff] }
 0x5ca   : > { %11687 = vmatprep.subr.bf16.mxu0 %v15556_v27  ;;  %v1494_v7 = vld [vmem:[%s17357_s27 + $0x1e58] sm:$0xff]  ;;  %v15532_v21 = vcombine.high %v1366_v44, %v1370_v10  ;;  %v15531_v53 = vcombine.low %v1366_v44, %v1370_v10 }
 0x5cb   : > { %11729 = vmatpush2.bf16.msra.mxu1 %v15691_v32  ;;  %v1498_v38 = vld [vmem:[%s17357_s27 + $0x1e78] sm:$0xff] }
 0x5cc   : > { %11730 = vmatprep.subr.bf16.mxu1 %v15684_v22  ;;  %v15660_v4 = vcombine.high %v1494_v7, %v1498_v38  ;;  %v1358_v43 = vld [vmem:[%s17357_s27 + $0x1a18] sm:$0xff]  ;;  %v15659_v0 = vcombine.low %v1494_v7, %v1498_v38 }
 0x5cd   : > { %11688 = vmatpush2.bf16.msra.mxu0 %v15555_v20  ;;  %v1362_v18 = vld [vmem:[%s17357_s27 + $0x1a38] sm:$0xff] }
 0x5ce   : > { %11689 = vmatprep.subr.bf16.mxu0 %v15548_v11  ;;  %v1486_v3 = vld [vmem:[%s17357_s27 + $0x1e18] sm:$0xff]  ;;  %v15524_v56 = vcombine.high %v1358_v43, %v1362_v18  ;;  %v15523_v54 = vcombine.low %v1358_v43, %v1362_v18 }
 0x5cf   : > { %11731 = vmatpush2.bf16.msra.mxu1 %v15683_v34  ;;  %v1490_v58 = vld [vmem:[%s17357_s27 + $0x1e38] sm:$0xff] }
 0x5d0   : > { %11732 = vmatprep.subr.bf16.mxu1 %v15676_v49  ;;  %v15652_v51 = vcombine.high %v1486_v3, %v1490_v58  ;;  %v1606_v60 = vld [vmem:[%s17357_s27 + $0x21d8] sm:$0xff]  ;;  %v15651_v61 = vcombine.low %v1486_v3, %v1490_v58 }
 0x5d1   : > { %11690 = vmatpush2.bf16.msra.mxu0 %v15547_v26  ;;  %v1610_v57 = vld [vmem:[%s17357_s27 + $0x21f8] sm:$0xff] }
 0x5d2   : > { %11691 = vmatprep.subr.bf16.mxu0 %v15540_v45  ;;  %v1734_v42 = vld [vmem:[%s17357_s27 + $0x25d8] sm:$0xff]  ;;  %v15772_v55 = vcombine.high %v1606_v60, %v1610_v57  ;;  %v15771_v1 = vcombine.low %v1606_v60, %v1610_v57 }
 0x5d3   : > { %11733 = vmatpush2.bf16.msra.mxu1 %v15675_v41  ;;  %v1738_v30 = vld [vmem:[%s17357_s27 + $0x25f8] sm:$0xff] }
 0x5d4   : > { %11734 = vmatprep.subr.bf16.mxu1 %v15668_v40  ;;  %v15900_v59 = vcombine.high %v1734_v42, %v1738_v30  ;;  %v1598_v19 = vld [vmem:[%s17357_s27 + $0x2198] sm:$0xff]  ;;  %v15899_v52 = vcombine.low %v1734_v42, %v1738_v30 }
 0x5d5   : > { %11692 = vmatpush2.bf16.msra.mxu0 %v15539_v24  ;;  %v1602_v47 = vld [vmem:[%s17357_s27 + $0x21b8] sm:$0xff] }
 0x5d6   : > { %11693 = vmatprep.subr.bf16.mxu0 %v15532_v21  ;;  %v1726_v37 = vld [vmem:[%s17357_s27 + $0x2598] sm:$0xff]  ;;  %v15764_v6 = vcombine.high %v1598_v19, %v1602_v47  ;;  %v15763_v27 = vcombine.low %v1598_v19, %v1602_v47 }
 0x5d7   : > { %11735 = vmatpush2.bf16.msra.mxu1 %v15667_v16  ;;  %v1730_v62 = vld [vmem:[%s17357_s27 + $0x25b8] sm:$0xff] }
 0x5d8   : > { %11736 = vmatprep.subr.bf16.mxu1 %v15660_v4  ;;  %v15892_v33 = vcombine.high %v1726_v37, %v1730_v62  ;;  %v1590_v29 = vld [vmem:[%s17357_s27 + $0x2158] sm:$0xff]  ;;  %v15891_v22 = vcombine.low %v1726_v37, %v1730_v62 }
 0x5d9   : > { %11694 = vmatpush2.bf16.msra.mxu0 %v15531_v53  ;;  %v1594_v28 = vld [vmem:[%s17357_s27 + $0x2178] sm:$0xff] }
 0x5da   : > { %11695 = vmatprep.subr.bf16.mxu0 %v15524_v56  ;;  %v1718_v12 = vld [vmem:[%s17357_s27 + $0x2558] sm:$0xff]  ;;  %v15756_v25 = vcombine.high %v1590_v29, %v1594_v28 }
 0x5db   : > { %11737 = vmatpush2.bf16.msra.mxu1 %v15659_v0  ;;  %v1722_v32 = vld [vmem:[%s17357_s27 + $0x2578] sm:$0xff] }
 0x5dc   : > { %11738 = vmatprep.subr.bf16.mxu1 %v15652_v51  ;;  %v15884_v23 = vcombine.high %v1718_v12, %v1722_v32  ;;  %v1582_v50 = vld [vmem:[%s17357_s27 + $0x2118] sm:$0xff]  ;;  %v15883_v34 = vcombine.low %v1718_v12, %v1722_v32 }
 0x5dd   : > { %11696 = vmatpush2.bf16.msra.mxu0 %v15523_v54  ;;  %v1586_v36 = vld [vmem:[%s17357_s27 + $0x2138] sm:$0xff] }
 0x5de   : > { %11751 = vmatprep.subr.bf16.mxu0 %v15772_v55  ;;  %v1714_v20 = vld [vmem:[%s17357_s27 + $0x2538] sm:$0xff]  ;;  %v15748_v11 = vcombine.high %v1582_v50, %v1586_v36  ;;  %v15747_v63 = vcombine.low %v1582_v50, %v1586_v36 }
 0x5df   : > { %11739 = vmatpush2.bf16.msra.mxu1 %v15651_v61  ;;  %v1574_v31 = vld [vmem:[%s17357_s27 + $0x20d8] sm:$0xff] }
 0x5e0   : > { %11794 = vmatprep.subr.bf16.mxu1 %v15900_v59  ;;  %11698 = vmatmul.mubr.bf16.vlgmr.msra.gmra.mxu0 %v17747_v35  ;;  %v1710_v35 = vld [vmem:[%s17357_s27 + $0x2518] sm:$0xff] }
 0x5e1   : > { %11752 = vmatpush1.bf16.msra.mxu0 %v15771_v1  ;;  %11783 = vmatprep.mubr.bf16.mxu0 %v17770_v17  ;;  %v15876_v49 = vcombine.high %v1710_v35, %v1714_v20  ;;  %v1578_v8 = vld [vmem:[%s17357_s27 + $0x20f8] sm:$0xff] }
 0x5e2   : > { %11741 = vmatmul.mubr.bf16.vlgmr.msra.gmra.mxu1 %v17758_v39  ;;  %11753 = vmatprep.subr.bf16.mxu0 %v15764_v6  ;;  %v15755_v39 = vcombine.low %v1590_v29, %v1594_v28  ;;  %v1702_v15 = vld [vmem:[%s17357_s27 + $0x24d8] sm:$0xff]  ;;  %v15740_v26 = vcombine.high %v1574_v31, %v1578_v8  ;;  %v15739_v7 = vcombine.low %v1574_v31, %v1578_v8 }
 0x5e3   : > { %11795 = vmatpush1.bf16.msra.mxu1 %v15899_v52  ;;  %11826 = vmatprep.mubr.bf16.mxu1 %v17777_v9  ;;  %v1706_v17 = vld [vmem:[%s17357_s27 + $0x24f8] sm:$0xff]  ;;  %v15875_v9 = vcombine.low %v1710_v35, %v1714_v20 }
 0x5e4   : > { %11796 = vmatprep.subr.bf16.mxu1 %v15892_v33  ;;  %v15868_v41 = vcombine.high %v1702_v15, %v1706_v17  ;;  %v1566_v45 = vld [vmem:[%s17357_s27 + $0x2098] sm:$0xff]  ;;  %v15867_v38 = vcombine.low %v1702_v15, %v1706_v17 }
 0x5e5   : > { %11754 = vmatpush1.bf16.msra.mxu0 %v15763_v27  ;;  %v1570_v40 = vld [vmem:[%s17357_s27 + $0x20b8] sm:$0xff] }
 0x5e6   : > { %11755 = vmatprep.subr.bf16.mxu0 %v15756_v25  ;;  %v1694_v44 = vld [vmem:[%s17357_s27 + $0x2498] sm:$0xff]  ;;  %v15732_v24 = vcombine.high %v1566_v45, %v1570_v40  ;;  %v15731_v3 = vcombine.low %v1566_v45, %v1570_v40 }
 0x5e7   : > { %11797 = vmatpush1.bf16.msra.mxu1 %v15891_v22  ;;  %v1698_v10 = vld [vmem:[%s17357_s27 + $0x24b8] sm:$0xff] }
 0x5e8   : > { %11798 = vmatprep.subr.bf16.mxu1 %v15884_v23  ;;  %v15860_v16 = vcombine.high %v1694_v44, %v1698_v10  ;;  %v1558_v21 = vld [vmem:[%s17357_s27 + $0x2058] sm:$0xff]  ;;  %v15859_v58 = vcombine.low %v1694_v44, %v1698_v10 }
 0x5e9   : > { %11756 = vmatpush1.bf16.msra.mxu0 %v15755_v39  ;;  %v1562_v4 = vld [vmem:[%s17357_s27 + $0x2078] sm:$0xff] }
 0x5ea   : > { %11757 = vmatprep.subr.bf16.mxu0 %v15748_v11  ;;  %v1686_v43 = vld [vmem:[%s17357_s27 + $0x2458] sm:$0xff]  ;;  %v15724_v53 = vcombine.high %v1558_v21, %v1562_v4  ;;  %v15723_v42 = vcombine.low %v1558_v21, %v1562_v4 }
 0x5eb   : > { %11799 = vmatpush1.bf16.msra.mxu1 %v15883_v34  ;;  %v1690_v18 = vld [vmem:[%s17357_s27 + $0x2478] sm:$0xff] }
 0x5ec   : > { %11800 = vmatprep.subr.bf16.mxu1 %v15876_v49  ;;  %v15852_v0 = vcombine.high %v1686_v43, %v1690_v18  ;;  %v1550_v56 = vld [vmem:[%s17357_s27 + $0x2018] sm:$0xff]  ;;  %v15851_v30 = vcombine.low %v1686_v43, %v1690_v18 }
 0x5ed   : > { %11758 = vmatpush1.bf16.msra.mxu0 %v15747_v63  ;;  %v1554_v51 = vld [vmem:[%s17357_s27 + $0x2038] sm:$0xff] }
 0x5ee   : > { %11759 = vmatprep.subr.bf16.mxu0 %v15740_v26  ;;  %v1678_v60 = vld [vmem:[%s17357_s27 + $0x2418] sm:$0xff]  ;;  %v15716_v54 = vcombine.high %v1550_v56, %v1554_v51  ;;  %v15715_v37 = vcombine.low %v1550_v56, %v1554_v51 }
 0x5ef   : > { %11801 = vmatpush1.bf16.msra.mxu1 %v15875_v9  ;;  %v1682_v57 = vld [vmem:[%s17357_s27 + $0x2438] sm:$0xff] }
 0x5f0   : > { %11802 = vmatprep.subr.bf16.mxu1 %v15868_v41  ;;  %v15844_v61 = vcombine.high %v1678_v60, %v1682_v57  ;;  %v1670_v55 = vld [vmem:[%s17357_s27 + $0x23d8] sm:$0xff]  ;;  %v15843_v62 = vcombine.low %v1678_v60, %v1682_v57 }
 0x5f1   : > { %11760 = vmatpush1.bf16.msra.mxu0 %v15739_v7  ;;  %v1674_v59 = vld [vmem:[%s17357_s27 + $0x23f8] sm:$0xff] }
 0x5f2   : > { %11761 = vmatprep.subr.bf16.mxu0 %v15732_v24  ;;  %v1798_v19 = vld [vmem:[%s17357_s27 + $0x27d8] sm:$0xff]  ;;  %v15836_v1 = vcombine.high %v1670_v55, %v1674_v59  ;;  %v15835_v12 = vcombine.low %v1670_v55, %v1674_v59 }
 0x5f3   : > { %11803 = vmatpush1.bf16.msra.mxu1 %v15867_v38  ;;  %v1802_v47 = vld [vmem:[%s17357_s27 + $0x27f8] sm:$0xff] }
 0x5f4   : > { %11804 = vmatprep.subr.bf16.mxu1 %v15860_v16  ;;  %v15964_v52 = vcombine.high %v1798_v19, %v1802_v47  ;;  %v1662_v6 = vld [vmem:[%s17357_s27 + $0x2398] sm:$0xff]  ;;  %v15963_v32 = vcombine.low %v1798_v19, %v1802_v47 }
 0x5f5   : > { %11762 = vmatpush1.bf16.msra.mxu0 %v15731_v3  ;;  %v1666_v33 = vld [vmem:[%s17357_s27 + $0x23b8] sm:$0xff] }
 0x5f6   : > { %11763 = vmatprep.subr.bf16.mxu0 %v15724_v53  ;;  %v1790_v29 = vld [vmem:[%s17357_s27 + $0x2798] sm:$0xff]  ;;  %v15828_v27 = vcombine.high %v1662_v6, %v1666_v33  ;;  %v15827_v35 = vcombine.low %v1662_v6, %v1666_v33 }
 0x5f7   : > { %11805 = vmatpush1.bf16.msra.mxu1 %v15859_v58  ;;  %v1794_v28 = vld [vmem:[%s17357_s27 + $0x27b8] sm:$0xff] }
 0x5f8   : > { %11806 = vmatprep.subr.bf16.mxu1 %v15852_v0  ;;  %v15956_v22 = vcombine.high %v1790_v29, %v1794_v28  ;;  %v1654_v25 = vld [vmem:[%s17357_s27 + $0x2358] sm:$0xff]  ;;  %v15955_v20 = vcombine.low %v1790_v29, %v1794_v28 }
 0x5f9   : > { %11764 = vmatpush1.bf16.msra.mxu0 %v15723_v42  ;;  %v1658_v23 = vld [vmem:[%s17357_s27 + $0x2378] sm:$0xff] }
 0x5fa   : > { %11765 = vmatprep.subr.bf16.mxu0 %v15716_v54  ;;  %v1782_v50 = vld [vmem:[%s17357_s27 + $0x2758] sm:$0xff]  ;;  %v15820_v39 = vcombine.high %v1654_v25, %v1658_v23  ;;  %v15819_v15 = vcombine.low %v1654_v25, %v1658_v23 }
 0x5fb   : > { %11807 = vmatpush1.bf16.msra.mxu1 %v15851_v30  ;;  %v1786_v36 = vld [vmem:[%s17357_s27 + $0x2778] sm:$0xff] }
 0x5fc   : > { %11808 = vmatprep.subr.bf16.mxu1 %v15844_v61  ;;  %v15948_v34 = vcombine.high %v1782_v50, %v1786_v36  ;;  %v1646_v11 = vld [vmem:[%s17357_s27 + $0x2318] sm:$0xff]  ;;  %v15947_v17 = vcombine.low %v1782_v50, %v1786_v36 }
 0x5fd   : > { %11766 = vmatpush1.bf16.msra.mxu0 %v15715_v37  ;;  %v1650_v49 = vld [vmem:[%s17357_s27 + $0x2338] sm:$0xff] }
 0x5fe   : > { %11767 = vmatprep.subr.bf16.mxu0 %v15836_v1  ;;  %v1774_v31 = vld [vmem:[%s17357_s27 + $0x2718] sm:$0xff]  ;;  %v15812_v63 = vcombine.high %v1646_v11, %v1650_v49  ;;  %v15811_v44 = vcombine.low %v1646_v11, %v1650_v49 }
 0x5ff   : > { %11809 = vmatpush1.bf16.msra.mxu1 %v15843_v62  ;;  %v1778_v8 = vld [vmem:[%s17357_s27 + $0x2738] sm:$0xff] }
 0x600   : > { %11810 = vmatprep.subr.bf16.mxu1 %v15964_v52  ;;  %v15940_v9 = vcombine.high %v1774_v31, %v1778_v8  ;;  %v1638_v26 = vld [vmem:[%s17357_s27 + $0x22d8] sm:$0xff]  ;;  %v15939_v10 = vcombine.low %v1774_v31, %v1778_v8 }
 0x601   : > { %11768 = vmatpush2.bf16.msra.mxu0 %v15835_v12  ;;  %v1642_v41 = vld [vmem:[%s17357_s27 + $0x22f8] sm:$0xff] }
 0x602   : > { %11769 = vmatprep.subr.bf16.mxu0 %v15828_v27  ;;  %v1766_v45 = vld [vmem:[%s17357_s27 + $0x26d8] sm:$0xff]  ;;  %v15804_v7 = vcombine.high %v1638_v26, %v1642_v41  ;;  %v15803_v43 = vcombine.low %v1638_v26, %v1642_v41 }
 0x603   : > { %11811 = vmatpush2.bf16.msra.mxu1 %v15963_v32  ;;  %v1770_v40 = vld [vmem:[%s17357_s27 + $0x26f8] sm:$0xff] }
 0x604   : > { %11812 = vmatprep.subr.bf16.mxu1 %v15956_v22  ;;  %v15932_v38 = vcombine.high %v1766_v45, %v1770_v40  ;;  %v1630_v24 = vld [vmem:[%s17357_s27 + $0x2298] sm:$0xff]  ;;  %v15931_v18 = vcombine.low %v1766_v45, %v1770_v40 }
 0x605   : > { %11770 = vmatpush2.bf16.msra.mxu0 %v15827_v35  ;;  %v1634_v16 = vld [vmem:[%s17357_s27 + $0x22b8] sm:$0xff] }
 0x606   : > { %11771 = vmatprep.subr.bf16.mxu0 %v15820_v39  ;;  %v1758_v21 = vld [vmem:[%s17357_s27 + $0x2698] sm:$0xff]  ;;  %v15796_v3 = vcombine.high %v1630_v24, %v1634_v16  ;;  %v15795_v60 = vcombine.low %v1630_v24, %v1634_v16 }
 0x607   : > { %11813 = vmatpush2.bf16.msra.mxu1 %v15955_v20  ;;  %v1762_v4 = vld [vmem:[%s17357_s27 + $0x26b8] sm:$0xff] }
 0x608   : > { %11814 = vmatprep.subr.bf16.mxu1 %v15948_v34  ;;  %v15924_v58 = vcombine.high %v1758_v21, %v1762_v4  ;;  %v1622_v53 = vld [vmem:[%s17357_s27 + $0x2258] sm:$0xff]  ;;  %v15923_v57 = vcombine.low %v1758_v21, %v1762_v4 }
 0x609   : > { %11772 = vmatpush2.bf16.msra.mxu0 %v15819_v15  ;;  %v1626_v0 = vld [vmem:[%s17357_s27 + $0x2278] sm:$0xff] }
 0x60a   : > { %11773 = vmatprep.subr.bf16.mxu0 %v15812_v63  ;;  %v1750_v56 = vld [vmem:[%s17357_s27 + $0x2658] sm:$0xff]  ;;  %v15788_v42 = vcombine.high %v1622_v53, %v1626_v0  ;;  %v15787_v19 = vcombine.low %v1622_v53, %v1626_v0 }
 0x60b   : > { %11815 = vmatpush2.bf16.msra.mxu1 %v15947_v17  ;;  %v1754_v51 = vld [vmem:[%s17357_s27 + $0x2678] sm:$0xff] }
 0x60c   : > { %11816 = vmatprep.subr.bf16.mxu1 %v15940_v9  ;;  %v15916_v30 = vcombine.high %v1750_v56, %v1754_v51  ;;  %v1614_v54 = vld [vmem:[%s17357_s27 + $0x2218] sm:$0xff]  ;;  %v15915_v47 = vcombine.low %v1750_v56, %v1754_v51 }
 0x60d   : > { %11774 = vmatpush2.bf16.msra.mxu0 %v15811_v44  ;;  %v1618_v61 = vld [vmem:[%s17357_s27 + $0x2238] sm:$0xff] }
 0x60e   : > { %11775 = vmatprep.subr.bf16.mxu0 %v15804_v7  ;;  %v1742_v55 = vld [vmem:[%s17357_s27 + $0x2618] sm:$0xff]  ;;  %v15780_v37 = vcombine.high %v1614_v54, %v1618_v61  ;;  %v15779_v29 = vcombine.low %v1614_v54, %v1618_v61 }
 0x60f   : > { %11817 = vmatpush2.bf16.msra.mxu1 %v15939_v10  ;;  %v1746_v59 = vld [vmem:[%s17357_s27 + $0x2638] sm:$0xff] }
 0x610   : > { %11818 = vmatprep.subr.bf16.mxu1 %v15932_v38  ;;  %v15908_v62 = vcombine.high %v1742_v55, %v1746_v59  ;;  %v1862_v1 = vld [vmem:[%s17357_s27 + $0x29d8] sm:$0xff]  ;;  %v15907_v28 = vcombine.low %v1742_v55, %v1746_v59 }
 0x611   : > { %11776 = vmatpush2.bf16.msra.mxu0 %v15803_v43  ;;  %v1866_v52 = vld [vmem:[%s17357_s27 + $0x29f8] sm:$0xff] }
 0x612   : > { %11777 = vmatprep.subr.bf16.mxu0 %v15796_v3  ;;  %v1990_v6 = vld [vmem:[%s17357_s27 + $0x2dd8] sm:$0xff]  ;;  %v16028_v12 = vcombine.high %v1862_v1, %v1866_v52  ;;  %v16027_v50 = vcombine.low %v1862_v1, %v1866_v52 }
 0x613   : > { %11819 = vmatpush2.bf16.msra.mxu1 %v15931_v18  ;;  %v1994_v33 = vld [vmem:[%s17357_s27 + $0x2df8] sm:$0xff] }
 0x614   : > { %11820 = vmatprep.subr.bf16.mxu1 %v15924_v58  ;;  %v16156_v32 = vcombine.high %v1990_v6, %v1994_v33  ;;  %v1854_v27 = vld [vmem:[%s17357_s27 + $0x2998] sm:$0xff]  ;;  %v16155_v36 = vcombine.low %v1990_v6, %v1994_v33 }
 0x615   : > { %11778 = vmatpush2.bf16.msra.mxu0 %v15795_v60  ;;  %v1858_v22 = vld [vmem:[%s17357_s27 + $0x29b8] sm:$0xff] }
 0x616   : > { %11779 = vmatprep.subr.bf16.mxu0 %v15788_v42  ;;  %v1982_v25 = vld [vmem:[%s17357_s27 + $0x2d98] sm:$0xff]  ;;  %v16020_v35 = vcombine.high %v1854_v27, %v1858_v22  ;;  %v16019_v31 = vcombine.low %v1854_v27, %v1858_v22 }
 0x617   : > { %11821 = vmatpush2.bf16.msra.mxu1 %v15923_v57  ;;  %v1986_v23 = vld [vmem:[%s17357_s27 + $0x2db8] sm:$0xff] }
 0x618   : > { %11822 = vmatprep.subr.bf16.mxu1 %v15916_v30  ;;  %v16148_v20 = vcombine.high %v1982_v25, %v1986_v23  ;;  %v1846_v39 = vld [vmem:[%s17357_s27 + $0x2958] sm:$0xff]  ;;  %v16147_v8 = vcombine.low %v1982_v25, %v1986_v23 }
 0x619   : > { %11780 = vmatpush2.bf16.msra.mxu0 %v15787_v19  ;;  %v1850_v34 = vld [vmem:[%s17357_s27 + $0x2978] sm:$0xff] }
 0x61a   : > { %11781 = vmatprep.subr.bf16.mxu0 %v15780_v37  ;;  %v1974_v11 = vld [vmem:[%s17357_s27 + $0x2d58] sm:$0xff]  ;;  %v16012_v15 = vcombine.high %v1846_v39, %v1850_v34 }
 0x61b   : > { %11823 = vmatpush2.bf16.msra.mxu1 %v15915_v47  ;;  %v1978_v49 = vld [vmem:[%s17357_s27 + $0x2d78] sm:$0xff] }
 0x61c   : > { %11824 = vmatprep.subr.bf16.mxu1 %v15908_v62  ;;  %v16140_v17 = vcombine.high %v1974_v11, %v1978_v49  ;;  %v1838_v63 = vld [vmem:[%s17357_s27 + $0x2918] sm:$0xff]  ;;  %v16139_v41 = vcombine.low %v1974_v11, %v1978_v49 }
 0x61d   : > { %11782 = vmatpush2.bf16.msra.mxu0 %v15779_v29  ;;  %v1842_v9 = vld [vmem:[%s17357_s27 + $0x2938] sm:$0xff] }
 0x61e   : > { %11837 = vmatprep.subr.bf16.mxu0 %v16028_v12  ;;  %v1970_v26 = vld [vmem:[%s17357_s27 + $0x2d38] sm:$0xff]  ;;  %v16004_v45 = vcombine.high %v1838_v63, %v1842_v9  ;;  %v16003_v38 = vcombine.low %v1838_v63, %v1842_v9 }
 0x61f   : > { %11825 = vmatpush2.bf16.msra.mxu1 %v15907_v28  ;;  %v1830_v44 = vld [vmem:[%s17357_s27 + $0x28d8] sm:$0xff] }
 0x620   : > { %11880 = vmatprep.subr.bf16.mxu1 %v16156_v32  ;;  %11784 = vmatmul.mubr.bf16.vlgmr.msra.gmra.mxu0 %v17843_v48  ;;  %v1966_v48 = vld [vmem:[%s17357_s27 + $0x2d18] sm:$0xff] }
 0x621   : > { %11838 = vmatpush1.bf16.msra.mxu0 %v16027_v50  ;;  %11869 = vmatprep.mubr.bf16.mxu0 %v17866_v13  ;;  %v16132_v40 = vcombine.high %v1966_v48, %v1970_v26  ;;  %v1834_v10 = vld [vmem:[%s17357_s27 + $0x28f8] sm:$0xff] }
 0x622   : > { %11827 = vmatmul.mubr.bf16.vlgmr.msra.gmra.mxu1 %v17854_v46  ;;  %11839 = vmatprep.subr.bf16.mxu0 %v16020_v35  ;;  %v16011_v46 = vcombine.low %v1846_v39, %v1850_v34  ;;  %v1958_v7 = vld [vmem:[%s17357_s27 + $0x2cd8] sm:$0xff]  ;;  %v15996_v24 = vcombine.high %v1830_v44, %v1834_v10  ;;  %v15995_v3 = vcombine.low %v1830_v44, %v1834_v10 }
 0x623   : > { %11881 = vmatpush1.bf16.msra.mxu1 %v16155_v36  ;;  %11912 = vmatprep.mubr.bf16.mxu1 %v17873_v14  ;;  %v1962_v13 = vld [vmem:[%s17357_s27 + $0x2cf8] sm:$0xff]  ;;  %v16131_v14 = vcombine.low %v1966_v48, %v1970_v26 }
 0x624   : > { %11882 = vmatprep.subr.bf16.mxu1 %v16148_v20  ;;  %v16124_v16 = vcombine.high %v1958_v7, %v1962_v13  ;;  %v1822_v21 = vld [vmem:[%s17357_s27 + $0x2898] sm:$0xff]  ;;  %v16123_v58 = vcombine.low %v1958_v7, %v1962_v13 }
 0x625   : > { %11840 = vmatpush1.bf16.msra.mxu0 %v16019_v31  ;;  %v1826_v4 = vld [vmem:[%s17357_s27 + $0x28b8] sm:$0xff] }
 0x626   : > { %11841 = vmatprep.subr.bf16.mxu0 %v16012_v15  ;;  %v1950_v43 = vld [vmem:[%s17357_s27 + $0x2c98] sm:$0xff]  ;;  %v15988_v53 = vcombine.high %v1822_v21, %v1826_v4  ;;  %v15987_v42 = vcombine.low %v1822_v21, %v1826_v4 }
 0x627   : > { %11883 = vmatpush1.bf16.msra.mxu1 %v16147_v8  ;;  %v1954_v18 = vld [vmem:[%s17357_s27 + $0x2cb8] sm:$0xff] }
 0x628   : > { %11884 = vmatprep.subr.bf16.mxu1 %v16140_v17  ;;  %v16116_v0 = vcombine.high %v1950_v43, %v1954_v18  ;;  %v1814_v56 = vld [vmem:[%s17357_s27 + $0x2858] sm:$0xff]  ;;  %v16115_v30 = vcombine.low %v1950_v43, %v1954_v18 }
 0x629   : > { %11842 = vmatpush1.bf16.msra.mxu0 %v16011_v46  ;;  %v1818_v51 = vld [vmem:[%s17357_s27 + $0x2878] sm:$0xff] }
 0x62a   : > { %11843 = vmatprep.subr.bf16.mxu0 %v16004_v45  ;;  %v1942_v60 = vld [vmem:[%s17357_s27 + $0x2c58] sm:$0xff]  ;;  %v15980_v54 = vcombine.high %v1814_v56, %v1818_v51  ;;  %v15979_v37 = vcombine.low %v1814_v56, %v1818_v51 }
 0x62b   : > { %11885 = vmatpush1.bf16.msra.mxu1 %v16139_v41  ;;  %v1946_v57 = vld [vmem:[%s17357_s27 + $0x2c78] sm:$0xff] }
 0x62c   : > { %11886 = vmatprep.subr.bf16.mxu1 %v16132_v40  ;;  %v16108_v61 = vcombine.high %v1942_v60, %v1946_v57  ;;  %v1806_v55 = vld [vmem:[%s17357_s27 + $0x2818] sm:$0xff]  ;;  %v16107_v62 = vcombine.low %v1942_v60, %v1946_v57 }
 0x62d   : > { %11844 = vmatpush1.bf16.msra.mxu0 %v16003_v38  ;;  %v1810_v59 = vld [vmem:[%s17357_s27 + $0x2838] sm:$0xff] }
 0x62e   : > { %11845 = vmatprep.subr.bf16.mxu0 %v15996_v24  ;;  %v1934_v19 = vld [vmem:[%s17357_s27 + $0x2c18] sm:$0xff]  ;;  %v15972_v1 = vcombine.high %v1806_v55, %v1810_v59  ;;  %v15971_v12 = vcombine.low %v1806_v55, %v1810_v59 }
 0x62f   : > { %11887 = vmatpush1.bf16.msra.mxu1 %v16131_v14  ;;  %v1938_v47 = vld [vmem:[%s17357_s27 + $0x2c38] sm:$0xff] }
 0x630   : > { %11888 = vmatprep.subr.bf16.mxu1 %v16124_v16  ;;  %v16100_v52 = vcombine.high %v1934_v19, %v1938_v47  ;;  %v1926_v6 = vld [vmem:[%s17357_s27 + $0x2bd8] sm:$0xff]  ;;  %v16099_v32 = vcombine.low %v1934_v19, %v1938_v47 }
 0x631   : > { %11846 = vmatpush1.bf16.msra.mxu0 %v15995_v3  ;;  %v1930_v33 = vld [vmem:[%s17357_s27 + $0x2bf8] sm:$0xff] }
 0x632   : > { %11847 = vmatprep.subr.bf16.mxu0 %v15988_v53  ;;  %v2054_v29 = vld [vmem:[%s17357_s27 + $0x2fd8] sm:$0xff]  ;;  %v16092_v27 = vcombine.high %v1926_v6, %v1930_v33  ;;  %v16091_v35 = vcombine.low %v1926_v6, %v1930_v33 }
 0x633   : > { %11889 = vmatpush1.bf16.msra.mxu1 %v16123_v58  ;;  %v2058_v28 = vld [vmem:[%s17357_s27 + $0x2ff8] sm:$0xff] }
 0x634   : > { %11890 = vmatprep.subr.bf16.mxu1 %v16116_v0  ;;  %v16220_v22 = vcombine.high %v2054_v29, %v2058_v28  ;;  %v1918_v25 = vld [vmem:[%s17357_s27 + $0x2b98] sm:$0xff]  ;;  %v16219_v20 = vcombine.low %v2054_v29, %v2058_v28 }
 0x635   : > { %11848 = vmatpush1.bf16.msra.mxu0 %v15987_v42  ;;  %v1922_v23 = vld [vmem:[%s17357_s27 + $0x2bb8] sm:$0xff] }
 0x636   : > { %11849 = vmatprep.subr.bf16.mxu0 %v15980_v54  ;;  %v2046_v50 = vld [vmem:[%s17357_s27 + $0x2f98] sm:$0xff]  ;;  %v16084_v39 = vcombine.high %v1918_v25, %v1922_v23  ;;  %v16083_v15 = vcombine.low %v1918_v25, %v1922_v23 }
 0x637   : > { %11891 = vmatpush1.bf16.msra.mxu1 %v16115_v30  ;;  %v2050_v36 = vld [vmem:[%s17357_s27 + $0x2fb8] sm:$0xff] }
 0x638   : > { %11892 = vmatprep.subr.bf16.mxu1 %v16108_v61  ;;  %v16212_v34 = vcombine.high %v2046_v50, %v2050_v36  ;;  %v1910_v11 = vld [vmem:[%s17357_s27 + $0x2b58] sm:$0xff]  ;;  %v16211_v17 = vcombine.low %v2046_v50, %v2050_v36 }
 0x639   : > { %11850 = vmatpush1.bf16.msra.mxu0 %v15979_v37  ;;  %v1914_v49 = vld [vmem:[%s17357_s27 + $0x2b78] sm:$0xff] }
 0x63a   : > { %11851 = vmatprep.subr.bf16.mxu0 %v15972_v1  ;;  %v2038_v31 = vld [vmem:[%s17357_s27 + $0x2f58] sm:$0xff]  ;;  %v16076_v63 = vcombine.high %v1910_v11, %v1914_v49  ;;  %v16075_v45 = vcombine.low %v1910_v11, %v1914_v49 }
 0x63b   : > { %11893 = vmatpush1.bf16.msra.mxu1 %v16107_v62  ;;  %v2042_v8 = vld [vmem:[%s17357_s27 + $0x2f78] sm:$0xff] }
 0x63c   : > { %11894 = vmatprep.subr.bf16.mxu1 %v16100_v52  ;;  %v16204_v9 = vcombine.high %v2038_v31, %v2042_v8  ;;  %v1902_v48 = vld [vmem:[%s17357_s27 + $0x2b18] sm:$0xff]  ;;  %v16203_v40 = vcombine.low %v2038_v31, %v2042_v8 }
 0x63d   : > { %11852 = vmatpush1.bf16.msra.mxu0 %v15971_v12  ;;  %v1906_v26 = vld [vmem:[%s17357_s27 + $0x2b38] sm:$0xff]  ;;  %v11441_v12 = vpop.f32.mrf.mxu0 }
 0x63e   : > { %11853 = vmatprep.subr.bf16.mxu0 %v16092_v27  ;;  %v2030_v46 = vld [vmem:[%s17357_s27 + $0x2f18] sm:$0xff]  ;;  %v16068_v44 = vcombine.high %v1902_v48, %v1906_v26  ;;  %v16067_v24 = vcombine.low %v1902_v48, %v1906_v26 }
 0x63f   : > { %11895 = vmatpush1.bf16.msra.mxu1 %v16099_v32  ;;  %v2034_v41 = vld [vmem:[%s17357_s27 + $0x2f38] sm:$0xff]  ;;  %v11484_v32 = vpop.f32.mrf.mxu1  ;;  %v11443_v27 = vpop.f32.mrf.mxu0 }
 0x640   : > { %11896 = vmatprep.subr.bf16.mxu1 %v16220_v22  ;;  %v16196_v10 = vcombine.high %v2030_v46, %v2034_v41  ;;  %v1894_v7 = vld [vmem:[%s17357_s27 + $0x2ad8] sm:$0xff]  ;;  %v16195_v16 = vcombine.low %v2030_v46, %v2034_v41 }
 0x641   : > { %11854 = vmatpush2.bf16.msra.mxu0 %v16091_v35  ;;  %v1898_v13 = vld [vmem:[%s17357_s27 + $0x2af8] sm:$0xff]  ;;  %v11486_v22 = vpop.f32.mrf.mxu1  ;;  %v11445_v25 = vpop.f32.mrf.mxu0 }
 0x642   : > { %11855 = vmatprep.subr.bf16.mxu0 %v16084_v39  ;;  %v2022_v38 = vld [vmem:[%s17357_s27 + $0x2ed8] sm:$0xff]  ;;  %v16060_v21 = vcombine.high %v1894_v7, %v1898_v13  ;;  %v16059_v53 = vcombine.low %v1894_v7, %v1898_v13 }
 0x643   : > { %11897 = vmatpush2.bf16.msra.mxu1 %v16219_v20  ;;  %v2026_v14 = vld [vmem:[%s17357_s27 + $0x2ef8] sm:$0xff]  ;;  %v11488_v23 = vpop.f32.mrf.mxu1  ;;  %v11447_v50 = vpop.f32.mrf.mxu0 }
 0x644   : > { %11898 = vmatprep.subr.bf16.mxu1 %v16212_v34  ;;  %v16188_v4 = vcombine.high %v2022_v38, %v2026_v14  ;;  %v1886_v43 = vld [vmem:[%s17357_s27 + $0x2a98] sm:$0xff]  ;;  %v16187_v0 = vcombine.low %v2022_v38, %v2026_v14  ;;  %v11489_v13 = vadd.f32 %v11488_v23, %v11445_v25 }
 0x645   : > { %11856 = vmatpush2.bf16.msra.mxu0 %v16083_v15  ;;  %v1890_v18 = vld [vmem:[%s17357_s27 + $0x2ab8] sm:$0xff]  ;;  %v11490_v36 = vpop.f32.mrf.mxu1  ;;  %v11527_v35 = vpop.f32.mrf.mxu0 }
 0x646   : > { %11857 = vmatprep.subr.bf16.mxu0 %v16076_v63  ;;  %v2014_v3 = vld [vmem:[%s17357_s27 + $0x2e98] sm:$0xff]  ;;  %v16052_v56 = vcombine.high %v1886_v43, %v1890_v18  ;;  %v16051_v54 = vcombine.low %v1886_v43, %v1890_v18 }
 0x647   : > { %11899 = vmatpush2.bf16.msra.mxu1 %v16211_v17  ;;  %v2018_v58 = vld [vmem:[%s17357_s27 + $0x2eb8] sm:$0xff]  ;;  %v11570_v20 = vpop.f32.mrf.mxu1  ;;  %v11529_v39 = vpop.f32.mrf.mxu0 }
 0x648   : > { %11900 = vmatprep.subr.bf16.mxu1 %v16204_v9  ;;  %v16180_v51 = vcombine.high %v2014_v3, %v2018_v58  ;;  %v1878_v60 = vld [vmem:[%s17357_s27 + $0x2a58] sm:$0xff]  ;;  %v16179_v61 = vcombine.low %v2014_v3, %v2018_v58 }
 0x649   : > { %11858 = vmatpush2.bf16.msra.mxu0 %v16075_v45  ;;  %v1882_v57 = vld [vmem:[%s17357_s27 + $0x2a78] sm:$0xff]  ;;  %v11572_v34 = vpop.f32.mrf.mxu1  ;;  %v11531_v11 = vpop.f32.mrf.mxu0  ;;  %v11485_v45 = vadd.f32 %v11484_v32, %v11441_v12 }
 0x64a   : > { %11859 = vmatprep.subr.bf16.mxu0 %v16068_v44  ;;  %v2006_v42 = vld [vmem:[%s17357_s27 + $0x2e58] sm:$0xff]  ;;  %v16044_v55 = vcombine.high %v1878_v60, %v1882_v57  ;;  %v16043_v1 = vcombine.low %v1878_v60, %v1882_v57  ;;  %v11487_v44 = vadd.f32 %v11486_v22, %v11443_v27 }
 0x64b   : > { %11901 = vmatpush2.bf16.msra.mxu1 %v16203_v40  ;;  %v2010_v30 = vld [vmem:[%s17357_s27 + $0x2e78] sm:$0xff]  ;;  %v11574_v49 = vpop.f32.mrf.mxu1  ;;  %v11533_v31 = vpop.f32.mrf.mxu0 }
 0x64c   : > { %11902 = vmatprep.subr.bf16.mxu1 %v16196_v10  ;;  %v16172_v59 = vcombine.high %v2006_v42, %v2010_v30  ;;  %v1870_v19 = vld [vmem:[%s17357_s27 + $0x2a18] sm:$0xff]  ;;  %v16171_v52 = vcombine.low %v2006_v42, %v2010_v30  ;;  %v11528_v10 = vadd.f32 %v11527_v35, %v11485_v45  ;;  %v11530_v38 = vadd.f32 %v11529_v39, %v11487_v44 }
 0x64d   : > { %11860 = vmatpush2.bf16.msra.mxu0 %v16067_v24  ;;  %v1874_v47 = vld [vmem:[%s17357_s27 + $0x2a38] sm:$0xff]  ;;  %v11576_v8 = vpop.f32.mrf.mxu1  ;;  %v11491_v24 = vadd.f32 %v11490_v36, %v11447_v50 }
 0x64e   : > { %11861 = vmatprep.subr.bf16.mxu0 %v16060_v21  ;;  %v1998_v37 = vld [vmem:[%s17357_s27 + $0x2e18] sm:$0xff]  ;;  %v16036_v6 = vcombine.high %v1870_v19, %v1874_v47  ;;  %v16035_v29 = vcombine.low %v1870_v19, %v1874_v47  ;;  %v11532_v21 = vadd.f32 %v11531_v11, %v11489_v13  ;;  %v11573_v43 = vadd.f32 %v11572_v34, %v11530_v38  ;;  %v498_v13 = vld [vmem:[#allocation2 + $0x28] sm:$0xff] }
 0x64f   : > { %11903 = vmatpush2.bf16.msra.mxu1 %v16195_v16  ;;  %v2002_v62 = vld [vmem:[%s17357_s27 + $0x2e38] sm:$0xff]  ;;  %v11571_v16 = vadd.f32 %v11570_v20, %v11528_v10  ;;  %v11534_v18 = vadd.f32 %v11533_v31, %v11491_v24 }
 0x650   : > { %11904 = vmatprep.subr.bf16.mxu1 %v16188_v4  ;;  %v16164_v33 = vcombine.high %v1998_v37, %v2002_v62  ;;  %v16163_v28 = vcombine.low %v1998_v37, %v2002_v62  ;;  %v497_v45 = vld [vmem:[#allocation2 + $0x78] sm:$0xff] }
 0x651   : > { %11862 = vmatpush2.bf16.msra.mxu0 %v16059_v53  ;;  %v11575_v53 = vadd.f32 %v11574_v49, %v11532_v21  ;;  %v11577_v60 = vadd.f32 %v11576_v8, %v11534_v18  ;;  %v489_v49 = vld [vmem:[#allocation2 + $0x8] sm:$0xff] }
 0x652   : > { %11863 = vmatprep.subr.bf16.mxu0 %v16052_v56 }
 0x653   : > { %11905 = vmatpush2.bf16.msra.mxu1 %v16187_v0 }
 0x654   : > { %11906 = vmatprep.subr.bf16.mxu1 %v16180_v51 }
 0x655   : > { %11864 = vmatpush2.bf16.msra.mxu0 %v16051_v54 }
 0x656   : > { %11865 = vmatprep.subr.bf16.mxu0 %v16044_v55 }
 0x657   : > { %11907 = vmatpush2.bf16.msra.mxu1 %v16179_v61 }
 0x658   : > { %11908 = vmatprep.subr.bf16.mxu1 %v16172_v59 }
 0x659   : > { %11866 = vmatpush2.bf16.msra.mxu0 %v16043_v1 }
 0x65a   : > { %11867 = vmatprep.subr.bf16.mxu0 %v16036_v6 }
 0x65b   : > { %11909 = vmatpush2.bf16.msra.mxu1 %v16171_v52 }
 0x65c   : > { %11910 = vmatprep.subr.bf16.mxu1 %v16164_v33 }
 0x65d   : > { %11868 = vmatpush2.bf16.msra.mxu0 %v16035_v29 }
 0x65f   : > { %11911 = vmatpush2.bf16.msra.mxu1 %v16163_v28 }
 0x660   : > { %11870 = vmatmul.mubr.bf16.vlgmr.msra.gmra.mxu0 %v17938_v2  ;;  %v11613_v15 = vpop.f32.mrf.mxu0 }
 0x661   : > { %v11614_v3 = vadd.f32 %v11613_v15, %v11571_v16 }
 0x662   : > { %11913 = vmatmul.mubr.bf16.vlgmr.msra.gmra.mxu1 %v17944_v5  ;;  %v11656_v2 = vpop.f32.mrf.mxu1  ;;  %v11615_v17 = vpop.f32.mrf.mxu0 }
 0x663   : > { %v11616_v0 = vadd.f32 %v11615_v17, %v11573_v43  ;;  %v11657_v57 = vadd.f32 %v11656_v2, %v11614_v3 }
 0x664   : > { %v11658_v5 = vpop.f32.mrf.mxu1  ;;  %v11617_v63 = vpop.f32.mrf.mxu0 }
 0x665   : > { %v11618_v42 = vadd.f32 %v11617_v63, %v11575_v53  ;;  %v11659_v54 = vadd.f32 %v11658_v5, %v11616_v0  ;;  %v490_v5 = vld [vmem:[#allocation2 + $0x48] sm:$0xff] }
 0x666   : > { %v11660_v9 = vpop.f32.mrf.mxu1  ;;  %v11619_v48 = vpop.f32.mrf.mxu0 }
 0x667   : > { %v11620_v61 = vadd.f32 %v11619_v48, %v11577_v60  ;;  %v11661_v19 = vadd.f32 %v11660_v9, %v11618_v42 }
 0x668   : > { %v11662_v26 = vpop.f32.mrf.mxu1 }
 0x669   : > { %v11663_v62 = vadd.f32 %v11662_v26, %v11620_v61 }
 0x6a0   : > { %v11699_v46 = vpop.f32.mrf.mxu0 }
 0x6a1   : > { %v11700_v55 = vadd.f32 %v11699_v46, %v11657_v57 }
 0x6a2   : > { %v11742_v41 = vpop.f32.mrf.mxu1  ;;  %v11701_v40 = vpop.f32.mrf.mxu0 }
 0x6a3   : > { %v11702_v47 = vadd.f32 %v11701_v40, %v11659_v54  ;;  %v11743_v1 = vadd.f32 %v11742_v41, %v11700_v55 }
 0x6a4   : > { %v11744_v7 = vpop.f32.mrf.mxu1  ;;  %v11703_v14 = vpop.f32.mrf.mxu0 }
 0x6a5   : > { %v11704_v52 = vadd.f32 %v11703_v14, %v11661_v19  ;;  %v11745_v33 = vadd.f32 %v11744_v7, %v11702_v47 }
 0x6a6   : > { %v11746_v4 = vpop.f32.mrf.mxu1  ;;  %v11705_v58 = vpop.f32.mrf.mxu0 }
 0x6a7   : > { %v11706_v29 = vadd.f32 %v11705_v58, %v11663_v62  ;;  %v11747_v32 = vadd.f32 %v11746_v4, %v11704_v52 }
 0x6a8   : > { %v11748_v56 = vpop.f32.mrf.mxu1 }
 0x6a9   : > { %v11749_v25 = vadd.f32 %v11748_v56, %v11706_v29 }
 0x6e0   : > { %v11785_v51 = vpop.f32.mrf.mxu0 }
 0x6e1   : > { %v11786_v28 = vadd.f32 %v11785_v51, %v11743_v1 }
 0x6e2   : > { %v11828_v30 = vpop.f32.mrf.mxu1  ;;  %v11787_v59 = vpop.f32.mrf.mxu0 }
 0x6e3   : > { %v11788_v27 = vadd.f32 %v11787_v59, %v11745_v33  ;;  %v11829_v23 = vadd.f32 %v11828_v30, %v11786_v28 }
 0x6e4   : > { %v11830_v37 = vpop.f32.mrf.mxu1  ;;  %v11789_v6 = vpop.f32.mrf.mxu0 }
 0x6e5   : > { %v11790_v50 = vadd.f32 %v11789_v6, %v11747_v32  ;;  %v11831_v20 = vadd.f32 %v11830_v37, %v11788_v27 }
 0x6e6   : > { %v11832_v12 = vpop.f32.mrf.mxu1  ;;  %v11791_v22 = vpop.f32.mrf.mxu0 }
 0x6e7   : > { %v11792_v39 = vadd.f32 %v11791_v22, %v11749_v25  ;;  %v11833_v8 = vadd.f32 %v11832_v12, %v11790_v50 }
 0x6e8   : > { %v11834_v36 = vpop.f32.mrf.mxu1 }
 0x6e9   : > { %v11835_v9 = vadd.f32 %v11834_v36, %v11792_v39 }
 0x720   : > { %v11871_v35 = vpop.f32.mrf.mxu0 }
 0x721   : > { %v11872_v34 = vadd.f32 %v11871_v35, %v11829_v23 }
 0x722   : > { %v11914_v11 = vpop.f32.mrf.mxu1  ;;  %v11873_v31 = vpop.f32.mrf.mxu0 }
 0x723   : > { %v11915_v15 = vadd.f32 %v11914_v11, %v11872_v34  ;;  %v11874_v2 = vadd.f32 %v11873_v31, %v11831_v20 }
 0x724   : > { %v11916_v17 = vpop.f32.mrf.mxu1  ;;  %v11875_v63 = vpop.f32.mrf.mxu0 }
 0x725   : > { %v11929_v48 = vadd.f32 %v11915_v15, %v489_v49  ;;  %v11917_v26 = vadd.f32 %v11916_v17, %v11874_v2  ;;  %v11876_v46 = vadd.f32 %v11875_v63, %v11833_v8 }
 0x726   : > { %v11918_v41 = vpop.f32.mrf.mxu1  ;;  %v11877_v40 = vpop.f32.mrf.mxu0 }
 0x727   : > { %11945 = vst [vmem:[#allocation2 + $0x8] sm:$0xff] %v11929_v48  ;;  %v11930_v44 = vadd.f32 %v11917_v26, %v490_v5  ;;  %v11919_v10 = vadd.f32 %v11918_v41, %v11876_v46  ;;  %v11878_v7 = vadd.f32 %v11877_v40, %v11835_v9 }
 0x728   : > { %v11920_v38 = vpop.f32.mrf.mxu1 }
 0x729   : > { %11946 = vst [vmem:[#allocation2 + $0x48] sm:$0xff] %v11930_v44  ;;  %v11937_v14 = vadd.f32 %v11919_v10, %v497_v45  ;;  %v11921_v24 = vadd.f32 %v11920_v38, %v11878_v7  ;;  %11958 = sbr.rel (%p16221_p6) target bundleno = 2685 (0xa7d), region = 91 }
 0x72b   : > { %11953 = vst [vmem:[#allocation2 + $0x78] sm:$0xff] %v11937_v14  ;;  %v11938_v16 = vadd.f32 %v11921_v24, %v498_v13 }
 0x72d   : > { %11954 = vst [vmem:[#allocation2 + $0x28] sm:$0xff] %v11938_v16 }
 0x72e   : > { %v16610_v21 = vld [vmem:[%s20541_s3 + $0xe4] ss:$16 sps:$4 sm:$0xff]   ;;  %v16614_v43 = vld [vmem:[%s20541_s3 + $0xe0] ss:$16 sps:$4 sm:$0xff]   ;;  %v11977_v20 = vlaneseq  ;;  %v11962_v45 = vld [vmem:[#allocation2 + $0x18] sm:$0xff] }
 0x72f   : > { %v16612_v4 = vld [vmem:[%s20541_s3 + $0x2e4] ss:$16 sps:$4 sm:$0xff]   ;;  %13647 = vmatprep.subr.bf16.mxu0 %v16610_v21  ;;  %v16615_v18 = vld [vmem:[%s20541_s3 + $0x2e0] ss:$16 sps:$4 sm:$0xff]   ;;  %v11970_v13 = vld [vmem:[#allocation2 + $0x38] sm:$0xff] }
 0x730   : > { %13690 = vmatprep.subr.bf16.mxu1 %v16612_v4  ;;  %v16616_v3 = vld [vmem:[%s20541_s3 + $0xc4] ss:$16 sps:$4 sm:$0xff]   ;;  %13648 = vmatpush1.bf16.msra.mxu0 %v16614_v43  ;;  %v16620_v53 = vld [vmem:[%s20541_s3 + $0xc0] ss:$16 sps:$4 sm:$0xff]   ;;  %v19579_v31 = vshrl.u32 %v11977_v20, 7 }
 0x731   : > { %13691 = vmatpush1.bf16.msra.mxu1 %v16615_v18  ;;  %v16618_v58 = vld [vmem:[%s20541_s3 + $0x2c4] ss:$16 sps:$4 sm:$0xff]   ;;  %13649 = vmatprep.subr.bf16.mxu0 %v16616_v3  ;;  %v16621_v0 = vld [vmem:[%s20541_s3 + $0x2c0] ss:$16 sps:$4 sm:$0xff]  }
 0x732   : > { %13692 = vmatprep.subr.bf16.mxu1 %v16618_v58  ;;  %v16622_v56 = vld [vmem:[%s20541_s3 + $0xa4] ss:$16 sps:$4 sm:$0xff]   ;;  %v16626_v60 = vld [vmem:[%s20541_s3 + $0xa0] ss:$16 sps:$4 sm:$0xff]   ;;  %v19594_v5 = vsub.s32 1, %v19579_v31  ;;  %v11991_v63 = vsub.s32 3, %v19579_v31 }
 0x733   : > { %v16624_v51 = vld [vmem:[%s20541_s3 + $0x2a4] ss:$16 sps:$4 sm:$0xff]   ;;  %v16627_v57 = vld [vmem:[%s20541_s3 + $0x2a0] ss:$16 sps:$4 sm:$0xff]   ;;  %v19601_v48 = vsub.s32 0, %v19579_v31  ;;  %v11987_v40 = vsub.s32 2, %v19579_v31 }
 0x734   : > { %13650 = vmatpush1.bf16.msra.mxu0 %v16620_v53  ;;  %v16628_v42 = vld [vmem:[%s20541_s3 + $0x84] ss:$16 sps:$4 sm:$0xff]   ;;  %v16632_v54 = vld [vmem:[%s20541_s3 + $0x80] ss:$16 sps:$4 sm:$0xff]  }
 0x735   : > { %13693 = vmatpush1.bf16.msra.mxu1 %v16621_v0  ;;  %13651 = vmatprep.subr.bf16.mxu0 %v16622_v56  ;;  %v16630_v30 = vld [vmem:[%s20541_s3 + $0x284] ss:$16 sps:$4 sm:$0xff]   ;;  %v16633_v61 = vld [vmem:[%s20541_s3 + $0x280] ss:$16 sps:$4 sm:$0xff]  }
 0x736   : > { %13694 = vmatprep.subr.bf16.mxu1 %v16624_v51  ;;  %v16634_v55 = vld [vmem:[%s20541_s3 + $0x64] ss:$16 sps:$4 sm:$0xff]   ;;  %v16638_v19 = vld [vmem:[%s20541_s3 + $0x60] ss:$16 sps:$4 sm:$0xff]  }
 0x737   : > { %v16636_v59 = vld [vmem:[%s20541_s3 + $0x264] ss:$16 sps:$4 sm:$0xff]   ;;  %v16639_v47 = vld [vmem:[%s20541_s3 + $0x260] ss:$16 sps:$4 sm:$0xff]  }
 0x738   : > { %13652 = vmatpush1.bf16.msra.mxu0 %v16626_v60  ;;  %v16640_v37 = vld [vmem:[%s20541_s3 + $0x44] ss:$16 sps:$4 sm:$0xff]   ;;  %v16644_v1 = vld [vmem:[%s20541_s3 + $0x40] ss:$16 sps:$4 sm:$0xff]   ;;  %v11961_v60 = vld [vmem:[#allocation2 + $0x58] sm:$0xff] }
 0x739   : > { %13695 = vmatpush1.bf16.msra.mxu1 %v16627_v57  ;;  %13653 = vmatprep.subr.bf16.mxu0 %v16628_v42  ;;  %v16642_v62 = vld [vmem:[%s20541_s3 + $0x244] ss:$16 sps:$4 sm:$0xff]   ;;  %v16645_v52 = vld [vmem:[%s20541_s3 + $0x240] ss:$16 sps:$4 sm:$0xff]  }
 0x73a   : > { %13696 = vmatprep.subr.bf16.mxu1 %v16630_v30  ;;  %v16646_v6 = vld [vmem:[%s20541_s3 + $0x24] ss:$16 sps:$4 sm:$0xff]   ;;  %v16650_v29 = vld [vmem:[%s20541_s3 + $0x20] ss:$16 sps:$4 sm:$0xff]   ;;  %v11995_v30 = vsub.s32 4, %v19579_v31 }
 0x73b   : > { %v16648_v33 = vld [vmem:[%s20541_s3 + $0x224] ss:$16 sps:$4 sm:$0xff]   ;;  %v16651_v28 = vld [vmem:[%s20541_s3 + $0x220] ss:$16 sps:$4 sm:$0xff]  }
 0x73c   : > { %13654 = vmatpush1.bf16.msra.mxu0 %v16632_v54  ;;  %v16652_v12 = vld [vmem:[%s20541_s3 + $0x4] ss:$16 sps:$4 sm:$0xff]   ;;  %v16656_v27 = vld [vmem:[%s20541_s3] ss:$16 sps:$4 sm:$0xff]  }
 0x73d   : > { %13697 = vmatpush1.bf16.msra.mxu1 %v16633_v61  ;;  %13655 = vmatprep.subr.bf16.mxu0 %v16634_v55  ;;  %v16654_v32 = vld [vmem:[%s20541_s3 + $0x204] ss:$16 sps:$4 sm:$0xff]   ;;  %v16657_v22 = vld [vmem:[%s20541_s3 + $0x200] ss:$16 sps:$4 sm:$0xff]  }
 0x73e   : > { %13698 = vmatprep.subr.bf16.mxu1 %v16636_v59  ;;  %v16658_v25 = vld [vmem:[%s20541_s3 + $0x1e4] ss:$16 sps:$4 sm:$0xff]   ;;  %v16662_v50 = vld [vmem:[%s20541_s3 + $0x1e0] ss:$16 sps:$4 sm:$0xff]  }
 0x73f   : > { %v16660_v23 = vld [vmem:[%s20541_s3 + $0x3e4] ss:$16 sps:$4 sm:$0xff]   ;;  %v16663_v36 = vld [vmem:[%s20541_s3 + $0x3e0] ss:$16 sps:$4 sm:$0xff]  }
 0x740   : > { %13656 = vmatpush1.bf16.msra.mxu0 %v16638_v19  ;;  %v16664_v35 = vld [vmem:[%s20541_s3 + $0x1c4] ss:$16 sps:$4 sm:$0xff]   ;;  %v16668_v34 = vld [vmem:[%s20541_s3 + $0x1c0] ss:$16 sps:$4 sm:$0xff]  }
 0x741   : > { %13699 = vmatpush1.bf16.msra.mxu1 %v16639_v47  ;;  %13657 = vmatprep.subr.bf16.mxu0 %v16640_v37  ;;  %v16666_v39 = vld [vmem:[%s20541_s3 + $0x3c4] ss:$16 sps:$4 sm:$0xff]   ;;  %v16669_v11 = vld [vmem:[%s20541_s3 + $0x3c0] ss:$16 sps:$4 sm:$0xff]  }
 0x742   : > { %13700 = vmatprep.subr.bf16.mxu1 %v16642_v62  ;;  %v16670_v49 = vld [vmem:[%s20541_s3 + $0x1a4] ss:$16 sps:$4 sm:$0xff]   ;;  %v16674_v15 = vld [vmem:[%s20541_s3 + $0x1a0] ss:$16 sps:$4 sm:$0xff]   ;;  %v12003_v62 = vsub.s32 6, %v19579_v31 }
 0x743   : > { %v16672_v8 = vld [vmem:[%s20541_s3 + $0x3a4] ss:$16 sps:$4 sm:$0xff]   ;;  %v16675_v2 = vld [vmem:[%s20541_s3 + $0x3a0] ss:$16 sps:$4 sm:$0xff]  }
 0x744   : > { %13658 = vmatpush1.bf16.msra.mxu0 %v16644_v1  ;;  %v16676_v17 = vld [vmem:[%s20541_s3 + $0x184] ss:$16 sps:$4 sm:$0xff]   ;;  %v16680_v44 = vld [vmem:[%s20541_s3 + $0x180] ss:$16 sps:$4 sm:$0xff]  }
 0x745   : > { %13701 = vmatpush1.bf16.msra.mxu1 %v16645_v52  ;;  %13659 = vmatprep.subr.bf16.mxu0 %v16646_v6  ;;  %v16678_v9 = vld [vmem:[%s20541_s3 + $0x384] ss:$16 sps:$4 sm:$0xff]   ;;  %v16681_v10 = vld [vmem:[%s20541_s3 + $0x380] ss:$16 sps:$4 sm:$0xff]  }
 0x746   : > { %13702 = vmatprep.subr.bf16.mxu1 %v16648_v33  ;;  %v11960_v26 = vld [vmem:[#allocation2] sm:$0xff]  ;;  %v11959_v53 = vld [vmem:[#allocation2 + $0x30] sm:$0xff] }
 0x747   : > { %v11968_v46 = vld [vmem:[#allocation2 + $0x20] sm:$0xff]  ;;  %v11969_v57 = vld [vmem:[#allocation2 + $0x10] sm:$0xff] }
 0x748   : > { %13660 = vmatpush1.bf16.msra.mxu0 %v16650_v29  ;;  %v19606_v41 = vld [vmem:[%s20540_s2] sm:$0xff] }
 0x749   : > { %13703 = vmatpush1.bf16.msra.mxu1 %v16651_v28  ;;  %13661 = vmatprep.subr.bf16.mxu0 %v16652_v12  ;;  %v11984_v7 = vrot.slane %v19606_v41, %v19594_v5  ;;  %v11992_v38 = vrot.slane %v19606_v41, %v11991_v63  ;;  %v16682_v14 = vld [vmem:[%s20541_s3 + $0x164] ss:$16 sps:$4 sm:$0xff]   ;;  %v11980_v16 = vrot.slane %v19606_v41, %v19601_v48  ;;  %v16686_v21 = vld [vmem:[%s20541_s3 + $0x160] ss:$16 sps:$4 sm:$0xff]  }
 0x74a   : > { %13704 = vmatprep.subr.bf16.mxu1 %v16654_v32  ;;  %v16684_v24 = vld [vmem:[%s20541_s3 + $0x364] ss:$16 sps:$4 sm:$0xff]   ;;  %v16687_v4 = vld [vmem:[%s20541_s3 + $0x360] ss:$16 sps:$4 sm:$0xff]   ;;  %v11988_v42 = vrot.slane %v19606_v41, %v11987_v40 }
 0x74b   : > { %v12018_v43 = vadd.f32 %v11984_v7, %v11960_v26  ;;  %v12026_v18 = vadd.f32 %v11984_v7, %v11968_v46  ;;  %v12020_v3 = vadd.f32 %v11992_v38, %v11962_v45  ;;  %v12028_v58 = vadd.f32 %v11992_v38, %v11970_v13  ;;  %v11967_v0 = vld [vmem:[#allocation2 + $0x40] sm:$0xff] }
 0x74c   : > { %13662 = vmatpush1.bf16.msra.mxu0 %v16656_v27  ;;  %v16688_v56 = vld [vmem:[%s20541_s3 + $0x144] ss:$16 sps:$4 sm:$0xff]   ;;  %v12017_v37 = vadd.f32 %v11980_v16, %v11959_v53  ;;  %v16692_v1 = vld [vmem:[%s20541_s3 + $0x140] ss:$16 sps:$4 sm:$0xff]   ;;  %v12025_v29 = vadd.f32 %v11980_v16, %v11967_v0  ;;  %v12019_v32 = vadd.f32 %v11988_v42, %v11961_v60  ;;  %v12027_v27 = vadd.f32 %v11988_v42, %v11969_v57 }
 0x74d   : > { %13705 = vmatpush1.bf16.msra.mxu1 %v16657_v22  ;;  %13663 = vmatprep.subr.bf16.mxu0 %v16658_v25  ;;  %v16690_v51 = vld [vmem:[%s20541_s3 + $0x344] ss:$16 sps:$4 sm:$0xff]   ;;  %vm12034_vm0 = vcmp.gt.f32.partialorder %v12018_v43, 0.0  ;;  %vm12042_vm1 = vcmp.gt.f32.partialorder %v12026_v18, 0.0  ;;  %v12050_v54 = vmul.f32 0.2, %v12018_v43 }
 0x74e   : > { %13706 = vmatprep.subr.bf16.mxu1 %v16660_v23  ;;  %v12058_v61 = vmul.f32 0.2, %v12026_v18  ;;  %vm12036_vm2 = vcmp.gt.f32.partialorder %v12020_v3, 0.0  ;;  %vm12044_vm3 = vcmp.gt.f32.partialorder %v12028_v58, 0.0  ;;  %v12052_v55 = vmul.f32 0.2, %v12020_v3 }
 0x74f   : > { %v12060_v59 = vmul.f32 0.2, %v12028_v58  ;;  %v12066_v19 = vsel %vm12034_vm0, %v12018_v43, %v12050_v54  ;;  %v16693_v28 = vld [vmem:[%s20541_s3 + $0x340] ss:$16 sps:$4 sm:$0xff]   ;;  %v16694_v22 = vld [vmem:[%s20541_s3 + $0x124] ss:$16 sps:$4 sm:$0xff]   ;;  %v19662_v23 = vrot.slane %v19606_v41, %v11995_v30 }
 0x750   : > { %13664 = vmatpush2.bf16.msra.mxu0 %v16662_v50  ;;  %v12074_v47 = vsel %vm12042_vm1, %v12026_v18, %v12058_v61  ;;  %v12068_v6 = vsel %vm12036_vm2, %v12020_v3, %v12052_v55  ;;  %v16696_v25 = vld [vmem:[%s20541_s3 + $0x324] ss:$16 sps:$4 sm:$0xff]   ;;  %v16698_v50 = vld [vmem:[%s20541_s3 + $0x120] ss:$16 sps:$4 sm:$0xff]   ;;  %vm12033_vm4 = vcmp.gt.f32.partialorder %v12017_v37, 0.0  ;;  %vm12041_vm5 = vcmp.gt.f32.partialorder %v12025_v29, 0.0 }
 0x751   : > { %13707 = vmatpush2.bf16.msra.mxu1 %v16663_v36  ;;  %13665 = vmatprep.subr.bf16.mxu0 %v16664_v35  ;;  %v19648_v52 = vpack.c.bf16 %v12074_v47, %v12066_v19  ;;  %v12076_v33 = vsel %vm12044_vm3, %v12028_v58, %v12060_v59  ;;  %v16699_v36 = vld [vmem:[%s20541_s3 + $0x320] ss:$16 sps:$4 sm:$0xff]   ;;  %v19673_v35 = vrot.slane %v19606_v41, %v12003_v62  ;;  %v16700_v20 = vld [vmem:[%s20541_s3 + $0x104] ss:$16 sps:$4 sm:$0xff]   ;;  %vm12035_vm6 = vcmp.gt.f32.partialorder %v12019_v32, 0.0 }
 0x752   : > { %13708 = vmatprep.subr.bf16.mxu1 %v16666_v39  ;;  %v19653_v12 = vpack.c.bf16 %v12076_v33, %v12068_v6  ;;  %v16702_v39 = vld [vmem:[%s20541_s3 + $0x304] ss:$16 sps:$4 sm:$0xff]   ;;  %vm12043_vm7 = vcmp.gt.f32.partialorder %v12027_v27, 0.0  ;;  %v16706_v13 = vld [vmem:[%s20541_s3 + $0x4e0] ss:$16 sps:$4 sm:$0xff]   ;;  %v11999_v19 = vsub.s32 5, %v19579_v31 }
 0x753   : > { %13679 = vmatprep.mubr.bf16.mxu0 %v19648_v52  ;;  %v16708_v45 = vld [vmem:[%s20541_s3 + $0x4e4] ss:$16 sps:$4 sm:$0xff]   ;;  %v16709_v38 = vld [vmem:[%s20541_s3 + $0x6e0] ss:$16 sps:$4 sm:$0xff]  }
 0x754   : > { %13666 = vmatpush2.bf16.msra.mxu0 %v16668_v34  ;;  %13722 = vmatprep.mubr.bf16.mxu1 %v19653_v12  ;;  %v12049_v34 = vmul.f32 0.2, %v12017_v37  ;;  %v16712_v16 = vld [vmem:[%s20541_s3 + $0x4c0] ss:$16 sps:$4 sm:$0xff]   ;;  %v16723_v43 = vld [vmem:[%s20541_s3 + $0x6a4] ss:$16 sps:$4 sm:$0xff]   ;;  %v12000_v33 = vrot.slane %v19606_v41, %v11999_v19 }
 0x755   : > { %13709 = vmatpush2.bf16.msra.mxu1 %v16669_v11  ;;  %13667 = vmatprep.subr.bf16.mxu0 %v16670_v49  ;;  %v12057_v11 = vmul.f32 0.2, %v12025_v29  ;;  %v12051_v49 = vmul.f32 0.2, %v12019_v32  ;;  %v16718_v18 = vld [vmem:[%s20541_s3 + $0x4a0] ss:$16 sps:$4 sm:$0xff]  }
 0x756   : > { %13710 = vmatprep.subr.bf16.mxu1 %v16672_v8  ;;  %v12059_v8 = vmul.f32 0.2, %v12027_v27  ;;  %v16721_v3 = vld [vmem:[%s20541_s3 + $0x6a0] ss:$16 sps:$4 sm:$0xff]   ;;  %v16726_v58 = vld [vmem:[%s20541_s3 + $0x484] ss:$16 sps:$4 sm:$0xff]  }
 0x757   : > { %v12067_v26 = vsel %vm12035_vm6, %v12019_v32, %v12051_v49  ;;  %v16729_v53 = vld [vmem:[%s20541_s3 + $0x684] ss:$16 sps:$4 sm:$0xff]   ;;  %v16724_v0 = vld [vmem:[%s20541_s3 + $0x480] ss:$16 sps:$4 sm:$0xff]   ;;  %v11965_v19 = vld [vmem:[#allocation2 + $0x8] sm:$0xff] }
 0x758   : > { %13668 = vmatpush2.bf16.msra.mxu0 %v16674_v15  ;;  %v16704_v15 = vld [vmem:[%s20541_s3 + $0x100] ss:$16 sps:$4 sm:$0xff]   ;;  %v12075_v46 = vsel %vm12043_vm7, %v12027_v27, %v12059_v8  ;;  %v16735_v60 = vld [vmem:[%s20541_s3 + $0x664] ss:$16 sps:$4 sm:$0xff]  }
 0x759   : > { %13711 = vmatpush2.bf16.msra.mxu1 %v16675_v2  ;;  %13669 = vmatprep.subr.bf16.mxu0 %v16676_v17  ;;  %v12065_v2 = vsel %vm12033_vm4, %v12017_v37, %v12049_v34  ;;  %v16705_v17 = vld [vmem:[%s20541_s3 + $0x300] ss:$16 sps:$4 sm:$0xff]   ;;  %v19695_v7 = vpack.c.bf16 %v12075_v46, %v12067_v26  ;;  %v16738_v30 = vld [vmem:[%s20541_s3 + $0x444] ss:$16 sps:$4 sm:$0xff]   ;;  %v12007_v37 = vsub.s32 7, %v19579_v31 }
 0x75a   : > { %13712 = vmatprep.subr.bf16.mxu1 %v16678_v9  ;;  %v12073_v9 = vsel %vm12041_vm5, %v12025_v29, %v12057_v11  ;;  %v16730_v57 = vld [vmem:[%s20541_s3 + $0x460] ss:$16 sps:$4 sm:$0xff]   ;;  %v16741_v54 = vld [vmem:[%s20541_s3 + $0x644] ss:$16 sps:$4 sm:$0xff]  }
 0x75b   : > { %v16733_v42 = vld [vmem:[%s20541_s3 + $0x660] ss:$16 sps:$4 sm:$0xff]   ;;  %v16744_v59 = vld [vmem:[%s20541_s3 + $0x424] ss:$16 sps:$4 sm:$0xff]  }
 0x75c   : > { %13670 = vmatpush2.bf16.msra.mxu0 %v16680_v44  ;;  %v16711_v44 = vld [vmem:[%s20541_s3 + $0x6e4] ss:$16 sps:$4 sm:$0xff]   ;;  %v16736_v61 = vld [vmem:[%s20541_s3 + $0x440] ss:$16 sps:$4 sm:$0xff]  }
 0x75d   : > { %13713 = vmatpush2.bf16.msra.mxu1 %v16681_v10  ;;  %13671 = vmatprep.subr.bf16.mxu0 %v16682_v14  ;;  %v19693_v10 = vpack.c.bf16 %v12073_v9, %v12065_v2  ;;  %v16714_v14 = vld [vmem:[%s20541_s3 + $0x4c4] ss:$16 sps:$4 sm:$0xff]   ;;  %v16739_v55 = vld [vmem:[%s20541_s3 + $0x640] ss:$16 sps:$4 sm:$0xff]  }
 0x75e   : > { %13714 = vmatprep.subr.bf16.mxu1 %v16684_v24  ;;  %v16717_v24 = vld [vmem:[%s20541_s3 + $0x6c4] ss:$16 sps:$4 sm:$0xff]   ;;  %v16742_v62 = vld [vmem:[%s20541_s3 + $0x420] ss:$16 sps:$4 sm:$0xff]  }
 0x75f   : > { %v16747_v47 = vld [vmem:[%s20541_s3 + $0x624] ss:$16 sps:$4 sm:$0xff]   ;;  %v16748_v32 = vld [vmem:[%s20541_s3 + $0x400] ss:$16 sps:$4 sm:$0xff]  }
 0x760   : > { %13672 = vmatpush2.bf16.msra.mxu0 %v16686_v21  ;;  %v16715_v21 = vld [vmem:[%s20541_s3 + $0x6c0] ss:$16 sps:$4 sm:$0xff]   ;;  %v16750_v6 = vld [vmem:[%s20541_s3 + $0x404] ss:$16 sps:$4 sm:$0xff]  }
 0x761   : > { %13715 = vmatpush2.bf16.msra.mxu1 %v16687_v4  ;;  %13673 = vmatprep.subr.bf16.mxu0 %v16688_v56  ;;  %v16720_v4 = vld [vmem:[%s20541_s3 + $0x4a4] ss:$16 sps:$4 sm:$0xff]   ;;  %v16727_v56 = vld [vmem:[%s20541_s3 + $0x680] ss:$16 sps:$4 sm:$0xff]  }
 0x762   : > { %13716 = vmatprep.subr.bf16.mxu1 %v16690_v51  ;;  %v16732_v51 = vld [vmem:[%s20541_s3 + $0x464] ss:$16 sps:$4 sm:$0xff]   ;;  %v16751_v27 = vld [vmem:[%s20541_s3 + $0x600] ss:$16 sps:$4 sm:$0xff]  }
 0x763   : > { %v16753_v29 = vld [vmem:[%s20541_s3 + $0x604] ss:$16 sps:$4 sm:$0xff]   ;;  %v16754_v8 = vld [vmem:[%s20541_s3 + $0x5e0] ss:$16 sps:$4 sm:$0xff]  }
 0x764   : > { %13674 = vmatpush2.bf16.msra.mxu0 %v16692_v1  ;;  %v16745_v1 = vld [vmem:[%s20541_s3 + $0x620] ss:$16 sps:$4 sm:$0xff]  }
 0x765   : > { %13717 = vmatpush2.bf16.msra.mxu1 %v16693_v28  ;;  %13675 = vmatprep.subr.bf16.mxu0 %v16694_v22  ;;  %v12008_v28 = vrot.slane %v19606_v41, %v12007_v37  ;;  %v11964_v22 = vld [vmem:[#allocation2 + $0x68] sm:$0xff]  ;;  %v16756_v41 = vld [vmem:[%s20541_s3 + $0x5e4] ss:$16 sps:$4 sm:$0xff]   ;;  %v16784_v37 = vld [vmem:[%s20541_s3 + $0x540] ss:$16 sps:$4 sm:$0xff]  }
 0x766   : > { %13718 = vmatprep.subr.bf16.mxu1 %v16696_v25  ;;  %v11972_v25 = vld [vmem:[#allocation2 + $0x70] sm:$0xff] }
 0x767   : > { %v12030_v34 = vadd.f32 %v12000_v33, %v11972_v25 }
 0x768   : > { %13676 = vmatpush2.bf16.msra.mxu0 %v16698_v50  ;;  %v12022_v50 = vadd.f32 %v12000_v33, %v11964_v22  ;;  %v16792_v33 = vld [vmem:[%s20541_s3 + $0x524] ss:$16 sps:$4 sm:$0xff]  }
 0x769   : > { %13719 = vmatpush2.bf16.msra.mxu1 %v16699_v36  ;;  %13677 = vmatprep.subr.bf16.mxu0 %v16700_v20  ;;  %v11966_v36 = vld [vmem:[#allocation2 + $0x48] sm:$0xff]  ;;  %vm12046_vm9 = vcmp.gt.f32.partialorder %v12030_v34, 0.0  ;;  %v16798_v22 = vld [vmem:[%s20541_s3 + $0x504] ss:$16 sps:$4 sm:$0xff]  }
 0x76a   : > { %13720 = vmatprep.subr.bf16.mxu1 %v16702_v39  ;;  %v11974_v20 = vld [vmem:[#allocation2 + $0x28] sm:$0xff]  ;;  %v16759_v39 = vld [vmem:[%s20541_s3 + $0x7e4] ss:$16 sps:$4 sm:$0xff]   ;;  %v12024_v11 = vadd.f32 %v12008_v28, %v11966_v36  ;;  %vm12038_vm8 = vcmp.gt.f32.partialorder %v12022_v50, 0.0  ;;  %v12054_v2 = vmul.f32 0.2, %v12022_v50 }
 0x76b   : > { %v12032_v49 = vadd.f32 %v12008_v28, %v11974_v20 }
 0x76c   : > { %13678 = vmatpush2.bf16.msra.mxu0 %v16704_v15  ;;  %v16757_v15 = vld [vmem:[%s20541_s3 + $0x7e0] ss:$16 sps:$4 sm:$0xff]   ;;  %vm12040_vm10 = vcmp.gt.f32.partialorder %v12024_v11, 0.0  ;;  %v12070_v9 = vsel %vm12038_vm8, %v12022_v50, %v12054_v2  ;;  %v12056_v26 = vmul.f32 0.2, %v12024_v11 }
 0x76d   : > { %13721 = vmatpush2.bf16.msra.mxu1 %v16705_v17  ;;  %13733 = vmatprep.subr.bf16.mxu0 %v16708_v45  ;;  %v12062_v17 = vmul.f32 0.2, %v12030_v34  ;;  %vm12048_vm11 = vcmp.gt.f32.partialorder %v12032_v49, 0.0  ;;  %v12064_v46 = vmul.f32 0.2, %v12032_v49 }
 0x76e   : > { %13776 = vmatprep.subr.bf16.mxu1 %v16711_v44  ;;  %v16762_v45 = vld [vmem:[%s20541_s3 + $0x5c4] ss:$16 sps:$4 sm:$0xff]   ;;  %v16807_v2 = vld [vmem:[%s20541_s3 + $0x2ec] ss:$16 sps:$4 sm:$0xff]  }
 0x76f   : > { %13680 = vmatmul.mubr.bf16.vlgmr.msra.gmra.mxu0 %v19693_v10  ;;  %v16765_v44 = vld [vmem:[%s20541_s3 + $0x7c4] ss:$16 sps:$4 sm:$0xff]  }
 0x770   : > { %13723 = vmatmul.mubr.bf16.vlgmr.msra.gmra.mxu1 %v19695_v7  ;;  %13734 = vmatpush1.bf16.msra.mxu0 %v16706_v13  ;;  %v12078_v13 = vsel %vm12046_vm9, %v12030_v34, %v12062_v17  ;;  %v16799_v34 = vld [vmem:[%s20541_s3 + $0x700] ss:$16 sps:$4 sm:$0xff]  }
 0x771   : > { %13777 = vmatpush1.bf16.msra.mxu1 %v16709_v38  ;;  %13735 = vmatprep.subr.bf16.mxu0 %v16714_v14  ;;  %v19811_v38 = vpack.c.bf16 %v12078_v13, %v12070_v9  ;;  %v12072_v14 = vsel %vm12040_vm10, %v12024_v11, %v12056_v26  ;;  %v16802_v26 = vld [vmem:[%s20541_s3 + $0xe8] ss:$16 sps:$4 sm:$0xff]  }
 0x772   : > { %13778 = vmatprep.subr.bf16.mxu1 %v16717_v24  ;;  %v12080_v24 = vsel %vm12048_vm11, %v12032_v49, %v12064_v46  ;;  %v16805_v46 = vld [vmem:[%s20541_s3 + $0x2e8] ss:$16 sps:$4 sm:$0xff]  }
 0x773   : > { %13765 = vmatprep.mubr.bf16.mxu0 %v19811_v38  ;;  %v16808_v13 = vld [vmem:[%s20541_s3 + $0xc8] ss:$16 sps:$4 sm:$0xff]  }
 0x774   : > { %13736 = vmatpush1.bf16.msra.mxu0 %v16712_v16  ;;  %v19813_v16 = vpack.c.bf16 %v12080_v24, %v12072_v14  ;;  %v16811_v14 = vld [vmem:[%s20541_s3 + $0x2c8] ss:$16 sps:$4 sm:$0xff]   ;;  %v16816_v24 = vld [vmem:[%s20541_s3 + $0xac] ss:$16 sps:$4 sm:$0xff]  }
 0x775   : > { %13779 = vmatpush1.bf16.msra.mxu1 %v16715_v21  ;;  %13737 = vmatprep.subr.bf16.mxu0 %v16720_v4  ;;  %v16760_v21 = vld [vmem:[%s20541_s3 + $0x5c0] ss:$16 sps:$4 sm:$0xff]  }
 0x776   : > { %13780 = vmatprep.subr.bf16.mxu1 %v16723_v43  ;;  %v16763_v4 = vld [vmem:[%s20541_s3 + $0x7c0] ss:$16 sps:$4 sm:$0xff]   ;;  %v16768_v43 = vld [vmem:[%s20541_s3 + $0x5a4] ss:$16 sps:$4 sm:$0xff]   ;;  %13808 = vmatprep.mubr.bf16.mxu1 %v19813_v16 }
 0x778   : > { %13738 = vmatpush1.bf16.msra.mxu0 %v16718_v18  ;;  %v16771_v18 = vld [vmem:[%s20541_s3 + $0x7a4] ss:$16 sps:$4 sm:$0xff]  }
 0x779   : > { %13781 = vmatpush1.bf16.msra.mxu1 %v16721_v3  ;;  %13739 = vmatprep.subr.bf16.mxu0 %v16726_v58  ;;  %v16766_v3 = vld [vmem:[%s20541_s3 + $0x5a0] ss:$16 sps:$4 sm:$0xff]  }
 0x77a   : > { %13782 = vmatprep.subr.bf16.mxu1 %v16729_v53  ;;  %v16769_v58 = vld [vmem:[%s20541_s3 + $0x7a0] ss:$16 sps:$4 sm:$0xff]   ;;  %v16774_v53 = vld [vmem:[%s20541_s3 + $0x584] ss:$16 sps:$4 sm:$0xff]  }
 0x77c   : > { %13740 = vmatpush1.bf16.msra.mxu0 %v16724_v0  ;;  %v16777_v0 = vld [vmem:[%s20541_s3 + $0x784] ss:$16 sps:$4 sm:$0xff]  }
 0x77d   : > { %13783 = vmatpush1.bf16.msra.mxu1 %v16727_v56  ;;  %13741 = vmatprep.subr.bf16.mxu0 %v16732_v51  ;;  %v16772_v56 = vld [vmem:[%s20541_s3 + $0x580] ss:$16 sps:$4 sm:$0xff]  }
 0x77e   : > { %13784 = vmatprep.subr.bf16.mxu1 %v16735_v60  ;;  %v16775_v51 = vld [vmem:[%s20541_s3 + $0x780] ss:$16 sps:$4 sm:$0xff]   ;;  %v16780_v60 = vld [vmem:[%s20541_s3 + $0x564] ss:$16 sps:$4 sm:$0xff]  }
 0x780   : > { %13742 = vmatpush1.bf16.msra.mxu0 %v16730_v57  ;;  %v16783_v57 = vld [vmem:[%s20541_s3 + $0x764] ss:$16 sps:$4 sm:$0xff]  }
 0x781   : > { %13785 = vmatpush1.bf16.msra.mxu1 %v16733_v42  ;;  %13743 = vmatprep.subr.bf16.mxu0 %v16738_v30  ;;  %v16778_v42 = vld [vmem:[%s20541_s3 + $0x560] ss:$16 sps:$4 sm:$0xff]  }
 0x782   : > { %13786 = vmatprep.subr.bf16.mxu1 %v16741_v54  ;;  %v16781_v30 = vld [vmem:[%s20541_s3 + $0x760] ss:$16 sps:$4 sm:$0xff]   ;;  %v16786_v54 = vld [vmem:[%s20541_s3 + $0x544] ss:$16 sps:$4 sm:$0xff]  }
 0x784   : > { %13744 = vmatpush1.bf16.msra.mxu0 %v16736_v61  ;;  %v16789_v61 = vld [vmem:[%s20541_s3 + $0x744] ss:$16 sps:$4 sm:$0xff]  }
 0x785   : > { %13787 = vmatpush1.bf16.msra.mxu1 %v16739_v55  ;;  %13745 = vmatprep.subr.bf16.mxu0 %v16744_v59  ;;  %v11963_v55 = vld [vmem:[#allocation2 + $0x50] sm:$0xff]  ;;  %v11971_v59 = vld [vmem:[#allocation2 + $0x60] sm:$0xff] }
 0x786   : > { %13788 = vmatprep.subr.bf16.mxu1 %v16747_v47  ;;  %v11973_v47 = vld [vmem:[#allocation2 + $0x78] sm:$0xff] }
 0x787   : > { %v12031_v28 = vadd.f32 %v19673_v35, %v11973_v47  ;;  %v16844_v47 = vld [vmem:[%s20541_s3 + $0x8] ss:$16 sps:$4 sm:$0xff]  }
 0x788   : > { %13746 = vmatpush1.bf16.msra.mxu0 %v16742_v62  ;;  %v12021_v62 = vadd.f32 %v19662_v23, %v11963_v55  ;;  %v16841_v55 = vld [vmem:[%s20541_s3 + $0x228] ss:$16 sps:$4 sm:$0xff]  }
 0x789   : > { %13789 = vmatpush1.bf16.msra.mxu1 %v16745_v1  ;;  %13747 = vmatprep.subr.bf16.mxu0 %v16750_v6  ;;  %v12029_v1 = vadd.f32 %v19662_v23, %v11971_v59  ;;  %v16787_v6 = vld [vmem:[%s20541_s3 + $0x740] ss:$16 sps:$4 sm:$0xff]   ;;  %v16795_v23 = vld [vmem:[%s20541_s3 + $0x724] ss:$16 sps:$4 sm:$0xff]   ;;  %v12063_v20 = vmul.f32 0.2, %v12031_v28 }
 0x78a   : > { %13790 = vmatprep.subr.bf16.mxu1 %v16753_v29  ;;  %v12023_v29 = vadd.f32 %v19673_v35, %v11965_v19  ;;  %v16801_v35 = vld [vmem:[%s20541_s3 + $0x704] ss:$16 sps:$4 sm:$0xff]   ;;  %v12053_v25 = vmul.f32 0.2, %v12021_v62  ;;  %vm12037_vm12 = vcmp.gt.f32.partialorder %v12021_v62, 0.0  ;;  %vm12047_vm15 = vcmp.gt.f32.partialorder %v12031_v28, 0.0 }
 0x78b   : > { %v12061_v50 = vmul.f32 0.2, %v12029_v1  ;;  %vm12045_vm13 = vcmp.gt.f32.partialorder %v12029_v1, 0.0  ;;  %v16846_v59 = vld [vmem:[%s20541_s3 + $0xc] ss:$16 sps:$4 sm:$0xff]  }
 0x78c   : > { %13748 = vmatpush1.bf16.msra.mxu0 %v16748_v32  ;;  %v16790_v32 = vld [vmem:[%s20541_s3 + $0x520] ss:$16 sps:$4 sm:$0xff]   ;;  %v12055_v36 = vmul.f32 0.2, %v12023_v29  ;;  %vm12039_vm14 = vcmp.gt.f32.partialorder %v12023_v29, 0.0 }
 0x78d   : > { %13791 = vmatpush1.bf16.msra.mxu1 %v16751_v27  ;;  %13749 = vmatprep.subr.bf16.mxu0 %v16756_v41  ;;  %v16793_v27 = vld [vmem:[%s20541_s3 + $0x720] ss:$16 sps:$4 sm:$0xff]   ;;  %v12077_v11 = vsel %vm12045_vm13, %v12029_v1, %v12061_v50  ;;  %v16849_v19 = vld [vmem:[%s20541_s3 + $0x20c] ss:$16 sps:$4 sm:$0xff]  }
 0x78e   : > { %13792 = vmatprep.subr.bf16.mxu1 %v16759_v39  ;;  %v16796_v41 = vld [vmem:[%s20541_s3 + $0x500] ss:$16 sps:$4 sm:$0xff]   ;;  %v12069_v39 = vsel %vm12037_vm12, %v12021_v62, %v12053_v25  ;;  %v12071_v49 = vsel %vm12039_vm14, %v12023_v29, %v12055_v36  ;;  %v16852_v62 = vld [vmem:[%s20541_s3 + $0x1ec] ss:$16 sps:$4 sm:$0xff]   ;;  %v16865_v25 = vld [vmem:[%s20541_s3 + $0x3a8] ss:$16 sps:$4 sm:$0xff]  }
 0x78f   : > { %v19905_v17 = vpack.c.bf16 %v12077_v11, %v12069_v39  ;;  %v16855_v1 = vld [vmem:[%s20541_s3 + $0x3ec] ss:$16 sps:$4 sm:$0xff]   ;;  %v16874_v11 = vld [vmem:[%s20541_s3 + $0x168] ss:$16 sps:$4 sm:$0xff]   ;;  %vm14556_vm12 = vcmask 7168  }
 0x790   : > { %13750 = vmatpush2.bf16.msra.mxu0 %v16754_v8  ;;  %v12079_v8 = vsel %vm12047_vm15, %v12031_v28, %v12063_v20  ;;  %v16858_v29 = vld [vmem:[%s20541_s3 + $0x1cc] ss:$16 sps:$4 sm:$0xff]   ;;  %v16868_v20 = vld [vmem:[%s20541_s3 + $0x188] ss:$16 sps:$4 sm:$0xff]  }
 0x791   : > { %13793 = vmatpush2.bf16.msra.mxu1 %v16757_v15  ;;  %13751 = vmatprep.subr.bf16.mxu0 %v16762_v45  ;;  %v16804_v15 = vld [vmem:[%s20541_s3 + $0xec] ss:$16 sps:$4 sm:$0xff]   ;;  %v19907_v9 = vpack.c.bf16 %v12079_v8, %v12071_v49  ;;  %v16877_v49 = vld [vmem:[%s20541_s3 + $0x368] ss:$16 sps:$4 sm:$0xff]  }
 0x792   : > { %13794 = vmatprep.subr.bf16.mxu1 %v16765_v44  ;;  %v16810_v45 = vld [vmem:[%s20541_s3 + $0xcc] ss:$16 sps:$4 sm:$0xff]  }
 0x793   : > { %v16813_v44 = vld [vmem:[%s20541_s3 + $0x2cc] ss:$16 sps:$4 sm:$0xff]  }
 0x794   : > { %13752 = vmatpush2.bf16.msra.mxu0 %v16760_v21  ;;  %v16819_v21 = vld [vmem:[%s20541_s3 + $0x2ac] ss:$16 sps:$4 sm:$0xff]  }
 0x795   : > { %13795 = vmatpush2.bf16.msra.mxu1 %v16763_v4  ;;  %13753 = vmatprep.subr.bf16.mxu0 %v16768_v43  ;;  %v16814_v4 = vld [vmem:[%s20541_s3 + $0xa8] ss:$16 sps:$4 sm:$0xff]   ;;  %v16861_v28 = vld [vmem:[%s20541_s3 + $0x3cc] ss:$16 sps:$4 sm:$0xff]  }
 0x796   : > { %13796 = vmatprep.subr.bf16.mxu1 %v16771_v18  ;;  %v16817_v43 = vld [vmem:[%s20541_s3 + $0x2a8] ss:$16 sps:$4 sm:$0xff]   ;;  %v16822_v18 = vld [vmem:[%s20541_s3 + $0x8c] ss:$16 sps:$4 sm:$0xff]  }
 0x797   : > { %v16870_v50 = vld [vmem:[%s20541_s3 + $0x18c] ss:$16 sps:$4 sm:$0xff]  }
 0x798   : > { %13754 = vmatpush2.bf16.msra.mxu0 %v16766_v3  ;;  %v16823_v3 = vld [vmem:[%s20541_s3 + $0x288] ss:$16 sps:$4 sm:$0xff]   ;;  %v16873_v36 = vld [vmem:[%s20541_s3 + $0x38c] ss:$16 sps:$4 sm:$0xff]  }
 0x799   : > { %13797 = vmatpush2.bf16.msra.mxu1 %v16769_v58  ;;  %13755 = vmatprep.subr.bf16.mxu0 %v16774_v53  ;;  %v16828_v58 = vld [vmem:[%s20541_s3 + $0x6c] ss:$16 sps:$4 sm:$0xff]  }
 0x79a   : > { %13798 = vmatprep.subr.bf16.mxu1 %v16777_v0  ;;  %v16831_v53 = vld [vmem:[%s20541_s3 + $0x26c] ss:$16 sps:$4 sm:$0xff]   ;;  %v16826_v0 = vld [vmem:[%s20541_s3 + $0x68] ss:$16 sps:$4 sm:$0xff]  }
 0x79b   : > { %v16876_v39 = vld [vmem:[%s20541_s3 + $0x16c] ss:$16 sps:$4 sm:$0xff]  }
 0x79c   : > { %13756 = vmatpush2.bf16.msra.mxu0 %v16772_v56  ;;  %v16829_v56 = vld [vmem:[%s20541_s3 + $0x268] ss:$16 sps:$4 sm:$0xff]   ;;  %v16882_v8 = vld [vmem:[%s20541_s3 + $0x14c] ss:$16 sps:$4 sm:$0xff]  }
 0x79d   : > { %13799 = vmatpush2.bf16.msra.mxu1 %v16775_v51  ;;  %13757 = vmatprep.subr.bf16.mxu0 %v16780_v60  ;;  %v16834_v51 = vld [vmem:[%s20541_s3 + $0x4c] ss:$16 sps:$4 sm:$0xff]  }
 0x79e   : > { %13800 = vmatprep.subr.bf16.mxu1 %v16783_v57  ;;  %v16837_v60 = vld [vmem:[%s20541_s3 + $0x24c] ss:$16 sps:$4 sm:$0xff]   ;;  %v16832_v57 = vld [vmem:[%s20541_s3 + $0x48] ss:$16 sps:$4 sm:$0xff]  }
 0x7a0   : > { %13758 = vmatpush2.bf16.msra.mxu0 %v16778_v42  ;;  %v16835_v42 = vld [vmem:[%s20541_s3 + $0x248] ss:$16 sps:$4 sm:$0xff]  }
 0x7a1   : > { %13801 = vmatpush2.bf16.msra.mxu1 %v16781_v30  ;;  %13759 = vmatprep.subr.bf16.mxu0 %v16786_v54  ;;  %v16840_v30 = vld [vmem:[%s20541_s3 + $0x2c] ss:$16 sps:$4 sm:$0xff]  }
 0x7a2   : > { %13802 = vmatprep.subr.bf16.mxu1 %v16789_v61  ;;  %v16843_v54 = vld [vmem:[%s20541_s3 + $0x22c] ss:$16 sps:$4 sm:$0xff]   ;;  %v16838_v61 = vld [vmem:[%s20541_s3 + $0x28] ss:$16 sps:$4 sm:$0xff]  }
 0x7a4   : > { %13760 = vmatpush2.bf16.msra.mxu0 %v16784_v37  ;;  %v16847_v37 = vld [vmem:[%s20541_s3 + $0x208] ss:$16 sps:$4 sm:$0xff]  }
 0x7a5   : > { %13803 = vmatpush2.bf16.msra.mxu1 %v16787_v6  ;;  %13761 = vmatprep.subr.bf16.mxu0 %v16792_v33  ;;  %v16850_v6 = vld [vmem:[%s20541_s3 + $0x1e8] ss:$16 sps:$4 sm:$0xff]  }
 0x7a6   : > { %13804 = vmatprep.subr.bf16.mxu1 %v16795_v23  ;;  %v16853_v33 = vld [vmem:[%s20541_s3 + $0x3e8] ss:$16 sps:$4 sm:$0xff]  }
 0x7a7   : > { %v16856_v23 = vld [vmem:[%s20541_s3 + $0x1c8] ss:$16 sps:$4 sm:$0xff]  }
 0x7a8   : > { %13762 = vmatpush2.bf16.msra.mxu0 %v16790_v32  ;;  %v16859_v32 = vld [vmem:[%s20541_s3 + $0x3c8] ss:$16 sps:$4 sm:$0xff]  }
 0x7a9   : > { %13805 = vmatpush2.bf16.msra.mxu1 %v16793_v27  ;;  %13763 = vmatprep.subr.bf16.mxu0 %v16798_v22  ;;  %v16864_v27 = vld [vmem:[%s20541_s3 + $0x1ac] ss:$16 sps:$4 sm:$0xff]  }
 0x7aa   : > { %13806 = vmatprep.subr.bf16.mxu1 %v16801_v35  ;;  %v16867_v22 = vld [vmem:[%s20541_s3 + $0x3ac] ss:$16 sps:$4 sm:$0xff]   ;;  %v16862_v35 = vld [vmem:[%s20541_s3 + $0x1a8] ss:$16 sps:$4 sm:$0xff]  }
 0x7ac   : > { %13764 = vmatpush2.bf16.msra.mxu0 %v16796_v41  ;;  %v16871_v41 = vld [vmem:[%s20541_s3 + $0x388] ss:$16 sps:$4 sm:$0xff]  }
 0x7ad   : > { %13807 = vmatpush2.bf16.msra.mxu1 %v16799_v34  ;;  %13819 = vmatprep.subr.bf16.mxu0 %v16804_v15  ;;  %v16879_v34 = vld [vmem:[%s20541_s3 + $0x36c] ss:$16 sps:$4 sm:$0xff]  }
 0x7ae   : > { %13862 = vmatprep.subr.bf16.mxu1 %v16807_v2  ;;  %v16885_v15 = vld [vmem:[%s20541_s3 + $0x34c] ss:$16 sps:$4 sm:$0xff]   ;;  %v16880_v2 = vld [vmem:[%s20541_s3 + $0x148] ss:$16 sps:$4 sm:$0xff]  }
 0x7af   : > { %13766 = vmatmul.mubr.bf16.vlgmr.msra.gmra.mxu0 %v19905_v17 }
 0x7b0   : > { %13809 = vmatmul.mubr.bf16.vlgmr.msra.gmra.mxu1 %v19907_v9  ;;  %13820 = vmatpush1.bf16.msra.mxu0 %v16802_v26  ;;  %v16883_v26 = vld [vmem:[%s20541_s3 + $0x348] ss:$16 sps:$4 sm:$0xff]  }
 0x7b1   : > { %13863 = vmatpush1.bf16.msra.mxu1 %v16805_v46  ;;  %13821 = vmatprep.subr.bf16.mxu0 %v16810_v45  ;;  %v16888_v46 = vld [vmem:[%s20541_s3 + $0x12c] ss:$16 sps:$4 sm:$0xff]  }
 0x7b2   : > { %13864 = vmatprep.subr.bf16.mxu1 %v16813_v44  ;;  %13851 = vmatprep.mubr.bf16.mxu0 %v19648_v52  ;;  %v16825_v52 = vld [vmem:[%s20541_s3 + $0x28c] ss:$16 sps:$4 sm:$0xff]   ;;  %v16886_v44 = vld [vmem:[%s20541_s3 + $0x128] ss:$16 sps:$4 sm:$0xff]  }
 0x7b3   : > { %13894 = vmatprep.mubr.bf16.mxu1 %v19653_v12  ;;  %v16820_v12 = vld [vmem:[%s20541_s3 + $0x88] ss:$16 sps:$4 sm:$0xff]   ;;  %v16891_v45 = vld [vmem:[%s20541_s3 + $0x32c] ss:$16 sps:$4 sm:$0xff]  }
 0x7b4   : > { %13822 = vmatpush1.bf16.msra.mxu0 %v16808_v13  ;;  %v16889_v13 = vld [vmem:[%s20541_s3 + $0x328] ss:$16 sps:$4 sm:$0xff]  }
 0x7b5   : > { %13865 = vmatpush1.bf16.msra.mxu1 %v16811_v14  ;;  %13823 = vmatprep.subr.bf16.mxu0 %v16816_v24  ;;  %v16894_v14 = vld [vmem:[%s20541_s3 + $0x10c] ss:$16 sps:$4 sm:$0xff]  }
 0x7b6   : > { %13866 = vmatprep.subr.bf16.mxu1 %v16819_v21  ;;  %v16897_v24 = vld [vmem:[%s20541_s3 + $0x30c] ss:$16 sps:$4 sm:$0xff]   ;;  %v16892_v21 = vld [vmem:[%s20541_s3 + $0x108] ss:$16 sps:$4 sm:$0xff]  }
 0x7b8   : > { %13824 = vmatpush1.bf16.msra.mxu0 %v16814_v4  ;;  %v16895_v4 = vld [vmem:[%s20541_s3 + $0x308] ss:$16 sps:$4 sm:$0xff]  }
 0x7b9   : > { %13867 = vmatpush1.bf16.msra.mxu1 %v16817_v43  ;;  %13825 = vmatprep.subr.bf16.mxu0 %v16822_v18  ;;  %v16900_v43 = vld [vmem:[%s20541_s3 + $0x4ec] ss:$16 sps:$4 sm:$0xff]  }
 0x7ba   : > { %13868 = vmatprep.subr.bf16.mxu1 %v16825_v52  ;;  %v16903_v18 = vld [vmem:[%s20541_s3 + $0x6ec] ss:$16 sps:$4 sm:$0xff]   ;;  %v16898_v52 = vld [vmem:[%s20541_s3 + $0x4e8] ss:$16 sps:$4 sm:$0xff]  }
 0x7bc   : > { %13826 = vmatpush1.bf16.msra.mxu0 %v16820_v12  ;;  %v16901_v12 = vld [vmem:[%s20541_s3 + $0x6e8] ss:$16 sps:$4 sm:$0xff]  }
 0x7bd   : > { %13869 = vmatpush1.bf16.msra.mxu1 %v16823_v3  ;;  %13827 = vmatprep.subr.bf16.mxu0 %v16828_v58  ;;  %v16906_v3 = vld [vmem:[%s20541_s3 + $0x4cc] ss:$16 sps:$4 sm:$0xff]  }
 0x7be   : > { %13870 = vmatprep.subr.bf16.mxu1 %v16831_v53  ;;  %v16909_v58 = vld [vmem:[%s20541_s3 + $0x6cc] ss:$16 sps:$4 sm:$0xff]   ;;  %v16904_v53 = vld [vmem:[%s20541_s3 + $0x4c8] ss:$16 sps:$4 sm:$0xff]  }
 0x7c0   : > { %13828 = vmatpush1.bf16.msra.mxu0 %v16826_v0  ;;  %v16907_v0 = vld [vmem:[%s20541_s3 + $0x6c8] ss:$16 sps:$4 sm:$0xff]  }
 0x7c1   : > { %13871 = vmatpush1.bf16.msra.mxu1 %v16829_v56  ;;  %13829 = vmatprep.subr.bf16.mxu0 %v16834_v51  ;;  %v16912_v56 = vld [vmem:[%s20541_s3 + $0x4ac] ss:$16 sps:$4 sm:$0xff]   ;;  %v16913_v51 = vld [vmem:[%s20541_s3 + $0x6a8] ss:$16 sps:$4 sm:$0xff]  }
 0x7c2   : > { %13872 = vmatprep.subr.bf16.mxu1 %v16837_v60  ;;  %v16918_v60 = vld [vmem:[%s20541_s3 + $0x48c] ss:$16 sps:$4 sm:$0xff]  }
 0x7c4   : > { %13830 = vmatpush1.bf16.msra.mxu0 %v16832_v57  ;;  %v16919_v57 = vld [vmem:[%s20541_s3 + $0x688] ss:$16 sps:$4 sm:$0xff]  }
 0x7c5   : > { %13873 = vmatpush1.bf16.msra.mxu1 %v16835_v42  ;;  %13831 = vmatprep.subr.bf16.mxu0 %v16840_v30  ;;  %v16924_v42 = vld [vmem:[%s20541_s3 + $0x46c] ss:$16 sps:$4 sm:$0xff]  }
 0x7c6   : > { %13874 = vmatprep.subr.bf16.mxu1 %v16843_v54  ;;  %v16927_v30 = vld [vmem:[%s20541_s3 + $0x66c] ss:$16 sps:$4 sm:$0xff]   ;;  %v16922_v54 = vld [vmem:[%s20541_s3 + $0x468] ss:$16 sps:$4 sm:$0xff]  }
 0x7c8   : > { %13832 = vmatpush1.bf16.msra.mxu0 %v16838_v61  ;;  %v16925_v61 = vld [vmem:[%s20541_s3 + $0x668] ss:$16 sps:$4 sm:$0xff]  }
 0x7c9   : > { %13875 = vmatpush1.bf16.msra.mxu1 %v16841_v55  ;;  %13833 = vmatprep.subr.bf16.mxu0 %v16846_v59  ;;  %v16930_v55 = vld [vmem:[%s20541_s3 + $0x44c] ss:$16 sps:$4 sm:$0xff]  }
 0x7ca   : > { %13876 = vmatprep.subr.bf16.mxu1 %v16849_v19  ;;  %v16933_v59 = vld [vmem:[%s20541_s3 + $0x64c] ss:$16 sps:$4 sm:$0xff]   ;;  %v16928_v19 = vld [vmem:[%s20541_s3 + $0x448] ss:$16 sps:$4 sm:$0xff]  }
 0x7cc   : > { %13834 = vmatpush1.bf16.msra.mxu0 %v16844_v47  ;;  %v16931_v47 = vld [vmem:[%s20541_s3 + $0x648] ss:$16 sps:$4 sm:$0xff]  }
 0x7cd   : > { %13877 = vmatpush1.bf16.msra.mxu1 %v16847_v37  ;;  %13835 = vmatprep.subr.bf16.mxu0 %v16852_v62  ;;  %v16936_v37 = vld [vmem:[%s20541_s3 + $0x42c] ss:$16 sps:$4 sm:$0xff]  }
 0x7ce   : > { %13878 = vmatprep.subr.bf16.mxu1 %v16855_v1  ;;  %v16939_v62 = vld [vmem:[%s20541_s3 + $0x62c] ss:$16 sps:$4 sm:$0xff]   ;;  %v16934_v1 = vld [vmem:[%s20541_s3 + $0x428] ss:$16 sps:$4 sm:$0xff]  }
 0x7d0   : > { %13836 = vmatpush2.bf16.msra.mxu0 %v16850_v6  ;;  %v16937_v6 = vld [vmem:[%s20541_s3 + $0x628] ss:$16 sps:$4 sm:$0xff]  }
 0x7d1   : > { %13879 = vmatpush2.bf16.msra.mxu1 %v16853_v33  ;;  %13837 = vmatprep.subr.bf16.mxu0 %v16858_v29  ;;  %v16942_v33 = vld [vmem:[%s20541_s3 + $0x40c] ss:$16 sps:$4 sm:$0xff]  }
 0x7d2   : > { %13880 = vmatprep.subr.bf16.mxu1 %v16861_v28  ;;  %v16945_v29 = vld [vmem:[%s20541_s3 + $0x60c] ss:$16 sps:$4 sm:$0xff]   ;;  %v16940_v28 = vld [vmem:[%s20541_s3 + $0x408] ss:$16 sps:$4 sm:$0xff]  }
 0x7d4   : > { %13838 = vmatpush2.bf16.msra.mxu0 %v16856_v23  ;;  %v16943_v23 = vld [vmem:[%s20541_s3 + $0x608] ss:$16 sps:$4 sm:$0xff]  }
 0x7d5   : > { %13881 = vmatpush2.bf16.msra.mxu1 %v16859_v32  ;;  %13839 = vmatprep.subr.bf16.mxu0 %v16864_v27  ;;  %v16948_v32 = vld [vmem:[%s20541_s3 + $0x5ec] ss:$16 sps:$4 sm:$0xff]  }
 0x7d6   : > { %13882 = vmatprep.subr.bf16.mxu1 %v16867_v22  ;;  %v16951_v27 = vld [vmem:[%s20541_s3 + $0x7ec] ss:$16 sps:$4 sm:$0xff]   ;;  %v16946_v22 = vld [vmem:[%s20541_s3 + $0x5e8] ss:$16 sps:$4 sm:$0xff]  }
 0x7d8   : > { %13840 = vmatpush2.bf16.msra.mxu0 %v16862_v35  ;;  %v16949_v35 = vld [vmem:[%s20541_s3 + $0x7e8] ss:$16 sps:$4 sm:$0xff]  }
 0x7d9   : > { %13883 = vmatpush2.bf16.msra.mxu1 %v16865_v25  ;;  %13841 = vmatprep.subr.bf16.mxu0 %v16870_v50  ;;  %v16954_v25 = vld [vmem:[%s20541_s3 + $0x5cc] ss:$16 sps:$4 sm:$0xff]  }
 0x7da   : > { %13884 = vmatprep.subr.bf16.mxu1 %v16873_v36  ;;  %v16957_v50 = vld [vmem:[%s20541_s3 + $0x7cc] ss:$16 sps:$4 sm:$0xff]   ;;  %v16952_v36 = vld [vmem:[%s20541_s3 + $0x5c8] ss:$16 sps:$4 sm:$0xff]  }
 0x7dc   : > { %13842 = vmatpush2.bf16.msra.mxu0 %v16868_v20  ;;  %v16955_v20 = vld [vmem:[%s20541_s3 + $0x7c8] ss:$16 sps:$4 sm:$0xff]  }
 0x7dd   : > { %13885 = vmatpush2.bf16.msra.mxu1 %v16871_v41  ;;  %13843 = vmatprep.subr.bf16.mxu0 %v16876_v39  ;;  %v16960_v41 = vld [vmem:[%s20541_s3 + $0x5ac] ss:$16 sps:$4 sm:$0xff]  }
 0x7de   : > { %13886 = vmatprep.subr.bf16.mxu1 %v16879_v34  ;;  %v16963_v39 = vld [vmem:[%s20541_s3 + $0x7ac] ss:$16 sps:$4 sm:$0xff]   ;;  %v16958_v34 = vld [vmem:[%s20541_s3 + $0x5a8] ss:$16 sps:$4 sm:$0xff]  }
 0x7e0   : > { %13844 = vmatpush2.bf16.msra.mxu0 %v16874_v11  ;;  %v16961_v11 = vld [vmem:[%s20541_s3 + $0x7a8] ss:$16 sps:$4 sm:$0xff]  }
 0x7e1   : > { %13887 = vmatpush2.bf16.msra.mxu1 %v16877_v49  ;;  %13845 = vmatprep.subr.bf16.mxu0 %v16882_v8  ;;  %v16966_v49 = vld [vmem:[%s20541_s3 + $0x58c] ss:$16 sps:$4 sm:$0xff]  }
 0x7e2   : > { %13888 = vmatprep.subr.bf16.mxu1 %v16885_v15  ;;  %v16969_v8 = vld [vmem:[%s20541_s3 + $0x78c] ss:$16 sps:$4 sm:$0xff]   ;;  %v16964_v15 = vld [vmem:[%s20541_s3 + $0x588] ss:$16 sps:$4 sm:$0xff]  }
 0x7e4   : > { %13846 = vmatpush2.bf16.msra.mxu0 %v16880_v2  ;;  %v16967_v2 = vld [vmem:[%s20541_s3 + $0x788] ss:$16 sps:$4 sm:$0xff]  }
 0x7e5   : > { %13889 = vmatpush2.bf16.msra.mxu1 %v16883_v26  ;;  %13847 = vmatprep.subr.bf16.mxu0 %v16888_v46  ;;  %v16972_v26 = vld [vmem:[%s20541_s3 + $0x56c] ss:$16 sps:$4 sm:$0xff]  }
 0x7e6   : > { %13890 = vmatprep.subr.bf16.mxu1 %v16891_v45  ;;  %v16975_v46 = vld [vmem:[%s20541_s3 + $0x76c] ss:$16 sps:$4 sm:$0xff]   ;;  %v16970_v45 = vld [vmem:[%s20541_s3 + $0x568] ss:$16 sps:$4 sm:$0xff]  }
 0x7e8   : > { %13848 = vmatpush2.bf16.msra.mxu0 %v16886_v44  ;;  %v16973_v44 = vld [vmem:[%s20541_s3 + $0x768] ss:$16 sps:$4 sm:$0xff]  }
 0x7e9   : > { %13891 = vmatpush2.bf16.msra.mxu1 %v16889_v13  ;;  %13849 = vmatprep.subr.bf16.mxu0 %v16894_v14  ;;  %v16978_v13 = vld [vmem:[%s20541_s3 + $0x54c] ss:$16 sps:$4 sm:$0xff]  }
 0x7ea   : > { %13892 = vmatprep.subr.bf16.mxu1 %v16897_v24  ;;  %v16981_v14 = vld [vmem:[%s20541_s3 + $0x74c] ss:$16 sps:$4 sm:$0xff]   ;;  %v16976_v24 = vld [vmem:[%s20541_s3 + $0x548] ss:$16 sps:$4 sm:$0xff]  }
 0x7ec   : > { %13850 = vmatpush2.bf16.msra.mxu0 %v16892_v21  ;;  %v16979_v21 = vld [vmem:[%s20541_s3 + $0x748] ss:$16 sps:$4 sm:$0xff]  }
 0x7ed   : > { %13893 = vmatpush2.bf16.msra.mxu1 %v16895_v4  ;;  %13905 = vmatprep.subr.bf16.mxu0 %v16900_v43  ;;  %v16984_v4 = vld [vmem:[%s20541_s3 + $0x52c] ss:$16 sps:$4 sm:$0xff]  }
 0x7ee   : > { %13948 = vmatprep.subr.bf16.mxu1 %v16903_v18  ;;  %v16987_v43 = vld [vmem:[%s20541_s3 + $0x72c] ss:$16 sps:$4 sm:$0xff]   ;;  %v16982_v18 = vld [vmem:[%s20541_s3 + $0x528] ss:$16 sps:$4 sm:$0xff]  }
 0x7ef   : > { %13852 = vmatmul.mubr.bf16.vlgmr.msra.gmra.mxu0 %v19693_v10  ;;  %v16915_v10 = vld [vmem:[%s20541_s3 + $0x6ac] ss:$16 sps:$4 sm:$0xff]  }
 0x7f0   : > { %13895 = vmatmul.mubr.bf16.vlgmr.msra.gmra.mxu1 %v19695_v7  ;;  %13906 = vmatpush1.bf16.msra.mxu0 %v16898_v52  ;;  %v16910_v7 = vld [vmem:[%s20541_s3 + $0x4a8] ss:$16 sps:$4 sm:$0xff]  }
 0x7f1   : > { %13949 = vmatpush1.bf16.msra.mxu1 %v16901_v12  ;;  %13907 = vmatprep.subr.bf16.mxu0 %v16906_v3  ;;  %v16985_v52 = vld [vmem:[%s20541_s3 + $0x728] ss:$16 sps:$4 sm:$0xff]   ;;  %v16990_v12 = vld [vmem:[%s20541_s3 + $0x50c] ss:$16 sps:$4 sm:$0xff]  }
 0x7f2   : > { %13950 = vmatprep.subr.bf16.mxu1 %v16909_v58  ;;  %13937 = vmatprep.mubr.bf16.mxu0 %v19811_v38  ;;  %v16921_v38 = vld [vmem:[%s20541_s3 + $0x68c] ss:$16 sps:$4 sm:$0xff]   ;;  %v16988_v58 = vld [vmem:[%s20541_s3 + $0x508] ss:$16 sps:$4 sm:$0xff]  }
 0x7f3   : > { %13980 = vmatprep.mubr.bf16.mxu1 %v19813_v16  ;;  %v16916_v16 = vld [vmem:[%s20541_s3 + $0x488] ss:$16 sps:$4 sm:$0xff]   ;;  %v16993_v3 = vld [vmem:[%s20541_s3 + $0x70c] ss:$16 sps:$4 sm:$0xff]  }
 0x7f4   : > { %13908 = vmatpush1.bf16.msra.mxu0 %v16904_v53  ;;  %v16991_v53 = vld [vmem:[%s20541_s3 + $0x708] ss:$16 sps:$4 sm:$0xff]  }
 0x7f5   : > { %13951 = vmatpush1.bf16.msra.mxu1 %v16907_v0  ;;  %13909 = vmatprep.subr.bf16.mxu0 %v16912_v56  ;;  %v16996_v0 = vld [vmem:[%s20543_s5 + $0x74] ss:$8 sps:$4 sm:$0xff]   ;;  %v16994_v56 = vld [vmem:[%s20543_s5 + $0x70] ss:$8 sps:$4 sm:$0xff]  }
 0x7f6   : > { %13952 = vmatprep.subr.bf16.mxu1 %v16915_v10  ;;  %v16999_v10 = vld [vmem:[%s20543_s5 + $0x64] ss:$8 sps:$4 sm:$0xff]  }
 0x7f8   : > { %13910 = vmatpush1.bf16.msra.mxu0 %v16910_v7  ;;  %v16997_v7 = vld [vmem:[%s20543_s5 + $0x60] ss:$8 sps:$4 sm:$0xff]  }
 0x7f9   : > { %13953 = vmatpush1.bf16.msra.mxu1 %v16913_v51  ;;  %13911 = vmatprep.subr.bf16.mxu0 %v16918_v60  ;;  %v17002_v51 = vld [vmem:[%s20543_s5 + $0x54] ss:$8 sps:$4 sm:$0xff]   ;;  %v17000_v60 = vld [vmem:[%s20543_s5 + $0x50] ss:$8 sps:$4 sm:$0xff]  }
 0x7fa   : > { %13954 = vmatprep.subr.bf16.mxu1 %v16921_v38  ;;  %v17042_v38 = vld [vmem:[%s20543_s5 + $0x170] ss:$8 sps:$4 sm:$0xff]  }
 0x7fc   : > { %13912 = vmatpush1.bf16.msra.mxu0 %v16916_v16  ;;  %v17044_v16 = vld [vmem:[%s20543_s5 + $0x174] ss:$8 sps:$4 sm:$0xff]  }
 0x7fd   : > { %13955 = vmatpush1.bf16.msra.mxu1 %v16919_v57  ;;  %13913 = vmatprep.subr.bf16.mxu0 %v16924_v42  ;;  %v17008_v57 = vld [vmem:[%s20543_s5 + $0x34] ss:$8 sps:$4 sm:$0xff]   ;;  %v17047_v42 = vld [vmem:[%s20543_s5 + $0x164] ss:$8 sps:$4 sm:$0xff]  }
 0x7fe   : > { %13956 = vmatprep.subr.bf16.mxu1 %v16927_v30  ;;  %v17045_v30 = vld [vmem:[%s20543_s5 + $0x160] ss:$8 sps:$4 sm:$0xff]  }
 0x800   : > { %13914 = vmatpush1.bf16.msra.mxu0 %v16922_v54  ;;  %v17006_v54 = vld [vmem:[%s20543_s5 + $0x30] ss:$8 sps:$4 sm:$0xff]  }
 0x801   : > { %13957 = vmatpush1.bf16.msra.mxu1 %v16925_v61  ;;  %13915 = vmatprep.subr.bf16.mxu0 %v16930_v55  ;;  %v17050_v61 = vld [vmem:[%s20543_s5 + $0x154] ss:$8 sps:$4 sm:$0xff]   ;;  %v17011_v55 = vld [vmem:[%s20543_s5 + $0x24] ss:$8 sps:$4 sm:$0xff]  }
 0x802   : > { %13958 = vmatprep.subr.bf16.mxu1 %v16933_v59  ;;  %v17048_v59 = vld [vmem:[%s20543_s5 + $0x150] ss:$8 sps:$4 sm:$0xff]  }
 0x804   : > { %13916 = vmatpush1.bf16.msra.mxu0 %v16928_v19  ;;  %v17009_v19 = vld [vmem:[%s20543_s5 + $0x20] ss:$8 sps:$4 sm:$0xff]  }
 0x805   : > { %13959 = vmatpush1.bf16.msra.mxu1 %v16931_v47  ;;  %13917 = vmatprep.subr.bf16.mxu0 %v16936_v37  ;;  %v17053_v47 = vld [vmem:[%s20543_s5 + $0x144] ss:$8 sps:$4 sm:$0xff]   ;;  %v17014_v37 = vld [vmem:[%s20543_s5 + $0x14] ss:$8 sps:$4 sm:$0xff]  }
 0x806   : > { %13960 = vmatprep.subr.bf16.mxu1 %v16939_v62  ;;  %v17051_v62 = vld [vmem:[%s20543_s5 + $0x140] ss:$8 sps:$4 sm:$0xff]  }
 0x808   : > { %13918 = vmatpush1.bf16.msra.mxu0 %v16934_v1  ;;  %v17012_v1 = vld [vmem:[%s20543_s5 + $0x10] ss:$8 sps:$4 sm:$0xff]  }
 0x809   : > { %13961 = vmatpush1.bf16.msra.mxu1 %v16937_v6  ;;  %13919 = vmatprep.subr.bf16.mxu0 %v16942_v33  ;;  %v17056_v6 = vld [vmem:[%s20543_s5 + $0x134] ss:$8 sps:$4 sm:$0xff]   ;;  %v17017_v33 = vld [vmem:[%s20543_s5 + $0x4] ss:$8 sps:$4 sm:$0xff]  }
 0x80a   : > { %13962 = vmatprep.subr.bf16.mxu1 %v16945_v29  ;;  %v17054_v29 = vld [vmem:[%s20543_s5 + $0x130] ss:$8 sps:$4 sm:$0xff]  }
 0x80c   : > { %13920 = vmatpush1.bf16.msra.mxu0 %v16940_v28  ;;  %v17015_v28 = vld [vmem:[%s20543_s5] ss:$8 sps:$4 sm:$0xff]  }
 0x80d   : > { %13963 = vmatpush1.bf16.msra.mxu1 %v16943_v23  ;;  %13921 = vmatprep.subr.bf16.mxu0 %v16948_v32  ;;  %v17059_v23 = vld [vmem:[%s20543_s5 + $0x124] ss:$8 sps:$4 sm:$0xff]   ;;  %v17020_v32 = vld [vmem:[%s20543_s5 + $0xf4] ss:$8 sps:$4 sm:$0xff]  }
 0x80e   : > { %13964 = vmatprep.subr.bf16.mxu1 %v16951_v27  ;;  %v17057_v27 = vld [vmem:[%s20543_s5 + $0x120] ss:$8 sps:$4 sm:$0xff]  }
 0x810   : > { %13922 = vmatpush2.bf16.msra.mxu0 %v16946_v22  ;;  %v17018_v22 = vld [vmem:[%s20543_s5 + $0xf0] ss:$8 sps:$4 sm:$0xff]  }
 0x811   : > { %13965 = vmatpush2.bf16.msra.mxu1 %v16949_v35  ;;  %13923 = vmatprep.subr.bf16.mxu0 %v16954_v25  ;;  %v17062_v35 = vld [vmem:[%s20543_s5 + $0x114] ss:$8 sps:$4 sm:$0xff]   ;;  %v17023_v25 = vld [vmem:[%s20543_s5 + $0xe4] ss:$8 sps:$4 sm:$0xff]  }
 0x812   : > { %13966 = vmatprep.subr.bf16.mxu1 %v16957_v50  ;;  %v17060_v50 = vld [vmem:[%s20543_s5 + $0x110] ss:$8 sps:$4 sm:$0xff]  }
 0x814   : > { %13924 = vmatpush2.bf16.msra.mxu0 %v16952_v36  ;;  %v17021_v36 = vld [vmem:[%s20543_s5 + $0xe0] ss:$8 sps:$4 sm:$0xff]  }
 0x815   : > { %13967 = vmatpush2.bf16.msra.mxu1 %v16955_v20  ;;  %13925 = vmatprep.subr.bf16.mxu0 %v16960_v41  ;;  %v17065_v20 = vld [vmem:[%s20543_s5 + $0x104] ss:$8 sps:$4 sm:$0xff]   ;;  %v17026_v41 = vld [vmem:[%s20543_s5 + $0xd4] ss:$8 sps:$4 sm:$0xff]  }
 0x816   : > { %13968 = vmatprep.subr.bf16.mxu1 %v16963_v39  ;;  %v17063_v39 = vld [vmem:[%s20543_s5 + $0x100] ss:$8 sps:$4 sm:$0xff]  }
 0x818   : > { %13926 = vmatpush2.bf16.msra.mxu0 %v16958_v34  ;;  %v17024_v34 = vld [vmem:[%s20543_s5 + $0xd0] ss:$8 sps:$4 sm:$0xff]  }
 0x819   : > { %13969 = vmatpush2.bf16.msra.mxu1 %v16961_v11  ;;  %13927 = vmatprep.subr.bf16.mxu0 %v16966_v49  ;;  %v17068_v11 = vld [vmem:[%s20543_s5 + $0x1f4] ss:$8 sps:$4 sm:$0xff]   ;;  %v17029_v49 = vld [vmem:[%s20543_s5 + $0xc4] ss:$8 sps:$4 sm:$0xff]  }
 0x81a   : > { %13970 = vmatprep.subr.bf16.mxu1 %v16969_v8  ;;  %v17066_v8 = vld [vmem:[%s20543_s5 + $0x1f0] ss:$8 sps:$4 sm:$0xff]  }
 0x81c   : > { %13928 = vmatpush2.bf16.msra.mxu0 %v16964_v15  ;;  %v17027_v15 = vld [vmem:[%s20543_s5 + $0xc0] ss:$8 sps:$4 sm:$0xff]  }
 0x81d   : > { %13971 = vmatpush2.bf16.msra.mxu1 %v16967_v2  ;;  %13929 = vmatprep.subr.bf16.mxu0 %v16972_v26  ;;  %v17071_v2 = vld [vmem:[%s20543_s5 + $0x1e4] ss:$8 sps:$4 sm:$0xff]   ;;  %v17032_v26 = vld [vmem:[%s20543_s5 + $0xb4] ss:$8 sps:$4 sm:$0xff]  }
 0x81e   : > { %13972 = vmatprep.subr.bf16.mxu1 %v16975_v46  ;;  %v17069_v46 = vld [vmem:[%s20543_s5 + $0x1e0] ss:$8 sps:$4 sm:$0xff]  }
 0x820   : > { %13930 = vmatpush2.bf16.msra.mxu0 %v16970_v45  ;;  %v17030_v45 = vld [vmem:[%s20543_s5 + $0xb0] ss:$8 sps:$4 sm:$0xff]  }
 0x821   : > { %13973 = vmatpush2.bf16.msra.mxu1 %v16973_v44  ;;  %13931 = vmatprep.subr.bf16.mxu0 %v16978_v13  ;;  %v17074_v44 = vld [vmem:[%s20543_s5 + $0x1d4] ss:$8 sps:$4 sm:$0xff]   ;;  %v17035_v13 = vld [vmem:[%s20543_s5 + $0xa4] ss:$8 sps:$4 sm:$0xff]  }
 0x822   : > { %13974 = vmatprep.subr.bf16.mxu1 %v16981_v14  ;;  %v17072_v14 = vld [vmem:[%s20543_s5 + $0x1d0] ss:$8 sps:$4 sm:$0xff]  }
 0x824   : > { %13932 = vmatpush2.bf16.msra.mxu0 %v16976_v24  ;;  %v17033_v24 = vld [vmem:[%s20543_s5 + $0xa0] ss:$8 sps:$4 sm:$0xff]  }
 0x825   : > { %13975 = vmatpush2.bf16.msra.mxu1 %v16979_v21  ;;  %13933 = vmatprep.subr.bf16.mxu0 %v16984_v4  ;;  %v17077_v21 = vld [vmem:[%s20543_s5 + $0x1c4] ss:$8 sps:$4 sm:$0xff]  }
 0x826   : > { %13976 = vmatprep.subr.bf16.mxu1 %v16987_v43 }
 0x828   : > { %13934 = vmatpush2.bf16.msra.mxu0 %v16982_v18  ;;  %v17038_v18 = vld [vmem:[%s20543_s5 + $0x94] ss:$8 sps:$4 sm:$0xff]  }
 0x829   : > { %13977 = vmatpush2.bf16.msra.mxu1 %v16985_v52  ;;  %13935 = vmatprep.subr.bf16.mxu0 %v16990_v12  ;;  %v17075_v52 = vld [vmem:[%s20543_s5 + $0x1c0] ss:$8 sps:$4 sm:$0xff]   ;;  %v17036_v12 = vld [vmem:[%s20543_s5 + $0x90] ss:$8 sps:$4 sm:$0xff]  }
 0x82a   : > { %13978 = vmatprep.subr.bf16.mxu1 %v16993_v3  ;;  %v20462_v3 = vld [vmem:[%s20542_s4] sm:$0xf] }
 0x82c   : > { %13936 = vmatpush2.bf16.msra.mxu0 %v16988_v58 }
 0x82d   : > { %13979 = vmatpush2.bf16.msra.mxu1 %v16991_v53  ;;  %14415 = vmatprep.subr.bf16.mxu0 %v16996_v0  ;;  %v17041_v0 = vld [vmem:[%s20543_s5 + $0x84] ss:$8 sps:$4 sm:$0xff]  }
 0x82e   : > { %14458 = vmatprep.subr.bf16.mxu1 %v17044_v16 }
 0x82f   : > { %13938 = vmatmul.mubr.bf16.vlgmr.msra.gmra.mxu0 %v19905_v17  ;;  %v17005_v17 = vld [vmem:[%s20543_s5 + $0x44] ss:$8 sps:$4 sm:$0xff]   ;;  %v13681_v4 = vpop.f32.mrf.mxu0 }
 0x830   : > { %13981 = vmatmul.mubr.bf16.vlgmr.msra.gmra.mxu1 %v19907_v9  ;;  %14416 = vmatpush1.bf16.msra.mxu0 %v16994_v56  ;;  %v17003_v9 = vld [vmem:[%s20543_s5 + $0x40] ss:$8 sps:$4 sm:$0xff]   ;;  %v13724_v43 = vpop.f32.mrf.mxu1  ;;  %v12350_v56 = vrot.slane %v20462_v3, %v19601_v48 }
 0x831   : > { %14417 = vmatprep.subr.bf16.mxu0 %v16999_v10  ;;  %14459 = vmatpush1.bf16.msra.mxu1 %v17042_v38  ;;  %v13683_v58 = vpop.f32.mrf.mxu0  ;;  %v12354_v10 = vrot.slane %v20462_v3, %v19594_v5 }
 0x832   : > { %14460 = vmatprep.subr.bf16.mxu1 %v17047_v42  ;;  %v13726_v53 = vpop.f32.mrf.mxu1 }
 0x834   : > { %14418 = vmatpush1.bf16.msra.mxu0 %v16997_v7  ;;  %v17039_v7 = vld [vmem:[%s20543_s5 + $0x80] ss:$8 sps:$4 sm:$0xff]  }
 0x835   : > { %14419 = vmatprep.subr.bf16.mxu0 %v17002_v51  ;;  %14461 = vmatpush1.bf16.msra.mxu1 %v17045_v30  ;;  %v13685_v51 = vpop.f32.mrf.mxu0 }
 0x836   : > { %14462 = vmatprep.subr.bf16.mxu1 %v17050_v61 }
 0x837   : > { %v13687_v38 = vpop.f32.mrf.mxu0 }
 0x838   : > { %14420 = vmatpush1.bf16.msra.mxu0 %v17000_v60  ;;  %v13728_v60 = vpop.f32.mrf.mxu1 }
 0x839   : > { %14421 = vmatprep.subr.bf16.mxu0 %v17005_v17  ;;  %14463 = vmatpush1.bf16.msra.mxu1 %v17048_v59  ;;  %v13682_v17 = vadd.f32 %v13681_v4, %v12350_v56  ;;  %v17078_v59 = vld [vmem:[%s20543_s5 + $0x1b0] ss:$8 sps:$4 sm:$0xff]  }
 0x83a   : > { %14464 = vmatprep.subr.bf16.mxu1 %v17053_v47  ;;  %v13730_v16 = vpop.f32.mrf.mxu1 }
 0x83b   : > { %v13725_v61 = vadd.f32 %v13724_v43, %v13682_v17 }
 0x83c   : > { %14422 = vmatpush1.bf16.msra.mxu0 %v17003_v9  ;;  %v13684_v9 = vadd.f32 %v13683_v58, %v12354_v10 }
 0x83d   : > { %14423 = vmatprep.subr.bf16.mxu0 %v17008_v57  ;;  %14465 = vmatpush1.bf16.msra.mxu1 %v17051_v62  ;;  %v13686_v57 = vadd.f32 %v13685_v51, %v12350_v56 }
 0x83e   : > { %14466 = vmatprep.subr.bf16.mxu1 %v17056_v6 }
 0x83f   : > { %v13729_v62 = vadd.f32 %v13728_v60, %v13686_v57 }
 0x840   : > { %14424 = vmatpush1.bf16.msra.mxu0 %v17006_v54  ;;  %v17080_v54 = vld [vmem:[%s20543_s5 + $0x1b4] ss:$8 sps:$4 sm:$0xff]  }
 0x841   : > { %14425 = vmatprep.subr.bf16.mxu0 %v17011_v55  ;;  %14467 = vmatpush1.bf16.msra.mxu1 %v17054_v29  ;;  %v13727_v55 = vadd.f32 %v13726_v53, %v13684_v9  ;;  %v17083_v29 = vld [vmem:[%s20543_s5 + $0x1a4] ss:$8 sps:$4 sm:$0xff]  }
 0x842   : > { %14468 = vmatprep.subr.bf16.mxu1 %v17059_v23 }
 0x844   : > { %14426 = vmatpush1.bf16.msra.mxu0 %v17009_v19  ;;  %v13688_v19 = vadd.f32 %v13687_v38, %v12354_v10 }
 0x845   : > { %14427 = vmatprep.subr.bf16.mxu0 %v17014_v37  ;;  %14469 = vmatpush1.bf16.msra.mxu1 %v17057_v27 }
 0x846   : > { %14470 = vmatprep.subr.bf16.mxu1 %v17062_v35  ;;  %v13731_v27 = vadd.f32 %v13730_v16, %v13688_v19 }
 0x848   : > { %14428 = vmatpush1.bf16.msra.mxu0 %v17012_v1 }
 0x849   : > { %14429 = vmatprep.subr.bf16.mxu0 %v17017_v33  ;;  %14471 = vmatpush1.bf16.msra.mxu1 %v17060_v50 }
 0x84a   : > { %14472 = vmatprep.subr.bf16.mxu1 %v17065_v20  ;;  %v17086_v20 = vld [vmem:[%s20543_s5 + $0x194] ss:$8 sps:$4 sm:$0xff]  }
 0x84c   : > { %14430 = vmatpush1.bf16.msra.mxu0 %v17015_v28 }
 0x84d   : > { %14431 = vmatprep.subr.bf16.mxu0 %v17020_v32  ;;  %14473 = vmatpush1.bf16.msra.mxu1 %v17063_v39  ;;  %v17081_v32 = vld [vmem:[%s20543_s5 + $0x1a0] ss:$8 sps:$4 sm:$0xff]  }
 0x84e   : > { %14474 = vmatprep.subr.bf16.mxu1 %v17068_v11 }
 0x850   : > { %14432 = vmatpush2.bf16.msra.mxu0 %v17018_v22 }
 0x851   : > { %14433 = vmatprep.subr.bf16.mxu0 %v17023_v25  ;;  %14475 = vmatpush2.bf16.msra.mxu1 %v17066_v8 }
 0x852   : > { %14476 = vmatprep.subr.bf16.mxu1 %v17071_v2  ;;  %v17087_v2 = vld [vmem:[%s20543_s5 + $0x180] ss:$8 sps:$4 sm:$0xff]  }
 0x854   : > { %14434 = vmatpush2.bf16.msra.mxu0 %v17021_v36 }
 0x855   : > { %14435 = vmatprep.subr.bf16.mxu0 %v17026_v41  ;;  %14477 = vmatpush2.bf16.msra.mxu1 %v17069_v46  ;;  %v17089_v46 = vld [vmem:[%s20543_s5 + $0x184] ss:$8 sps:$4 sm:$0xff]  }
 0x856   : > { %14478 = vmatprep.subr.bf16.mxu1 %v17074_v44 }
 0x858   : > { %14436 = vmatpush2.bf16.msra.mxu0 %v17024_v34  ;;  %v17084_v34 = vld [vmem:[%s20543_s5 + $0x190] ss:$8 sps:$4 sm:$0xff]  }
 0x859   : > { %14437 = vmatprep.subr.bf16.mxu0 %v17029_v49  ;;  %14479 = vmatpush2.bf16.msra.mxu1 %v17072_v14 }
 0x85a   : > { %14480 = vmatprep.subr.bf16.mxu1 %v17077_v21 }
 0x85c   : > { %14438 = vmatpush2.bf16.msra.mxu0 %v17027_v15 }
 0x85d   : > { %14439 = vmatprep.subr.bf16.mxu0 %v17032_v26  ;;  %14481 = vmatpush2.bf16.msra.mxu1 %v17075_v52  ;;  %v12358_v52 = vrot.slane %v20462_v3, %v11987_v40 }
 0x85e   : > { %14482 = vmatprep.subr.bf16.mxu1 %v17080_v54 }
 0x860   : > { %14440 = vmatpush2.bf16.msra.mxu0 %v17030_v45 }
 0x861   : > { %14441 = vmatprep.subr.bf16.mxu0 %v17035_v13  ;;  %14483 = vmatpush2.bf16.msra.mxu1 %v17078_v59 }
 0x862   : > { %14484 = vmatprep.subr.bf16.mxu1 %v17083_v29 }
 0x864   : > { %14442 = vmatpush2.bf16.msra.mxu0 %v17033_v24 }
 0x865   : > { %14443 = vmatprep.subr.bf16.mxu0 %v17038_v18  ;;  %14485 = vmatpush2.bf16.msra.mxu1 %v17081_v32 }
 0x866   : > { %14486 = vmatprep.subr.bf16.mxu1 %v17086_v20 }
 0x868   : > { %14444 = vmatpush2.bf16.msra.mxu0 %v17036_v12  ;;  %v12362_v12 = vrot.slane %v20462_v3, %v11991_v63 }
 0x869   : > { %14445 = vmatprep.subr.bf16.mxu0 %v17041_v0  ;;  %14487 = vmatpush2.bf16.msra.mxu1 %v17084_v34 }
 0x86a   : > { %14488 = vmatprep.subr.bf16.mxu1 %v17089_v46 }
 0x86c   : > { %14446 = vmatpush2.bf16.msra.mxu0 %v17039_v7 }
 0x86d   : > { %14489 = vmatpush2.bf16.msra.mxu1 %v17087_v2 }
 0x86f   : > { %v13767_v42 = vpop.f32.mrf.mxu0 }
 0x870   : > { %v13810_v30 = vpop.f32.mrf.mxu1  ;;  %v13768_v1 = vadd.f32 %v13767_v42, %v13725_v61 }
 0x871   : > { %v13769_v47 = vpop.f32.mrf.mxu0 }
 0x872   : > { %v13812_v37 = vpop.f32.mrf.mxu1  ;;  %v13770_v6 = vadd.f32 %v13769_v47, %v13727_v55  ;;  %v13811_v25 = vadd.f32 %v13810_v30, %v13768_v1 }
 0x873   : > { %v13771_v33 = vpop.f32.mrf.mxu0 }
 0x874   : > { %v13772_v28 = vadd.f32 %v13771_v33, %v13729_v62  ;;  %v13814_v23 = vpop.f32.mrf.mxu1  ;;  %v13813_v22 = vadd.f32 %v13812_v37, %v13770_v6  ;;  %v13999_v8 = vmul.f32 0.2, %v13811_v25  ;;  %vm13991_vm2 = vcmp.gt.f32.partialorder %v13811_v25, 0.0 }
 0x875   : > { %v13773_v35 = vpop.f32.mrf.mxu0 }
 0x876   : > { %v13815_v50 = vadd.f32 %v13814_v23, %v13772_v28  ;;  %v13774_v36 = vadd.f32 %v13773_v35, %v13731_v27  ;;  %v13816_v39 = vpop.f32.mrf.mxu1  ;;  %v14000_v11 = vmul.f32 0.2, %v13813_v22  ;;  %vm13992_vm1 = vcmp.gt.f32.partialorder %v13813_v22, 0.0 }
 0x877   : > { %v14007_v13 = vsel %vm13991_vm2, %v13811_v25, %v13999_v8 }
 0x878   : > { %v14003_v41 = vmul.f32 0.2, %v13815_v50  ;;  %vm13995_vm0 = vcmp.gt.f32.partialorder %v13815_v50, 0.0  ;;  %v13817_v49 = vadd.f32 %v13816_v39, %v13774_v36  ;;  %v14008_v45 = vsel %vm13992_vm1, %v13813_v22, %v14000_v11  ;;  %v14083_v36 = vld [vmem:[%s20544_s6] sm:$0x3] }
 0x879   : > { %v14092_v39 = vrot.slane %v14083_v36, %v19594_v5 }
 0x87a   : > { %vm13996_vm3 = vcmp.gt.f32.partialorder %v13817_v49, 0.0  ;;  %v14004_v15 = vmul.f32 0.2, %v13817_v49  ;;  %v14011_v26 = vsel %vm13995_vm0, %v13815_v50, %v14003_v41  ;;  %v14088_v41 = vrot.slane %v14083_v36, %v19601_v48 }
 0x87b   : > { %v14015_v24 = vpack.c.bf16 %v14011_v26, %v14007_v13  ;;  %v14513_v26 = vld [vmem:[%s20545_s7] sm:$0x3] }
 0x87c   : > { %v14012_v44 = vsel %vm13996_vm3, %v13817_v49, %v14004_v15 }
 0x87d   : > { %v14016_v14 = vpack.c.bf16 %v14012_v44, %v14008_v45 }
 0x87f   : > { %14447 = vmatprep.mubr.bf16.mxu0 %v14016_v14 }
 0x880   : > { %14448 = vmatmul.mubr.bf16.vlgmr.msra.gmra.mxu0 %v14015_v24 }
 0x8af   : > { %v13853_v21 = vpop.f32.mrf.mxu0 }
 0x8b0   : > { %v13896_v4 = vpop.f32.mrf.mxu1  ;;  %v13854_v0 = vadd.f32 %v13853_v21, %v12358_v52  ;;  %v14518_v21 = vrot.slane %v14513_v26, %v19601_v48 }
 0x8b1   : > { %v13855_v43 = vpop.f32.mrf.mxu0 }
 0x8b2   : > { %v13898_v18 = vpop.f32.mrf.mxu1  ;;  %v13856_v56 = vadd.f32 %v13855_v43, %v12362_v12  ;;  %v13897_v9 = vadd.f32 %v13896_v4, %v13854_v0  ;;  %v14522_v4 = vrot.slane %v14513_v26, %v19594_v5 }
 0x8b3   : > { %v13857_v58 = vpop.f32.mrf.mxu0 }
 0x8b4   : > { %v13900_v53 = vpop.f32.mrf.mxu1  ;;  %v13858_v51 = vadd.f32 %v13857_v58, %v12358_v52  ;;  %v13899_v38 = vadd.f32 %v13898_v18, %v13856_v56 }
 0x8b5   : > { %v13859_v10 = vpop.f32.mrf.mxu0 }
 0x8b6   : > { %v13902_v7 = vpop.f32.mrf.mxu1  ;;  %v13860_v16 = vadd.f32 %v13859_v10, %v12362_v12  ;;  %v13901_v30 = vadd.f32 %v13900_v53, %v13858_v51 }
 0x8b8   : > { %v13903_v3 = vadd.f32 %v13902_v7, %v13860_v16 }
 0x8ef   : > { %v13939_v60 = vpop.f32.mrf.mxu0 }
 0x8f0   : > { %v13982_v17 = vpop.f32.mrf.mxu1  ;;  %v13940_v40 = vadd.f32 %v13939_v60, %v13897_v9 }
 0x8f1   : > { %v13941_v57 = vpop.f32.mrf.mxu0 }
 0x8f2   : > { %v13984_v42 = vpop.f32.mrf.mxu1  ;;  %v13942_v54 = vadd.f32 %v13941_v57, %v13899_v38  ;;  %v13983_v19 = vadd.f32 %v13982_v17, %v13940_v40  ;;  %v16542_v38 = vld [vmem:[#allocation3] ss:$0 sm:$0xff] }
 0x8f3   : > { %v13943_v31 = vpop.f32.mrf.mxu0 }
 0x8f4   : > { %v13944_v61 = vadd.f32 %v13943_v31, %v13901_v30  ;;  %v13986_v63 = vpop.f32.mrf.mxu1  ;;  %v13985_v55 = vadd.f32 %v13984_v42, %v13942_v54  ;;  %v14001_v29 = vmul.f32 0.2, %v13983_v19  ;;  %vm13993_vm6 = vcmp.gt.f32.partialorder %v13983_v19, 0.0 }
 0x8f5   : > { %v13945_v59 = vpop.f32.mrf.mxu0 }
 0x8f6   : > { %v13987_v47 = vadd.f32 %v13986_v63, %v13944_v61  ;;  %v13946_v37 = vadd.f32 %v13945_v59, %v13903_v3  ;;  %v13988_v1 = vpop.f32.mrf.mxu1  ;;  %v14002_v6 = vmul.f32 0.2, %v13985_v55  ;;  %vm13994_vm5 = vcmp.gt.f32.partialorder %v13985_v55, 0.0 }
 0x8f7   : > { %v14009_v22 = vsel %vm13993_vm6, %v13983_v19, %v14001_v29 }
 0x8f8   : > { %v14005_v62 = vmul.f32 0.2, %v13987_v47  ;;  %vm13997_vm4 = vcmp.gt.f32.partialorder %v13987_v47, 0.0  ;;  %v13989_v33 = vadd.f32 %v13988_v1, %v13946_v37  ;;  %v14010_v32 = vsel %vm13994_vm5, %v13985_v55, %v14002_v6 }
 0x8fa   : > { %vm13998_vm7 = vcmp.gt.f32.partialorder %v13989_v33, 0.0  ;;  %v14006_v28 = vmul.f32 0.2, %v13989_v33  ;;  %v14013_v23 = vsel %vm13997_vm4, %v13987_v47, %v14005_v62 }
 0x8fb   : > { %v14017_v25 = vpack.c.bf16 %v14013_v23, %v14009_v22 }
 0x8fc   : > { %v14014_v27 = vsel %vm13998_vm7, %v13989_v33, %v14006_v28 }
 0x8fd   : > { %v14018_v35 = vpack.c.bf16 %v14014_v27, %v14010_v32 }
 0x8ff   : > { %14490 = vmatprep.mubr.bf16.mxu1 %v14018_v35 }
 0x900   : > { %14491 = vmatmul.mubr.bf16.vlgmr.msra.gmra.mxu1 %v14017_v25 }
 0x940   : > { %v14449_v50 = vpop.f32.mrf.mxu0 }
 0x941   : > { %v14450_v11 = vadd.f32 %v14449_v50, %v14088_v41 }
 0x942   : > { %v14451_v20 = vpop.f32.mrf.mxu0 }
 0x943   : > { %v14452_v8 = vadd.f32 %v14451_v20, %v14092_v39 }
 0x944   : > { %v14453_v34 = vpop.f32.mrf.mxu0 }
 0x945   : > { %v14454_v45 = vadd.f32 %v14453_v34, %v14088_v41 }
 0x946   : > { %v14455_v15 = vpop.f32.mrf.mxu0 }
 0x947   : > { %v14456_v14 = vadd.f32 %v14455_v15, %v14092_v39 }
 0x9c0   : > { %v14492_v49 = vpop.f32.mrf.mxu1 }
 0x9c1   : > { %v14493_v2 = vadd.f32 %v14492_v49, %v14450_v11 }
 0x9c2   : > { %v14494_v46 = vpop.f32.mrf.mxu1 }
 0x9c3   : > { %vm14501_vm8 = vcmp.gt.f32.partialorder %v14493_v2, 0.0  ;;  %v14505_v44 = vmul.f32 0.2, %v14493_v2  ;;  %v14495_v13 = vadd.f32 %v14494_v46, %v14452_v8 }
 0x9c4   : > { %v14496_v24 = vpop.f32.mrf.mxu1 }
 0x9c5   : > { %vm14502_vm9 = vcmp.gt.f32.partialorder %v14495_v13, 0.0  ;;  %v14506_v43 = vmul.f32 0.2, %v14495_v13  ;;  %v14497_v18 = vadd.f32 %v14496_v24, %v14454_v45  ;;  %v14509_v52 = vsel %vm14501_vm8, %v14493_v2, %v14505_v44 }
 0x9c6   : > { %v14498_v12 = vpop.f32.mrf.mxu1  ;;  %v14525_v56 = vmul.f32 %v14518_v21, %v14509_v52 }
 0x9c7   : > { %vm14503_vm10 = vcmp.gt.f32.partialorder %v14497_v18, 0.0  ;;  %v14507_v58 = vmul.f32 0.2, %v14497_v18  ;;  %v14499_v53 = vadd.f32 %v14498_v12, %v14456_v14  ;;  %v14510_v0 = vsel %vm14502_vm9, %v14495_v13, %v14506_v43 }
 0x9c8   : > { %v14526_v10 = vmul.f32 %v14522_v4, %v14510_v0 }
 0x9c9   : > { %vm14504_vm11 = vcmp.gt.f32.partialorder %v14499_v53, 0.0  ;;  %v14508_v7 = vmul.f32 0.2, %v14499_v53  ;;  %v14511_v51 = vsel %vm14503_vm10, %v14497_v18, %v14507_v58 }
 0x9ca   : > { %v14529_v60 = vadd.f32 %v14526_v10, %v14525_v56  ;;  %v14527_v48 = vmul.f32 %v14518_v21, %v14511_v51 }
 0x9cb   : > { %v14512_v17 = vsel %vm14504_vm11, %v14499_v53, %v14508_v7 }
 0x9cc   : > { %14530 = vadd.xlane.f32.xlu0 %v14529_v60  ;;  %v14528_v9 = vmul.f32 %v14522_v4, %v14512_v17 }
 0x9ce   : > { %v14532_v5 = vadd.f32 %v14528_v9, %v14527_v48 }
 0x9d0   : > { %14533 = vadd.xlane.f32.xlu0 %v14532_v5 }
 0xa55   : > { %v14531_v16 = vpop.xlane.xlu0 %14530 }
 0xa56   : > { %v14542_v57 = vadd.f32 %v16542_v38, %v14531_v16 }
 0xa58   : > { %v16543_v42 = vmul.f32 -1.442695, %v14542_v57 }
 0xa59   : > { %v14534_v30 = vpop.xlane.xlu0 %14533 }
 0xa5a   : > { %17090 = vpow2.f32 %v16543_v42  ;;  %v14543_v40 = vadd.f32 %v16542_v38, %v14534_v30 }
 0xa5c   : > { %v16544_v54 = vmul.f32 -1.442695, %v14543_v40 }
 0xa5e   : > { %17092 = vpow2.f32 %v16544_v54 }
 0xa67   : > { %v17091_v31 = vpop.eup %17090 }
 0xa68   : > { %v14550_v61 = vadd.f32 1.0, %v17091_v31 }
 0xa6a   : > { %17094 = vrcp.f32 %v14550_v61 }
 0xa6b   : > { %v17093_v63 = vpop.eup %17092 }
 0xa6c   : > { %v14551_v3 = vadd.f32 1.0, %v17093_v63 }
 0xa6e   : > { %17096 = vrcp.f32 %v14551_v3 }
 0xa77   : > { %v17095_v55 = vpop.eup %17094 }
 0xa78   : > { %14557 = vst.msk [vmem:[%s20547_s9] sm:$0xff] %vm14556_vm12, %v17095_v55 }
 0xa7b   : > { %v17097_v59 = vpop.eup %17096 }
 0xa7c   : > { %14558 = vst.msk [vmem:[%s20547_s9 + $0x8] sm:$0xff] %vm14556_vm12, %v17097_v59 }
 0xa7d PF: > { %s24_s16 = sadd.s32 1, %s17174_s16   ;;  %s20590_s11 = smov %s17158_s12 }
 0xa7e   : > { %p21_p7 = scmp.ge.s32.totalorder %s24_s16, 51   ;;  %s20591_s12 = smov %s17162_s13 }
 0xa7f   : > { %s20592_s13 = smov %s17281_s22  ;;  %s20593_s14 = smov %s17170_s15 }
 0xa80   : > { %s20594_s15 = smov %s20596_s17  ;;  %23 = sbr.rel (!%p21_p7) target bundleno = 7 (0x7), region = 135 }
 0xa85   :  { %14581 = vsyncpa [#allocation6], 1 }
 0xa86   :  { %14583 = vsyncpa [#allocation6 + $0x1], 1 }

</bundles_post_ra>
